<compile_context>
chip_gen: v7x
topology: tpu7x:2x2x1
jax: 0.10.0
libtpu: 0.0.40
codegen_flags: <defaults>
</compile_context>

<pallas_src>
import jax
import jax.numpy as jnp
from jax.experimental import pallas as pl
from jax.experimental.pallas import tpu as pltpu


def _multiloss_kernel(x_ref, w_ref, b_ref, sep_ref, out_ref):
    """One grid cell = one (row-block, time-tile).

    x_ref:   (RB, F, TT)     mixture rows (freq on sublanes, time on lanes)
    w_ref:   (S, F, F)       pre-transposed mask-predictor weights (resident)
    b_ref:   (S, F, 1)       bias, f32 (resident)
    sep_ref: (S, RB, F, TT)  per-instrument target rows
    out_ref: (8, TT)         f32 vreg-shaped partial sums for this grid cell
    """
    S, RB, F, TT = sep_ref.shape
    acc = jnp.zeros((8, TT), jnp.float32)
    # Row / instrument loops are fully unrolled (static trip count RB*S <= 16,
    # equivalent to lax.fori_loop(..., unroll=True)); all Ref indices stay static.
    for r in range(RB):
        x = x_ref[r]                                            # (F, TT), streamed dtype
        for i in range(S):
            # Per-instrument (F,F)@(F,TT) dot: same total MXU cost as one fused
            # (S*F,F)@(F,TT) dot, but keeps the post-matmul working set at
            # (F,TT) instead of (S*F,TT) f32 (v7x VMEM-traffic fix).
            logits = jnp.dot(w_ref[i], x, preferred_element_type=jnp.float32)
            logits = logits + b_ref[i]                          # (F,1) lane-broadcast add
            pred = jax.nn.sigmoid(logits.astype(jnp.bfloat16))  # bf16 EUP on v6e/v7x
            diff = jnp.abs(pred * x - sep_ref[i, r])            # bf16 mask-apply + L1
            # VPU-only fold of the frequency axis into 8 sublanes; f32 accumulation.
            acc = acc + jnp.sum(
                diff.astype(jnp.float32).reshape(F // 8, 8, TT), axis=0)
    out_ref[...] = acc


def _vmem_capacity_bytes():
    """Per-core VMEM capacity; conservative (v7x, 64 MiB) fallback if unavailable."""
    try:
        return int(pltpu.get_tpu_info().vmem_capacity_bytes)
    except Exception:
        return 64 * 1024 * 1024


def _pick_tiles(BC, Fq, T, S, itemsize, budget_bytes):
    """Largest (row-block RB, time-tile TT) whose VMEM footprint fits the budget."""
    tt_cands = [tt for tt in (2048, 1024, 512, 256, 128) if T % tt == 0]
    if not tt_cands:
        # Legal (block dim == full array dim) but lane-masked stores: perf edge case.
        tt_cands = [T]
    resident = S * Fq * Fq * itemsize + S * Fq * 128 * 4   # W + lane-padded f32 bias
    for TT in tt_cands:                                    # prefer the widest time tile
        for RB in (4, 2, 1):                               # then the tallest row block
            if BC % RB:
                continue
            stream = 2 * ((1 + S) * RB * Fq * TT * itemsize + 8 * TT * 4)  # 2x buffered
            temps = 16 * Fq * TT                           # logits/pred/prod/diff chain
            if stream + resident + temps <= budget_bytes:
                return RB, TT
    return 1, tt_cands[-1]


def multi_loss(mix_stft_mag, separate_stft_mag, W, b):
    """mix_stft_mag:      (B, C, F, T)
    separate_stft_mag: (S, B, C, F, T)
    W: (S, F, F)  per-instrument mask-predictor weights (x @ W_i orientation)
    b: (S, F)     per-instrument bias
    returns scalar f32: (1/S) * sum_i mean |sigmoid(W_i^T x + b_i) * x - sep_i|
    """
    B, C, Fq, T = mix_stft_mag.shape
    S = W.shape[0]
    assert separate_stft_mag.shape == (S, B, C, Fq, T)

    itemsize = jnp.dtype(mix_stft_mag.dtype).itemsize
    min_sub = 8 * (4 // itemsize)            # 8 for f32, 16 for bf16 (min sublane tile)
    assert Fq % min_sub == 0, (
        f"frequency axis must be a multiple of {min_sub} for {mix_stft_mag.dtype}")
    BC = B * C

    cap = _vmem_capacity_bytes()
    RB, TT = _pick_tiles(BC, Fq, T, S, itemsize, budget_bytes=cap // 2)
    NBC, NT = BC // RB, T // TT

    # Free (contiguous) reshapes -- no HBM transpose of the streamed tensors.
    x = mix_stft_mag.reshape(BC, Fq, T)
    sep = separate_stft_mag.reshape(S, BC, Fq, T)

    # Tiny per-instrument weights, pre-transposed so logits_i = W_i^T @ x_(F,T)
    # contracts over frequency with time on the lane axis; bias kept in f32.
    w_stack = jnp.transpose(W, (0, 2, 1)).astype(x.dtype)      # (S, F, F)
    b_stack = b.reshape(S, Fq, 1).astype(jnp.float32)          # (S, F, 1)

    def _resident_spec(block_shape, index_map):
        # Resident (constant index_map) operands: single-buffer when supported.
        try:
            return pl.BlockSpec(block_shape, index_map, pipeline_mode=pl.Buffered(1))
        except (TypeError, AttributeError):
            return pl.BlockSpec(block_shape, index_map)

    partials = pl.pallas_call(
        _multiloss_kernel,
        out_shape=jax.ShapeDtypeStruct((NBC, NT, 8, TT), jnp.float32),
        grid_spec=pltpu.PrefetchScalarGridSpec(
            num_scalar_prefetch=0,
            grid=(NBC, NT),
            in_specs=[
                pl.BlockSpec((RB, Fq, TT), lambda r, t: (r, 0, t)),        # mixture rows
                _resident_spec((S, Fq, Fq), lambda r, t: (0, 0, 0)),       # W (resident)
                _resident_spec((S, Fq, 1), lambda r, t: (0, 0, 0)),        # b (resident)
                pl.BlockSpec((S, RB, Fq, TT), lambda r, t: (0, r, 0, t)),  # target rows
            ],
            out_specs=pl.BlockSpec((None, None, 8, TT), lambda r, t: (r, t, 0, 0)),
        ),
        compiler_params=pltpu.CompilerParams(
            dimension_semantics=("parallel", "parallel"),
            # Tiles are budgeted against the device's VMEM (64 MiB/core on v7x,
            # 128 MiB on v5e/v6e); raise the scoped limit to match.
            vmem_limit_bytes=min(cap * 3 // 4, 100 * 1024 * 1024),
        ),
    )(x, w_stack, b_stack, sep)

    # Tiny final reduction + normalization (mean per instrument, mean over S).
    return jnp.sum(partials) * (1.0 / (S * BC * Fq * T))


def multi_loss_ref(mix, sep, W, b):
    """Pure-JAX reference of the same forward (same stand-in model precision)."""
    B, C, Fq, T = mix.shape
    S = W.shape[0]
    x = mix.reshape(B * C, Fq, T)
    sp = sep.reshape(S, B * C, Fq, T)
    loss = 0.0
    for i in range(S):
        logits = jnp.einsum("fo,bft->bot", W[i].astype(x.dtype), x,
                            preferred_element_type=jnp.float32)
        logits = logits + b[i].astype(jnp.float32)[None, :, None]
        pred = jax.nn.sigmoid(logits.astype(jnp.bfloat16))
        diff = jnp.abs(pred * x - sp[i]).astype(jnp.float32)
        loss = loss + jnp.mean(diff)
    return loss / S


if __name__ == "__main__":
    key = jax.random.PRNGKey(0)
    k1, k2, k3, k4 = jax.random.split(key, 4)

    # params = {'num_instruments': ['vocals', 'drums', 'bass', 'other']}
    S = 4                           # number of instruments
    B, C, Fq, T = 2, 2, 128, 256    # batch, channels, freq bins, time frames

    # Magnitude spectrograms streamed in bf16 (halves HBM traffic of this
    # memory-bound loss); parameters in f32, loss accumulation in f32.
    mix = jax.random.uniform(k1, (B, C, Fq, T), jnp.float32).astype(jnp.bfloat16)
    sep = jax.random.uniform(k2, (S, B, C, Fq, T), jnp.float32).astype(jnp.bfloat16)

    # Deterministic synthetic "model_list" parameters (one mask predictor / instrument).
    # TODO(synk): the real `model_list` (e.g. U-Nets) is unspecified in the reference;
    #             a linear+sigmoid mask predictor is used as a deterministic stand-in.
    W = 0.05 * jax.random.normal(k3, (S, Fq, Fq), jnp.float32)
    b = 0.01 * jax.random.normal(k4, (S, Fq), jnp.float32)

    loss = jax.jit(multi_loss)(mix, sep, W, b)
    jax.block_until_ready(loss)

    ref = multi_loss_ref(mix, sep, W, b)
    assert jnp.allclose(loss, ref, rtol=2e-3, atol=2e-3), (loss, ref)

    print("KERNEL_OK")
</pallas_src>

<mosaic_0001>
module attributes {stable_mosaic.version = 11 : i64} {
  func.func @_multiloss_kernel(%arg0: i32, %arg1: i32, %arg2: memref<4x128x256xbf16, #tpu.memory_space<vmem>>, %arg3: memref<4x128x128xbf16, #tpu.memory_space<vmem>>, %arg4: memref<4x128x1xf32, #tpu.memory_space<vmem>>, %arg5: memref<4x4x128x256xbf16, #tpu.memory_space<vmem>>, %arg6: memref<1x1x8x256xf32, #tpu.memory_space<vmem>>) attributes {dimension_semantics = [#tpu.dimension_semantics<parallel>, #tpu.dimension_semantics<parallel>], iteration_bounds = array<i64: 1, 1>, scalar_prefetch = 0 : i64, scratch_operands = 0 : i64, tpu.core_type = #tpu.core_type<tc>, window_params = [{transform_indices = @transform_0, window_bounds = array<i64: 4, 128, 256>}, {pipeline_mode = #tpu.pipeline_mode<synchronous>, transform_indices = @transform_1, window_bounds = array<i64: 4, 128, 128>}, {pipeline_mode = #tpu.pipeline_mode<synchronous>, transform_indices = @transform_2, window_bounds = array<i64: 4, 128, 1>}, {transform_indices = @transform_3, window_bounds = array<i64: 4, 4, 128, 256>}, {transform_indices = @transform_4, window_bounds = array<i64: 1, 1, 8, 256>}]} {
    %cst = arith.constant 0.000000e+00 : f32
    %0 = vector.broadcast %cst : f32 to vector<8x256xf32>
    %c0 = arith.constant 0 : index
    %c0_0 = arith.constant 0 : index
    %c0_1 = arith.constant 0 : index
    %1 = vector.load %arg2[%c0, %c0_0, %c0_1] : memref<4x128x256xbf16, #tpu.memory_space<vmem>>, vector<1x128x256xbf16>
    %2 = vector.shape_cast %1 : vector<1x128x256xbf16> to vector<128x256xbf16>
    %c0_2 = arith.constant 0 : index
    %c0_3 = arith.constant 0 : index
    %c0_4 = arith.constant 0 : index
    %3 = vector.load %arg3[%c0_2, %c0_3, %c0_4] : memref<4x128x128xbf16, #tpu.memory_space<vmem>>, vector<1x128x128xbf16>
    %4 = vector.shape_cast %3 : vector<1x128x128xbf16> to vector<128x128xbf16>
    %cst_5 = arith.constant dense<0.000000e+00> : vector<128x256xf32>
    %5 = tpu.matmul %4, %2, %cst_5 {dimension_numbers = #tpu.dot_dimension_numbers<[1], [0], [0], [1], [0, 0, 1, 1], [], []>} : vector<128x128xbf16>, vector<128x256xbf16>, vector<128x256xf32> -> vector<128x256xf32>
    %c0_6 = arith.constant 0 : index
    %c0_7 = arith.constant 0 : index
    %c0_8 = arith.constant 0 : index
    %6 = vector.load %arg4[%c0_6, %c0_7, %c0_8] : memref<4x128x1xf32, #tpu.memory_space<vmem>>, vector<1x128x1xf32>
    %7 = vector.shape_cast %6 : vector<1x128x1xf32> to vector<128x1xf32>
    %8 = vector.broadcast %7 : vector<128x1xf32> to vector<128x256xf32>
    %9 = arith.addf %5, %8 : vector<128x256xf32>
    %10 = arith.truncf %9 : vector<128x256xf32> to vector<128x256xbf16>
    %11 = arith.negf %10 : vector<128x256xbf16>
    %12 = math.exp %11 : vector<128x256xbf16>
    %cst_9 = arith.constant 1.000000e+00 : bf16
    %13 = vector.broadcast %cst_9 : bf16 to vector<128x256xbf16>
    %14 = arith.addf %13, %12 : vector<128x256xbf16>
    %15 = arith.divf %13, %14 : vector<128x256xbf16>
    %16 = arith.mulf %15, %2 : vector<128x256xbf16>
    %c0_10 = arith.constant 0 : index
    %c0_11 = arith.constant 0 : index
    %c0_12 = arith.constant 0 : index
    %c0_13 = arith.constant 0 : index
    %17 = vector.load %arg5[%c0_10, %c0_11, %c0_12, %c0_13] : memref<4x4x128x256xbf16, #tpu.memory_space<vmem>>, vector<1x1x128x256xbf16>
    %18 = vector.shape_cast %17 : vector<1x1x128x256xbf16> to vector<128x256xbf16>
    %19 = arith.subf %16, %18 : vector<128x256xbf16>
    %20 = math.absf %19 : vector<128x256xbf16>
    %21 = arith.extf %20 : vector<128x256xbf16> to vector<128x256xf32>
    %22 = vector.shape_cast %21 : vector<128x256xf32> to vector<16x8x256xf32>
    %cst_14 = arith.constant dense<0.000000e+00> : vector<8x256xf32>
    %23 = vector.multi_reduction <add>, %22, %cst_14 [0] : vector<16x8x256xf32> to vector<8x256xf32>
    %24 = arith.addf %0, %23 : vector<8x256xf32>
    %c1 = arith.constant 1 : index
    %c0_15 = arith.constant 0 : index
    %c0_16 = arith.constant 0 : index
    %25 = vector.load %arg3[%c1, %c0_15, %c0_16] : memref<4x128x128xbf16, #tpu.memory_space<vmem>>, vector<1x128x128xbf16>
    %26 = vector.shape_cast %25 : vector<1x128x128xbf16> to vector<128x128xbf16>
    %cst_17 = arith.constant dense<0.000000e+00> : vector<128x256xf32>
    %27 = tpu.matmul %26, %2, %cst_17 {dimension_numbers = #tpu.dot_dimension_numbers<[1], [0], [0], [1], [0, 0, 1, 1], [], []>} : vector<128x128xbf16>, vector<128x256xbf16>, vector<128x256xf32> -> vector<128x256xf32>
    %c1_18 = arith.constant 1 : index
    %c0_19 = arith.constant 0 : index
    %c0_20 = arith.constant 0 : index
    %28 = vector.load %arg4[%c1_18, %c0_19, %c0_20] : memref<4x128x1xf32, #tpu.memory_space<vmem>>, vector<1x128x1xf32>
    %29 = vector.shape_cast %28 : vector<1x128x1xf32> to vector<128x1xf32>
    %30 = vector.broadcast %29 : vector<128x1xf32> to vector<128x256xf32>
    %31 = arith.addf %27, %30 : vector<128x256xf32>
    %32 = arith.truncf %31 : vector<128x256xf32> to vector<128x256xbf16>
    %33 = arith.negf %32 : vector<128x256xbf16>
    %34 = math.exp %33 : vector<128x256xbf16>
    %cst_21 = arith.constant 1.000000e+00 : bf16
    %35 = vector.broadcast %cst_21 : bf16 to vector<128x256xbf16>
    %36 = arith.addf %35, %34 : vector<128x256xbf16>
    %37 = arith.divf %35, %36 : vector<128x256xbf16>
    %38 = arith.mulf %37, %2 : vector<128x256xbf16>
    %c1_22 = arith.constant 1 : index
    %c0_23 = arith.constant 0 : index
    %c0_24 = arith.constant 0 : index
    %c0_25 = arith.constant 0 : index
    %39 = vector.load %arg5[%c1_22, %c0_23, %c0_24, %c0_25] : memref<4x4x128x256xbf16, #tpu.memory_space<vmem>>, vector<1x1x128x256xbf16>
    %40 = vector.shape_cast %39 : vector<1x1x128x256xbf16> to vector<128x256xbf16>
    %41 = arith.subf %38, %40 : vector<128x256xbf16>
    %42 = math.absf %41 : vector<128x256xbf16>
    %43 = arith.extf %42 : vector<128x256xbf16> to vector<128x256xf32>
    %44 = vector.shape_cast %43 : vector<128x256xf32> to vector<16x8x256xf32>
    %cst_26 = arith.constant dense<0.000000e+00> : vector<8x256xf32>
    %45 = vector.multi_reduction <add>, %44, %cst_26 [0] : vector<16x8x256xf32> to vector<8x256xf32>
    %46 = arith.addf %24, %45 : vector<8x256xf32>
    %c2 = arith.constant 2 : index
    %c0_27 = arith.constant 0 : index
    %c0_28 = arith.constant 0 : index
    %47 = vector.load %arg3[%c2, %c0_27, %c0_28] : memref<4x128x128xbf16, #tpu.memory_space<vmem>>, vector<1x128x128xbf16>
    %48 = vector.shape_cast %47 : vector<1x128x128xbf16> to vector<128x128xbf16>
    %cst_29 = arith.constant dense<0.000000e+00> : vector<128x256xf32>
    %49 = tpu.matmul %48, %2, %cst_29 {dimension_numbers = #tpu.dot_dimension_numbers<[1], [0], [0], [1], [0, 0, 1, 1], [], []>} : vector<128x128xbf16>, vector<128x256xbf16>, vector<128x256xf32> -> vector<128x256xf32>
    %c2_30 = arith.constant 2 : index
    %c0_31 = arith.constant 0 : index
    %c0_32 = arith.constant 0 : index
    %50 = vector.load %arg4[%c2_30, %c0_31, %c0_32] : memref<4x128x1xf32, #tpu.memory_space<vmem>>, vector<1x128x1xf32>
    %51 = vector.shape_cast %50 : vector<1x128x1xf32> to vector<128x1xf32>
    %52 = vector.broadcast %51 : vector<128x1xf32> to vector<128x256xf32>
    %53 = arith.addf %49, %52 : vector<128x256xf32>
    %54 = arith.truncf %53 : vector<128x256xf32> to vector<128x256xbf16>
    %55 = arith.negf %54 : vector<128x256xbf16>
    %56 = math.exp %55 : vector<128x256xbf16>
    %cst_33 = arith.constant 1.000000e+00 : bf16
    %57 = vector.broadcast %cst_33 : bf16 to vector<128x256xbf16>
    %58 = arith.addf %57, %56 : vector<128x256xbf16>
    %59 = arith.divf %57, %58 : vector<128x256xbf16>
    %60 = arith.mulf %59, %2 : vector<128x256xbf16>
    %c2_34 = arith.constant 2 : index
    %c0_35 = arith.constant 0 : index
    %c0_36 = arith.constant 0 : index
    %c0_37 = arith.constant 0 : index
    %61 = vector.load %arg5[%c2_34, %c0_35, %c0_36, %c0_37] : memref<4x4x128x256xbf16, #tpu.memory_space<vmem>>, vector<1x1x128x256xbf16>
    %62 = vector.shape_cast %61 : vector<1x1x128x256xbf16> to vector<128x256xbf16>
    %63 = arith.subf %60, %62 : vector<128x256xbf16>
    %64 = math.absf %63 : vector<128x256xbf16>
    %65 = arith.extf %64 : vector<128x256xbf16> to vector<128x256xf32>
    %66 = vector.shape_cast %65 : vector<128x256xf32> to vector<16x8x256xf32>
    %cst_38 = arith.constant dense<0.000000e+00> : vector<8x256xf32>
    %67 = vector.multi_reduction <add>, %66, %cst_38 [0] : vector<16x8x256xf32> to vector<8x256xf32>
    %68 = arith.addf %46, %67 : vector<8x256xf32>
    %c3 = arith.constant 3 : index
    %c0_39 = arith.constant 0 : index
    %c0_40 = arith.constant 0 : index
    %69 = vector.load %arg3[%c3, %c0_39, %c0_40] : memref<4x128x128xbf16, #tpu.memory_space<vmem>>, vector<1x128x128xbf16>
    %70 = vector.shape_cast %69 : vector<1x128x128xbf16> to vector<128x128xbf16>
    %cst_41 = arith.constant dense<0.000000e+00> : vector<128x256xf32>
    %71 = tpu.matmul %70, %2, %cst_41 {dimension_numbers = #tpu.dot_dimension_numbers<[1], [0], [0], [1], [0, 0, 1, 1], [], []>} : vector<128x128xbf16>, vector<128x256xbf16>, vector<128x256xf32> -> vector<128x256xf32>
    %c3_42 = arith.constant 3 : index
    %c0_43 = arith.constant 0 : index
    %c0_44 = arith.constant 0 : index
    %72 = vector.load %arg4[%c3_42, %c0_43, %c0_44] : memref<4x128x1xf32, #tpu.memory_space<vmem>>, vector<1x128x1xf32>
    %73 = vector.shape_cast %72 : vector<1x128x1xf32> to vector<128x1xf32>
    %74 = vector.broadcast %73 : vector<128x1xf32> to vector<128x256xf32>
    %75 = arith.addf %71, %74 : vector<128x256xf32>
    %76 = arith.truncf %75 : vector<128x256xf32> to vector<128x256xbf16>
    %77 = arith.negf %76 : vector<128x256xbf16>
    %78 = math.exp %77 : vector<128x256xbf16>
    %cst_45 = arith.constant 1.000000e+00 : bf16
    %79 = vector.broadcast %cst_45 : bf16 to vector<128x256xbf16>
    %80 = arith.addf %79, %78 : vector<128x256xbf16>
    %81 = arith.divf %79, %80 : vector<128x256xbf16>
    %82 = arith.mulf %81, %2 : vector<128x256xbf16>
    %c3_46 = arith.constant 3 : index
    %c0_47 = arith.constant 0 : index
    %c0_48 = arith.constant 0 : index
    %c0_49 = arith.constant 0 : index
    %83 = vector.load %arg5[%c3_46, %c0_47, %c0_48, %c0_49] : memref<4x4x128x256xbf16, #tpu.memory_space<vmem>>, vector<1x1x128x256xbf16>
    %84 = vector.shape_cast %83 : vector<1x1x128x256xbf16> to vector<128x256xbf16>
    %85 = arith.subf %82, %84 : vector<128x256xbf16>
    %86 = math.absf %85 : vector<128x256xbf16>
    %87 = arith.extf %86 : vector<128x256xbf16> to vector<128x256xf32>
    %88 = vector.shape_cast %87 : vector<128x256xf32> to vector<16x8x256xf32>
    %cst_50 = arith.constant dense<0.000000e+00> : vector<8x256xf32>
    %89 = vector.multi_reduction <add>, %88, %cst_50 [0] : vector<16x8x256xf32> to vector<8x256xf32>
    %90 = arith.addf %68, %89 : vector<8x256xf32>
    %c1_51 = arith.constant 1 : index
    %c0_52 = arith.constant 0 : index
    %c0_53 = arith.constant 0 : index
    %91 = vector.load %arg2[%c1_51, %c0_52, %c0_53] : memref<4x128x256xbf16, #tpu.memory_space<vmem>>, vector<1x128x256xbf16>
    %92 = vector.shape_cast %91 : vector<1x128x256xbf16> to vector<128x256xbf16>
    %c0_54 = arith.constant 0 : index
    %c0_55 = arith.constant 0 : index
    %c0_56 = arith.constant 0 : index
    %93 = vector.load %arg3[%c0_54, %c0_55, %c0_56] : memref<4x128x128xbf16, #tpu.memory_space<vmem>>, vector<1x128x128xbf16>
    %94 = vector.shape_cast %93 : vector<1x128x128xbf16> to vector<128x128xbf16>
    %cst_57 = arith.constant dense<0.000000e+00> : vector<128x256xf32>
    %95 = tpu.matmul %94, %92, %cst_57 {dimension_numbers = #tpu.dot_dimension_numbers<[1], [0], [0], [1], [0, 0, 1, 1], [], []>} : vector<128x128xbf16>, vector<128x256xbf16>, vector<128x256xf32> -> vector<128x256xf32>
    %c0_58 = arith.constant 0 : index
    %c0_59 = arith.constant 0 : index
    %c0_60 = arith.constant 0 : index
    %96 = vector.load %arg4[%c0_58, %c0_59, %c0_60] : memref<4x128x1xf32, #tpu.memory_space<vmem>>, vector<1x128x1xf32>
    %97 = vector.shape_cast %96 : vector<1x128x1xf32> to vector<128x1xf32>
    %98 = vector.broadcast %97 : vector<128x1xf32> to vector<128x256xf32>
    %99 = arith.addf %95, %98 : vector<128x256xf32>
    %100 = arith.truncf %99 : vector<128x256xf32> to vector<128x256xbf16>
    %101 = arith.negf %100 : vector<128x256xbf16>
    %102 = math.exp %101 : vector<128x256xbf16>
    %cst_61 = arith.constant 1.000000e+00 : bf16
    %103 = vector.broadcast %cst_61 : bf16 to vector<128x256xbf16>
    %104 = arith.addf %103, %102 : vector<128x256xbf16>
    %105 = arith.divf %103, %104 : vector<128x256xbf16>
    %106 = arith.mulf %105, %92 : vector<128x256xbf16>
    %c0_62 = arith.constant 0 : index
    %c1_63 = arith.constant 1 : index
    %c0_64 = arith.constant 0 : index
    %c0_65 = arith.constant 0 : index
    %107 = vector.load %arg5[%c0_62, %c1_63, %c0_64, %c0_65] : memref<4x4x128x256xbf16, #tpu.memory_space<vmem>>, vector<1x1x128x256xbf16>
    %108 = vector.shape_cast %107 : vector<1x1x128x256xbf16> to vector<128x256xbf16>
    %109 = arith.subf %106, %108 : vector<128x256xbf16>
    %110 = math.absf %109 : vector<128x256xbf16>
    %111 = arith.extf %110 : vector<128x256xbf16> to vector<128x256xf32>
    %112 = vector.shape_cast %111 : vector<128x256xf32> to vector<16x8x256xf32>
    %cst_66 = arith.constant dense<0.000000e+00> : vector<8x256xf32>
    %113 = vector.multi_reduction <add>, %112, %cst_66 [0] : vector<16x8x256xf32> to vector<8x256xf32>
    %114 = arith.addf %90, %113 : vector<8x256xf32>
    %c1_67 = arith.constant 1 : index
    %c0_68 = arith.constant 0 : index
    %c0_69 = arith.constant 0 : index
    %115 = vector.load %arg3[%c1_67, %c0_68, %c0_69] : memref<4x128x128xbf16, #tpu.memory_space<vmem>>, vector<1x128x128xbf16>
    %116 = vector.shape_cast %115 : vector<1x128x128xbf16> to vector<128x128xbf16>
    %cst_70 = arith.constant dense<0.000000e+00> : vector<128x256xf32>
    %117 = tpu.matmul %116, %92, %cst_70 {dimension_numbers = #tpu.dot_dimension_numbers<[1], [0], [0], [1], [0, 0, 1, 1], [], []>} : vector<128x128xbf16>, vector<128x256xbf16>, vector<128x256xf32> -> vector<128x256xf32>
    %c1_71 = arith.constant 1 : index
    %c0_72 = arith.constant 0 : index
    %c0_73 = arith.constant 0 : index
    %118 = vector.load %arg4[%c1_71, %c0_72, %c0_73] : memref<4x128x1xf32, #tpu.memory_space<vmem>>, vector<1x128x1xf32>
    %119 = vector.shape_cast %118 : vector<1x128x1xf32> to vector<128x1xf32>
    %120 = vector.broadcast %119 : vector<128x1xf32> to vector<128x256xf32>
    %121 = arith.addf %117, %120 : vector<128x256xf32>
    %122 = arith.truncf %121 : vector<128x256xf32> to vector<128x256xbf16>
    %123 = arith.negf %122 : vector<128x256xbf16>
    %124 = math.exp %123 : vector<128x256xbf16>
    %cst_74 = arith.constant 1.000000e+00 : bf16
    %125 = vector.broadcast %cst_74 : bf16 to vector<128x256xbf16>
    %126 = arith.addf %125, %124 : vector<128x256xbf16>
    %127 = arith.divf %125, %126 : vector<128x256xbf16>
    %128 = arith.mulf %127, %92 : vector<128x256xbf16>
    %c1_75 = arith.constant 1 : index
    %c1_76 = arith.constant 1 : index
    %c0_77 = arith.constant 0 : index
    %c0_78 = arith.constant 0 : index
    %129 = vector.load %arg5[%c1_75, %c1_76, %c0_77, %c0_78] : memref<4x4x128x256xbf16, #tpu.memory_space<vmem>>, vector<1x1x128x256xbf16>
    %130 = vector.shape_cast %129 : vector<1x1x128x256xbf16> to vector<128x256xbf16>
    %131 = arith.subf %128, %130 : vector<128x256xbf16>
    %132 = math.absf %131 : vector<128x256xbf16>
    %133 = arith.extf %132 : vector<128x256xbf16> to vector<128x256xf32>
    %134 = vector.shape_cast %133 : vector<128x256xf32> to vector<16x8x256xf32>
    %cst_79 = arith.constant dense<0.000000e+00> : vector<8x256xf32>
    %135 = vector.multi_reduction <add>, %134, %cst_79 [0] : vector<16x8x256xf32> to vector<8x256xf32>
    %136 = arith.addf %114, %135 : vector<8x256xf32>
    %c2_80 = arith.constant 2 : index
    %c0_81 = arith.constant 0 : index
    %c0_82 = arith.constant 0 : index
    %137 = vector.load %arg3[%c2_80, %c0_81, %c0_82] : memref<4x128x128xbf16, #tpu.memory_space<vmem>>, vector<1x128x128xbf16>
    %138 = vector.shape_cast %137 : vector<1x128x128xbf16> to vector<128x128xbf16>
    %cst_83 = arith.constant dense<0.000000e+00> : vector<128x256xf32>
    %139 = tpu.matmul %138, %92, %cst_83 {dimension_numbers = #tpu.dot_dimension_numbers<[1], [0], [0], [1], [0, 0, 1, 1], [], []>} : vector<128x128xbf16>, vector<128x256xbf16>, vector<128x256xf32> -> vector<128x256xf32>
    %c2_84 = arith.constant 2 : index
    %c0_85 = arith.constant 0 : index
    %c0_86 = arith.constant 0 : index
    %140 = vector.load %arg4[%c2_84, %c0_85, %c0_86] : memref<4x128x1xf32, #tpu.memory_space<vmem>>, vector<1x128x1xf32>
    %141 = vector.shape_cast %140 : vector<1x128x1xf32> to vector<128x1xf32>
    %142 = vector.broadcast %141 : vector<128x1xf32> to vector<128x256xf32>
    %143 = arith.addf %139, %142 : vector<128x256xf32>
    %144 = arith.truncf %143 : vector<128x256xf32> to vector<128x256xbf16>
    %145 = arith.negf %144 : vector<128x256xbf16>
    %146 = math.exp %145 : vector<128x256xbf16>
    %cst_87 = arith.constant 1.000000e+00 : bf16
    %147 = vector.broadcast %cst_87 : bf16 to vector<128x256xbf16>
    %148 = arith.addf %147, %146 : vector<128x256xbf16>
    %149 = arith.divf %147, %148 : vector<128x256xbf16>
    %150 = arith.mulf %149, %92 : vector<128x256xbf16>
    %c2_88 = arith.constant 2 : index
    %c1_89 = arith.constant 1 : index
    %c0_90 = arith.constant 0 : index
    %c0_91 = arith.constant 0 : index
    %151 = vector.load %arg5[%c2_88, %c1_89, %c0_90, %c0_91] : memref<4x4x128x256xbf16, #tpu.memory_space<vmem>>, vector<1x1x128x256xbf16>
    %152 = vector.shape_cast %151 : vector<1x1x128x256xbf16> to vector<128x256xbf16>
    %153 = arith.subf %150, %152 : vector<128x256xbf16>
    %154 = math.absf %153 : vector<128x256xbf16>
    %155 = arith.extf %154 : vector<128x256xbf16> to vector<128x256xf32>
    %156 = vector.shape_cast %155 : vector<128x256xf32> to vector<16x8x256xf32>
    %cst_92 = arith.constant dense<0.000000e+00> : vector<8x256xf32>
    %157 = vector.multi_reduction <add>, %156, %cst_92 [0] : vector<16x8x256xf32> to vector<8x256xf32>
    %158 = arith.addf %136, %157 : vector<8x256xf32>
    %c3_93 = arith.constant 3 : index
    %c0_94 = arith.constant 0 : index
    %c0_95 = arith.constant 0 : index
    %159 = vector.load %arg3[%c3_93, %c0_94, %c0_95] : memref<4x128x128xbf16, #tpu.memory_space<vmem>>, vector<1x128x128xbf16>
    %160 = vector.shape_cast %159 : vector<1x128x128xbf16> to vector<128x128xbf16>
    %cst_96 = arith.constant dense<0.000000e+00> : vector<128x256xf32>
    %161 = tpu.matmul %160, %92, %cst_96 {dimension_numbers = #tpu.dot_dimension_numbers<[1], [0], [0], [1], [0, 0, 1, 1], [], []>} : vector<128x128xbf16>, vector<128x256xbf16>, vector<128x256xf32> -> vector<128x256xf32>
    %c3_97 = arith.constant 3 : index
    %c0_98 = arith.constant 0 : index
    %c0_99 = arith.constant 0 : index
    %162 = vector.load %arg4[%c3_97, %c0_98, %c0_99] : memref<4x128x1xf32, #tpu.memory_space<vmem>>, vector<1x128x1xf32>
    %163 = vector.shape_cast %162 : vector<1x128x1xf32> to vector<128x1xf32>
    %164 = vector.broadcast %163 : vector<128x1xf32> to vector<128x256xf32>
    %165 = arith.addf %161, %164 : vector<128x256xf32>
    %166 = arith.truncf %165 : vector<128x256xf32> to vector<128x256xbf16>
    %167 = arith.negf %166 : vector<128x256xbf16>
    %168 = math.exp %167 : vector<128x256xbf16>
    %cst_100 = arith.constant 1.000000e+00 : bf16
    %169 = vector.broadcast %cst_100 : bf16 to vector<128x256xbf16>
    %170 = arith.addf %169, %168 : vector<128x256xbf16>
    %171 = arith.divf %169, %170 : vector<128x256xbf16>
    %172 = arith.mulf %171, %92 : vector<128x256xbf16>
    %c3_101 = arith.constant 3 : index
    %c1_102 = arith.constant 1 : index
    %c0_103 = arith.constant 0 : index
    %c0_104 = arith.constant 0 : index
    %173 = vector.load %arg5[%c3_101, %c1_102, %c0_103, %c0_104] : memref<4x4x128x256xbf16, #tpu.memory_space<vmem>>, vector<1x1x128x256xbf16>
    %174 = vector.shape_cast %173 : vector<1x1x128x256xbf16> to vector<128x256xbf16>
    %175 = arith.subf %172, %174 : vector<128x256xbf16>
    %176 = math.absf %175 : vector<128x256xbf16>
    %177 = arith.extf %176 : vector<128x256xbf16> to vector<128x256xf32>
    %178 = vector.shape_cast %177 : vector<128x256xf32> to vector<16x8x256xf32>
    %cst_105 = arith.constant dense<0.000000e+00> : vector<8x256xf32>
    %179 = vector.multi_reduction <add>, %178, %cst_105 [0] : vector<16x8x256xf32> to vector<8x256xf32>
    %180 = arith.addf %158, %179 : vector<8x256xf32>
    %c2_106 = arith.constant 2 : index
    %c0_107 = arith.constant 0 : index
    %c0_108 = arith.constant 0 : index
    %181 = vector.load %arg2[%c2_106, %c0_107, %c0_108] : memref<4x128x256xbf16, #tpu.memory_space<vmem>>, vector<1x128x256xbf16>
    %182 = vector.shape_cast %181 : vector<1x128x256xbf16> to vector<128x256xbf16>
    %c0_109 = arith.constant 0 : index
    %c0_110 = arith.constant 0 : index
    %c0_111 = arith.constant 0 : index
    %183 = vector.load %arg3[%c0_109, %c0_110, %c0_111] : memref<4x128x128xbf16, #tpu.memory_space<vmem>>, vector<1x128x128xbf16>
    %184 = vector.shape_cast %183 : vector<1x128x128xbf16> to vector<128x128xbf16>
    %cst_112 = arith.constant dense<0.000000e+00> : vector<128x256xf32>
    %185 = tpu.matmul %184, %182, %cst_112 {dimension_numbers = #tpu.dot_dimension_numbers<[1], [0], [0], [1], [0, 0, 1, 1], [], []>} : vector<128x128xbf16>, vector<128x256xbf16>, vector<128x256xf32> -> vector<128x256xf32>
    %c0_113 = arith.constant 0 : index
    %c0_114 = arith.constant 0 : index
    %c0_115 = arith.constant 0 : index
    %186 = vector.load %arg4[%c0_113, %c0_114, %c0_115] : memref<4x128x1xf32, #tpu.memory_space<vmem>>, vector<1x128x1xf32>
    %187 = vector.shape_cast %186 : vector<1x128x1xf32> to vector<128x1xf32>
    %188 = vector.broadcast %187 : vector<128x1xf32> to vector<128x256xf32>
    %189 = arith.addf %185, %188 : vector<128x256xf32>
    %190 = arith.truncf %189 : vector<128x256xf32> to vector<128x256xbf16>
    %191 = arith.negf %190 : vector<128x256xbf16>
    %192 = math.exp %191 : vector<128x256xbf16>
    %cst_116 = arith.constant 1.000000e+00 : bf16
    %193 = vector.broadcast %cst_116 : bf16 to vector<128x256xbf16>
    %194 = arith.addf %193, %192 : vector<128x256xbf16>
    %195 = arith.divf %193, %194 : vector<128x256xbf16>
    %196 = arith.mulf %195, %182 : vector<128x256xbf16>
    %c0_117 = arith.constant 0 : index
    %c2_118 = arith.constant 2 : index
    %c0_119 = arith.constant 0 : index
    %c0_120 = arith.constant 0 : index
    %197 = vector.load %arg5[%c0_117, %c2_118, %c0_119, %c0_120] : memref<4x4x128x256xbf16, #tpu.memory_space<vmem>>, vector<1x1x128x256xbf16>
    %198 = vector.shape_cast %197 : vector<1x1x128x256xbf16> to vector<128x256xbf16>
    %199 = arith.subf %196, %198 : vector<128x256xbf16>
    %200 = math.absf %199 : vector<128x256xbf16>
    %201 = arith.extf %200 : vector<128x256xbf16> to vector<128x256xf32>
    %202 = vector.shape_cast %201 : vector<128x256xf32> to vector<16x8x256xf32>
    %cst_121 = arith.constant dense<0.000000e+00> : vector<8x256xf32>
    %203 = vector.multi_reduction <add>, %202, %cst_121 [0] : vector<16x8x256xf32> to vector<8x256xf32>
    %204 = arith.addf %180, %203 : vector<8x256xf32>
    %c1_122 = arith.constant 1 : index
    %c0_123 = arith.constant 0 : index
    %c0_124 = arith.constant 0 : index
    %205 = vector.load %arg3[%c1_122, %c0_123, %c0_124] : memref<4x128x128xbf16, #tpu.memory_space<vmem>>, vector<1x128x128xbf16>
    %206 = vector.shape_cast %205 : vector<1x128x128xbf16> to vector<128x128xbf16>
    %cst_125 = arith.constant dense<0.000000e+00> : vector<128x256xf32>
    %207 = tpu.matmul %206, %182, %cst_125 {dimension_numbers = #tpu.dot_dimension_numbers<[1], [0], [0], [1], [0, 0, 1, 1], [], []>} : vector<128x128xbf16>, vector<128x256xbf16>, vector<128x256xf32> -> vector<128x256xf32>
    %c1_126 = arith.constant 1 : index
    %c0_127 = arith.constant 0 : index
    %c0_128 = arith.constant 0 : index
    %208 = vector.load %arg4[%c1_126, %c0_127, %c0_128] : memref<4x128x1xf32, #tpu.memory_space<vmem>>, vector<1x128x1xf32>
    %209 = vector.shape_cast %208 : vector<1x128x1xf32> to vector<128x1xf32>
    %210 = vector.broadcast %209 : vector<128x1xf32> to vector<128x256xf32>
    %211 = arith.addf %207, %210 : vector<128x256xf32>
    %212 = arith.truncf %211 : vector<128x256xf32> to vector<128x256xbf16>
    %213 = arith.negf %212 : vector<128x256xbf16>
    %214 = math.exp %213 : vector<128x256xbf16>
    %cst_129 = arith.constant 1.000000e+00 : bf16
    %215 = vector.broadcast %cst_129 : bf16 to vector<128x256xbf16>
    %216 = arith.addf %215, %214 : vector<128x256xbf16>
    %217 = arith.divf %215, %216 : vector<128x256xbf16>
    %218 = arith.mulf %217, %182 : vector<128x256xbf16>
    %c1_130 = arith.constant 1 : index
    %c2_131 = arith.constant 2 : index
    %c0_132 = arith.constant 0 : index
    %c0_133 = arith.constant 0 : index
    %219 = vector.load %arg5[%c1_130, %c2_131, %c0_132, %c0_133] : memref<4x4x128x256xbf16, #tpu.memory_space<vmem>>, vector<1x1x128x256xbf16>
    %220 = vector.shape_cast %219 : vector<1x1x128x256xbf16> to vector<128x256xbf16>
    %221 = arith.subf %218, %220 : vector<128x256xbf16>
    %222 = math.absf %221 : vector<128x256xbf16>
    %223 = arith.extf %222 : vector<128x256xbf16> to vector<128x256xf32>
    %224 = vector.shape_cast %223 : vector<128x256xf32> to vector<16x8x256xf32>
    %cst_134 = arith.constant dense<0.000000e+00> : vector<8x256xf32>
    %225 = vector.multi_reduction <add>, %224, %cst_134 [0] : vector<16x8x256xf32> to vector<8x256xf32>
    %226 = arith.addf %204, %225 : vector<8x256xf32>
    %c2_135 = arith.constant 2 : index
    %c0_136 = arith.constant 0 : index
    %c0_137 = arith.constant 0 : index
    %227 = vector.load %arg3[%c2_135, %c0_136, %c0_137] : memref<4x128x128xbf16, #tpu.memory_space<vmem>>, vector<1x128x128xbf16>
    %228 = vector.shape_cast %227 : vector<1x128x128xbf16> to vector<128x128xbf16>
    %cst_138 = arith.constant dense<0.000000e+00> : vector<128x256xf32>
    %229 = tpu.matmul %228, %182, %cst_138 {dimension_numbers = #tpu.dot_dimension_numbers<[1], [0], [0], [1], [0, 0, 1, 1], [], []>} : vector<128x128xbf16>, vector<128x256xbf16>, vector<128x256xf32> -> vector<128x256xf32>
    %c2_139 = arith.constant 2 : index
    %c0_140 = arith.constant 0 : index
    %c0_141 = arith.constant 0 : index
    %230 = vector.load %arg4[%c2_139, %c0_140, %c0_141] : memref<4x128x1xf32, #tpu.memory_space<vmem>>, vector<1x128x1xf32>
    %231 = vector.shape_cast %230 : vector<1x128x1xf32> to vector<128x1xf32>
    %232 = vector.broadcast %231 : vector<128x1xf32> to vector<128x256xf32>
    %233 = arith.addf %229, %232 : vector<128x256xf32>
    %234 = arith.truncf %233 : vector<128x256xf32> to vector<128x256xbf16>
    %235 = arith.negf %234 : vector<128x256xbf16>
    %236 = math.exp %235 : vector<128x256xbf16>
    %cst_142 = arith.constant 1.000000e+00 : bf16
    %237 = vector.broadcast %cst_142 : bf16 to vector<128x256xbf16>
    %238 = arith.addf %237, %236 : vector<128x256xbf16>
    %239 = arith.divf %237, %238 : vector<128x256xbf16>
    %240 = arith.mulf %239, %182 : vector<128x256xbf16>
    %c2_143 = arith.constant 2 : index
    %c2_144 = arith.constant 2 : index
    %c0_145 = arith.constant 0 : index
    %c0_146 = arith.constant 0 : index
    %241 = vector.load %arg5[%c2_143, %c2_144, %c0_145, %c0_146] : memref<4x4x128x256xbf16, #tpu.memory_space<vmem>>, vector<1x1x128x256xbf16>
    %242 = vector.shape_cast %241 : vector<1x1x128x256xbf16> to vector<128x256xbf16>
    %243 = arith.subf %240, %242 : vector<128x256xbf16>
    %244 = math.absf %243 : vector<128x256xbf16>
    %245 = arith.extf %244 : vector<128x256xbf16> to vector<128x256xf32>
    %246 = vector.shape_cast %245 : vector<128x256xf32> to vector<16x8x256xf32>
    %cst_147 = arith.constant dense<0.000000e+00> : vector<8x256xf32>
    %247 = vector.multi_reduction <add>, %246, %cst_147 [0] : vector<16x8x256xf32> to vector<8x256xf32>
    %248 = arith.addf %226, %247 : vector<8x256xf32>
    %c3_148 = arith.constant 3 : index
    %c0_149 = arith.constant 0 : index
    %c0_150 = arith.constant 0 : index
    %249 = vector.load %arg3[%c3_148, %c0_149, %c0_150] : memref<4x128x128xbf16, #tpu.memory_space<vmem>>, vector<1x128x128xbf16>
    %250 = vector.shape_cast %249 : vector<1x128x128xbf16> to vector<128x128xbf16>
    %cst_151 = arith.constant dense<0.000000e+00> : vector<128x256xf32>
    %251 = tpu.matmul %250, %182, %cst_151 {dimension_numbers = #tpu.dot_dimension_numbers<[1], [0], [0], [1], [0, 0, 1, 1], [], []>} : vector<128x128xbf16>, vector<128x256xbf16>, vector<128x256xf32> -> vector<128x256xf32>
    %c3_152 = arith.constant 3 : index
    %c0_153 = arith.constant 0 : index
    %c0_154 = arith.constant 0 : index
    %252 = vector.load %arg4[%c3_152, %c0_153, %c0_154] : memref<4x128x1xf32, #tpu.memory_space<vmem>>, vector<1x128x1xf32>
    %253 = vector.shape_cast %252 : vector<1x128x1xf32> to vector<128x1xf32>
    %254 = vector.broadcast %253 : vector<128x1xf32> to vector<128x256xf32>
    %255 = arith.addf %251, %254 : vector<128x256xf32>
    %256 = arith.truncf %255 : vector<128x256xf32> to vector<128x256xbf16>
    %257 = arith.negf %256 : vector<128x256xbf16>
    %258 = math.exp %257 : vector<128x256xbf16>
    %cst_155 = arith.constant 1.000000e+00 : bf16
    %259 = vector.broadcast %cst_155 : bf16 to vector<128x256xbf16>
    %260 = arith.addf %259, %258 : vector<128x256xbf16>
    %261 = arith.divf %259, %260 : vector<128x256xbf16>
    %262 = arith.mulf %261, %182 : vector<128x256xbf16>
    %c3_156 = arith.constant 3 : index
    %c2_157 = arith.constant 2 : index
    %c0_158 = arith.constant 0 : index
    %c0_159 = arith.constant 0 : index
    %263 = vector.load %arg5[%c3_156, %c2_157, %c0_158, %c0_159] : memref<4x4x128x256xbf16, #tpu.memory_space<vmem>>, vector<1x1x128x256xbf16>
    %264 = vector.shape_cast %263 : vector<1x1x128x256xbf16> to vector<128x256xbf16>
    %265 = arith.subf %262, %264 : vector<128x256xbf16>
    %266 = math.absf %265 : vector<128x256xbf16>
    %267 = arith.extf %266 : vector<128x256xbf16> to vector<128x256xf32>
    %268 = vector.shape_cast %267 : vector<128x256xf32> to vector<16x8x256xf32>
    %cst_160 = arith.constant dense<0.000000e+00> : vector<8x256xf32>
    %269 = vector.multi_reduction <add>, %268, %cst_160 [0] : vector<16x8x256xf32> to vector<8x256xf32>
    %270 = arith.addf %248, %269 : vector<8x256xf32>
    %c3_161 = arith.constant 3 : index
    %c0_162 = arith.constant 0 : index
    %c0_163 = arith.constant 0 : index
    %271 = vector.load %arg2[%c3_161, %c0_162, %c0_163] : memref<4x128x256xbf16, #tpu.memory_space<vmem>>, vector<1x128x256xbf16>
    %272 = vector.shape_cast %271 : vector<1x128x256xbf16> to vector<128x256xbf16>
    %c0_164 = arith.constant 0 : index
    %c0_165 = arith.constant 0 : index
    %c0_166 = arith.constant 0 : index
    %273 = vector.load %arg3[%c0_164, %c0_165, %c0_166] : memref<4x128x128xbf16, #tpu.memory_space<vmem>>, vector<1x128x128xbf16>
    %274 = vector.shape_cast %273 : vector<1x128x128xbf16> to vector<128x128xbf16>
    %cst_167 = arith.constant dense<0.000000e+00> : vector<128x256xf32>
    %275 = tpu.matmul %274, %272, %cst_167 {dimension_numbers = #tpu.dot_dimension_numbers<[1], [0], [0], [1], [0, 0, 1, 1], [], []>} : vector<128x128xbf16>, vector<128x256xbf16>, vector<128x256xf32> -> vector<128x256xf32>
    %c0_168 = arith.constant 0 : index
    %c0_169 = arith.constant 0 : index
    %c0_170 = arith.constant 0 : index
    %276 = vector.load %arg4[%c0_168, %c0_169, %c0_170] : memref<4x128x1xf32, #tpu.memory_space<vmem>>, vector<1x128x1xf32>
    %277 = vector.shape_cast %276 : vector<1x128x1xf32> to vector<128x1xf32>
    %278 = vector.broadcast %277 : vector<128x1xf32> to vector<128x256xf32>
    %279 = arith.addf %275, %278 : vector<128x256xf32>
    %280 = arith.truncf %279 : vector<128x256xf32> to vector<128x256xbf16>
    %281 = arith.negf %280 : vector<128x256xbf16>
    %282 = math.exp %281 : vector<128x256xbf16>
    %cst_171 = arith.constant 1.000000e+00 : bf16
    %283 = vector.broadcast %cst_171 : bf16 to vector<128x256xbf16>
    %284 = arith.addf %283, %282 : vector<128x256xbf16>
    %285 = arith.divf %283, %284 : vector<128x256xbf16>
    %286 = arith.mulf %285, %272 : vector<128x256xbf16>
    %c0_172 = arith.constant 0 : index
    %c3_173 = arith.constant 3 : index
    %c0_174 = arith.constant 0 : index
    %c0_175 = arith.constant 0 : index
    %287 = vector.load %arg5[%c0_172, %c3_173, %c0_174, %c0_175] : memref<4x4x128x256xbf16, #tpu.memory_space<vmem>>, vector<1x1x128x256xbf16>
    %288 = vector.shape_cast %287 : vector<1x1x128x256xbf16> to vector<128x256xbf16>
    %289 = arith.subf %286, %288 : vector<128x256xbf16>
    %290 = math.absf %289 : vector<128x256xbf16>
    %291 = arith.extf %290 : vector<128x256xbf16> to vector<128x256xf32>
    %292 = vector.shape_cast %291 : vector<128x256xf32> to vector<16x8x256xf32>
    %cst_176 = arith.constant dense<0.000000e+00> : vector<8x256xf32>
    %293 = vector.multi_reduction <add>, %292, %cst_176 [0] : vector<16x8x256xf32> to vector<8x256xf32>
    %294 = arith.addf %270, %293 : vector<8x256xf32>
    %c1_177 = arith.constant 1 : index
    %c0_178 = arith.constant 0 : index
    %c0_179 = arith.constant 0 : index
    %295 = vector.load %arg3[%c1_177, %c0_178, %c0_179] : memref<4x128x128xbf16, #tpu.memory_space<vmem>>, vector<1x128x128xbf16>
    %296 = vector.shape_cast %295 : vector<1x128x128xbf16> to vector<128x128xbf16>
    %cst_180 = arith.constant dense<0.000000e+00> : vector<128x256xf32>
    %297 = tpu.matmul %296, %272, %cst_180 {dimension_numbers = #tpu.dot_dimension_numbers<[1], [0], [0], [1], [0, 0, 1, 1], [], []>} : vector<128x128xbf16>, vector<128x256xbf16>, vector<128x256xf32> -> vector<128x256xf32>
    %c1_181 = arith.constant 1 : index
    %c0_182 = arith.constant 0 : index
    %c0_183 = arith.constant 0 : index
    %298 = vector.load %arg4[%c1_181, %c0_182, %c0_183] : memref<4x128x1xf32, #tpu.memory_space<vmem>>, vector<1x128x1xf32>
    %299 = vector.shape_cast %298 : vector<1x128x1xf32> to vector<128x1xf32>
    %300 = vector.broadcast %299 : vector<128x1xf32> to vector<128x256xf32>
    %301 = arith.addf %297, %300 : vector<128x256xf32>
    %302 = arith.truncf %301 : vector<128x256xf32> to vector<128x256xbf16>
    %303 = arith.negf %302 : vector<128x256xbf16>
    %304 = math.exp %303 : vector<128x256xbf16>
    %cst_184 = arith.constant 1.000000e+00 : bf16
    %305 = vector.broadcast %cst_184 : bf16 to vector<128x256xbf16>
    %306 = arith.addf %305, %304 : vector<128x256xbf16>
    %307 = arith.divf %305, %306 : vector<128x256xbf16>
    %308 = arith.mulf %307, %272 : vector<128x256xbf16>
    %c1_185 = arith.constant 1 : index
    %c3_186 = arith.constant 3 : index
    %c0_187 = arith.constant 0 : index
    %c0_188 = arith.constant 0 : index
    %309 = vector.load %arg5[%c1_185, %c3_186, %c0_187, %c0_188] : memref<4x4x128x256xbf16, #tpu.memory_space<vmem>>, vector<1x1x128x256xbf16>
    %310 = vector.shape_cast %309 : vector<1x1x128x256xbf16> to vector<128x256xbf16>
    %311 = arith.subf %308, %310 : vector<128x256xbf16>
    %312 = math.absf %311 : vector<128x256xbf16>
    %313 = arith.extf %312 : vector<128x256xbf16> to vector<128x256xf32>
    %314 = vector.shape_cast %313 : vector<128x256xf32> to vector<16x8x256xf32>
    %cst_189 = arith.constant dense<0.000000e+00> : vector<8x256xf32>
    %315 = vector.multi_reduction <add>, %314, %cst_189 [0] : vector<16x8x256xf32> to vector<8x256xf32>
    %316 = arith.addf %294, %315 : vector<8x256xf32>
    %c2_190 = arith.constant 2 : index
    %c0_191 = arith.constant 0 : index
    %c0_192 = arith.constant 0 : index
    %317 = vector.load %arg3[%c2_190, %c0_191, %c0_192] : memref<4x128x128xbf16, #tpu.memory_space<vmem>>, vector<1x128x128xbf16>
    %318 = vector.shape_cast %317 : vector<1x128x128xbf16> to vector<128x128xbf16>
    %cst_193 = arith.constant dense<0.000000e+00> : vector<128x256xf32>
    %319 = tpu.matmul %318, %272, %cst_193 {dimension_numbers = #tpu.dot_dimension_numbers<[1], [0], [0], [1], [0, 0, 1, 1], [], []>} : vector<128x128xbf16>, vector<128x256xbf16>, vector<128x256xf32> -> vector<128x256xf32>
    %c2_194 = arith.constant 2 : index
    %c0_195 = arith.constant 0 : index
    %c0_196 = arith.constant 0 : index
    %320 = vector.load %arg4[%c2_194, %c0_195, %c0_196] : memref<4x128x1xf32, #tpu.memory_space<vmem>>, vector<1x128x1xf32>
    %321 = vector.shape_cast %320 : vector<1x128x1xf32> to vector<128x1xf32>
    %322 = vector.broadcast %321 : vector<128x1xf32> to vector<128x256xf32>
    %323 = arith.addf %319, %322 : vector<128x256xf32>
    %324 = arith.truncf %323 : vector<128x256xf32> to vector<128x256xbf16>
    %325 = arith.negf %324 : vector<128x256xbf16>
    %326 = math.exp %325 : vector<128x256xbf16>
    %cst_197 = arith.constant 1.000000e+00 : bf16
    %327 = vector.broadcast %cst_197 : bf16 to vector<128x256xbf16>
    %328 = arith.addf %327, %326 : vector<128x256xbf16>
    %329 = arith.divf %327, %328 : vector<128x256xbf16>
    %330 = arith.mulf %329, %272 : vector<128x256xbf16>
    %c2_198 = arith.constant 2 : index
    %c3_199 = arith.constant 3 : index
    %c0_200 = arith.constant 0 : index
    %c0_201 = arith.constant 0 : index
    %331 = vector.load %arg5[%c2_198, %c3_199, %c0_200, %c0_201] : memref<4x4x128x256xbf16, #tpu.memory_space<vmem>>, vector<1x1x128x256xbf16>
    %332 = vector.shape_cast %331 : vector<1x1x128x256xbf16> to vector<128x256xbf16>
    %333 = arith.subf %330, %332 : vector<128x256xbf16>
    %334 = math.absf %333 : vector<128x256xbf16>
    %335 = arith.extf %334 : vector<128x256xbf16> to vector<128x256xf32>
    %336 = vector.shape_cast %335 : vector<128x256xf32> to vector<16x8x256xf32>
    %cst_202 = arith.constant dense<0.000000e+00> : vector<8x256xf32>
    %337 = vector.multi_reduction <add>, %336, %cst_202 [0] : vector<16x8x256xf32> to vector<8x256xf32>
    %338 = arith.addf %316, %337 : vector<8x256xf32>
    %c3_203 = arith.constant 3 : index
    %c0_204 = arith.constant 0 : index
    %c0_205 = arith.constant 0 : index
    %339 = vector.load %arg3[%c3_203, %c0_204, %c0_205] : memref<4x128x128xbf16, #tpu.memory_space<vmem>>, vector<1x128x128xbf16>
    %340 = vector.shape_cast %339 : vector<1x128x128xbf16> to vector<128x128xbf16>
    %cst_206 = arith.constant dense<0.000000e+00> : vector<128x256xf32>
    %341 = tpu.matmul %340, %272, %cst_206 {dimension_numbers = #tpu.dot_dimension_numbers<[1], [0], [0], [1], [0, 0, 1, 1], [], []>} : vector<128x128xbf16>, vector<128x256xbf16>, vector<128x256xf32> -> vector<128x256xf32>
    %c3_207 = arith.constant 3 : index
    %c0_208 = arith.constant 0 : index
    %c0_209 = arith.constant 0 : index
    %342 = vector.load %arg4[%c3_207, %c0_208, %c0_209] : memref<4x128x1xf32, #tpu.memory_space<vmem>>, vector<1x128x1xf32>
    %343 = vector.shape_cast %342 : vector<1x128x1xf32> to vector<128x1xf32>
    %344 = vector.broadcast %343 : vector<128x1xf32> to vector<128x256xf32>
    %345 = arith.addf %341, %344 : vector<128x256xf32>
    %346 = arith.truncf %345 : vector<128x256xf32> to vector<128x256xbf16>
    %347 = arith.negf %346 : vector<128x256xbf16>
    %348 = math.exp %347 : vector<128x256xbf16>
    %cst_210 = arith.constant 1.000000e+00 : bf16
    %349 = vector.broadcast %cst_210 : bf16 to vector<128x256xbf16>
    %350 = arith.addf %349, %348 : vector<128x256xbf16>
    %351 = arith.divf %349, %350 : vector<128x256xbf16>
    %352 = arith.mulf %351, %272 : vector<128x256xbf16>
    %c3_211 = arith.constant 3 : index
    %c3_212 = arith.constant 3 : index
    %c0_213 = arith.constant 0 : index
    %c0_214 = arith.constant 0 : index
    %353 = vector.load %arg5[%c3_211, %c3_212, %c0_213, %c0_214] : memref<4x4x128x256xbf16, #tpu.memory_space<vmem>>, vector<1x1x128x256xbf16>
    %354 = vector.shape_cast %353 : vector<1x1x128x256xbf16> to vector<128x256xbf16>
    %355 = arith.subf %352, %354 : vector<128x256xbf16>
    %356 = math.absf %355 : vector<128x256xbf16>
    %357 = arith.extf %356 : vector<128x256xbf16> to vector<128x256xf32>
    %358 = vector.shape_cast %357 : vector<128x256xf32> to vector<16x8x256xf32>
    %cst_215 = arith.constant dense<0.000000e+00> : vector<8x256xf32>
    %359 = vector.multi_reduction <add>, %358, %cst_215 [0] : vector<16x8x256xf32> to vector<8x256xf32>
    %360 = arith.addf %338, %359 : vector<8x256xf32>
    %c0_216 = arith.constant 0 : index
    %c0_217 = arith.constant 0 : index
    %c0_218 = arith.constant 0 : index
    %c0_219 = arith.constant 0 : index
    %361 = vector.load %arg6[%c0_216, %c0_217, %c0_218, %c0_219] : memref<1x1x8x256xf32, #tpu.memory_space<vmem>>, vector<1x1x8x256xf32>
    %362 = vector.shape_cast %361 : vector<1x1x8x256xf32> to vector<8x256xf32>
    %363 = vector.shape_cast %360 : vector<8x256xf32> to vector<1x1x8x256xf32>
    tpu.vector_store %arg6[%c0_216, %c0_217, %c0_218, %c0_219], %363 {strides = array<i32>} : memref<1x1x8x256xf32, #tpu.memory_space<vmem>>, vector<1x1x8x256xf32>,
    return
  }
  func.func @transform_0(%arg0: i32, %arg1: i32) -> (i32, i32, i32) {
    %c0_i32 = arith.constant 0 : i32
    %c0_i32_0 = arith.constant 0 : i32
    return %arg0, %c0_i32, %arg1 : i32, i32, i32
  }
  func.func @transform_1(%arg0: i32, %arg1: i32) -> (i32, i32, i32) {
    %c0_i32 = arith.constant 0 : i32
    %c0_i32_0 = arith.constant 0 : i32
    %c0_i32_1 = arith.constant 0 : i32
    %c0_i32_2 = arith.constant 0 : i32
    return %c0_i32, %c0_i32_0, %c0_i32_1 : i32, i32, i32
  }
  func.func @transform_2(%arg0: i32, %arg1: i32) -> (i32, i32, i32) {
    %c0_i32 = arith.constant 0 : i32
    %c0_i32_0 = arith.constant 0 : i32
    %c0_i32_1 = arith.constant 0 : i32
    %c0_i32_2 = arith.constant 0 : i32
    return %c0_i32, %c0_i32_0, %c0_i32_1 : i32, i32, i32
  }
  func.func @transform_3(%arg0: i32, %arg1: i32) -> (i32, i32, i32, i32) {
    %c0_i32 = arith.constant 0 : i32
    %c0_i32_0 = arith.constant 0 : i32
    %c0_i32_1 = arith.constant 0 : i32
    return %c0_i32, %arg0, %c0_i32_0, %arg1 : i32, i32, i32, i32
  }
  func.func @transform_4(%arg0: i32, %arg1: i32) -> (i32, i32, i32, i32) {
    %c0_i32 = arith.constant 0 : i32
    %c0_i32_0 = arith.constant 0 : i32
    %c0_i32_1 = arith.constant 0 : i32
    return %arg0, %arg1, %c0_i32, %c0_i32_0 : i32, i32, i32, i32
  }
}

</mosaic_0001>

<bundles_post_ra>
// kernel: multi_loss.1
= control target key start
LH: loop header
LB: loop body
LE: loop exit
PB: predicated region body
PF: predicated region fallthrough
CT: control target
= control target key end

     0   :  { %9 = vsyncpa [#allocation3], 0  ;;  %s10794_s15 = smov [#allocation2]   ;;  %s15595_s0 = inlined_call_operand.vmem [shape: bf16[4,128,256], index: 0, kind: input, shape index: {}]   ;;  %s15596_s1 = inlined_call_operand.vmem [shape: bf16[4,128,128], index: 1, kind: input, shape index: {}]   ;;  %s15597_s2 = inlined_call_operand.vmem [shape: f32[4,128,1], index: 2, kind: input, shape index: {}]   ;;  %s15598_s3 = inlined_call_operand.hbm [shape: bf16[4,4,128,256], index: 3, kind: input, shape index: {}]   ;;  %s15599_s4 = inlined_call_operand.vmem [shape: f32[1,1,8,256], index: 4, kind: output, shape index: {}]  }
   0x1   :  { %s21_s16 = sshll.u32 %s10794_s15, 4  ;;  %s10770_s19 = scalar_lea.hbm %s15598_s3, 32768  ;;  %s22_s16 = int_to_ptr.vmem [resolvable:$true] %s21_s16 }
   0x2   :  { %p10771_p0 = scmp.ne.s32.totalorder %s15598_s3, %s10770_s19  ;;  %p10774_p1 = scmp.lt.u32.totalorder %s10770_s19, %s15598_s3 }
   0x4   :  { %p10776_p2 = pnand %p10774_p1, %p10771_p0 }
   0x6   :  { %10779 = shalt.err (!%p10776_p2)
}
   0x7   :  { %s10780_s24 = scalar_lea.vmem %s22_s16, 32768  ;;  %p10785_p4 = scmp.lt.s32.totalorder %s22_s16, %s22_s16 }
   0x8   :  { %p10781_p3 = scmp.ne.s32.totalorder %s22_s16, %s10780_s24  ;;  %p10786_p5 = scmp.lt.s32.totalorder %s10780_s24, %s10780_s24 }
   0xa   :  { %p10787_p6 = por %p10786_p5, %p10785_p4 }
   0xc   :  { %p10788_p7 = pnand %p10787_p6, %p10781_p3 }
   0xe   :  { %10791 = shalt.err (!%p10788_p7)
}
   0xf   :  { %s10795_s25 = smov 128   ;;  %s10796_s26 = smov 8  }
  0x10   :  { %27 = dma.hbm_to_vmem [thread:$0]  %s15598_s3, 32768, %s22_s16, [#allocation3], %s10795_s25, %s10795_s25, %s10796_s26  }
  0x11   :  { %10792 = dma.done.wait [#allocation3], 32768  }
  0x12   :  { %10793 = vsyncadd [#allocation3], 4294934528  ;;  %v15600_v0 = vmov 0   ;;  %v10842_v1 = vld [vmem:[%s15595_s0 + $0x4] ss:$8 sps:$4 sm:$0xff]   ;;  %v67_v13 = vld [vmem:[%s15597_s2 + $0x10] sm:$0xff] }
  0x13   :  { %321 = vmatprep.mubr.bf16.mxu0 %v15600_v0  ;;  %932 = vmatprep.mubr.bf16.mxu1 %v15600_v0  ;;  %v10847_v2 = vld [vmem:[%s15595_s0] ss:$8 sps:$4 sm:$0xff]   ;;  %v10854_v3 = vld [vmem:[%s15595_s0 + $0x14] ss:$8 sps:$4 sm:$0xff]   ;;  %v10861_v4 = vld [vmem:[%s15595_s0 + $0x10] ss:$8 sps:$4 sm:$0xff]  }
  0x14   :  { %9029 = vset.pattern.permute.xlu1 %v15600_v0  ;;  %9028 = vset.pattern.permute.xlu0 %v15600_v0  ;;  %v10868_v5 = vld [vmem:[%s15595_s0 + $0x24] ss:$8 sps:$4 sm:$0xff]   ;;  %v10875_v6 = vld [vmem:[%s15595_s0 + $0x20] ss:$8 sps:$4 sm:$0xff]   ;;  %v10882_v7 = vld [vmem:[%s15595_s0 + $0x34] ss:$8 sps:$4 sm:$0xff]  }
  0x15   :  { %289 = vmatprep.subr.bf16.mxu0 %v10842_v1  ;;  %900 = vmatprep.subr.bf16.mxu1 %v10842_v1  ;;  %v10889_v8 = vld [vmem:[%s15595_s0 + $0x30] ss:$8 sps:$4 sm:$0xff]   ;;  %v10896_v9 = vld [vmem:[%s15595_s0 + $0x44] ss:$8 sps:$4 sm:$0xff]   ;;  %v10903_v10 = vld [vmem:[%s15595_s0 + $0x40] ss:$8 sps:$4 sm:$0xff]  }
  0x16   :  { %290 = vmatpush1.bf16.msra.mxu0 %v10847_v2  ;;  %901 = vmatpush1.bf16.msra.mxu1 %v10847_v2  ;;  %v10910_v11 = vld [vmem:[%s15595_s0 + $0x54] ss:$8 sps:$4 sm:$0xff]   ;;  %v10915_v12 = vld [vmem:[%s15595_s0 + $0x50] ss:$8 sps:$4 sm:$0xff]   ;;  %v65_v14 = vld [vmem:[%s15597_s2] sm:$0xff] }
  0x17   :  { %291 = vmatprep.subr.bf16.mxu0 %v10854_v3  ;;  %902 = vmatprep.subr.bf16.mxu1 %v10854_v3  ;;  %v10930_v15 = vld [vmem:[%s15595_s0 + $0x64] ss:$8 sps:$4 sm:$0xff]   ;;  %v68_v16 = vld [vmem:[%s15597_s2 + $0x18] sm:$0xff]  ;;  %v10943_v18 = vld [vmem:[%s15595_s0 + $0x60] ss:$8 sps:$4 sm:$0xff]  }
  0x18   :  { %93 = vperm.xlu1 %9029, %v67_v13   ;;  %83 = vperm.xlu0 %9028, %v65_v14   ;;  %v66_v17 = vld [vmem:[%s15597_s2 + $0x8] sm:$0xff]  ;;  %v10950_v19 = vld [vmem:[%s15595_s0 + $0x74] ss:$8 sps:$4 sm:$0xff]   ;;  %v69_v21 = vld [vmem:[%s15597_s2 + $0x20] sm:$0xff] }
  0x19   :  { %v70_v20 = vld [vmem:[%s15597_s2 + $0x28] sm:$0xff]  ;;  %v10963_v22 = vld [vmem:[%s15595_s0 + $0x70] ss:$8 sps:$4 sm:$0xff]   ;;  %v9054_v23 = vld [vmem:[%s15596_s1] sm:$0xff]  }
  0x1a   :  { %292 = vmatpush1.bf16.msra.mxu0 %v10861_v4  ;;  %903 = vmatpush1.bf16.msra.mxu1 %v10861_v4  ;;  %v9055_v24 = vld [vmem:[%s15596_s1 + $0x40] sm:$0xff]   ;;  %v72_v25 = vld [vmem:[%s15597_s2 + $0x38] sm:$0xff]  ;;  %v71_v26 = vld [vmem:[%s15597_s2 + $0x30] sm:$0xff] }
  0x1b   :  { %293 = vmatprep.subr.bf16.mxu0 %v10868_v5  ;;  %904 = vmatprep.subr.bf16.mxu1 %v10868_v5  ;;  %v74_v27 = vld [vmem:[%s15597_s2 + $0x48] sm:$0xff]  ;;  %v73_v28 = vld [vmem:[%s15597_s2 + $0x40] sm:$0xff]  ;;  %v76_v31 = vld [vmem:[%s15597_s2 + $0x58] sm:$0xff] }
  0x1c   :  { %98 = vperm.xlu1 %9029, %v68_v16   ;;  %88 = vperm.xlu0 %9028, %v66_v17   ;;  %v9056_v29 = vld [vmem:[%s15596_s1 + $0x8] sm:$0xff]   ;;  %v75_v32 = vld [vmem:[%s15597_s2 + $0x50] sm:$0xff]  ;;  %v77_v36 = vld [vmem:[%s15597_s2 + $0x60] sm:$0xff] }
  0x1d   :  { %v9057_v30 = vld [vmem:[%s15596_s1 + $0x48] sm:$0xff]   ;;  %v9058_v33 = vld [vmem:[%s15596_s1 + $0x10] sm:$0xff]   ;;  %v9060_v37 = vld [vmem:[%s15596_s1 + $0x18] sm:$0xff]  }
  0x1e   :  { %294 = vmatpush1.bf16.msra.mxu0 %v10875_v6  ;;  %905 = vmatpush1.bf16.msra.mxu1 %v10875_v6  ;;  %v9059_v34 = vld [vmem:[%s15596_s1 + $0x50] sm:$0xff]   ;;  %v78_v35 = vld [vmem:[%s15597_s2 + $0x68] sm:$0xff]  ;;  %v9061_v38 = vld [vmem:[%s15596_s1 + $0x58] sm:$0xff]  }
  0x1f   :  { %295 = vmatprep.subr.bf16.mxu0 %v10882_v7  ;;  %906 = vmatprep.subr.bf16.mxu1 %v10882_v7  ;;  %v80_v39 = vld [vmem:[%s15597_s2 + $0x78] sm:$0xff]  ;;  %v79_v40 = vld [vmem:[%s15597_s2 + $0x70] sm:$0xff]  ;;  %v9062_v41 = vld [vmem:[%s15596_s1 + $0x20] sm:$0xff]  }
  0x20   :  { %108 = vperm.xlu1 %9029, %v70_v20   ;;  %103 = vperm.xlu0 %9028, %v69_v21   ;;  %v9063_v42 = vld [vmem:[%s15596_s1 + $0x60] sm:$0xff]   ;;  %v8345_v44 = vld [vmem:[%s15597_s2 + $0x88] sm:$0xff]  ;;  %v8347_v46 = vld [vmem:[%s15597_s2 + $0x98] sm:$0xff] }
  0x21   :  { %v11069_v43 = vld [vmem:[%s15595_s0 + $0x84] ss:$8 sps:$4 sm:$0xff]   ;;  %v8346_v47 = vld [vmem:[%s15597_s2 + $0x90] sm:$0xff]  ;;  %v8419_v59 = vld [vmem:[%s15597_s2 + $0x118] sm:$0xff] }
  0x22   :  { %296 = vmatpush1.bf16.msra.mxu0 %v10889_v8  ;;  %907 = vmatpush1.bf16.msra.mxu1 %v10889_v8  ;;  %v8344_v45 = vld [vmem:[%s15597_s2 + $0x80] sm:$0xff]  ;;  %v9064_v48 = vld [vmem:[%s15596_s1 + $0x28] sm:$0xff]   ;;  %v8350_v53 = vld [vmem:[%s15597_s2 + $0xb0] sm:$0xff] }
  0x23   :  { %297 = vmatprep.subr.bf16.mxu0 %v10896_v9  ;;  %908 = vmatprep.subr.bf16.mxu1 %v10896_v9  ;;  %v9065_v49 = vld [vmem:[%s15596_s1 + $0x68] sm:$0xff]   ;;  %v8348_v51 = vld [vmem:[%s15597_s2 + $0xa0] sm:$0xff]  ;;  %v9066_v54 = vld [vmem:[%s15596_s1 + $0x30] sm:$0xff]  }
  0x24   :  { %118 = vperm.xlu1 %9029, %v72_v25   ;;  %113 = vperm.xlu0 %9028, %v71_v26   ;;  %v8349_v50 = vld [vmem:[%s15597_s2 + $0xa8] sm:$0xff]  ;;  %v8416_v52 = vld [vmem:[%s15597_s2 + $0x100] sm:$0xff]  ;;  %v9067_v55 = vld [vmem:[%s15596_s1 + $0x70] sm:$0xff]  }
  0x25   :  { %v8418_v56 = vld [vmem:[%s15597_s2 + $0x110] sm:$0xff]  ;;  %v8417_v57 = vld [vmem:[%s15597_s2 + $0x108] sm:$0xff]  ;;  %v8488_v58 = vld [vmem:[%s15597_s2 + $0x180] sm:$0xff] }
  0x26   :  { %298 = vmatpush1.bf16.msra.mxu0 %v10903_v10  ;;  %909 = vmatpush1.bf16.msra.mxu1 %v10903_v10  ;;  %v9068_v60 = vld [vmem:[%s15596_s1 + $0x38] sm:$0xff]   ;;  %v8490_v62 = vld [vmem:[%s15597_s2 + $0x190] sm:$0xff]  ;;  %v8489_v63 = vld [vmem:[%s15597_s2 + $0x188] sm:$0xff] }
  0x27   :  { %299 = vmatprep.subr.bf16.mxu0 %v10910_v11  ;;  %910 = vmatprep.subr.bf16.mxu1 %v10910_v11  ;;  %v9069_v61 = vld [vmem:[%s15596_s1 + $0x78] sm:$0xff]   ;;  %v11203_v13 = vld [vmem:[%s15596_s1 + $0xc8] sm:$0xff]   ;;  %v11244_v20 = vld [vmem:[%s15596_s1 + $0x90] sm:$0xff]  }
  0x28   :  { %128 = vperm.xlu1 %9029, %v74_v27   ;;  %123 = vperm.xlu0 %9028, %v73_v28   ;;  %v11210_v14 = vld [vmem:[%s15595_s0 + $0xa0] ss:$8 sps:$4 sm:$0xff]   ;;  %v11226_v16 = vld [vmem:[%s15595_s0 + $0xb0] ss:$8 sps:$4 sm:$0xff]   ;;  %v11233_v17 = vld [vmem:[%s15595_s0 + $0xc4] ss:$8 sps:$4 sm:$0xff]  }
  0x29   :  { %v11249_v21 = vld [vmem:[%s15596_s1 + $0xd0] sm:$0xff]   ;;  %v8353_v26 = vld [vmem:[%s15597_s2 + $0xc8] sm:$0xff]  ;;  %v11292_v28 = vld [vmem:[%s15596_s1 + $0x98] sm:$0xff]  }
  0x2a   :  { %300 = vmatpush1.bf16.msra.mxu0 %v10915_v12  ;;  %911 = vmatpush1.bf16.msra.mxu1 %v10915_v12  ;;  %v11277_v25 = vld [vmem:[%s15595_s0 + $0xd0] ss:$8 sps:$4 sm:$0xff]   ;;  %v11287_v27 = vld [vmem:[%s15595_s0 + $0xe4] ss:$8 sps:$4 sm:$0xff]  }
  0x2b   :  { %301 = vmatprep.subr.bf16.mxu0 %v10930_v15  ;;  %912 = vmatprep.subr.bf16.mxu1 %v10930_v15 }
  0x2c   :  { %138 = vperm.xlu1 %9029, %v76_v31   ;;  %133 = vperm.xlu0 %9028, %v75_v32   ;;  %v11309_v31 = vld [vmem:[%s15595_s0 + $0xe0] ss:$8 sps:$4 sm:$0xff]   ;;  %v8495_v32 = vld [vmem:[%s15597_s2 + $0x1b8] sm:$0xff] }
  0x2e   :  { %302 = vmatpush1.bf16.msra.mxu0 %v10943_v18  ;;  %913 = vmatpush1.bf16.msra.mxu1 %v10943_v18 }
  0x2f   :  { %303 = vmatprep.subr.bf16.mxu0 %v10950_v19  ;;  %914 = vmatprep.subr.bf16.mxu1 %v10950_v19 }
  0x30   :  { %148 = vperm.xlu1 %9029, %v78_v35   ;;  %143 = vperm.xlu0 %9028, %v77_v36   ;;  %v11330_v35 = vld [vmem:[%s15595_s0 + $0xf0] ss:$8 sps:$4 sm:$0xff]   ;;  %v8425_v36 = vld [vmem:[%s15597_s2 + $0x148] sm:$0xff] }
  0x32   :  { %304 = vmatpush1.bf16.msra.mxu0 %v10963_v22  ;;  %915 = vmatpush1.bf16.msra.mxu1 %v10963_v22 }
  0x33   :  { %1512 = vmatprep.subr.bf16.mxu0 %v10842_v1  ;;  %2124 = vmatprep.subr.bf16.mxu1 %v10842_v1  ;;  %v8420_v1 = vld [vmem:[%s15597_s2 + $0x120] sm:$0xff] }
  0x34   :  { %158 = vperm.xlu1 %9029, %v80_v39   ;;  %153 = vperm.xlu0 %9028, %v79_v40   ;;  %v8424_v39 = vld [vmem:[%s15597_s2 + $0x140] sm:$0xff]  ;;  %v8355_v40 = vld [vmem:[%s15597_s2 + $0xd8] sm:$0xff] }
  0x35   :  { %322 = vmatmul.mubr.bf16.vlgmr.msra.gmra.mrb[0].mxu0 %v9054_v23  ;;  %933 = vmatmul.mubr.bf16.vlgmr.msra.gmra.mrb[0].mxu1 %v9055_v24  ;;  %v11263_v23 = vld [vmem:[%s15595_s0 + $0xd4] ss:$8 sps:$4 sm:$0xff]  }
  0x36   :  { %1513 = vmatpush1.bf16.msra.mxu0 %v10847_v2  ;;  %2125 = vmatpush1.bf16.msra.mxu1 %v10847_v2  ;;  %v8491_v2 = vld [vmem:[%s15597_s2 + $0x198] sm:$0xff]  ;;  %v8422_v24 = vld [vmem:[%s15597_s2 + $0x130] sm:$0xff] }
  0x37   :  { %331 = vmatprep.mubr.bf16.mxu0 %v15600_v0  ;;  %942 = vmatprep.mubr.bf16.mxu1 %v15600_v0 }
  0x38   :  { %1514 = vmatprep.subr.bf16.mxu0 %v10854_v3  ;;  %2126 = vmatprep.subr.bf16.mxu1 %v10854_v3  ;;  %v11153_v3 = vld [vmem:[%s15596_s1 + $0x80] sm:$0xff]  }
  0x39   :  { %779 = vperm.xlu1 %9029, %v8345_v44   ;;  %774 = vperm.xlu0 %9028, %v8344_v45   ;;  %v11373_v44 = vld [vmem:[%s15596_s1 + $0xa8] sm:$0xff]  }
  0x3a   :  { %1515 = vmatpush1.bf16.msra.mxu0 %v10861_v4  ;;  %2127 = vmatpush1.bf16.msra.mxu1 %v10861_v4  ;;  %v11158_v4 = vld [vmem:[%s15596_s1 + $0xc0] sm:$0xff]   ;;  %v11378_v45 = vld [vmem:[%s15596_s1 + $0xe8] sm:$0xff]  }
  0x3b   :  { %1516 = vmatprep.subr.bf16.mxu0 %v10868_v5  ;;  %2128 = vmatprep.subr.bf16.mxu1 %v10868_v5  ;;  %v8351_v5 = vld [vmem:[%s15597_s2 + $0xb8] sm:$0xff] }
  0x3d   :  { %332 = vmatmul.mubr.bf16.gmra.mrb[4].mxu0 %v9056_v29  ;;  %943 = vmatmul.mubr.bf16.gmra.mrb[4].mxu1 %v9057_v30  ;;  %v11297_v29 = vld [vmem:[%s15596_s1 + $0xd8] sm:$0xff]   ;;  %v8352_v30 = vld [vmem:[%s15597_s2 + $0xc0] sm:$0xff] }
  0x3e   :  { %341 = vmatprep.mubr.bf16.mxu0 %v15600_v0  ;;  %952 = vmatprep.mubr.bf16.mxu1 %v15600_v0 }
  0x3f   :  { %1517 = vmatpush1.bf16.msra.mxu0 %v10875_v6  ;;  %2129 = vmatpush1.bf16.msra.mxu1 %v10875_v6  ;;  %v11166_v6 = vld [vmem:[%s15595_s0 + $0x80] ss:$8 sps:$4 sm:$0xff]  }
  0x40   :  { %1518 = vmatprep.subr.bf16.mxu0 %v10882_v7  ;;  %2130 = vmatprep.subr.bf16.mxu1 %v10882_v7  ;;  %v11171_v7 = vld [vmem:[%s15595_s0 + $0x94] ss:$8 sps:$4 sm:$0xff]  }
  0x41   :  { %789 = vperm.xlu1 %9029, %v8347_v46   ;;  %784 = vperm.xlu0 %9028, %v8346_v47   ;;  %v8496_v46 = vld [vmem:[%s15597_s2 + $0x1c0] sm:$0xff]  ;;  %v8427_v47 = vld [vmem:[%s15597_s2 + $0x158] sm:$0xff] }
  0x43   :  { %1519 = vmatpush1.bf16.msra.mxu0 %v10889_v8  ;;  %2131 = vmatpush1.bf16.msra.mxu1 %v10889_v8  ;;  %v11178_v8 = vld [vmem:[%s15595_s0 + $0x90] ss:$8 sps:$4 sm:$0xff]  }
  0x44   :  { %1520 = vmatprep.subr.bf16.mxu0 %v10896_v9  ;;  %2132 = vmatprep.subr.bf16.mxu1 %v10896_v9  ;;  %v11183_v9 = vld [vmem:[%s15595_s0 + $0xa4] ss:$8 sps:$4 sm:$0xff]  }
  0x45   :  { %342 = vmatmul.mubr.bf16.gmra.mrb[8].mxu0 %v9058_v33  ;;  %953 = vmatmul.mubr.bf16.gmra.mrb[8].mxu1 %v9059_v34  ;;  %v8494_v33 = vld [vmem:[%s15597_s2 + $0x1b0] sm:$0xff] }
  0x46   :  { %351 = vmatprep.mubr.bf16.mxu0 %v15600_v0  ;;  %962 = vmatprep.mubr.bf16.mxu1 %v15600_v0  ;;  %v11322_v34 = vld [vmem:[%s15595_s0 + $0xf4] ss:$8 sps:$4 sm:$0xff]  }
  0x47   :  { %1521 = vmatpush1.bf16.msra.mxu0 %v10903_v10  ;;  %2133 = vmatpush1.bf16.msra.mxu1 %v10903_v10  ;;  %v8421_v10 = vld [vmem:[%s15597_s2 + $0x128] sm:$0xff] }
  0x48   :  { %1522 = vmatprep.subr.bf16.mxu0 %v10910_v11  ;;  %2134 = vmatprep.subr.bf16.mxu1 %v10910_v11  ;;  %v8493_v11 = vld [vmem:[%s15597_s2 + $0x1a8] sm:$0xff] }
  0x49   :  { %799 = vperm.xlu1 %9029, %v8349_v50   ;;  %794 = vperm.xlu0 %9028, %v8348_v51   ;;  %v11406_v50 = vld [vmem:[%s15596_s1 + $0xf0] sm:$0xff]   ;;  %v8356_v51 = vld [vmem:[%s15597_s2 + $0xe0] sm:$0xff] }
  0x4b   :  { %1523 = vmatpush1.bf16.msra.mxu0 %v10915_v12  ;;  %2135 = vmatpush1.bf16.msra.mxu1 %v10915_v12  ;;  %v11198_v12 = vld [vmem:[%s15596_s1 + $0x88] sm:$0xff]  }
  0x4c   :  { %1524 = vmatprep.subr.bf16.mxu0 %v10930_v15  ;;  %2136 = vmatprep.subr.bf16.mxu1 %v10930_v15  ;;  %v11217_v15 = vld [vmem:[%s15595_s0 + $0xb4] ss:$8 sps:$4 sm:$0xff]  }
  0x4d   :  { %352 = vmatmul.mubr.bf16.gmra.mrb[12].mxu0 %v9060_v37  ;;  %963 = vmatmul.mubr.bf16.gmra.mrb[12].mxu1 %v9061_v38  ;;  %v11340_v37 = vld [vmem:[%s15596_s1 + $0xa0] sm:$0xff]  }
  0x4e   :  { %361 = vmatprep.mubr.bf16.mxu0 %v15600_v0  ;;  %972 = vmatprep.mubr.bf16.mxu1 %v15600_v0  ;;  %v11345_v38 = vld [vmem:[%s15596_s1 + $0xe0] sm:$0xff]  }
  0x4f   :  { %1525 = vmatpush1.bf16.msra.mxu0 %v10943_v18  ;;  %2137 = vmatpush1.bf16.msra.mxu1 %v10943_v18  ;;  %v8492_v18 = vld [vmem:[%s15597_s2 + $0x1a0] sm:$0xff] }
  0x50   :  { %1526 = vmatprep.subr.bf16.mxu0 %v10950_v19  ;;  %2138 = vmatprep.subr.bf16.mxu1 %v10950_v19  ;;  %v8423_v19 = vld [vmem:[%s15597_s2 + $0x138] sm:$0xff] }
  0x51   :  { %1386 = vperm.xlu1 %9029, %v8416_v52   ;;  %804 = vperm.xlu0 %9028, %v8350_v53   ;;  %v8499_v52 = vld [vmem:[%s15597_s2 + $0x1d8] sm:$0xff]  ;;  %v8498_v53 = vld [vmem:[%s15597_s2 + $0x1d0] sm:$0xff] }
  0x53   :  { %1527 = vmatpush1.bf16.msra.mxu0 %v10963_v22  ;;  %2139 = vmatpush1.bf16.msra.mxu1 %v10963_v22  ;;  %v11258_v22 = vld [vmem:[%s15595_s0 + $0xc0] ss:$8 sps:$4 sm:$0xff]  }
  0x54   :  { %2671 = vmatprep.subr.bf16.mxu0 %v11069_v43  ;;  %3121 = vmatprep.subr.bf16.mxu1 %v11069_v43 }
  0x55   :  { %362 = vmatmul.mubr.bf16.gmra.mrb[16].mxu0 %v9062_v41  ;;  %973 = vmatmul.mubr.bf16.gmra.mrb[16].mxu1 %v9063_v42  ;;  %v8354_v41 = vld [vmem:[%s15597_s2 + $0xd0] sm:$0xff]  ;;  %v8497_v42 = vld [vmem:[%s15597_s2 + $0x1c8] sm:$0xff] }
  0x56   :  { %371 = vmatprep.mubr.bf16.mxu0 %v15600_v0  ;;  %982 = vmatprep.mubr.bf16.mxu1 %v15600_v0 }
  0x57   :  { %1396 = vperm.xlu1 %9029, %v8418_v56   ;;  %1391 = vperm.xlu0 %9028, %v8417_v57   ;;  %v8429_v56 = vld [vmem:[%s15597_s2 + $0x168] sm:$0xff] }
  0x5b   :  { %1998 = vperm.xlu1 %9029, %v8488_v58   ;;  %1401 = vperm.xlu0 %9028, %v8419_v59   ;;  %v8428_v59 = vld [vmem:[%s15597_s2 + $0x160] sm:$0xff] }
  0x5d   :  { %372 = vmatmul.mubr.bf16.gmra.mrb[20].mxu0 %v9064_v48  ;;  %983 = vmatmul.mubr.bf16.gmra.mrb[20].mxu1 %v9065_v49  ;;  %v8426_v48 = vld [vmem:[%s15597_s2 + $0x150] sm:$0xff] }
  0x5e   :  { %381 = vmatprep.mubr.bf16.mxu0 %v15600_v0  ;;  %992 = vmatprep.mubr.bf16.mxu1 %v15600_v0  ;;  %v11401_v49 = vld [vmem:[%s15596_s1 + $0xb0] sm:$0xff]  }
  0x5f   :  { %2008 = vperm.xlu1 %9029, %v8490_v62   ;;  %2003 = vperm.xlu0 %9028, %v8489_v63   ;;  %v8358_v63 = vld [vmem:[%s15597_s2 + $0xf0] sm:$0xff] }
  0x63   :  { %1406 = vperm.xlu1 %9029, %v8420_v1   ;;  %2013 = vperm.xlu0 %9028, %v8491_v2   ;;  %v8501_v1 = vld [vmem:[%s15597_s2 + $0x1e8] sm:$0xff] }
  0x65   :  { %382 = vmatmul.mubr.bf16.gmra.mrb[24].mxu0 %v9066_v54  ;;  %993 = vmatmul.mubr.bf16.gmra.mrb[24].mxu1 %v9067_v55  ;;  %v11424_v54 = vld [vmem:[%s15596_s1 + $0xb8] sm:$0xff]  }
  0x66   :  { %391 = vmatprep.mubr.bf16.mxu0 %v15600_v0  ;;  %1002 = vmatprep.mubr.bf16.mxu1 %v15600_v0  ;;  %v11429_v55 = vld [vmem:[%s15596_s1 + $0xf8] sm:$0xff]  }
  0x67   :  { %809 = vperm.xlu1 %9029, %v8351_v5   ;;  %1411 = vperm.xlu0 %9028, %v8421_v10   ;;  %v8500_v5 = vld [vmem:[%s15597_s2 + $0x1e0] sm:$0xff] }
  0x6b   :  { %2023 = vperm.xlu1 %9029, %v8493_v11   ;;  %2018 = vperm.xlu0 %9028, %v8492_v18   ;;  %v8431_v11 = vld [vmem:[%s15597_s2 + $0x178] sm:$0xff]  ;;  %v11471_v18 = vld [vmem:[%s15596_s1] sm:$0xff]  }
  0x6d   :  { %392 = vmatmul.mubr.bf16.gmra.mrb[28].mxu0 %v9068_v60  ;;  %1003 = vmatmul.mubr.bf16.gmra.mrb[28].mxu1 %v9069_v61  ;;  %v8359_v60 = vld [vmem:[%s15597_s2 + $0xf8] sm:$0xff] }
  0x6e   :  { %1544 = vmatprep.mubr.bf16.mxu0 %v15600_v0  ;;  %2156 = vmatprep.mubr.bf16.mxu1 %v15600_v0 }
  0x6f   :  { %1421 = vperm.xlu1 %9029, %v8423_v19   ;;  %1416 = vperm.xlu0 %9028, %v8422_v24   ;;  %v11477_v19 = vld [vmem:[%s15596_s1 + $0x40] sm:$0xff]   ;;  %v8430_v24 = vld [vmem:[%s15597_s2 + $0x170] sm:$0xff] }
  0x73   :  { %819 = vperm.xlu1 %9029, %v8353_v26   ;;  %814 = vperm.xlu0 %9028, %v8352_v30  }
  0x75   :  { %1545 = vmatmul.mubr.bf16.vlgmr.msra.gmra.mrb[32].mxu0 %v11153_v3  ;;  %2157 = vmatmul.mubr.bf16.vlgmr.msra.gmra.mrb[32].mxu1 %v11158_v4 }
  0x76   :  { %2672 = vmatpush1.bf16.msra.mxu0 %v11166_v6  ;;  %3122 = vmatpush1.bf16.msra.mxu1 %v11166_v6 }
  0x77   :  { %1554 = vmatprep.mubr.bf16.mxu0 %v15600_v0  ;;  %2166 = vmatprep.mubr.bf16.mxu1 %v15600_v0 }
  0x78   :  { %2673 = vmatprep.subr.bf16.mxu0 %v11171_v7  ;;  %3123 = vmatprep.subr.bf16.mxu1 %v11171_v7 }
  0x79   :  { %2033 = vperm.xlu1 %9029, %v8495_v32   ;;  %2028 = vperm.xlu0 %9028, %v8494_v33   ;;  %v11506_v32 = vld [vmem:[%s15596_s1 + $0x8] sm:$0xff]  }
  0x7a   :  { %2674 = vmatpush1.bf16.msra.mxu0 %v11178_v8  ;;  %3124 = vmatpush1.bf16.msra.mxu1 %v11178_v8 }
  0x7b   :  { %2675 = vmatprep.subr.bf16.mxu0 %v11183_v9  ;;  %3125 = vmatprep.subr.bf16.mxu1 %v11183_v9 }
  0x7d   :  { %1555 = vmatmul.mubr.bf16.gmra.mrb[36].mxu0 %v11198_v12  ;;  %2167 = vmatmul.mubr.bf16.gmra.mrb[36].mxu1 %v11203_v13 }
  0x7e   :  { %1564 = vmatprep.mubr.bf16.mxu0 %v15600_v0  ;;  %2176 = vmatprep.mubr.bf16.mxu1 %v15600_v0 }
  0x7f   :  { %2676 = vmatpush1.bf16.msra.mxu0 %v11210_v14  ;;  %3126 = vmatpush1.bf16.msra.mxu1 %v11210_v14 }
  0x80   :  { %2677 = vmatprep.subr.bf16.mxu0 %v11217_v15  ;;  %3127 = vmatprep.subr.bf16.mxu1 %v11217_v15 }
  0x81   :  { %1431 = vperm.xlu1 %9029, %v8425_v36   ;;  %1426 = vperm.xlu0 %9028, %v8424_v39  }
  0x83   :  { %2678 = vmatpush1.bf16.msra.mxu0 %v11226_v16  ;;  %3128 = vmatpush1.bf16.msra.mxu1 %v11226_v16 }
  0x84   :  { %2679 = vmatprep.subr.bf16.mxu0 %v11233_v17  ;;  %3129 = vmatprep.subr.bf16.mxu1 %v11233_v17 }
  0x85   :  { %1565 = vmatmul.mubr.bf16.gmra.mrb[40].mxu0 %v11244_v20  ;;  %2177 = vmatmul.mubr.bf16.gmra.mrb[40].mxu1 %v11249_v21 }
  0x86   :  { %1574 = vmatprep.mubr.bf16.mxu0 %v15600_v0  ;;  %2186 = vmatprep.mubr.bf16.mxu1 %v15600_v0 }
  0x87   :  { %2680 = vmatpush1.bf16.msra.mxu0 %v11258_v22  ;;  %3130 = vmatpush1.bf16.msra.mxu1 %v11258_v22 }
  0x88   :  { %2681 = vmatprep.subr.bf16.mxu0 %v11263_v23  ;;  %3131 = vmatprep.subr.bf16.mxu1 %v11263_v23 }
  0x89   :  { %829 = vperm.xlu1 %9029, %v8355_v40   ;;  %824 = vperm.xlu0 %9028, %v8354_v41   ;;  %v11578_v40 = vld [vmem:[%s15595_s0 + $0x104] ss:$8 sps:$4 sm:$0xff]  }
  0x8b   :  { %2682 = vmatpush1.bf16.msra.mxu0 %v11277_v25  ;;  %3132 = vmatpush1.bf16.msra.mxu1 %v11277_v25 }
  0x8c   :  { %2683 = vmatprep.subr.bf16.mxu0 %v11287_v27  ;;  %3133 = vmatprep.subr.bf16.mxu1 %v11287_v27 }
  0x8d   :  { %1575 = vmatmul.mubr.bf16.gmra.mrb[44].mxu0 %v11292_v28  ;;  %2187 = vmatmul.mubr.bf16.gmra.mrb[44].mxu1 %v11297_v29 }
  0x8e   :  { %1584 = vmatprep.mubr.bf16.mxu0 %v15600_v0  ;;  %2196 = vmatprep.mubr.bf16.mxu1 %v15600_v0 }
  0x8f   :  { %2684 = vmatpush1.bf16.msra.mxu0 %v11309_v31  ;;  %3134 = vmatpush1.bf16.msra.mxu1 %v11309_v31 }
  0x90   :  { %2685 = vmatprep.subr.bf16.mxu0 %v11322_v34  ;;  %3135 = vmatprep.subr.bf16.mxu1 %v11322_v34 }
  0x91   :  { %2043 = vperm.xlu1 %9029, %v8497_v42   ;;  %2038 = vperm.xlu0 %9028, %v8496_v46  }
  0x93   :  { %2686 = vmatpush1.bf16.msra.mxu0 %v11330_v35  ;;  %3136 = vmatpush1.bf16.msra.mxu1 %v11330_v35 }
  0x94   :  { %3571 = vmatprep.subr.bf16.mxu0 %v11069_v43  ;;  %4021 = vmatprep.subr.bf16.mxu1 %v11069_v43  ;;  %v8357_v43 = vld [vmem:[%s15597_s2 + $0xe8] sm:$0xff] }
  0x95   :  { %1585 = vmatmul.mubr.bf16.gmra.mrb[48].mxu0 %v11340_v37  ;;  %2197 = vmatmul.mubr.bf16.gmra.mrb[48].mxu1 %v11345_v38 }
  0x96   :  { %1594 = vmatprep.mubr.bf16.mxu0 %v15600_v0  ;;  %2206 = vmatprep.mubr.bf16.mxu1 %v15600_v0 }
  0x97   :  { %1441 = vperm.xlu1 %9029, %v8427_v47   ;;  %1436 = vperm.xlu0 %9028, %v8426_v48   ;;  %v11434_v57 = vpop.permute.xlu1 %93  ;;  %v11436_v58 = vpop.permute.xlu0 %83  ;;  %v10576_v47 = vld [vmem:[%s15596_s1 + $0x28] sm:$0xff]  }
  0x98   :  { %15868 = vst [vmem:[#allocation5_spill] sm:$0xff] %v11434_v57  ;;  %15869 = vst [vmem:[#allocation6_spill] sm:$0xff] %v11436_v58  ;;  %v10577_v48 = vld [vmem:[%s15596_s1 + $0x68] sm:$0xff]  }
  0x9b   :  { %839 = vperm.xlu1 %9029, %v8357_v43   ;;  %834 = vperm.xlu0 %9028, %v8356_v51   ;;  %v11444_v61 = vpop.permute.xlu1 %98  ;;  %v11446_v62 = vpop.permute.xlu0 %88 }
  0x9c   :  { %15870 = vst [vmem:[#allocation7_spill] sm:$0xff] %v11444_v61  ;;  %15871 = vst [vmem:[#allocation8_spill] sm:$0xff] %v11446_v62 }
  0x9d   :  { %1595 = vmatmul.mubr.bf16.gmra.mrb[52].mxu0 %v11373_v44  ;;  %2207 = vmatmul.mubr.bf16.gmra.mrb[52].mxu1 %v11378_v45 }
  0x9e   :  { %1604 = vmatprep.mubr.bf16.mxu0 %v15600_v0  ;;  %2216 = vmatprep.mubr.bf16.mxu1 %v15600_v0 }
  0x9f   :  { %2053 = vperm.xlu1 %9029, %v8499_v52   ;;  %2048 = vperm.xlu0 %9028, %v8498_v53   ;;  %v11458_v2 = vpop.permute.xlu1 %108  ;;  %v11463_v10 = vpop.permute.xlu0 %103 }
  0xa0   :  { %15872 = vst [vmem:[#allocation9_spill] sm:$0xff] %v11458_v2  ;;  %15873 = vst [vmem:[#allocation10_spill] sm:$0xff] %v11463_v10 }
  0xa3   :  { %1451 = vperm.xlu1 %9029, %v8429_v56   ;;  %1446 = vperm.xlu0 %9028, %v8428_v59   ;;  %v11487_v26 = vpop.permute.xlu1 %118  ;;  %v11491_v30 = vpop.permute.xlu0 %113  ;;  %v10578_v56 = vld [vmem:[%s15596_s1 + $0x30] sm:$0xff]  }
  0xa4   :  { %15874 = vst [vmem:[#allocation11_spill] sm:$0xff] %v11487_v26  ;;  %15875 = vst [vmem:[#allocation12_spill] sm:$0xff] %v11491_v30  ;;  %v10579_v59 = vld [vmem:[%s15596_s1 + $0x70] sm:$0xff]  }
  0xa5   :  { %1605 = vmatmul.mubr.bf16.gmra.mrb[56].mxu0 %v11401_v49  ;;  %2217 = vmatmul.mubr.bf16.gmra.mrb[56].mxu1 %v11406_v50 }
  0xa6   :  { %1614 = vmatprep.mubr.bf16.mxu0 %v15600_v0  ;;  %2226 = vmatprep.mubr.bf16.mxu1 %v15600_v0 }
  0xa7   :  { %849 = vperm.xlu1 %9029, %v8359_v60   ;;  %844 = vperm.xlu0 %9028, %v8358_v63   ;;  %v11519_v33 = vpop.permute.xlu0 %123 }
  0xa8   :  { %15877 = vst [vmem:[#allocation14_spill] sm:$0xff] %v11519_v33 }
  0xab   :  { %2063 = vperm.xlu1 %9029, %v8501_v1   ;;  %2058 = vperm.xlu0 %9028, %v8500_v5   ;;  %v11531_v39 = vpop.permute.xlu0 %133  ;;  %v10580_v5 = vld [vmem:[%s15596_s1 + $0x38] sm:$0xff]  }
  0xac   :  { %15879 = vst [vmem:[#allocation16_spill] sm:$0xff] %v11531_v39 }
  0xad   :  { %1615 = vmatmul.mubr.bf16.gmra.mrb[60].mxu0 %v11424_v54  ;;  %2227 = vmatmul.mubr.bf16.gmra.mrb[60].mxu1 %v11429_v55 }
  0xae   :  { %2703 = vmatprep.mubr.bf16.mxu0 %v15600_v0  ;;  %3153 = vmatprep.mubr.bf16.mxu1 %v15600_v0 }
  0xaf   :  { %1461 = vperm.xlu1 %9029, %v8431_v11   ;;  %1456 = vperm.xlu0 %9028, %v8430_v24   ;;  %v10581_v11 = vld [vmem:[%s15596_s1 + $0x78] sm:$0xff]  }
  0xb5   :  { %2704 = vmatmul.mubr.bf16.vlgmr.msra.gmra.mrb[64].mxu0 %v11471_v18  ;;  %3154 = vmatmul.mubr.bf16.vlgmr.msra.gmra.mrb[64].mxu1 %v11477_v19 }
  0xb6   :  { %3572 = vmatpush1.bf16.msra.mxu0 %v11166_v6  ;;  %4022 = vmatpush1.bf16.msra.mxu1 %v11166_v6  ;;  %v8503_v6 = vld [vmem:[%s15597_s2 + $0x1f8] sm:$0xff] }
  0xb7   :  { %2713 = vmatprep.mubr.bf16.mxu0 %v15600_v0  ;;  %3163 = vmatprep.mubr.bf16.mxu1 %v15600_v0 }
  0xb8   :  { %3573 = vmatprep.subr.bf16.mxu0 %v11171_v7  ;;  %4023 = vmatprep.subr.bf16.mxu1 %v11171_v7  ;;  %v8502_v7 = vld [vmem:[%s15597_s2 + $0x1f0] sm:$0xff] }
  0xb9   :  { %2073 = vperm.xlu1 %9029, %v8503_v6   ;;  %2068 = vperm.xlu0 %9028, %v8502_v7   ;;  %v11645_v7 = vld [vmem:[%s15595_s0 + $0x100] ss:$8 sps:$4 sm:$0xff]  }
  0xba   :  { %3574 = vmatpush1.bf16.msra.mxu0 %v11178_v8  ;;  %4024 = vmatpush1.bf16.msra.mxu1 %v11178_v8  ;;  %v11512_v8 = vld [vmem:[%s15596_s1 + $0x48] sm:$0xff]  }
  0xbb   :  { %3575 = vmatprep.subr.bf16.mxu0 %v11183_v9  ;;  %4025 = vmatprep.subr.bf16.mxu1 %v11183_v9  ;;  %v11515_v9 = vpop.permute.xlu1 %128 }
  0xbc   :  { %15876 = vst [vmem:[#allocation13_spill] sm:$0xff] %v11515_v9 }
  0xbd   :  { %2714 = vmatmul.mubr.bf16.gmra.mrb[68].mxu0 %v11506_v32  ;;  %3164 = vmatmul.mubr.bf16.gmra.mrb[68].mxu1 %v11512_v8 }
  0xbe   :  { %2723 = vmatprep.mubr.bf16.mxu0 %v15600_v0  ;;  %3173 = vmatprep.mubr.bf16.mxu1 %v15600_v0 }
  0xbf   :  { %3576 = vmatpush1.bf16.msra.mxu0 %v11210_v14  ;;  %4026 = vmatpush1.bf16.msra.mxu1 %v11210_v14  ;;  %v11527_v36 = vpop.permute.xlu1 %138  ;;  %v11536_v14 = vld [vmem:[%s15596_s1 + $0x10] sm:$0xff]  }
  0xc0   :  { %3577 = vmatprep.subr.bf16.mxu0 %v11217_v15  ;;  %4027 = vmatprep.subr.bf16.mxu1 %v11217_v15  ;;  %15878 = vst [vmem:[#allocation15_spill] sm:$0xff] %v11527_v36  ;;  %v11542_v15 = vld [vmem:[%s15596_s1 + $0x50] sm:$0xff]  }
  0xc3   :  { %3578 = vmatpush1.bf16.msra.mxu0 %v11226_v16  ;;  %4028 = vmatpush1.bf16.msra.mxu1 %v11226_v16  ;;  %v11551_v16 = vpop.permute.xlu1 %148 }
  0xc4   :  { %3579 = vmatprep.subr.bf16.mxu0 %v11233_v17  ;;  %4029 = vmatprep.subr.bf16.mxu1 %v11233_v17  ;;  %15880 = vst [vmem:[#allocation17_spill] sm:$0xff] %v11551_v16  ;;  %v11553_v17 = vpop.permute.xlu0 %143 }
  0xc5   :  { %2724 = vmatmul.mubr.bf16.gmra.mrb[72].mxu0 %v11536_v14  ;;  %3174 = vmatmul.mubr.bf16.gmra.mrb[72].mxu1 %v11542_v15  ;;  %15881 = vst [vmem:[#allocation18_spill] sm:$0xff] %v11553_v17 }
  0xc6   :  { %2733 = vmatprep.mubr.bf16.mxu0 %v15600_v0  ;;  %3183 = vmatprep.mubr.bf16.mxu1 %v15600_v0 }
  0xc7   :  { %3580 = vmatpush1.bf16.msra.mxu0 %v11258_v22  ;;  %4030 = vmatpush1.bf16.msra.mxu1 %v11258_v22  ;;  %v10572_v22 = vld [vmem:[%s15596_s1 + $0x18] sm:$0xff]  }
  0xc8   :  { %3581 = vmatprep.subr.bf16.mxu0 %v11263_v23  ;;  %4031 = vmatprep.subr.bf16.mxu1 %v11263_v23  ;;  %v10573_v23 = vld [vmem:[%s15596_s1 + $0x58] sm:$0xff]  }
  0xcb   :  { %3582 = vmatpush1.bf16.msra.mxu0 %v11277_v25  ;;  %4032 = vmatpush1.bf16.msra.mxu1 %v11277_v25  ;;  %v11569_v25 = vpop.permute.xlu1 %158 }
  0xcc   :  { %3583 = vmatprep.subr.bf16.mxu0 %v11287_v27  ;;  %4033 = vmatprep.subr.bf16.mxu1 %v11287_v27  ;;  %15882 = vst [vmem:[#allocation19_spill] sm:$0xff] %v11569_v25  ;;  %v11572_v27 = vpop.permute.xlu0 %153 }
  0xcd   :  { %2734 = vmatmul.mubr.bf16.gmra.mrb[76].mxu0 %v10572_v22  ;;  %3184 = vmatmul.mubr.bf16.gmra.mrb[76].mxu1 %v10573_v23  ;;  %15883 = vst [vmem:[#allocation20_spill] sm:$0xff] %v11572_v27  ;;  %v11650_v22 = vld [vmem:[%s15595_s0 + $0x114] ss:$8 sps:$4 sm:$0xff]  }
  0xce   :  { %2743 = vmatprep.mubr.bf16.mxu0 %v15600_v0  ;;  %3193 = vmatprep.mubr.bf16.mxu1 %v15600_v0 }
  0xcf   :  { %3584 = vmatpush1.bf16.msra.mxu0 %v11309_v31  ;;  %4034 = vmatpush1.bf16.msra.mxu1 %v11309_v31  ;;  %v11582_v41 = vpop.permute.xlu1 %779  ;;  %v10574_v31 = vld [vmem:[%s15596_s1 + $0x20] sm:$0xff]  }
  0xd0   :  { %3585 = vmatprep.subr.bf16.mxu0 %v11322_v34  ;;  %4035 = vmatprep.subr.bf16.mxu1 %v11322_v34  ;;  %15884 = vst [vmem:[#allocation21_spill] sm:$0xff] %v11582_v41  ;;  %v10575_v34 = vld [vmem:[%s15596_s1 + $0x60] sm:$0xff]  }
  0xd3   :  { %3586 = vmatpush1.bf16.msra.mxu0 %v11330_v35  ;;  %4036 = vmatpush1.bf16.msra.mxu1 %v11330_v35  ;;  %v11594_v35 = vpop.permute.xlu0 %774  ;;  %v11596_v42 = vpop.permute.xlu1 %789 }
  0xd4   :  { %4568 = vmatprep.subr.bf16.mxu0 %v11578_v40  ;;  %5018 = vmatprep.subr.bf16.mxu1 %v11578_v40  ;;  %15885 = vst [vmem:[#allocation22_spill] sm:$0xff] %v11594_v35  ;;  %15886 = vst [vmem:[#allocation23_spill] sm:$0xff] %v11596_v42 }
  0xd5   :  { %2744 = vmatmul.mubr.bf16.gmra.mrb[80].mxu0 %v10574_v31  ;;  %3194 = vmatmul.mubr.bf16.gmra.mrb[80].mxu1 %v10575_v34  ;;  %v11663_v34 = vld [vmem:[%s15595_s0 + $0x110] ss:$8 sps:$4 sm:$0xff]  }
  0xd6   :  { %2753 = vmatprep.mubr.bf16.mxu0 %v15600_v0  ;;  %3203 = vmatprep.mubr.bf16.mxu1 %v15600_v0 }
  0xd7   :  { %v11598_v46 = vpop.permute.xlu0 %784  ;;  %v11606_v43 = vpop.permute.xlu1 %799 }
  0xd8   :  { %15887 = vst [vmem:[#allocation24_spill] sm:$0xff] %v11598_v46  ;;  %15888 = vst [vmem:[#allocation25_spill] sm:$0xff] %v11606_v43 }
  0xdb   :  { %v11610_v51 = vpop.permute.xlu0 %794  ;;  %v11614_v53 = vpop.permute.xlu1 %1386 }
  0xdc   :  { %15889 = vst [vmem:[#allocation26_spill] sm:$0xff] %v11610_v51  ;;  %15891 = vst [vmem:[#allocation28_spill] sm:$0xff] %v11614_v53 }
  0xdd   :  { %2754 = vmatmul.mubr.bf16.gmra.mrb[84].mxu0 %v10576_v47  ;;  %3204 = vmatmul.mubr.bf16.gmra.mrb[84].mxu1 %v10577_v48 }
  0xde   :  { %2763 = vmatprep.mubr.bf16.mxu0 %v15600_v0  ;;  %3213 = vmatprep.mubr.bf16.mxu1 %v15600_v0 }
  0xdf   :  { %v11612_v52 = vpop.permute.xlu0 %804  ;;  %v11626_v63 = vpop.permute.xlu1 %1396 }
  0xe0   :  { %15890 = vst [vmem:[#allocation27_spill] sm:$0xff] %v11612_v52  ;;  %15893 = vst [vmem:[#allocation30_spill] sm:$0xff] %v11626_v63 }
  0xe3   :  { %v11624_v60 = vpop.permute.xlu0 %1391  ;;  %v11638_v24 = vpop.permute.xlu1 %1998 }
  0xe4   :  { %15892 = vst [vmem:[#allocation29_spill] sm:$0xff] %v11624_v60  ;;  %15895 = vst [vmem:[#allocation32_spill] sm:$0xff] %v11638_v24 }
  0xe5   :  { %2764 = vmatmul.mubr.bf16.gmra.mrb[88].mxu0 %v10578_v56  ;;  %3214 = vmatmul.mubr.bf16.gmra.mrb[88].mxu1 %v10579_v59  ;;  %v11690_v56 = vld [vmem:[%s15595_s0 + $0x134] ss:$8 sps:$4 sm:$0xff]   ;;  %v11701_v59 = vld [vmem:[%s15595_s0 + $0x130] ss:$8 sps:$4 sm:$0xff]  }
  0xe6   :  { %2773 = vmatprep.mubr.bf16.mxu0 %v15600_v0  ;;  %3223 = vmatprep.mubr.bf16.mxu1 %v15600_v0 }
  0xe7   :  { %v11628_v1 = vpop.permute.xlu0 %1401  ;;  %v11654_v23 = vpop.permute.xlu1 %2008 }
  0xe8   :  { %15894 = vst [vmem:[#allocation31_spill] sm:$0xff] %v11628_v1  ;;  %15897 = vst [vmem:[#allocation34_spill] sm:$0xff] %v11654_v23 }
  0xeb   :  { %v11640_v6 = vpop.permute.xlu0 %2003  ;;  %v11683_v47 = vpop.permute.xlu1 %1406 }
  0xec   :  { %15896 = vst [vmem:[#allocation33_spill] sm:$0xff] %v11640_v6  ;;  %15899 = vst [vmem:[#allocation36_spill] sm:$0xff] %v11683_v47 }
  0xed   :  { %2774 = vmatmul.mubr.bf16.gmra.mrb[92].mxu0 %v10580_v5  ;;  %3224 = vmatmul.mubr.bf16.gmra.mrb[92].mxu1 %v10581_v11  ;;  %v11719_v11 = vld [vmem:[%s15595_s0 + $0x140] ss:$8 sps:$4 sm:$0xff]  }
  0xee   :  { %3603 = vmatprep.mubr.bf16.mxu0 %v15600_v0  ;;  %4053 = vmatprep.mubr.bf16.mxu1 %v15600_v0 }
  0xef   :  { %v11656_v31 = vpop.permute.xlu0 %2013 }
  0xf0   :  { %15898 = vst [vmem:[#allocation35_spill] sm:$0xff] %v11656_v31  ;;  %v11741_v31 = vld [vmem:[%s15595_s0 + $0x150] ss:$8 sps:$4 sm:$0xff]  }
  0xf3   :  { %v11685_v48 = vpop.permute.xlu0 %1411 }
  0xf4   :  { %15900 = vst [vmem:[#allocation37_spill] sm:$0xff] %v11685_v48  ;;  %v15903_v48 = vmov 0  }
  0xf5   :  { %3604 = vmatmul.mubr.bf16.vlgmr.msra.gmra.mrb[96].mxu0 %v11153_v3  ;;  %4054 = vmatmul.mubr.bf16.vlgmr.msra.gmra.mrb[96].mxu1 %v11158_v4  ;;  %v11670_v3 = vld [vmem:[%s15595_s0 + $0x124] ss:$8 sps:$4 sm:$0xff]   ;;  %v11680_v4 = vld [vmem:[%s15595_s0 + $0x120] ss:$8 sps:$4 sm:$0xff]  }
  0xf6   :  { %4569 = vmatpush1.bf16.msra.mxu0 %v11645_v7  ;;  %5019 = vmatpush1.bf16.msra.mxu1 %v11645_v7 }
  0xf7   :  { %3613 = vmatprep.mubr.bf16.mxu0 %v15600_v0  ;;  %4063 = vmatprep.mubr.bf16.mxu1 %v15600_v0  ;;  %v11712_v5 = vpop.permute.xlu0 %2018 }
  0xf8   :  { %4570 = vmatprep.subr.bf16.mxu0 %v11650_v22  ;;  %5020 = vmatprep.subr.bf16.mxu1 %v11650_v22  ;;  %15902 = vst [vmem:[#allocation39_spill] sm:$0xff] %v11712_v5 }
  0xfa   :  { %4571 = vmatpush1.bf16.msra.mxu0 %v11663_v34  ;;  %5021 = vmatpush1.bf16.msra.mxu1 %v11663_v34 }
  0xfb   :  { %4572 = vmatprep.subr.bf16.mxu0 %v11670_v3  ;;  %5022 = vmatprep.subr.bf16.mxu1 %v11670_v3  ;;  %v11736_v47 = vpop.permute.xlu0 %1416 }
  0xfc   :  { %15905 = vst [vmem:[#allocation41_spill] sm:$0xff] %v11736_v47 }
  0xfd   :  { %3614 = vmatmul.mubr.bf16.gmra.mrb[100].mxu0 %v11198_v12  ;;  %4064 = vmatmul.mubr.bf16.gmra.mrb[100].mxu1 %v11203_v13  ;;  %v11708_v12 = vld [vmem:[%s15595_s0 + $0x144] ss:$8 sps:$4 sm:$0xff]   ;;  %v11710_v13 = vpop.permute.xlu1 %809 }
  0xfe   :  { %3623 = vmatprep.mubr.bf16.mxu0 %v15600_v0  ;;  %4073 = vmatprep.mubr.bf16.mxu1 %v15600_v0  ;;  %15901 = vst [vmem:[#allocation38_spill] sm:$0xff] %v11710_v13  ;;  %v11726_v0 = vld [vmem:[%s15595_s0 + $0x154] ss:$8 sps:$4 sm:$0xff]  }
  0xff   :  { %4573 = vmatpush1.bf16.msra.mxu0 %v11680_v4  ;;  %5023 = vmatpush1.bf16.msra.mxu1 %v11680_v4 }
 0x100   :  { %4574 = vmatprep.subr.bf16.mxu0 %v11690_v56  ;;  %5024 = vmatprep.subr.bf16.mxu1 %v11690_v56 }
 0x101   :  { %v11732_v5 = vpop.permute.xlu1 %2023 }
 0x102   :  { %15904 = vst [vmem:[#allocation40_spill] sm:$0xff] %v11732_v5 }
 0x103   :  { %4575 = vmatpush1.bf16.msra.mxu0 %v11701_v59  ;;  %5025 = vmatpush1.bf16.msra.mxu1 %v11701_v59 }
 0x104   :  { %4576 = vmatprep.subr.bf16.mxu0 %v11708_v12  ;;  %5026 = vmatprep.subr.bf16.mxu1 %v11708_v12 }
 0x105   :  { %3624 = vmatmul.mubr.bf16.gmra.mrb[104].mxu0 %v11244_v20  ;;  %4074 = vmatmul.mubr.bf16.gmra.mrb[104].mxu1 %v11249_v21  ;;  %v11748_v21 = vld [vmem:[%s15595_s0 + $0x164] ss:$8 sps:$4 sm:$0xff]  }
 0x106   :  { %3633 = vmatprep.mubr.bf16.mxu0 %v15903_v48  ;;  %4083 = vmatprep.mubr.bf16.mxu1 %v15903_v48 }
 0x107   :  { %4577 = vmatpush1.bf16.msra.mxu0 %v11719_v11  ;;  %5027 = vmatpush1.bf16.msra.mxu1 %v11719_v11 }
 0x108   :  { %v323_v20 = vpop.f32.mrb[0].mxu0  ;;  %v934_v1 = vpop.f32.mrb[0].mxu1  ;;  %4578 = vmatprep.subr.bf16.mxu0 %v11726_v0  ;;  %5028 = vmatprep.subr.bf16.mxu1 %v11726_v0 }
 0x109   :  { %v935_v5 = vadd.f32 %v934_v1, %v11594_v35  ;;  %v325_v23 = vpop.f32.mrb[1].mxu0  ;;  %v936_v47 = vpop.f32.mrb[1].mxu1  ;;  %v324_v24 = vadd.f32 %v323_v20, %v11436_v58  ;;  %v11760_v1 = vld [vmem:[%s15595_s0 + $0x160] ss:$8 sps:$4 sm:$0xff]  }
 0x10a   :  { %v937_v63 = vadd.f32 %v936_v47, %v11594_v35  ;;  %v327_v6 = vpop.f32.mrb[2].mxu0  ;;  %v938_v60 = vpop.f32.mrb[2].mxu1  ;;  %15906 = vst [vmem:[#allocation42_spill] sm:$0xff] %v11760_v1  ;;  %v326_v47 = vadd.f32 %v325_v23, %v11436_v58 }
 0x10b   :  { %v328_v53 = vadd.f32 %v327_v6, %v11446_v62  ;;  %v939_v25 = vadd.f32 %v938_v60, %v11582_v41  ;;  %v329_v27 = vpop.f32.mrb[3].mxu0  ;;  %v940_v16 = vpop.f32.mrb[3].mxu1  ;;  %4579 = vmatpush1.bf16.msra.mxu0 %v11741_v31  ;;  %5029 = vmatpush1.bf16.msra.mxu1 %v11741_v31  ;;  %v11770_v60 = vld [vmem:[%s15595_s0 + $0x174] ss:$8 sps:$4 sm:$0xff]  }
 0x10c   :  { %v330_v35 = vadd.f32 %v329_v27, %v11446_v62  ;;  %v941_v20 = vadd.f32 %v940_v16, %v11582_v41  ;;  %4580 = vmatprep.subr.bf16.mxu0 %v11748_v21  ;;  %5030 = vmatprep.subr.bf16.mxu1 %v11748_v21  ;;  %15907 = vst [vmem:[#allocation43_spill] sm:$0xff] %v11770_v60  ;;  %v11776_v41 = vpop.permute.xlu1 %1421  ;;  %v11778_v62 = vpop.permute.xlu0 %814 }
 0x10d   :  { %v402_v6 = vpack.c.bf16 %v328_v53, %v324_v24  ;;  %v1013_v17 = vpack.c.bf16 %v939_v25, %v935_v5  ;;  %3634 = vmatmul.mubr.bf16.gmra.mrb[108].mxu0 %v11292_v28  ;;  %4084 = vmatmul.mubr.bf16.gmra.mrb[108].mxu1 %v11297_v29  ;;  %15908 = vst [vmem:[#allocation44_spill] sm:$0xff] %v11776_v41  ;;  %15909 = vst [vmem:[#allocation45_spill] sm:$0xff] %v11778_v62  ;;  %v11785_v28 = vld [vmem:[%s15595_s0 + $0x170] ss:$8 sps:$4 sm:$0xff]  }
 0x10e   :  { %v403_v23 = vpack.c.bf16 %v330_v35, %v326_v47  ;;  %v1014_v58 = vpack.c.bf16 %v941_v20, %v937_v63  ;;  %3643 = vmatprep.mubr.bf16.mxu0 %v15903_v48  ;;  %4093 = vmatprep.mubr.bf16.mxu1 %v15903_v48  ;;  %15910 = vst [vmem:[#allocation46_spill] sm:$0xff] %v11785_v28 }
 0x10f   :  { %v8296_v16 = vmul.bf16 3216621497, %v402_v6  ;;  %v8368_v27 = vmul.bf16 3216621497, %v1013_v17  ;;  %4581 = vmatpush1.bf16.msra.mxu0 %v11760_v1  ;;  %5031 = vmatpush1.bf16.msra.mxu1 %v11760_v1 }
 0x110   :  { %v8297_v29 = vmul.bf16 3216621497, %v403_v23  ;;  %v8369_v25 = vmul.bf16 3216621497, %v1014_v58  ;;  %v333_v35 = vpop.f32.mrb[4].mxu0  ;;  %v944_v53 = vpop.f32.mrb[4].mxu1  ;;  %4582 = vmatprep.subr.bf16.mxu0 %v11770_v60  ;;  %5032 = vmatprep.subr.bf16.mxu1 %v11770_v60 }
 0x111   :  { %9542 = vpow.bf16 %v8296_v16  ;;  %v945_v17 = vadd.f32 %v944_v53, %v11598_v46  ;;  %v335_v63 = vpop.f32.mrb[5].mxu0  ;;  %v946_v24 = vpop.f32.mrb[5].mxu1  ;;  %v334_v6 = vadd.f32 %v333_v35, %v11434_v57 }
 0x112   :  { %9544 = vpow.bf16 %v8368_v27  ;;  %v947_v5 = vadd.f32 %v946_v24, %v11598_v46  ;;  %v337_v47 = vpop.f32.mrb[6].mxu0  ;;  %v948_v20 = vpop.f32.mrb[6].mxu1  ;;  %v336_v16 = vadd.f32 %v335_v63, %v11434_v57 }
 0x113   :  { %9546 = vpow.bf16 %v8297_v29  ;;  %v338_v58 = vadd.f32 %v337_v47, %v11444_v61  ;;  %v949_v23 = vadd.f32 %v948_v20, %v11596_v42  ;;  %v339_v41 = vpop.f32.mrb[7].mxu0  ;;  %v950_v1 = vpop.f32.mrb[7].mxu1  ;;  %4583 = vmatpush1.bf16.msra.mxu0 %v11785_v28  ;;  %5033 = vmatpush1.bf16.msra.mxu1 %v11785_v28 }
 0x114   :  { %9548 = vpow.bf16 %v8369_v25  ;;  %v340_v27 = vadd.f32 %v339_v41, %v11444_v61  ;;  %v951_v53 = vadd.f32 %v950_v1, %v11596_v42  ;;  %5468 = vmatprep.subr.bf16.mxu0 %v11578_v40  ;;  %5918 = vmatprep.subr.bf16.mxu1 %v11578_v40  ;;  %v11805_v63 = vpop.permute.xlu1 %819  ;;  %v11807_v1 = vpop.permute.xlu0 %2028 }
 0x115   :  { %v404_v29 = vpack.c.bf16 %v338_v58, %v334_v6  ;;  %v1015_v35 = vpack.c.bf16 %v949_v23, %v945_v17  ;;  %3644 = vmatmul.mubr.bf16.gmra.mrb[112].mxu0 %v11340_v37  ;;  %4094 = vmatmul.mubr.bf16.gmra.mrb[112].mxu1 %v11345_v38  ;;  %15911 = vst [vmem:[#allocation47_spill] sm:$0xff] %v11805_v63  ;;  %15912 = vst [vmem:[#allocation48_spill] sm:$0xff] %v11807_v1 }
 0x116   :  { %v405_v24 = vpack.c.bf16 %v340_v27, %v336_v16  ;;  %v1016_v47 = vpack.c.bf16 %v951_v53, %v947_v5  ;;  %3653 = vmatprep.mubr.bf16.mxu0 %v15903_v48  ;;  %4103 = vmatprep.mubr.bf16.mxu1 %v15903_v48 }
 0x117   :  { %v8298_v25 = vmul.bf16 3216621497, %v404_v29  ;;  %v8370_v41 = vmul.bf16 3216621497, %v1015_v35 }
 0x118   :  { %v8299_v20 = vmul.bf16 3216621497, %v405_v24  ;;  %v8371_v40 = vmul.bf16 3216621497, %v1016_v47  ;;  %v343_v6 = vpop.f32.mrb[8].mxu0  ;;  %v954_v17 = vpop.f32.mrb[8].mxu1 }
 0x119   :  { %9550 = vpow.bf16 %v8298_v25  ;;  %v955_v37 = vadd.f32 %v954_v17, %v11610_v51  ;;  %v345_v38 = vpop.f32.mrb[9].mxu0  ;;  %v956_v58 = vpop.f32.mrb[9].mxu1  ;;  %v344_v27 = vadd.f32 %v343_v6, %v11463_v10 }
 0x11a   :  { %9552 = vpow.bf16 %v8370_v41  ;;  %v957_v5 = vadd.f32 %v956_v58, %v11610_v51  ;;  %v347_v23 = vpop.f32.mrb[10].mxu0  ;;  %v958_v16 = vpop.f32.mrb[10].mxu1  ;;  %v346_v25 = vadd.f32 %v345_v38, %v11463_v10 }
 0x11b   :  { %9554 = vpow.bf16 %v8299_v20  ;;  %v348_v53 = vadd.f32 %v347_v23, %v11458_v2  ;;  %v959_v29 = vadd.f32 %v958_v16, %v11606_v43  ;;  %v349_v35 = vpop.f32.mrb[11].mxu0  ;;  %v960_v24 = vpop.f32.mrb[11].mxu1 }
 0x11c   :  { %v9543_v47 = vpop.eup %9542  ;;  %9556 = vpow.bf16 %v8371_v40  ;;  %v350_v17 = vadd.f32 %v349_v35, %v11458_v2  ;;  %v961_v41 = vadd.f32 %v960_v24, %v11606_v43  ;;  %v9128_v43 = vld [vmem:[#allocation2 + $0x10] ss:$8 sps:$4 sm:$0xff]  }
 0x11d   :  { %v9545_v58 = vpop.eup %9544  ;;  %v482_v51 = vadd.bf16 1065369472, %v9543_v47  ;;  %v406_v42 = vpack.c.bf16 %v348_v53, %v344_v27  ;;  %v1017_v20 = vpack.c.bf16 %v959_v29, %v955_v37  ;;  %3654 = vmatmul.mubr.bf16.gmra.mrb[116].mxu0 %v11373_v44  ;;  %4104 = vmatmul.mubr.bf16.gmra.mrb[116].mxu1 %v11378_v45  ;;  %v11821_v37 = vpop.permute.xlu1 %2033 }
 0x11e   :  { %v9547_v6 = vpop.eup %9546  ;;  %v1093_v23 = vadd.bf16 1065369472, %v9545_v58  ;;  %v407_v16 = vpack.c.bf16 %v350_v17, %v346_v25  ;;  %v1018_v61 = vpack.c.bf16 %v961_v41, %v957_v5  ;;  %3663 = vmatprep.mubr.bf16.mxu0 %v15903_v48  ;;  %4113 = vmatprep.mubr.bf16.mxu1 %v15903_v48  ;;  %15913 = vst [vmem:[#allocation49_spill] sm:$0xff] %v11821_v37  ;;  %v11823_v44 = vpop.permute.xlu0 %1426 }
 0x11f   :  { %v9549_v40 = vpop.eup %9548  ;;  %9558 = vrcp.bf16 %v482_v51  ;;  %v483_v38 = vadd.bf16 1065369472, %v9547_v6  ;;  %v8300_v35 = vmul.bf16 3216621497, %v406_v42  ;;  %v8372_v27 = vmul.bf16 3216621497, %v1017_v20 }
 0x120   :  { %9560 = vrcp.bf16 %v1093_v23  ;;  %v1094_v24 = vadd.bf16 1065369472, %v9549_v40  ;;  %15914 = vst [vmem:[#allocation50_spill] sm:$0xff] %v11823_v44  ;;  %v8301_v45 = vmul.bf16 3216621497, %v407_v16  ;;  %v353_v53 = vpop.f32.mrb[12].mxu0 }
 0x121   :  { %9562 = vrcp.bf16 %v483_v38  ;;  %v964_v29 = vpop.f32.mrb[12].mxu1  ;;  %v8373_v5 = vmul.bf16 3216621497, %v1018_v61  ;;  %v355_v25 = vpop.f32.mrb[13].mxu0  ;;  %v354_v42 = vadd.f32 %v353_v53, %v11491_v30 }
 0x122   :  { %9564 = vrcp.bf16 %v1094_v24  ;;  %v965_v47 = vadd.f32 %v964_v29, %v11612_v52  ;;  %v966_v17 = vpop.f32.mrb[13].mxu1  ;;  %v357_v41 = vpop.f32.mrb[14].mxu0  ;;  %v356_v6 = vadd.f32 %v355_v25, %v11491_v30 }
 0x123   :  { %9566 = vpow.bf16 %v8300_v35  ;;  %v967_v51 = vadd.f32 %v966_v17, %v11612_v52  ;;  %v968_v58 = vpop.f32.mrb[14].mxu1  ;;  %v358_v23 = vadd.f32 %v357_v41, %v11487_v26  ;;  %v359_v61 = vpop.f32.mrb[15].mxu0 }
 0x124   :  { %v9551_v20 = vpop.eup %9550  ;;  %9568 = vpow.bf16 %v8372_v27  ;;  %v969_v16 = vadd.f32 %v968_v58, %v11710_v13  ;;  %v970_v40 = vpop.f32.mrb[15].mxu1  ;;  %v360_v35 = vadd.f32 %v359_v61, %v11487_v26  ;;  %v9124_v26 = vld [vmem:[#allocation2 + $0x204] ss:$8 sps:$4 sm:$0xff]  }
 0x125   :  { %v9553_v38 = vpop.eup %9552  ;;  %v484_v24 = vadd.bf16 1065369472, %v9551_v20  ;;  %9570 = vpow.bf16 %v8301_v45  ;;  %v971_v53 = vadd.f32 %v970_v40, %v11710_v13  ;;  %3664 = vmatmul.mubr.bf16.gmra.mrb[120].mxu0 %v11401_v49  ;;  %4114 = vmatmul.mubr.bf16.gmra.mrb[120].mxu1 %v11406_v50  ;;  %v408_v25 = vpack.c.bf16 %v358_v23, %v354_v42  ;;  %v11837_v13 = vpop.permute.xlu1 %1431 }
 0x126   :  { %v9555_v27 = vpop.eup %9554  ;;  %v1095_v29 = vadd.bf16 1065369472, %v9553_v38  ;;  %9572 = vpow.bf16 %v8373_v5  ;;  %v1019_v17 = vpack.c.bf16 %v969_v16, %v965_v47  ;;  %3673 = vmatprep.mubr.bf16.mxu0 %v15903_v48  ;;  %4123 = vmatprep.mubr.bf16.mxu1 %v15903_v48  ;;  %v409_v58 = vpack.c.bf16 %v360_v35, %v356_v6  ;;  %15915 = vst [vmem:[#allocation51_spill] sm:$0xff] %v11837_v13  ;;  %v11839_v50 = vpop.permute.xlu0 %824 }
 0x127   :  { %v9557_v41 = vpop.eup %9556  ;;  %9574 = vrcp.bf16 %v484_v24  ;;  %v485_v45 = vadd.bf16 1065369472, %v9555_v27  ;;  %v1020_v20 = vpack.c.bf16 %v971_v53, %v967_v51  ;;  %v8302_v40 = vmul.bf16 3216621497, %v408_v25  ;;  %15916 = vst [vmem:[#allocation52_spill] sm:$0xff] %v11839_v50 }
 0x128   :  { %9576 = vrcp.bf16 %v1095_v29  ;;  %v1096_v61 = vadd.bf16 1065369472, %v9557_v41  ;;  %v8374_v49 = vmul.bf16 3216621497, %v1019_v17  ;;  %v8303_v5 = vmul.bf16 3216621497, %v409_v58 }
 0x129   :  { %9578 = vrcp.bf16 %v485_v45  ;;  %v363_v47 = vpop.f32.mrb[16].mxu0  ;;  %v974_v42 = vpop.f32.mrb[16].mxu1  ;;  %v8375_v16 = vmul.bf16 3216621497, %v1020_v20  ;;  %v9119_v27 = vld [vmem:[#allocation2] ss:$8 sps:$4 sm:$0xff]  }
 0x12a   :  { %v9559_v23 = vpop.eup %9558  ;;  %9580 = vrcp.bf16 %v1096_v61  ;;  %v364_v38 = vadd.f32 %v363_v47, %v11519_v33  ;;  %v11843_v6 = vadd.f32 %v974_v42, %v11778_v62  ;;  %v365_v51 = vpop.f32.mrb[17].mxu0  ;;  %v9121_v20 = vld [vmem:[#allocation2 + $0x200] ss:$8 sps:$4 sm:$0xff]  }
 0x12b   :  { %v976_v24 = vpop.f32.mrb[17].mxu1  ;;  %v9561_v35 = vpop.eup %9560  ;;  %v499_v53 = vmul.bf16 1065369472, %v9559_v23  ;;  %9582 = vpow.bf16 %v8302_v40  ;;  %v11846_v29 = vadd.f32 %v365_v51, %v11519_v33  ;;  %v10582_v51 = vld [vmem:[%s15595_s0] ss:$8 sps:$4 sm:$0xff]  }
 0x12c   :  { %v11849_v25 = vadd.f32 %v976_v24, %v11778_v62  ;;  %v367_v17 = vpop.f32.mrb[18].mxu0  ;;  %v978_v41 = vpop.f32.mrb[18].mxu1  ;;  %v1110_v58 = vmul.bf16 1065369472, %v9561_v35  ;;  %9584 = vpow.bf16 %v8374_v49  ;;  %v9123_v33 = vld [vmem:[#allocation2 + $0x4] ss:$8 sps:$4 sm:$0xff]  }
 0x12d   :  { %v9563_v45 = vpop.eup %9562  ;;  %v368_v61 = vadd.f32 %v367_v17, %v11515_v9  ;;  %v11853_v47 = vadd.f32 %v978_v41, %v11805_v63  ;;  %v369_v42 = vpop.f32.mrb[19].mxu0  ;;  %v530_v24 = vmul.bf16 %v10582_v51, %v499_v53  ;;  %9586 = vpow.bf16 %v8303_v5  ;;  %3674 = vmatmul.mubr.bf16.gmra.mrb[124].mxu0 %v11424_v54  ;;  %4124 = vmatmul.mubr.bf16.gmra.mrb[124].mxu1 %v11429_v55  ;;  %v10583_v5 = vld [vmem:[%s15595_s0 + $0x4] ss:$8 sps:$4 sm:$0xff]  }
 0x12e   :  { %v11855_v23 = vpop.f32.mrb[19].mxu1  ;;  %v9565_v40 = vpop.eup %9564  ;;  %v501_v62 = vmul.bf16 1065369472, %v9563_v45  ;;  %v11861_v35 = vadd.f32 %v369_v42, %v11515_v9  ;;  %v1141_v17 = vmul.bf16 %v10582_v51, %v1110_v58  ;;  %9588 = vpow.bf16 %v8375_v16  ;;  %4600 = vmatprep.mubr.bf16.mxu0 %v15903_v48  ;;  %5050 = vmatprep.mubr.bf16.mxu1 %v15903_v48 }
 0x12f   :  { %v9567_v49 = vpop.eup %9566  ;;  %v1112_v41 = vmul.bf16 1065369472, %v9565_v40  ;;  %v410_v52 = vpack.c.bf16 %v368_v61, %v364_v38  ;;  %v642_v45 = vsub.bf16 %v530_v24, %v9119_v27  ;;  %v11870_v9 = vpop.permute.xlu1 %829 }
 0x130   :  { %v9569_v53 = vpop.eup %9568  ;;  %v531_v42 = vmul.bf16 %v10583_v5, %v501_v62  ;;  %v486_v54 = vadd.bf16 1065369472, %v9567_v49  ;;  %15917 = vst [vmem:[#allocation53_spill] sm:$0xff] %v11870_v9  ;;  %v11874_v58 = vpop.permute.xlu0 %2038  ;;  %v1254_v38 = vsub.bf16 %v1141_v17, %v9121_v20 }
 0x131   :  { %15918 = vst [vmem:[#allocation54_spill] sm:$0xff] %v11874_v58  ;;  %v11876_v16 = vpop.eup %9570  ;;  %v1142_v61 = vmul.bf16 %v10583_v5, %v1112_v41  ;;  %v1097_v40 = vadd.bf16 1065369472, %v9569_v53  ;;  %v11878_v51 = vmul.bf16 3216621497, %v410_v52  ;;  %v11880_v27 = vpop.f32.mrb[20].mxu0 }
 0x132   :  { %v11882_v24 = vpop.f32.mrb[20].mxu1  ;;  %v11884_v62 = vpop.eup %9572  ;;  %v658_v49 = vand.u32 2147450879, %v642_v45  ;;  %v643_v30 = vsub.bf16 %v531_v42, %v9123_v33  ;;  %9590 = vrcp.bf16 %v486_v54  ;;  %v487_v55 = vadd.bf16 1065369472, %v11876_v16 }
 0x133   :  { %v11887_v2 = vpop.f32.mrb[21].mxu0  ;;  %v11889_v10 = vpop.f32.mrb[21].mxu1  ;;  %v1270_v17 = vand.u32 2147450879, %v1254_v38  ;;  %v1255_v52 = vsub.bf16 %v1142_v61, %v9124_v26  ;;  %9592 = vrcp.bf16 %v1097_v40  ;;  %v1098_v41 = vadd.bf16 1065369472, %v11884_v62 }
 0x134   :  { %v9575_v20 = vpop.eup %9574  ;;  %v11892_v53 = vpop.f32.mrb[22].mxu0  ;;  %v674_v33 = vunpack.c.l.bf16 %v658_v49  ;;  %v676_v42 = vunpack.c.h.bf16 %v658_v49  ;;  %v659_v54 = vand.u32 2147450879, %v643_v30  ;;  %v9130_v40 = vld [vmem:[#allocation2 + $0x210] ss:$8 sps:$4 sm:$0xff]   ;;  %9594 = vrcp.bf16 %v487_v55 }
 0x135   :  { %v11894_v5 = vpop.f32.mrb[22].mxu1  ;;  %v9577_v45 = vpop.eup %9576  ;;  %v503_v46 = vmul.bf16 1065369472, %v9575_v20  ;;  %v1286_v58 = vunpack.c.l.bf16 %v1270_v17  ;;  %v1288_v38 = vunpack.c.h.bf16 %v1270_v17  ;;  %v1271_v26 = vand.u32 2147450879, %v1255_v52  ;;  %4601 = vmatmul.mubr.bf16.vlgmr.msra.gmra.mrb[128].mxu0 %v11471_v18  ;;  %5051 = vmatmul.mubr.bf16.vlgmr.msra.gmra.mrb[128].mxu1 %v11477_v19 }
 0x136   :  { %v11896_v16 = vpop.f32.mrb[23].mxu0  ;;  %v11898_v57 = vpop.f32.mrb[23].mxu1  ;;  %v1114_v61 = vmul.bf16 1065369472, %v9577_v45  ;;  %v11900_v44 = vadd.f32 %v676_v42, %v674_v33  ;;  %v675_v37 = vunpack.c.l.bf16 %v659_v54  ;;  %v677_v1 = vunpack.c.h.bf16 %v659_v54  ;;  %v10584_v30 = vld [vmem:[%s15595_s0 + $0x10] ss:$8 sps:$4 sm:$0xff]   ;;  %5469 = vmatpush1.bf16.msra.mxu0 %v11645_v7  ;;  %5919 = vmatpush1.bf16.msra.mxu1 %v11645_v7 }
 0x137   :  { %15919 = vst [vmem:[#allocation55_spill] sm:$0xff] %v11896_v16  ;;  %15920 = vst [vmem:[#allocation56_spill] sm:$0xff] %v11898_v57  ;;  %v9579_v13 = vpop.eup %9578  ;;  %v532_v49 = vmul.bf16 %v10584_v30, %v503_v46  ;;  %v11907_v57 = vadd.f32 %v1288_v38, %v1286_v58  ;;  %v1287_v17 = vunpack.c.l.bf16 %v1271_v26  ;;  %v1289_v52 = vunpack.c.h.bf16 %v1271_v26  ;;  %v9132_v16 = vld [vmem:[#allocation2 + $0x14] ss:$8 sps:$4 sm:$0xff]   ;;  %v11913_v60 = vpop.permute.xlu1 %2043  ;;  %4610 = vmatprep.mubr.bf16.mxu0 %v15903_v48 }
 0x138   :  { %v9581_v62 = vpop.eup %9580  ;;  %v1143_v45 = vmul.bf16 %v10584_v30, %v1114_v61  ;;  %v11911_v42 = vadd.f32 %v677_v1, %v675_v37  ;;  %v505_v46 = vmul.bf16 1065369472, %v9579_v13  ;;  %v9133_v18 = vld [vmem:[#allocation2 + $0x214] ss:$8 sps:$4 sm:$0xff]   ;;  %15921 = vst [vmem:[#allocation57_spill] sm:$0xff] %v11913_v60  ;;  %v11915_v19 = vpop.permute.xlu0 %1436  ;;  %5060 = vmatprep.mubr.bf16.mxu1 %v15903_v48  ;;  %5470 = vmatprep.subr.bf16.mxu0 %v11650_v22  ;;  %9596 = vrcp.bf16 %v1098_v41 }
 0x139   :  { %v9583_v20 = vpop.eup %9582  ;;  %v644_v54 = vsub.bf16 %v532_v49, %v9128_v43  ;;  %v1116_v28 = vmul.bf16 1065369472, %v9581_v62  ;;  %15922 = vst [vmem:[#allocation58_spill] sm:$0xff] %v11915_v19  ;;  %v11919_v38 = vadd.f32 %v1289_v52, %v1287_v17  ;;  %v11921_v1 = vpop.f32.mrb[24].mxu0  ;;  %5920 = vmatprep.subr.bf16.mxu1 %v11650_v22  ;;  %v10585_v61 = vld [vmem:[%s15595_s0 + $0x14] ss:$8 sps:$4 sm:$0xff]  }
 0x13a   :  { %v9585_v33 = vpop.eup %9584  ;;  %v1256_v26 = vsub.bf16 %v1143_v45, %v9130_v40  ;;  %v488_v7 = vadd.bf16 1065369472, %v9583_v20  ;;  %v11923_v43 = vpop.f32.mrb[24].mxu1  ;;  %v533_v62 = vmul.bf16 %v10585_v61, %v505_v46  ;;  %5471 = vmatpush1.bf16.msra.mxu0 %v11663_v34  ;;  %5921 = vmatpush1.bf16.msra.mxu1 %v11663_v34 }
 0x13b   :  { %v9587_v58 = vpop.eup %9586  ;;  %v660_v37 = vand.u32 2147450879, %v644_v54  ;;  %v1144_v30 = vmul.bf16 %v10585_v61, %v1116_v28  ;;  %v11932_v55 = vpop.f32.mrb[25].mxu0  ;;  %v1099_v20 = vadd.bf16 1065369472, %v9585_v33  ;;  %5472 = vmatprep.subr.bf16.mxu0 %v11670_v3  ;;  %5922 = vmatprep.subr.bf16.mxu1 %v11670_v3 }
 0x13c   :  { %v11927_v13 = vpop.eup %9588  ;;  %v11934_v40 = vpop.f32.mrb[25].mxu1  ;;  %v1272_v49 = vand.u32 2147450879, %v1256_v26  ;;  %9598 = vrcp.bf16 %v488_v7  ;;  %v489_v17 = vadd.bf16 1065369472, %v9587_v58  ;;  %v645_v45 = vsub.bf16 %v533_v62, %v9132_v16 }
 0x13d   :  { %v678_v22 = vunpack.c.l.bf16 %v660_v37  ;;  %v680_v52 = vunpack.c.h.bf16 %v660_v37  ;;  %v1257_v54 = vsub.bf16 %v1144_v30, %v9133_v18  ;;  %v11938_v19 = vpop.f32.mrb[26].mxu0  ;;  %v11940_v28 = vpop.f32.mrb[26].mxu1  ;;  %v9137_v58 = vld [vmem:[#allocation2 + $0x20] ss:$8 sps:$4 sm:$0xff]   ;;  %9600 = vrcp.bf16 %v1099_v20  ;;  %4611 = vmatmul.mubr.bf16.gmra.mrb[132].mxu0 %v11506_v32  ;;  %5061 = vmatmul.mubr.bf16.gmra.mrb[132].mxu1 %v11512_v8 }
 0x13e   :  { %v9591_v41 = vpop.eup %9590  ;;  %v1290_v46 = vunpack.c.l.bf16 %v1272_v49  ;;  %v1292_v33 = vunpack.c.h.bf16 %v1272_v49  ;;  %v1100_v26 = vadd.bf16 1065369472, %v11927_v13  ;;  %v11945_v34 = vpop.f32.mrb[27].mxu0  ;;  %v661_v37 = vand.u32 2147450879, %v645_v45  ;;  %4620 = vmatprep.mubr.bf16.mxu0 %v15903_v48  ;;  %5070 = vmatprep.mubr.bf16.mxu1 %v15903_v48 }
 0x13f   :  { %v11947_v7 = vpop.f32.mrb[27].mxu1  ;;  %v9593_v16 = vpop.eup %9592  ;;  %v707_v18 = vadd.f32 %v11900_v44, %v678_v22  ;;  %v1273_v61 = vand.u32 2147450879, %v1257_v54  ;;  %v507_v62 = vmul.bf16 1065369472, %v9591_v41  ;;  %9602 = vrcp.bf16 %v489_v17  ;;  %5473 = vmatpush1.bf16.msra.mxu0 %v11680_v4  ;;  %5923 = vmatpush1.bf16.msra.mxu1 %v11680_v4 }
 0x140   :  { %v1319_v3 = vadd.f32 %v11907_v57, %v1290_v46  ;;  %v1118_v30 = vmul.bf16 1065369472, %v9593_v16  ;;  %v9139_v49 = vld [vmem:[#allocation2 + $0x220] ss:$8 sps:$4 sm:$0xff]   ;;  %v15923_v13 = vpack.c.bf16 %v11853_v47, %v11843_v6  ;;  %v679_v22 = vunpack.c.l.bf16 %v661_v37  ;;  %v11960_v54 = vpop.permute.xlu1 %1441  ;;  %v11962_v8 = vpop.permute.xlu0 %834  ;;  %5474 = vmatprep.subr.bf16.mxu0 %v11690_v56  ;;  %5924 = vmatprep.subr.bf16.mxu1 %v11690_v56 }
 0x141   :  { %v11958_v44 = vadd.f32 %v707_v18, %v680_v52  ;;  %v681_v45 = vunpack.c.h.bf16 %v661_v37  ;;  %v1291_v32 = vunpack.c.l.bf16 %v1273_v61  ;;  %15924 = vst [vmem:[#allocation59_spill] sm:$0xff] %v11960_v54  ;;  %15925 = vst [vmem:[#allocation60_spill] sm:$0xff] %v11962_v8  ;;  %v1293_v6 = vunpack.c.h.bf16 %v1273_v61  ;;  %v10586_v47 = vld [vmem:[%s15595_s0 + $0x20] ss:$8 sps:$4 sm:$0xff]   ;;  %v11971_v41 = vpop.f32.mrb[28].mxu0  ;;  %v11973_v46 = vpop.f32.mrb[28].mxu1 }
 0x142   :  { %v8376_v20 = vmul.bf16 3216621497, %v15923_v13  ;;  %v11966_v57 = vadd.f32 %v1319_v3, %v1292_v33  ;;  %v534_v17 = vmul.bf16 %v10586_v47, %v507_v62  ;;  %v1145_v52 = vmul.bf16 %v10586_v47, %v1118_v30  ;;  %v11981_v18 = vpop.f32.mrb[29].mxu0  ;;  %v11983_v37 = vpop.f32.mrb[29].mxu1 }
 0x143   :  { %v722_v16 = vadd.f32 %v11911_v42, %v679_v22  ;;  %v1334_v4 = vadd.f32 %v11919_v38, %v1291_v32  ;;  %9604 = vrcp.bf16 %v1100_v26  ;;  %v411_v33 = vpack.c.bf16 %v11861_v35, %v11846_v29  ;;  %v9595_v56 = vpop.eup %9594  ;;  %v11992_v38 = vld [vmem:[#allocation2 + $0x24] ss:$8 sps:$4 sm:$0xff]   ;;  %v11994_v35 = vpop.f32.mrb[30].mxu0  ;;  %5475 = vmatpush1.bf16.msra.mxu0 %v11701_v59  ;;  %5925 = vmatpush1.bf16.msra.mxu1 %v11701_v59 }
 0x144   :  { %v646_v61 = vsub.bf16 %v534_v17, %v9137_v58  ;;  %v1258_v62 = vsub.bf16 %v1145_v52, %v9139_v49  ;;  %9606 = vpow.bf16 %v11878_v51  ;;  %v981_v3 = vadd.f32 %v11855_v23, %v11805_v63  ;;  %v11996_v26 = vpop.f32.mrb[30].mxu1  ;;  %v9597_v51 = vpop.eup %9596  ;;  %5476 = vmatprep.subr.bf16.mxu0 %v11708_v12  ;;  %5926 = vmatprep.subr.bf16.mxu1 %v11708_v12  ;;  %v9151_v63 = vld [vmem:[#allocation2 + $0x234] ss:$8 sps:$4 sm:$0xff]  }
 0x145   :  { %v11988_v30 = vadd.f32 %v722_v16, %v681_v45  ;;  %v11990_v42 = vadd.f32 %v1334_v4, %v1293_v6  ;;  %9608 = vpow.bf16 %v8376_v20  ;;  %v8305_v29 = vmul.bf16 3216621497, %v411_v33  ;;  %v9142_v45 = vld [vmem:[#allocation2 + $0x224] ss:$8 sps:$4 sm:$0xff]   ;;  %v12011_v6 = vpop.f32.mrb[31].mxu0  ;;  %v12013_v47 = vpop.f32.mrb[31].mxu1  ;;  %4621 = vmatmul.mubr.bf16.gmra.mrb[136].mxu0 %v11536_v14  ;;  %5071 = vmatmul.mubr.bf16.gmra.mrb[136].mxu1 %v11542_v15 }
 0x146   :  { %v662_v58 = vand.u32 2147450879, %v646_v61  ;;  %v1274_v23 = vand.u32 2147450879, %v1258_v62  ;;  %v509_v49 = vmul.bf16 1065369472, %v9595_v56  ;;  %v1022_v13 = vpack.c.bf16 %v981_v3, %v11849_v25  ;;  %4630 = vmatprep.mubr.bf16.mxu0 %v15903_v48  ;;  %5080 = vmatprep.mubr.bf16.mxu1 %v15903_v48  ;;  %v12022_v62 = vpop.permute.xlu1 %839  ;;  %v12024_v15 = vpop.permute.xlu0 %2048 }
 0x147   :  { %v9599_v20 = vpop.eup %9598  ;;  %v1120_v22 = vmul.bf16 1065369472, %v9597_v51  ;;  %9610 = vpow.bf16 %v8305_v29  ;;  %v12005_v32 = vadd.f32 %v11880_v27, %v11531_v39  ;;  %v12009_v59 = vadd.f32 %v11882_v24, %v11839_v50  ;;  %v10587_v24 = vld [vmem:[%s15595_s0 + $0x24] ss:$8 sps:$4 sm:$0xff]   ;;  %v9146_v61 = vld [vmem:[#allocation2 + $0x30] ss:$8 sps:$4 sm:$0xff]   ;;  %5477 = vmatpush1.bf16.msra.mxu0 %v11719_v11  ;;  %5927 = vmatpush1.bf16.msra.mxu1 %v11719_v11 }
 0x148   :  { %v682_v12 = vunpack.c.l.bf16 %v662_v58  ;;  %v684_v25 = vunpack.c.h.bf16 %v662_v58  ;;  %v1294_v17 = vunpack.c.l.bf16 %v1274_v23  ;;  %v1296_v52 = vunpack.c.h.bf16 %v1274_v23  ;;  %v9601_v27 = vpop.eup %9600  ;;  %15926 = vst [vmem:[#allocation61_spill] sm:$0xff] %v12022_v62  ;;  %15927 = vst [vmem:[#allocation62_spill] sm:$0xff] %v12024_v15  ;;  %v9148_v51 = vld [vmem:[#allocation2 + $0x230] ss:$8 sps:$4 sm:$0xff]   ;;  %v12034_v23 = vpop.f32.mrb[32].mxu0  ;;  %5478 = vmatprep.subr.bf16.mxu0 %v11726_v0  ;;  %5928 = vmatprep.subr.bf16.mxu1 %v11726_v0 }
 0x149   :  { %v535_v16 = vmul.bf16 %v10587_v24, %v509_v49  ;;  %v1146_v4 = vmul.bf16 %v10587_v24, %v1120_v22  ;;  %v511_v33 = vmul.bf16 1065369472, %v9599_v20  ;;  %v8377_v14 = vmul.bf16 3216621497, %v1022_v13  ;;  %v12036_v49 = vpop.f32.mrb[32].mxu1 }
 0x14a   :  { %v709_v3 = vadd.f32 %v11958_v44, %v682_v12  ;;  %v1321_v56 = vadd.f32 %v11966_v57, %v1294_v17  ;;  %v1122_v29 = vmul.bf16 1065369472, %v9601_v27  ;;  %v12032_v58 = vadd.f32 %v11887_v2, %v11531_v39  ;;  %v9603_v13 = vpop.eup %9602  ;;  %v10588_v57 = vld [vmem:[%s15595_s0 + $0x30] ss:$8 sps:$4 sm:$0xff]   ;;  %v12044_v2 = vpop.f32.mrb[33].mxu0 }
 0x14b   :  { %v647_v11 = vsub.bf16 %v535_v16, %v11992_v38  ;;  %v1259_v44 = vsub.bf16 %v1146_v4, %v9142_v45  ;;  %v536_v20 = vmul.bf16 %v10588_v57, %v511_v33  ;;  %9612 = vpow.bf16 %v8377_v14  ;;  %v12046_v22 = vpop.f32.mrb[33].mxu1  ;;  %v9150_v24 = vld [vmem:[#allocation2 + $0x34] ss:$8 sps:$4 sm:$0xff]   ;;  %v12052_v39 = vpop.f32.mrb[34].mxu0  ;;  %5479 = vmatpush1.bf16.msra.mxu0 %v11741_v31  ;;  %5929 = vmatpush1.bf16.msra.mxu1 %v11741_v31 }
 0x14c   :  { %v12048_v12 = vadd.f32 %v709_v3, %v684_v25  ;;  %v12050_v17 = vadd.f32 %v1321_v56, %v1296_v52  ;;  %v1147_v27 = vmul.bf16 %v10588_v57, %v1122_v29  ;;  %v513_v0 = vmul.bf16 1065369472, %v9603_v13  ;;  %v12054_v38 = vpop.f32.mrb[34].mxu1  ;;  %v12060_v14 = vpop.f32.mrb[35].mxu0  ;;  %v10589_v56 = vld [vmem:[%s15595_s0 + $0x34] ss:$8 sps:$4 sm:$0xff]   ;;  %5480 = vmatprep.subr.bf16.mxu0 %v11748_v21  ;;  %5930 = vmatprep.subr.bf16.mxu1 %v11748_v21 }
 0x14d   :  { %v663_v45 = vand.u32 2147450879, %v647_v11  ;;  %v1275_v16 = vand.u32 2147450879, %v1259_v44  ;;  %v648_v4 = vsub.bf16 %v536_v20, %v9146_v61  ;;  %v12058_v33 = vadd.f32 %v11889_v10, %v11839_v50  ;;  %v12062_v25 = vpop.f32.mrb[35].mxu1  ;;  %v10590_v57 = vld [vmem:[%s15596_s1 + $0x18] sm:$0xff]   ;;  %v12088_v15 = vpop.permute.xlu1 %2053 }
 0x14e   :  { %15928 = vst [vmem:[#allocation63_spill] sm:$0xff] %v12062_v25  ;;  %v9605_v52 = vpop.eup %9604  ;;  %v1260_v3 = vsub.bf16 %v1147_v27, %v9148_v51  ;;  %v537_v29 = vmul.bf16 %v10589_v56, %v513_v0  ;;  %v12071_v61 = vadd.f32 %v11892_v53, %v11527_v36  ;;  %v12075_v10 = vadd.f32 %v11894_v5, %v11870_v9  ;;  %v10591_v53 = vld [vmem:[%s15596_s1 + $0x58] sm:$0xff]   ;;  %v12090_v60 = vpop.permute.xlu0 %1446 }
 0x14f   :  { %v9607_v13 = vpop.eup %9606  ;;  %v683_v11 = vunpack.c.l.bf16 %v663_v45  ;;  %v685_v31 = vunpack.c.h.bf16 %v663_v45  ;;  %v1295_v44 = vunpack.c.l.bf16 %v1275_v16  ;;  %v1297_v51 = vunpack.c.h.bf16 %v1275_v16  ;;  %4631 = vmatmul.mubr.bf16.gmra.mrb[140].mxu0 %v10590_v57  ;;  %5081 = vmatmul.mubr.bf16.gmra.mrb[140].mxu1 %v10591_v53  ;;  %15929 = vst [vmem:[#allocation64_spill] sm:$0xff] %v12088_v15  ;;  %15930 = vst [vmem:[#allocation65_spill] sm:$0xff] %v12090_v60  ;;  %v15931_v53 = vld [vmem:[#allocation42_spill] sm:$0xff] }
 0x150   :  { %v9609_v20 = vpop.eup %9608  ;;  %v664_v5 = vand.u32 2147450879, %v648_v4  ;;  %v1276_v27 = vand.u32 2147450879, %v1260_v3  ;;  %v649_v0 = vsub.bf16 %v537_v29, %v9150_v24  ;;  %v1124_v50 = vmul.bf16 1065369472, %v9605_v52  ;;  %4640 = vmatprep.mubr.bf16.mxu0 %v15903_v48  ;;  %5090 = vmatprep.mubr.bf16.mxu1 %v15903_v48 }
 0x151   :  { %v724_v45 = vadd.f32 %v11988_v30, %v683_v11  ;;  %v1336_v16 = vadd.f32 %v11990_v42, %v1295_v44  ;;  %v490_v57 = vadd.bf16 1065369472, %v9607_v13  ;;  %v1101_v54 = vadd.bf16 1065369472, %v9609_v20  ;;  %5481 = vmatpush1.bf16.msra.mxu0 %v15931_v53  ;;  %v12094_v25 = vpop.f32.mrb[36].mxu0  ;;  %v12096_v30 = vpop.f32.mrb[36].mxu1  ;;  %5931 = vmatpush1.bf16.msra.mxu1 %v15931_v53 }
 0x152   :  { %v9611_v24 = vpop.eup %9610  ;;  %v686_v4 = vunpack.c.l.bf16 %v664_v5  ;;  %v688_v52 = vunpack.c.h.bf16 %v664_v5  ;;  %v1298_v3 = vunpack.c.l.bf16 %v1276_v27  ;;  %v1300_v29 = vunpack.c.h.bf16 %v1276_v27  ;;  %15932 = vst [vmem:[#allocation42_spill] sm:$0xff] %v12096_v30  ;;  %v15933_v42 = vld [vmem:[#allocation43_spill] sm:$0xff]  ;;  %v12100_v60 = vpop.f32.mrb[37].mxu0 }
 0x153   :  { %5482 = vmatprep.subr.bf16.mxu0 %v15933_v42  ;;  %v725_v13 = vadd.f32 %v724_v45, %v685_v31  ;;  %v1337_v11 = vadd.f32 %v1336_v16, %v1297_v51  ;;  %v665_v44 = vand.u32 2147450879, %v649_v0  ;;  %v1148_v20 = vmul.bf16 %v10589_v56, %v1124_v50  ;;  %v12102_v21 = vpop.f32.mrb[37].mxu1  ;;  %5932 = vmatprep.subr.bf16.mxu1 %v15933_v42  ;;  %v12107_v30 = vpop.f32.mrb[38].mxu0  ;;  %v15934_v45 = vld [vmem:[#allocation46_spill] sm:$0xff] }
 0x154   :  { %v711_v5 = vadd.f32 %v12048_v12, %v686_v4  ;;  %v1323_v27 = vadd.f32 %v12050_v17, %v1298_v3  ;;  %9614 = vrcp.bf16 %v490_v57  ;;  %v491_v15 = vadd.bf16 1065369472, %v9611_v24  ;;  %v12109_v53 = vpop.f32.mrb[38].mxu1  ;;  %v12111_v50 = vpop.f32.mrb[39].mxu0  ;;  %v10592_v3 = vld [vmem:[%s15596_s1 + $0x20] sm:$0xff]  }
 0x155   :  { %v687_v31 = vunpack.c.l.bf16 %v665_v44  ;;  %v689_v51 = vunpack.c.h.bf16 %v665_v44  ;;  %v1261_v0 = vsub.bf16 %v1148_v20, %v9151_v63  ;;  %9616 = vrcp.bf16 %v1101_v54  ;;  %v12113_v56 = vpop.f32.mrb[39].mxu1  ;;  %5483 = vmatpush1.bf16.msra.mxu0 %v15934_v45  ;;  %5933 = vmatpush1.bf16.msra.mxu1 %v15934_v45 }
 0x156   :  { %v9613_v16 = vpop.eup %9612  ;;  %v12116_v12 = vadd.f32 %v711_v5, %v688_v52  ;;  %v12118_v17 = vadd.f32 %v1323_v27, %v1300_v29  ;;  %9618 = vrcp.bf16 %v491_v15  ;;  %v412_v57 = vpack.c.bf16 %v12071_v61, %v12005_v32  ;;  %v10593_v15 = vld [vmem:[%s15596_s1 + $0x60] sm:$0xff]   ;;  %v15935_v32 = vld [vmem:[#allocation55_spill] sm:$0xff]  ;;  %v15936_v29 = vld [vmem:[#allocation56_spill] sm:$0xff]  ;;  %v12143_v27 = vpop.permute.xlu0 %844 }
 0x157   :  { %v726_v24 = vadd.f32 %v725_v13, %v687_v31  ;;  %v1277_v63 = vand.u32 2147450879, %v1261_v0  ;;  %v1102_v54 = vadd.bf16 1065369472, %v9613_v16  ;;  %v1023_v4 = vpack.c.bf16 %v12075_v10, %v12009_v59  ;;  %4641 = vmatmul.mubr.bf16.gmra.mrb[144].mxu0 %v10592_v3  ;;  %5091 = vmatmul.mubr.bf16.gmra.mrb[144].mxu1 %v10593_v15  ;;  %v15937_v13 = vld [vmem:[#allocation18_spill] sm:$0xff]  ;;  %v12137_v10 = vpop.permute.xlu1 %1451  ;;  %15939 = vst [vmem:[#allocation46_spill] sm:$0xff] %v12143_v27 }
 0x158   :  { %v8306_v52 = vmul.bf16 3216621497, %v412_v57  ;;  %v380_v61 = vadd.f32 %v15935_v32, %v11527_v36  ;;  %v991_v42 = vadd.f32 %v15936_v29, %v11870_v9  ;;  %v384_v59 = vadd.f32 %v11921_v1, %v15937_v13  ;;  %15938 = vst [vmem:[#allocation43_spill] sm:$0xff] %v12137_v10  ;;  %4650 = vmatprep.mubr.bf16.mxu0 %v15903_v48  ;;  %v12147_v1 = vpop.f32.mrb[40].mxu0  ;;  %v12149_v16 = vpop.f32.mrb[40].mxu1  ;;  %v15940_v3 = vld [vmem:[#allocation17_spill] sm:$0xff] }
 0x159   :  { %5100 = vmatprep.mubr.bf16.mxu1 %v15903_v48  ;;  %v12141_v44 = vadd.f32 %v726_v24, %v689_v51  ;;  %v1299_v20 = vunpack.c.l.bf16 %v1277_v63  ;;  %v1301_v5 = vunpack.c.h.bf16 %v1277_v63  ;;  %9620 = vrcp.bf16 %v1102_v54  ;;  %v12157_v54 = vpop.f32.mrb[41].mxu0 }
 0x15a   :  { %9622 = vpow.bf16 %v8306_v52  ;;  %v8378_v31 = vmul.bf16 3216621497, %v1023_v4  ;;  %v413_v0 = vpack.c.bf16 %v380_v61, %v12032_v58  ;;  %v1024_v45 = vpack.c.bf16 %v991_v42, %v12058_v33  ;;  %v12159_v4 = vpop.f32.mrb[41].mxu1  ;;  %v15941_v42 = vld [vmem:[#allocation20_spill] sm:$0xff] }
 0x15b   :  { %v1338_v57 = vadd.f32 %v1337_v11, %v1299_v20  ;;  %v995_v51 = vadd.f32 %v11923_v43, %v11962_v8  ;;  %v386_v24 = vadd.f32 %v11932_v55, %v15937_v13  ;;  %v997_v63 = vadd.f32 %v11934_v40, %v11962_v8  ;;  %v12163_v11 = vpop.f32.mrb[42].mxu0  ;;  %v12165_v52 = vpop.f32.mrb[42].mxu1 }
 0x15c   :  { %9624 = vpow.bf16 %v8378_v31  ;;  %v8307_v58 = vmul.bf16 3216621497, %v413_v0  ;;  %v8379_v33 = vmul.bf16 3216621497, %v1024_v45  ;;  %v388_v15 = vadd.f32 %v11938_v19, %v15940_v3  ;;  %v12175_v61 = vpop.f32.mrb[43].mxu0  ;;  %v12177_v29 = vpop.f32.mrb[43].mxu1 }
 0x15d   :  { %v12167_v43 = vadd.f32 %v1338_v57, %v1301_v5  ;;  %v999_v55 = vadd.f32 %v11940_v28, %v12022_v62  ;;  %v390_v40 = vadd.f32 %v11945_v34, %v15940_v3  ;;  %v1001_v32 = vadd.f32 %v11947_v7, %v12022_v62  ;;  %v12185_v28 = vpop.permute.xlu1 %849  ;;  %v9155_v34 = vld [vmem:[#allocation2 + $0x40] ss:$8 sps:$4 sm:$0xff]   ;;  %v15943_v62 = vld [vmem:[#allocation19_spill] sm:$0xff] }
 0x15e   :  { %9626 = vpow.bf16 %v8307_v58  ;;  %v414_v19 = vpack.c.bf16 %v388_v15, %v384_v59  ;;  %v394_v20 = vadd.f32 %v11971_v41, %v15941_v42  ;;  %v12183_v5 = vadd.f32 %v11981_v18, %v15941_v42  ;;  %15942 = vst [vmem:[#allocation55_spill] sm:$0xff] %v12185_v28  ;;  %v9157_v0 = vld [vmem:[#allocation2 + $0x240] ss:$8 sps:$4 sm:$0xff]   ;;  %v9159_v15 = vld [vmem:[#allocation2 + $0x44] ss:$8 sps:$4 sm:$0xff]  }
 0x15f   :  { %v9615_v31 = vpop.eup %9614  ;;  %9628 = vpow.bf16 %v8379_v33  ;;  %v1025_v7 = vpack.c.bf16 %v999_v55, %v995_v51  ;;  %v415_v45 = vpack.c.bf16 %v390_v40, %v386_v24  ;;  %v1026_v57 = vpack.c.bf16 %v1001_v32, %v997_v63  ;;  %v10594_v59 = vld [vmem:[%s15596_s1 + $0x28] sm:$0xff]  }
 0x160   :  { %4651 = vmatmul.mubr.bf16.gmra.mrb[148].mxu0 %v10594_v59  ;;  %v10595_v41 = vld [vmem:[%s15596_s1 + $0x68] sm:$0xff]   ;;  %v9617_v18 = vpop.eup %9616  ;;  %v515_v58 = vmul.bf16 1065369472, %v9615_v31  ;;  %v8308_v42 = vmul.bf16 3216621497, %v414_v19  ;;  %v398_v33 = vadd.f32 %v11994_v35, %v15943_v62  ;;  %v1005_v51 = vadd.f32 %v11973_v46, %v12143_v27  ;;  %v12204_v46 = vpop.f32.mrb[44].mxu0 }
 0x161   :  { %5101 = vmatmul.mubr.bf16.gmra.mrb[148].mxu1 %v10595_v41  ;;  %4660 = vmatprep.mubr.bf16.mxu0 %v15903_v48  ;;  %v9619_v24 = vpop.eup %9618  ;;  %v1126_v63 = vmul.bf16 1065369472, %v9617_v18  ;;  %v8380_v55 = vmul.bf16 3216621497, %v1025_v7  ;;  %v8309_v40 = vmul.bf16 3216621497, %v415_v45  ;;  %v1009_v32 = vadd.f32 %v11996_v26, %v12185_v28 }
 0x162   :  { %5110 = vmatprep.mubr.bf16.mxu1 %v15903_v48  ;;  %v10596_v19 = vld [vmem:[%s15595_s0 + $0x40] ss:$8 sps:$4 sm:$0xff]   ;;  %v517_v35 = vmul.bf16 1065369472, %v9619_v24  ;;  %9630 = vpow.bf16 %v8308_v42  ;;  %v8381_v59 = vmul.bf16 3216621497, %v1026_v57  ;;  %v416_v18 = vpack.c.bf16 %v398_v33, %v394_v20 }
 0x163   :  { %v538_v31 = vmul.bf16 %v10596_v19, %v515_v58  ;;  %v12206_v41 = vpop.f32.mrb[44].mxu1  ;;  %v1149_v3 = vmul.bf16 %v10596_v19, %v1126_v63  ;;  %9632 = vpow.bf16 %v8380_v55  ;;  %v1027_v7 = vpack.c.bf16 %v1009_v32, %v1005_v51  ;;  %v12208_v45 = vpop.f32.mrb[45].mxu0  ;;  %v10597_v58 = vld [vmem:[%s15595_s0 + $0x44] ss:$8 sps:$4 sm:$0xff]  }
 0x164   :  { %v12210_v8 = vpop.f32.mrb[45].mxu1  ;;  %v9621_v26 = vpop.eup %9620  ;;  %v539_v42 = vmul.bf16 %v10597_v58, %v517_v35  ;;  %v9160_v57 = vld [vmem:[#allocation2 + $0x244] ss:$8 sps:$4 sm:$0xff]   ;;  %9634 = vpow.bf16 %v8309_v40  ;;  %v400_v24 = vadd.f32 %v12011_v6, %v15943_v62  ;;  %v8310_v32 = vmul.bf16 3216621497, %v416_v18 }
 0x165   :  { %v650_v13 = vsub.bf16 %v538_v31, %v9155_v34  ;;  %v12217_v63 = vpop.f32.mrb[46].mxu0  ;;  %v12219_v20 = vpop.f32.mrb[46].mxu1  ;;  %v1262_v51 = vsub.bf16 %v1149_v3, %v9157_v0  ;;  %v1128_v55 = vmul.bf16 1065369472, %v9621_v26  ;;  %9636 = vpow.bf16 %v8381_v59  ;;  %v10598_v3 = vld [vmem:[%s15596_s1 + $0x30] sm:$0xff]  }
 0x166   :  { %v9623_v33 = vpop.eup %9622  ;;  %v12221_v34 = vpop.f32.mrb[47].mxu0  ;;  %v651_v35 = vsub.bf16 %v539_v42, %v9159_v15  ;;  %v8382_v40 = vmul.bf16 3216621497, %v1027_v7  ;;  %9638 = vpow.bf16 %v8310_v32  ;;  %v417_v62 = vpack.c.bf16 %v400_v24, %v12183_v5  ;;  %v10599_v0 = vld [vmem:[%s15596_s1 + $0x70] sm:$0xff]  }
 0x167   :  { %v12223_v19 = vpop.f32.mrb[47].mxu1  ;;  %v666_v31 = vand.u32 2147450879, %v650_v13  ;;  %v492_v9 = vadd.bf16 1065369472, %v9623_v33  ;;  %v9625_v36 = vpop.eup %9624  ;;  %v1150_v6 = vmul.bf16 %v10597_v58, %v1128_v55 }
 0x168   :  { %v1278_v10 = vand.u32 2147450879, %v1262_v51  ;;  %4661 = vmatmul.mubr.bf16.gmra.mrb[152].mxu0 %v10598_v3  ;;  %v667_v59 = vand.u32 2147450879, %v651_v35  ;;  %v1103_v58 = vadd.bf16 1065369472, %v9625_v36 }
 0x169   :  { %5111 = vmatmul.mubr.bf16.gmra.mrb[152].mxu1 %v10599_v0  ;;  %v690_v13 = vunpack.c.l.bf16 %v666_v31  ;;  %v692_v15 = vunpack.c.h.bf16 %v666_v31  ;;  %9640 = vrcp.bf16 %v492_v9  ;;  %4670 = vmatprep.mubr.bf16.mxu0 %v15903_v48  ;;  %v9627_v18 = vpop.eup %9626  ;;  %v1263_v26 = vsub.bf16 %v1150_v6, %v9160_v57  ;;  %v12235_v32 = vpop.f32.mrb[48].mxu0 }
 0x16a   :  { %5120 = vmatprep.mubr.bf16.mxu1 %v15903_v48  ;;  %v1302_v5 = vunpack.c.l.bf16 %v1278_v10  ;;  %v1304_v7 = vunpack.c.h.bf16 %v1278_v10  ;;  %v9629_v42 = vpop.eup %9628  ;;  %v691_v33 = vunpack.c.l.bf16 %v667_v59  ;;  %v693_v51 = vunpack.c.h.bf16 %v667_v59  ;;  %v12237_v31 = vpop.f32.mrb[48].mxu1 }
 0x16b   :  { %v713_v24 = vadd.f32 %v12116_v12, %v690_v13  ;;  %v493_v55 = vadd.bf16 1065369472, %v9627_v18  ;;  %v1279_v35 = vand.u32 2147450879, %v1263_v26  ;;  %9642 = vrcp.bf16 %v1103_v58  ;;  %v12240_v0 = vpop.f32.mrb[49].mxu0  ;;  %v12242_v10 = vpop.f32.mrb[49].mxu1 }
 0x16c   :  { %v1325_v9 = vadd.f32 %v12118_v17, %v1302_v5  ;;  %v1104_v3 = vadd.bf16 1065369472, %v9629_v42  ;;  %v728_v12 = vadd.f32 %v12141_v44, %v691_v33  ;;  %v8311_v57 = vmul.bf16 3216621497, %v417_v62  ;;  %v12247_v6 = vpop.f32.mrb[50].mxu0  ;;  %v12249_v13 = vpop.f32.mrb[50].mxu1 }
 0x16d   :  { %v12244_v36 = vadd.f32 %v713_v24, %v692_v15  ;;  %9644 = vrcp.bf16 %v493_v55  ;;  %15944 = vst [vmem:[#allocation56_spill] sm:$0xff] %v12249_v13  ;;  %v9631_v59 = vpop.eup %9630  ;;  %v1303_v17 = vunpack.c.l.bf16 %v1279_v35  ;;  %v1305_v5 = vunpack.c.h.bf16 %v1279_v35  ;;  %v12253_v26 = vpop.f32.mrb[51].mxu0  ;;  %v9218_v44 = vld [vmem:[%s15595_s0 + $0x184] ss:$8 sps:$4 sm:$0xff]   ;;  %v10600_v35 = vld [vmem:[%s15596_s1 + $0x38] sm:$0xff]  }
 0x16e   :  { %v12251_v18 = vadd.f32 %v1325_v9, %v1304_v7  ;;  %9646 = vrcp.bf16 %v1104_v3  ;;  %15945 = vst [vmem:[#allocation66_spill] sm:$0xff] %v12253_v26  ;;  %v12255_v58 = vpop.f32.mrb[51].mxu1  ;;  %v9633_v15 = vpop.eup %9632  ;;  %v12260_v62 = vadd.f32 %v728_v12, %v693_v51  ;;  %v494_v42 = vadd.bf16 1065369472, %v9631_v59  ;;  %v15947_v3 = vld [vmem:[#allocation28_spill] sm:$0xff]  ;;  %6465 = vmatprep.subr.bf16.mxu0 %v9218_v44  ;;  %6915 = vmatprep.subr.bf16.mxu1 %v9218_v44 }
 0x16f   :  { %15946 = vst [vmem:[#allocation67_spill] sm:$0xff] %v12255_v58  ;;  %9648 = vpow.bf16 %v8382_v40  ;;  %v1007_v7 = vadd.f32 %v11983_v37, %v12143_v27  ;;  %v9635_v24 = vpop.eup %9634  ;;  %v1340_v33 = vadd.f32 %v12167_v43, %v1303_v17  ;;  %v1105_v55 = vadd.bf16 1065369472, %v9633_v15  ;;  %v10601_v40 = vld [vmem:[%s15596_s1 + $0x78] sm:$0xff]  }
 0x170   :  { %9650 = vpow.bf16 %v8311_v57  ;;  %v1011_v9 = vadd.f32 %v12013_v47, %v12185_v28  ;;  %4671 = vmatmul.mubr.bf16.gmra.mrb[156].mxu0 %v10600_v35  ;;  %v9637_v51 = vpop.eup %9636  ;;  %v495_v37 = vadd.bf16 1065369472, %v9635_v24  ;;  %v1547_v43 = vadd.f32 %v12034_v23, %v15947_v3  ;;  %v15948_v12 = vld [vmem:[#allocation32_spill] sm:$0xff]  ;;  %v15949_v24 = vld [vmem:[#allocation29_spill] sm:$0xff] }
 0x171   :  { %5121 = vmatmul.mubr.bf16.gmra.mrb[156].mxu1 %v10601_v40  ;;  %9652 = vrcp.bf16 %v494_v42  ;;  %v2159_v57 = vadd.f32 %v12036_v49, %v15948_v12  ;;  %5500 = vmatprep.mubr.bf16.mxu0 %v15903_v48  ;;  %v12279_v47 = vadd.f32 %v1340_v33, %v1305_v5  ;;  %v1106_v59 = vadd.bf16 1065369472, %v9637_v51  ;;  %v9639_v15 = vpop.eup %9638  ;;  %v9164_v42 = vld [vmem:[#allocation2 + $0x50] ss:$8 sps:$4 sm:$0xff]   ;;  %v12287_v40 = vpop.f32.mrb[52].mxu0 }
 0x172   :  { %5950 = vmatprep.mubr.bf16.mxu1 %v15903_v48  ;;  %9654 = vrcp.bf16 %v1105_v55  ;;  %v1028_v17 = vpack.c.bf16 %v1011_v9, %v1007_v7  ;;  %v1549_v23 = vadd.f32 %v12044_v2, %v15947_v3  ;;  %v2161_v49 = vadd.f32 %v12046_v22, %v15948_v12  ;;  %15950 = vst [vmem:[#allocation68_spill] sm:$0xff] %v12287_v40  ;;  %v12289_v5 = vpop.f32.mrb[52].mxu1  ;;  %v15952_v55 = vld [vmem:[#allocation33_spill] sm:$0xff]  ;;  %v12293_v51 = vpop.f32.mrb[53].mxu0  ;;  %v15955_v12 = vld [vmem:[#allocation63_spill] sm:$0xff] }
 0x173   :  { %9656 = vrcp.bf16 %v495_v37  ;;  %v1551_v35 = vadd.f32 %v12052_v39, %v15949_v24  ;;  %15951 = vst [vmem:[#allocation69_spill] sm:$0xff] %v12289_v5  ;;  %v496_v7 = vadd.bf16 1065369472, %v9639_v15  ;;  %v2163_v9 = vadd.f32 %v12054_v38, %v15952_v55  ;;  %15953 = vst [vmem:[#allocation70_spill] sm:$0xff] %v12293_v51  ;;  %v12295_v2 = vpop.f32.mrb[53].mxu1  ;;  %v12301_v28 = vpop.f32.mrb[54].mxu0 }
 0x174   :  { %v9641_v33 = vpop.eup %9640  ;;  %9658 = vrcp.bf16 %v1106_v59  ;;  %v8383_v44 = vmul.bf16 3216621497, %v1028_v17  ;;  %15954 = vst [vmem:[#allocation71_spill] sm:$0xff] %v12295_v2  ;;  %v1553_v39 = vadd.f32 %v12060_v14, %v15949_v24  ;;  %v2165_v3 = vadd.f32 %v15955_v12, %v15952_v55  ;;  %15956 = vst [vmem:[#allocation63_spill] sm:$0xff] %v12301_v28  ;;  %v12303_v59 = vpop.f32.mrb[54].mxu1  ;;  %v15958_v15 = vld [vmem:[#allocation30_spill] sm:$0xff] }
 0x175   :  { %v519_v37 = vmul.bf16 1065369472, %v9641_v33  ;;  %v1625_v22 = vpack.c.bf16 %v1551_v35, %v1547_v43  ;;  %15957 = vst [vmem:[#allocation72_spill] sm:$0xff] %v12303_v59  ;;  %v9220_v38 = vld [vmem:[%s15595_s0 + $0x180] ss:$8 sps:$4 sm:$0xff]   ;;  %9660 = vrcp.bf16 %v496_v7  ;;  %v2237_v17 = vpack.c.bf16 %v2163_v9, %v2159_v57  ;;  %v12316_v24 = vpop.f32.mrb[55].mxu0 }
 0x176   :  { %v12310_v33 = vadd.f32 %v12094_v25, %v15958_v15  ;;  %v15959_v43 = vld [vmem:[#allocation34_spill] sm:$0xff]  ;;  %v12318_v12 = vpop.f32.mrb[55].mxu1  ;;  %v9643_v55 = vpop.eup %9642  ;;  %v10602_v27 = vld [vmem:[%s15595_s0 + $0x50] ss:$8 sps:$4 sm:$0xff]   ;;  %9662 = vpow.bf16 %v8383_v44  ;;  %v1626_v7 = vpack.c.bf16 %v1553_v39, %v1549_v23  ;;  %v2238_v51 = vpack.c.bf16 %v2165_v3, %v2161_v49  ;;  %v10604_v44 = vld [vmem:[%s15596_s1 + $0xc0] sm:$0xff]  }
 0x177   :  { %v15960_v35 = vld [vmem:[#allocation42_spill] sm:$0xff]  ;;  %15962 = vst [vmem:[#allocation73_spill] sm:$0xff] %v12318_v12  ;;  %v540_v59 = vmul.bf16 %v10602_v27, %v519_v37  ;;  %v8440_v57 = vmul.bf16 3216621497, %v1625_v22  ;;  %v1130_v25 = vmul.bf16 1065369472, %v9643_v55 }
 0x178   :  { %v12314_v14 = vadd.f32 %v15960_v35, %v15959_v43  ;;  %15961 = vst [vmem:[#allocation42_spill] sm:$0xff] %v12316_v24  ;;  %v9645_v9 = vpop.eup %9644  ;;  %v9166_v28 = vld [vmem:[#allocation2 + $0x250] ss:$8 sps:$4 sm:$0xff]   ;;  %v8512_v2 = vmul.bf16 3216621497, %v2237_v17  ;;  %v12325_v35 = vadd.f32 %v12100_v60, %v15958_v15  ;;  %v10603_v12 = vld [vmem:[%s15596_s1 + $0x80] sm:$0xff]  }
 0x179   :  { %5501 = vmatmul.mubr.bf16.vlgmr.msra.gmra.mrb[160].mxu0 %v10603_v12  ;;  %5951 = vmatmul.mubr.bf16.vlgmr.msra.gmra.mrb[160].mxu1 %v10604_v44  ;;  %v9647_v23 = vpop.eup %9646  ;;  %v652_v37 = vsub.bf16 %v540_v59, %v9164_v42  ;;  %v521_v55 = vmul.bf16 1065369472, %v9645_v9  ;;  %v9168_v22 = vld [vmem:[#allocation2 + $0x54] ss:$8 sps:$4 sm:$0xff]   ;;  %9664 = vpow.bf16 %v8440_v57  ;;  %v8441_v3 = vmul.bf16 3216621497, %v1626_v7 }
 0x17a   :  { %6466 = vmatpush1.bf16.msra.mxu0 %v9220_v38  ;;  %6916 = vmatpush1.bf16.msra.mxu1 %v9220_v38  ;;  %v9649_v60 = vpop.eup %9648  ;;  %v1151_v49 = vmul.bf16 %v10602_v27, %v1130_v25  ;;  %v1132_v39 = vmul.bf16 1065369472, %v9647_v23  ;;  %v9169_v17 = vld [vmem:[#allocation2 + $0x254] ss:$8 sps:$4 sm:$0xff]   ;;  %9666 = vpow.bf16 %v8512_v2  ;;  %v8513_v15 = vmul.bf16 3216621497, %v2238_v51 }
 0x17b   :  { %5510 = vmatprep.mubr.bf16.mxu0 %v15903_v48  ;;  %5960 = vmatprep.mubr.bf16.mxu1 %v15903_v48  ;;  %v12335_v12 = vpop.eup %9650  ;;  %v668_v44 = vand.u32 2147450879, %v652_v37  ;;  %v10605_v42 = vld [vmem:[%s15595_s0 + $0x54] ss:$8 sps:$4 sm:$0xff]   ;;  %v1107_v57 = vadd.bf16 1065369472, %v9649_v60  ;;  %9668 = vpow.bf16 %v8441_v3 }
 0x17c   :  { %v541_v59 = vmul.bf16 %v10605_v42, %v521_v55  ;;  %v12340_v38 = vpop.f32.mrb[56].mxu0  ;;  %v12342_v27 = vpop.f32.mrb[56].mxu1  ;;  %v1264_v51 = vsub.bf16 %v1151_v49, %v9166_v28  ;;  %v1152_v7 = vmul.bf16 %v10605_v42, %v1132_v39  ;;  %v9170_v9 = vld [vmem:[#allocation2 + $0x60] ss:$8 sps:$4 sm:$0xff]   ;;  %9670 = vpow.bf16 %v8513_v15  ;;  %v9176_v58 = vld [vmem:[#allocation2 + $0x70] ss:$8 sps:$4 sm:$0xff]  }
 0x17d   :  { %15963 = vst [vmem:[#allocation74_spill] sm:$0xff] %v12340_v38  ;;  %15964 = vst [vmem:[#allocation75_spill] sm:$0xff] %v12342_v27  ;;  %v9653_v2 = vpop.eup %9652  ;;  %v12345_v23 = vpop.f32.mrb[57].mxu0  ;;  %v694_v5 = vunpack.c.l.bf16 %v668_v44  ;;  %v696_v55 = vunpack.c.h.bf16 %v668_v44  ;;  %v9172_v40 = vld [vmem:[#allocation2 + $0x260] ss:$8 sps:$4 sm:$0xff]   ;;  %9672 = vrcp.bf16 %v1107_v57 }
 0x17e   :  { %15965 = vst [vmem:[#allocation76_spill] sm:$0xff] %v12345_v23  ;;  %v12347_v37 = vpop.f32.mrb[57].mxu1  ;;  %v9655_v24 = vpop.eup %9654  ;;  %v653_v60 = vsub.bf16 %v541_v59, %v9168_v22  ;;  %v523_v3 = vmul.bf16 1065369472, %v9653_v2  ;;  %v1280_v49 = vand.u32 2147450879, %v1264_v51  ;;  %v1265_v39 = vsub.bf16 %v1152_v7, %v9169_v17 }
 0x17f   :  { %15966 = vst [vmem:[#allocation77_spill] sm:$0xff] %v12347_v37  ;;  %v12349_v38 = vpop.f32.mrb[58].mxu0  ;;  %v12351_v27 = vpop.f32.mrb[58].mxu1  ;;  %v1134_v42 = vmul.bf16 1065369472, %v9655_v24  ;;  %v715_v23 = vadd.f32 %v12244_v36, %v694_v5  ;;  %v10607_v36 = vld [vmem:[%s15596_s1 + $0x88] sm:$0xff]  }
 0x180   :  { %15967 = vst [vmem:[#allocation78_spill] sm:$0xff] %v12349_v38  ;;  %15968 = vst [vmem:[#allocation79_spill] sm:$0xff] %v12351_v27  ;;  %v9657_v28 = vpop.eup %9656  ;;  %v12353_v15 = vpop.f32.mrb[59].mxu0  ;;  %v669_v44 = vand.u32 2147450879, %v653_v60  ;;  %v1306_v24 = vunpack.c.l.bf16 %v1280_v49  ;;  %v1308_v57 = vunpack.c.h.bf16 %v1280_v49  ;;  %v10608_v5 = vld [vmem:[%s15596_s1 + $0xc8] sm:$0xff]  }
 0x181   :  { %15969 = vst [vmem:[#allocation80_spill] sm:$0xff] %v12353_v15  ;;  %v12355_v25 = vpop.f32.mrb[59].mxu1  ;;  %v9659_v37 = vpop.eup %9658  ;;  %v10606_v22 = vld [vmem:[%s15595_s0 + $0x60] ss:$8 sps:$4 sm:$0xff]   ;;  %v525_v2 = vmul.bf16 1065369472, %v9657_v28  ;;  %5511 = vmatmul.mubr.bf16.gmra.mrb[164].mxu0 %v10607_v36  ;;  %5961 = vmatmul.mubr.bf16.gmra.mrb[164].mxu1 %v10608_v5  ;;  %v716_v28 = vadd.f32 %v715_v23, %v696_v55 }
 0x182   :  { %15970 = vst [vmem:[#allocation81_spill] sm:$0xff] %v12355_v25  ;;  %v542_v59 = vmul.bf16 %v10606_v22, %v523_v3  ;;  %v12364_v17 = vld [vmem:[%s15595_s0 + $0x194] ss:$8 sps:$4 sm:$0xff]   ;;  %v1281_v51 = vand.u32 2147450879, %v1265_v39  ;;  %v1153_v7 = vmul.bf16 %v10606_v22, %v1134_v42  ;;  %v9661_v3 = vpop.eup %9660  ;;  %v695_v49 = vunpack.c.l.bf16 %v669_v44  ;;  %5520 = vmatprep.mubr.bf16.mxu0 %v15903_v48  ;;  %5970 = vmatprep.mubr.bf16.mxu1 %v15903_v48 }
 0x183   :  { %15971 = vst [vmem:[#allocation82_spill] sm:$0xff] %v12364_v17  ;;  %v12375_v60 = vld [vmem:[%s15595_s0 + $0x190] ss:$8 sps:$4 sm:$0xff]   ;;  %v697_v39 = vunpack.c.h.bf16 %v669_v44  ;;  %v9174_v22 = vld [vmem:[#allocation2 + $0x64] ss:$8 sps:$4 sm:$0xff]   ;;  %6467 = vmatprep.subr.bf16.mxu0 %v12364_v17  ;;  %6917 = vmatprep.subr.bf16.mxu1 %v12364_v17  ;;  %v12379_v36 = vpop.eup %9662  ;;  %v1327_v25 = vadd.f32 %v12251_v18, %v1306_v24 }
 0x184   :  { %15972 = vst [vmem:[#allocation83_spill] sm:$0xff] %v12375_v60  ;;  %v654_v42 = vsub.bf16 %v542_v59, %v9170_v9  ;;  %v1307_v5 = vunpack.c.l.bf16 %v1281_v51  ;;  %v1309_v15 = vunpack.c.h.bf16 %v1281_v51  ;;  %v1266_v27 = vsub.bf16 %v1153_v7, %v9172_v40  ;;  %6468 = vmatpush1.bf16.msra.mxu0 %v12375_v60  ;;  %6918 = vmatpush1.bf16.msra.mxu1 %v12375_v60  ;;  %v10609_v9 = vld [vmem:[%s15595_s0 + $0x64] ss:$8 sps:$4 sm:$0xff]   ;;  %v9665_v18 = vpop.eup %9664  ;;  %v12391_v60 = vpop.f32.mrb[60].mxu0 }
 0x185   :  { %v730_v23 = vadd.f32 %v12260_v62, %v695_v49  ;;  %v543_v44 = vmul.bf16 %v10609_v9, %v525_v2  ;;  %v1136_v59 = vmul.bf16 1065369472, %v9659_v37  ;;  %v9175_v17 = vld [vmem:[#allocation2 + $0x264] ss:$8 sps:$4 sm:$0xff]   ;;  %v1328_v40 = vadd.f32 %v1327_v25, %v1308_v57  ;;  %v12393_v62 = vpop.f32.mrb[60].mxu1  ;;  %v12395_v49 = vpop.eup %9666 }
 0x186   :  { %v670_v55 = vand.u32 2147450879, %v654_v42  ;;  %v1342_v24 = vadd.f32 %v12279_v47, %v1307_v5  ;;  %v1282_v51 = vand.u32 2147450879, %v1266_v27  ;;  %v527_v7 = vmul.bf16 1065369472, %v9661_v3  ;;  %v9669_v27 = vpop.eup %9668 }
 0x187   :  { %15973 = vst [vmem:[#allocation84_spill] sm:$0xff] %v12393_v62  ;;  %v731_v42 = vadd.f32 %v730_v23, %v697_v39  ;;  %v655_v38 = vsub.bf16 %v543_v44, %v9174_v22  ;;  %v12397_v26 = vpop.f32.mrb[61].mxu0  ;;  %v12399_v13 = vpop.f32.mrb[61].mxu1  ;;  %v12404_v47 = vld [vmem:[%s15595_s0 + $0x1a4] ss:$8 sps:$4 sm:$0xff]   ;;  %v1154_v5 = vmul.bf16 %v10609_v9, %v1136_v59 }
 0x188   :  { %v698_v2 = vunpack.c.l.bf16 %v670_v55  ;;  %v700_v37 = vunpack.c.h.bf16 %v670_v55  ;;  %15974 = vst [vmem:[#allocation85_spill] sm:$0xff] %v12399_v13  ;;  %v1343_v25 = vadd.f32 %v1342_v24, %v1309_v15  ;;  %v1310_v57 = vunpack.c.l.bf16 %v1282_v51  ;;  %v12406_v62 = vpop.f32.mrb[62].mxu0  ;;  %v12408_v39 = vpop.f32.mrb[62].mxu1  ;;  %v12413_v22 = vld [vmem:[%s15595_s0 + $0x1a0] ss:$8 sps:$4 sm:$0xff]   ;;  %6469 = vmatprep.subr.bf16.mxu0 %v12404_v47  ;;  %6919 = vmatprep.subr.bf16.mxu1 %v12404_v47 }
 0x189   :  { %v1312_v3 = vunpack.c.h.bf16 %v1282_v51  ;;  %15975 = vst [vmem:[#allocation86_spill] sm:$0xff] %v12406_v62  ;;  %15976 = vst [vmem:[#allocation87_spill] sm:$0xff] %v12408_v39  ;;  %v9671_v23 = vpop.eup %9670  ;;  %v671_v44 = vand.u32 2147450879, %v655_v38  ;;  %v10610_v13 = vld [vmem:[%s15595_s0 + $0x70] ss:$8 sps:$4 sm:$0xff]   ;;  %v1267_v39 = vsub.bf16 %v1154_v5, %v9175_v17  ;;  %6470 = vmatpush1.bf16.msra.mxu0 %v12413_v22  ;;  %6920 = vmatpush1.bf16.msra.mxu1 %v12413_v22 }
 0x18a   :  { %v717_v55 = vadd.f32 %v716_v28, %v698_v2  ;;  %v544_v15 = vmul.bf16 %v10610_v13, %v527_v7  ;;  %v15977_v24 = vadd.bf16 1065369472, %v12335_v12  ;;  %v12420_v9 = vpop.f32.mrb[63].mxu0  ;;  %v12422_v59 = vpop.f32.mrb[63].mxu1  ;;  %v1329_v51 = vadd.f32 %v1328_v40, %v1310_v57  ;;  %v10611_v7 = vld [vmem:[%s15596_s1 + $0x90] sm:$0xff]  }
 0x18b   :  { %15978 = vst [vmem:[#allocation88_spill] sm:$0xff] %v12420_v9  ;;  %15979 = vst [vmem:[#allocation89_spill] sm:$0xff] %v12422_v59  ;;  %v1108_v38 = vadd.bf16 1065369472, %v12379_v36  ;;  %v1705_v28 = vadd.bf16 1065369472, %v9665_v18  ;;  %5521 = vmatmul.mubr.bf16.gmra.mrb[168].mxu0 %v10611_v7  ;;  %v9673_v2 = vpop.eup %9672  ;;  %v699_v59 = vunpack.c.l.bf16 %v671_v44  ;;  %v701_v9 = vunpack.c.h.bf16 %v671_v44 }
 0x18c   :  { %9674 = vrcp.bf16 %v15977_v24  ;;  %v10612_v12 = vld [vmem:[%s15596_s1 + $0xd0] sm:$0xff]   ;;  %v718_v24 = vadd.f32 %v717_v55, %v700_v37  ;;  %v656_v62 = vsub.bf16 %v544_v15, %v9176_v58  ;;  %v1330_v17 = vadd.f32 %v1329_v51, %v1312_v3  ;;  %5530 = vmatprep.mubr.bf16.mxu0 %v15903_v48  ;;  %v12438_v55 = vpop.f32.mrb[64].mxu0  ;;  %v12440_v58 = vpop.f32.mrb[64].mxu1 }
 0x18d   :  { %5971 = vmatmul.mubr.bf16.gmra.mrb[168].mxu1 %v10612_v12  ;;  %v1283_v36 = vand.u32 2147450879, %v1267_v39  ;;  %v1138_v18 = vmul.bf16 1065369472, %v9673_v2  ;;  %v9178_v40 = vld [vmem:[#allocation2 + $0x270] ss:$8 sps:$4 sm:$0xff]   ;;  %9676 = vrcp.bf16 %v1108_v38  ;;  %v732_v57 = vadd.f32 %v731_v42, %v699_v59 }
 0x18e   :  { %5980 = vmatprep.mubr.bf16.mxu1 %v15903_v48  ;;  %v672_v5 = vand.u32 2147450879, %v656_v62  ;;  %9678 = vrcp.bf16 %v1705_v28  ;;  %v2317_v37 = vadd.bf16 1065369472, %v12395_v49  ;;  %v1706_v39 = vadd.bf16 1065369472, %v9669_v27 }
 0x18f   :  { %v1311_v44 = vunpack.c.l.bf16 %v1283_v36  ;;  %v1313_v15 = vunpack.c.h.bf16 %v1283_v36  ;;  %v1155_v3 = vmul.bf16 %v10610_v13, %v1138_v18  ;;  %v12442_v51 = vpop.f32.mrb[65].mxu0  ;;  %v12444_v38 = vpop.f32.mrb[65].mxu1  ;;  %v12446_v7 = vadd.f32 %v732_v57, %v701_v9  ;;  %v15981_v27 = vld [vmem:[#allocation31_spill] sm:$0xff] }
 0x190   :  { %v702_v12 = vunpack.c.l.bf16 %v672_v5  ;;  %v704_v42 = vunpack.c.h.bf16 %v672_v5  ;;  %9680 = vrcp.bf16 %v2317_v37  ;;  %v12448_v62 = vpop.f32.mrb[66].mxu0  ;;  %v12450_v49 = vpop.f32.mrb[66].mxu1  ;;  %v2318_v2 = vadd.bf16 1065369472, %v9671_v23  ;;  %v15982_v9 = vld [vmem:[#allocation35_spill] sm:$0xff] }
 0x191   :  { %15980 = vst [vmem:[#allocation90_spill] sm:$0xff] %v12448_v62  ;;  %v1344_v59 = vadd.f32 %v1343_v25, %v1311_v44  ;;  %v1268_v28 = vsub.bf16 %v1155_v3, %v9178_v40  ;;  %9682 = vrcp.bf16 %v1706_v39  ;;  %v2171_v13 = vadd.f32 %v12102_v21, %v15959_v43  ;;  %v12458_v5 = vpop.f32.mrb[67].mxu0  ;;  %v12460_v37 = vpop.f32.mrb[67].mxu1  ;;  %v10613_v21 = vld [vmem:[%s15596_s1 + $0x98] sm:$0xff]  }
 0x192   :  { %v719_v36 = vadd.f32 %v718_v24, %v702_v12  ;;  %v1561_v18 = vadd.f32 %v12107_v30, %v15981_v27  ;;  %v2173_v57 = vadd.f32 %v12109_v53, %v15982_v9  ;;  %9684 = vrcp.bf16 %v2318_v2  ;;  %v10614_v30 = vld [vmem:[%s15596_s1 + $0xd8] sm:$0xff]  }
 0x193   :  { %v12462_v62 = vadd.f32 %v1344_v59, %v1313_v15  ;;  %v1284_v25 = vand.u32 2147450879, %v1268_v28  ;;  %v1563_v23 = vadd.f32 %v12111_v50, %v15981_v27  ;;  %5531 = vmatmul.mubr.bf16.gmra.mrb[172].mxu0 %v10613_v21  ;;  %v2175_v44 = vadd.f32 %v12113_v56, %v15982_v9  ;;  %v9180_v39 = vld [vmem:[#allocation2 + $0x74] ss:$8 sps:$4 sm:$0xff]   ;;  %v9184_v27 = vld [vmem:[#allocation2 + $0x600] ss:$8 sps:$4 sm:$0xff]  }
 0x194   :  { %v720_v53 = vadd.f32 %v719_v36, %v704_v42  ;;  %v1627_v24 = vpack.c.bf16 %v1561_v18, %v12310_v33  ;;  %v2239_v40 = vpack.c.bf16 %v2173_v57, %v12314_v14  ;;  %5540 = vmatprep.mubr.bf16.mxu0 %v15903_v48  ;;  %v15983_v59 = vld [vmem:[#allocation36_spill] sm:$0xff]  ;;  %v15984_v56 = vld [vmem:[#allocation39_spill] sm:$0xff] }
 0x195   :  { %5981 = vmatmul.mubr.bf16.gmra.mrb[172].mxu1 %v10614_v30  ;;  %v1314_v15 = vunpack.c.l.bf16 %v1284_v25  ;;  %v1316_v3 = vunpack.c.h.bf16 %v1284_v25  ;;  %v1628_v12 = vpack.c.bf16 %v1563_v23, %v12325_v35  ;;  %v1567_v28 = vadd.f32 %v12147_v1, %v15983_v59  ;;  %v12489_v35 = vpop.f32.mrb[68].mxu0  ;;  %v12491_v23 = vpop.f32.mrb[68].mxu1  ;;  %v10615_v21 = vld [vmem:[%s15595_s0 + $0x74] ss:$8 sps:$4 sm:$0xff]  }
 0x196   :  { %5990 = vmatprep.mubr.bf16.mxu1 %v15903_v48  ;;  %v8442_v33 = vmul.bf16 3216621497, %v1627_v24  ;;  %v8514_v2 = vmul.bf16 3216621497, %v2239_v40  ;;  %v2240_v14 = vpack.c.bf16 %v2175_v44, %v2171_v13  ;;  %v12483_v57 = vadd.f32 %v12149_v16, %v15984_v56  ;;  %15985 = vst [vmem:[#allocation91_spill] sm:$0xff] %v12489_v35  ;;  %15986 = vst [vmem:[#allocation92_spill] sm:$0xff] %v12491_v23 }
 0x197   :  { %v9675_v50 = vpop.eup %9674  ;;  %v1331_v36 = vadd.f32 %v1330_v17, %v1314_v15  ;;  %v8443_v18 = vmul.bf16 3216621497, %v1628_v12  ;;  %v12487_v25 = vadd.f32 %v12157_v54, %v15983_v59  ;;  %v9181_v17 = vld [vmem:[#allocation2 + $0x274] ss:$8 sps:$4 sm:$0xff]   ;;  %v12498_v16 = vadd.f32 %v12159_v4, %v15984_v56  ;;  %v12510_v12 = vld [vmem:[%s15595_s0 + $0x1b0] ss:$8 sps:$4 sm:$0xff]  }
 0x198   :  { %v529_v42 = vmul.bf16 1065369472, %v9675_v50  ;;  %v9677_v1 = vpop.eup %9676  ;;  %9686 = vpow.bf16 %v8442_v33  ;;  %v8515_v30 = vmul.bf16 3216621497, %v2240_v14  ;;  %v12503_v54 = vld [vmem:[%s15595_s0 + $0x1b4] ss:$8 sps:$4 sm:$0xff]  }
 0x199   :  { %v9679_v24 = vpop.eup %9678  ;;  %v1332_v40 = vadd.f32 %v1331_v36, %v1316_v3  ;;  %v1140_v44 = vmul.bf16 1065369472, %v9677_v1  ;;  %9688 = vpow.bf16 %v8514_v2  ;;  %v15987_v50 = vld [vmem:[#allocation37_spill] sm:$0xff]  ;;  %v12514_v4 = vpop.f32.mrb[69].mxu1  ;;  %v15990_v59 = vld [vmem:[#allocation40_spill] sm:$0xff]  ;;  %6471 = vmatprep.subr.bf16.mxu0 %v12503_v54  ;;  %6921 = vmatprep.subr.bf16.mxu1 %v12503_v54 }
 0x19a   :  { %v545_v13 = vmul.bf16 %v10615_v21, %v529_v42  ;;  %v1571_v15 = vadd.f32 %v12163_v11, %v15987_v50  ;;  %v12512_v42 = vpop.f32.mrb[69].mxu0  ;;  %15989 = vst [vmem:[#allocation94_spill] sm:$0xff] %v12514_v4  ;;  %v1722_v14 = vmul.bf16 1065369472, %v9679_v24  ;;  %v9182_v56 = vld [vmem:[#allocation2 + $0x400] ss:$8 sps:$4 sm:$0xff]   ;;  %9690 = vpow.bf16 %v8443_v18  ;;  %6472 = vmatpush1.bf16.msra.mxu0 %v12510_v12  ;;  %6922 = vmatpush1.bf16.msra.mxu1 %v12510_v12 }
 0x19b   :  { %15988 = vst [vmem:[#allocation93_spill] sm:$0xff] %v12512_v42  ;;  %v2183_v3 = vadd.f32 %v12165_v52, %v15990_v59  ;;  %v12520_v11 = vpop.f32.mrb[70].mxu0  ;;  %v12522_v2 = vpop.f32.mrb[70].mxu1  ;;  %v12524_v1 = vadd.f32 %v1332_v40, %v720_v53  ;;  %v1156_v9 = vmul.bf16 %v10615_v21, %v1140_v44  ;;  %9692 = vpow.bf16 %v8515_v30  ;;  %v10616_v53 = vld [vmem:[%s15595_s0] ss:$8 sps:$4 sm:$0xff]  }
 0x19c   :  { %v657_v33 = vsub.bf16 %v545_v13, %v9180_v39  ;;  %15991 = vst [vmem:[#allocation95_spill] sm:$0xff] %v12520_v11  ;;  %15992 = vst [vmem:[#allocation96_spill] sm:$0xff] %v12522_v2  ;;  %v9681_v36 = vpop.eup %9680  ;;  %v9186_v39 = vld [vmem:[#allocation2 + $0x404] ss:$8 sps:$4 sm:$0xff]   ;;  %v1629_v13 = vpack.c.bf16 %v1571_v15, %v1567_v28  ;;  %v12528_v52 = vpop.f32.mrb[71].mxu0  ;;  %v1753_v40 = vmul.bf16 %v10616_v53, %v1722_v14 }
 0x19d   :  { %15993 = vst [vmem:[#allocation97_spill] sm:$0xff] %v12524_v1  ;;  %15994 = vst [vmem:[#allocation98_spill] sm:$0xff] %v12528_v52  ;;  %v12530_v18 = vpop.f32.mrb[71].mxu1  ;;  %v9683_v24 = vpop.eup %9682  ;;  %v2334_v21 = vmul.bf16 1065369472, %v9681_v36  ;;  %v2241_v44 = vpack.c.bf16 %v2183_v3, %v12483_v57  ;;  %v10617_v28 = vld [vmem:[%s15596_s1 + $0xa0] sm:$0xff]   ;;  %v12549_v57 = vadd.f32 %v12175_v61, %v15987_v50 }
 0x19e   :  { %15995 = vst [vmem:[#allocation99_spill] sm:$0xff] %v12530_v18  ;;  %v673_v43 = vand.u32 2147450879, %v657_v33  ;;  %5541 = vmatmul.mubr.bf16.gmra.mrb[176].mxu0 %v10617_v28  ;;  %v10618_v30 = vld [vmem:[%s15596_s1 + $0xe0] sm:$0xff]   ;;  %v1269_v33 = vsub.bf16 %v1156_v9, %v9181_v17  ;;  %v1724_v14 = vmul.bf16 1065369472, %v9683_v24  ;;  %v9685_v28 = vpop.eup %9684  ;;  %v1866_v18 = vsub.bf16 %v1753_v40, %v9182_v56 }
 0x19f   :  { %5991 = vmatmul.mubr.bf16.gmra.mrb[176].mxu1 %v10618_v30  ;;  %v12545_v15 = vld [vmem:[%s15595_s0 + $0x1c4] ss:$8 sps:$4 sm:$0xff]   ;;  %v8444_v36 = vmul.bf16 3216621497, %v1629_v13  ;;  %v12554_v3 = vld [vmem:[%s15595_s0 + $0x1c0] ss:$8 sps:$4 sm:$0xff]   ;;  %5550 = vmatprep.mubr.bf16.mxu0 %v15903_v48  ;;  %v2365_v9 = vmul.bf16 %v10616_v53, %v2334_v21 }
 0x1a0   :  { %6000 = vmatprep.mubr.bf16.mxu1 %v15903_v48  ;;  %v703_v30 = vunpack.c.l.bf16 %v673_v43  ;;  %v705_v1 = vunpack.c.h.bf16 %v673_v43  ;;  %v9187_v17 = vld [vmem:[#allocation2 + $0x604] ss:$8 sps:$4 sm:$0xff]   ;;  %6473 = vmatprep.subr.bf16.mxu0 %v12545_v15  ;;  %v12560_v61 = vpop.f32.mrb[72].mxu0  ;;  %v12562_v13 = vpop.f32.mrb[72].mxu1  ;;  %v1285_v24 = vand.u32 2147450879, %v1269_v33 }
 0x1a1   :  { %6923 = vmatprep.subr.bf16.mxu1 %v12545_v15  ;;  %15996 = vst [vmem:[#allocation100_spill] sm:$0xff] %v12560_v61  ;;  %15997 = vst [vmem:[#allocation101_spill] sm:$0xff] %v12562_v13  ;;  %v10619_v50 = vld [vmem:[%s15595_s0 + $0x4] ss:$8 sps:$4 sm:$0xff]   ;;  %v2336_v2 = vmul.bf16 1065369472, %v9685_v28  ;;  %9694 = vpow.bf16 %v8444_v36  ;;  %6474 = vmatpush1.bf16.msra.mxu0 %v12554_v3  ;;  %v2478_v21 = vsub.bf16 %v2365_v9, %v9184_v27 }
 0x1a2   :  { %v1754_v52 = vmul.bf16 %v10619_v50, %v1724_v14  ;;  %6924 = vmatpush1.bf16.msra.mxu1 %v12554_v3  ;;  %v12569_v43 = vpop.f32.mrb[73].mxu0  ;;  %v12571_v56 = vpop.f32.mrb[73].mxu1  ;;  %v734_v53 = vadd.f32 %v12446_v7, %v703_v30  ;;  %v1882_v40 = vand.u32 2147450879, %v1866_v18  ;;  %v8516_v33 = vmul.bf16 3216621497, %v2241_v44 }
 0x1a3   :  { %15998 = vst [vmem:[#allocation102_spill] sm:$0xff] %v12569_v43  ;;  %15999 = vst [vmem:[#allocation103_spill] sm:$0xff] %v12571_v56  ;;  %v12574_v13 = vpop.f32.mrb[74].mxu0  ;;  %v12576_v61 = vpop.f32.mrb[74].mxu1  ;;  %v1315_v14 = vunpack.c.l.bf16 %v1285_v24  ;;  %v1317_v28 = vunpack.c.h.bf16 %v1285_v24  ;;  %v2366_v11 = vmul.bf16 %v10619_v50, %v2336_v2  ;;  %v2494_v35 = vand.u32 2147450879, %v2478_v21 }
 0x1a4   :  { %v1867_v36 = vsub.bf16 %v1754_v52, %v9186_v39  ;;  %v12578_v4 = vpop.f32.mrb[75].mxu0  ;;  %v12580_v42 = vpop.f32.mrb[75].mxu1  ;;  %v735_v43 = vadd.f32 %v734_v53, %v705_v1  ;;  %v1898_v23 = vunpack.c.l.bf16 %v1882_v40  ;;  %v1900_v56 = vunpack.c.h.bf16 %v1882_v40  ;;  %v10620_v2 = vld [vmem:[%s15596_s1 + $0xa8] sm:$0xff]  }
 0x1a5   :  { %v9687_v7 = vpop.eup %9686  ;;  %v1346_v27 = vadd.f32 %v12462_v62, %v1315_v14  ;;  %v2479_v44 = vsub.bf16 %v2366_v11, %v9187_v17  ;;  %9696 = vpow.bf16 %v8516_v33  ;;  %v2510_v24 = vunpack.c.l.bf16 %v2494_v35  ;;  %v10621_v1 = vld [vmem:[%s15596_s1 + $0xe8] sm:$0xff]  }
 0x1a6   :  { %v1883_v18 = vand.u32 2147450879, %v1867_v36  ;;  %v9689_v30 = vpop.eup %9688  ;;  %v12583_v9 = vadd.f32 %v1900_v56, %v1898_v23  ;;  %v2512_v39 = vunpack.c.h.bf16 %v2494_v35  ;;  %v1707_v50 = vadd.bf16 1065369472, %v9687_v7  ;;  %5551 = vmatmul.mubr.bf16.gmra.mrb[180].mxu0 %v10620_v2  ;;  %v12601_v7 = vpop.f32.mrb[76].mxu1  ;;  %v16005_v2 = vld [vmem:[#allocation48_spill] sm:$0xff] }
 0x1a7   :  { %6001 = vmatmul.mubr.bf16.gmra.mrb[180].mxu1 %v10621_v1  ;;  %v9691_v62 = vpop.eup %9690  ;;  %v1347_v52 = vadd.f32 %v1346_v27, %v1317_v28  ;;  %v2495_v53 = vand.u32 2147450879, %v2479_v44  ;;  %5560 = vmatprep.mubr.bf16.mxu0 %v15903_v48  ;;  %v2319_v56 = vadd.bf16 1065369472, %v9689_v30  ;;  %v12599_v28 = vpop.f32.mrb[76].mxu0  ;;  %16001 = vst [vmem:[#allocation105_spill] sm:$0xff] %v12601_v7  ;;  %v2185_v44 = vadd.f32 %v12177_v29, %v15990_v59 }
 0x1a8   :  { %v1899_v11 = vunpack.c.l.bf16 %v1883_v18  ;;  %v1901_v17 = vunpack.c.h.bf16 %v1883_v18  ;;  %6010 = vmatprep.mubr.bf16.mxu1 %v15903_v48  ;;  %v9693_v35 = vpop.eup %9692  ;;  %v12593_v23 = vadd.f32 %v2512_v39, %v2510_v24  ;;  %9698 = vrcp.bf16 %v1707_v50  ;;  %16000 = vst [vmem:[#allocation104_spill] sm:$0xff] %v12599_v28  ;;  %v12607_v30 = vpop.f32.mrb[77].mxu0  ;;  %v16004_v39 = vld [vmem:[#allocation41_spill] sm:$0xff]  ;;  %v10624_v59 = vld [vmem:[%s15595_s0 + $0x10] ss:$8 sps:$4 sm:$0xff]  }
 0x1a9   :  { %v1708_v40 = vadd.bf16 1065369472, %v9691_v62  ;;  %v12595_v21 = vadd.f32 %v1347_v52, %v735_v43  ;;  %v2511_v14 = vunpack.c.l.bf16 %v2495_v53  ;;  %v2513_v36 = vunpack.c.h.bf16 %v2495_v53  ;;  %16002 = vst [vmem:[#allocation106_spill] sm:$0xff] %v12607_v30  ;;  %v12609_v43 = vpop.f32.mrb[77].mxu1  ;;  %v12617_v62 = vpop.f32.mrb[78].mxu0 }
 0x1aa   :  { %v12597_v33 = vadd.f32 %v1901_v17, %v1899_v11  ;;  %9700 = vrcp.bf16 %v2319_v56  ;;  %v2320_v27 = vadd.bf16 1065369472, %v9693_v35  ;;  %v1630_v18 = vpack.c.bf16 %v12549_v57, %v12487_v25  ;;  %16003 = vst [vmem:[#allocation107_spill] sm:$0xff] %v12609_v43  ;;  %16006 = vst [vmem:[#allocation108_spill] sm:$0xff] %v12617_v62  ;;  %v12619_v52 = vpop.f32.mrb[78].mxu1  ;;  %v12624_v17 = vpop.f32.mrb[79].mxu0 }
 0x1ab   :  { %v12611_v24 = vadd.f32 %v2513_v36, %v2511_v14  ;;  %9702 = vrcp.bf16 %v1708_v40  ;;  %v1577_v50 = vadd.f32 %v12204_v46, %v16004_v39  ;;  %v2189_v1 = vadd.f32 %v12206_v41, %v16005_v2  ;;  %16007 = vst [vmem:[#allocation109_spill] sm:$0xff] %v12619_v52  ;;  %16008 = vst [vmem:[#allocation110_spill] sm:$0xff] %v12624_v17  ;;  %v12626_v53 = vpop.f32.mrb[79].mxu1  ;;  %v16010_v35 = vld [vmem:[#allocation44_spill] sm:$0xff]  ;;  %v16011_v40 = vld [vmem:[#allocation49_spill] sm:$0xff] }
 0x1ac   :  { %v9695_v25 = vpop.eup %9694  ;;  %9704 = vrcp.bf16 %v2320_v27  ;;  %v8445_v29 = vmul.bf16 3216621497, %v1630_v18  ;;  %v2242_v57 = vpack.c.bf16 %v2185_v44, %v12498_v16  ;;  %v1579_v11 = vadd.f32 %v12208_v45, %v16004_v39  ;;  %16009 = vst [vmem:[#allocation111_spill] sm:$0xff] %v12626_v53  ;;  %v12641_v27 = vld [vmem:[%s15595_s0 + $0x1d4] ss:$8 sps:$4 sm:$0xff]   ;;  %v16012_v18 = vld [vmem:[#allocation50_spill] sm:$0xff] }
 0x1ad   :  { %v1709_v46 = vadd.bf16 1065369472, %v9695_v25  ;;  %v2191_v41 = vadd.f32 %v12210_v8, %v16005_v2  ;;  %v1581_v56 = vadd.f32 %v12217_v63, %v16010_v35  ;;  %v2193_v14 = vadd.f32 %v12219_v20, %v16011_v40  ;;  %v10622_v8 = vld [vmem:[%s15596_s1 + $0xb0] sm:$0xff]   ;;  %6475 = vmatprep.subr.bf16.mxu0 %v12641_v27  ;;  %6925 = vmatprep.subr.bf16.mxu1 %v12641_v27  ;;  %v9208_v7 = vld [vmem:[#allocation2 + $0x640] ss:$8 sps:$4 sm:$0xff]  }
 0x1ae   :  { %9706 = vpow.bf16 %v8445_v29  ;;  %v8517_v36 = vmul.bf16 3216621497, %v2242_v57  ;;  %v1583_v16 = vadd.f32 %v12221_v34, %v16010_v35  ;;  %v2195_v45 = vadd.f32 %v12223_v19, %v16011_v40  ;;  %5561 = vmatmul.mubr.bf16.gmra.mrb[184].mxu0 %v10622_v8  ;;  %v10623_v63 = vld [vmem:[%s15596_s1 + $0xf0] sm:$0xff]   ;;  %v16013_v8 = vld [vmem:[#allocation54_spill] sm:$0xff]  ;;  %v16022_v35 = vld [vmem:[#allocation68_spill] sm:$0xff] }
 0x1af   :  { %6011 = vmatmul.mubr.bf16.gmra.mrb[184].mxu1 %v10623_v63  ;;  %9708 = vrcp.bf16 %v1709_v46  ;;  %v1631_v20 = vpack.c.bf16 %v1581_v56, %v1577_v50  ;;  %v2243_v34 = vpack.c.bf16 %v2193_v14, %v2189_v1  ;;  %v1587_v19 = vadd.f32 %v12235_v32, %v16012_v18  ;;  %v12654_v44 = vld [vmem:[%s15595_s0 + $0x1d0] ss:$8 sps:$4 sm:$0xff]   ;;  %5570 = vmatprep.mubr.bf16.mxu0 %v15903_v48  ;;  %v16015_v63 = vld [vmem:[#allocation57_spill] sm:$0xff] }
 0x1b0   :  { %6020 = vmatprep.mubr.bf16.mxu1 %v15903_v48  ;;  %v9697_v25 = vpop.eup %9696  ;;  %9710 = vpow.bf16 %v8517_v36  ;;  %v1632_v29 = vpack.c.bf16 %v1583_v16, %v1579_v11  ;;  %v2244_v57 = vpack.c.bf16 %v2195_v45, %v2191_v41  ;;  %v2199_v50 = vadd.f32 %v12237_v31, %v16013_v8  ;;  %6476 = vmatpush1.bf16.msra.mxu0 %v12654_v44  ;;  %v16014_v31 = vld [vmem:[#allocation51_spill] sm:$0xff] }
 0x1b1   :  { %v2321_v32 = vadd.bf16 1065369472, %v9697_v25  ;;  %v8446_v1 = vmul.bf16 3216621497, %v1631_v20  ;;  %v8518_v46 = vmul.bf16 3216621497, %v2243_v34  ;;  %v1589_v56 = vadd.f32 %v12240_v0, %v16012_v18  ;;  %6926 = vmatpush1.bf16.msra.mxu1 %v12654_v44 }
 0x1b2   :  { %v8447_v14 = vmul.bf16 3216621497, %v1632_v29  ;;  %v8519_v11 = vmul.bf16 3216621497, %v2244_v57  ;;  %v2201_v41 = vadd.f32 %v12242_v10, %v16013_v8  ;;  %v1591_v36 = vadd.f32 %v12247_v6, %v16014_v31  ;;  %v9188_v45 = vld [vmem:[#allocation2 + $0x410] ss:$8 sps:$4 sm:$0xff]  }
 0x1b3   :  { %v9699_v16 = vpop.eup %9698  ;;  %9712 = vrcp.bf16 %v2321_v32  ;;  %v16016_v20 = vld [vmem:[#allocation56_spill] sm:$0xff]  ;;  %v16017_v0 = vld [vmem:[#allocation66_spill] sm:$0xff]  ;;  %v16018_v18 = vld [vmem:[#allocation67_spill] sm:$0xff]  ;;  %v12676_v29 = vpop.f32.mrb[80].mxu0 }
 0x1b4   :  { %v2203_v34 = vadd.f32 %v16016_v20, %v16015_v63  ;;  %v1593_v25 = vadd.f32 %v16017_v0, %v16014_v31  ;;  %v2205_v40 = vadd.f32 %v16018_v18, %v16015_v63  ;;  %16019 = vst [vmem:[#allocation56_spill] sm:$0xff] %v12676_v29  ;;  %v12678_v57 = vpop.f32.mrb[80].mxu1  ;;  %v1726_v10 = vmul.bf16 1065369472, %v9699_v16  ;;  %v16021_v6 = vld [vmem:[#allocation58_spill] sm:$0xff]  ;;  %v12689_v20 = vpop.f32.mrb[81].mxu0 }
 0x1b5   :  { %16020 = vst [vmem:[#allocation66_spill] sm:$0xff] %v12678_v57  ;;  %9714 = vpow.bf16 %v8446_v1  ;;  %v1633_v8 = vpack.c.bf16 %v1591_v36, %v1587_v19  ;;  %v12682_v2 = vadd.f32 %v16022_v35, %v16021_v6  ;;  %v12687_v32 = vld [vmem:[%s15595_s0 + $0x1e4] ss:$8 sps:$4 sm:$0xff]   ;;  %16023 = vst [vmem:[#allocation67_spill] sm:$0xff] %v12689_v20  ;;  %v12691_v0 = vpop.f32.mrb[81].mxu1  ;;  %v9701_v18 = vpop.eup %9700 }
 0x1b6   :  { %16024 = vst [vmem:[#allocation68_spill] sm:$0xff] %v12691_v0  ;;  %v9190_v63 = vld [vmem:[#allocation2 + $0x610] ss:$8 sps:$4 sm:$0xff]   ;;  %9716 = vpow.bf16 %v8518_v46  ;;  %v2245_v31 = vpack.c.bf16 %v2203_v34, %v2199_v50  ;;  %v1634_v16 = vpack.c.bf16 %v1593_v25, %v1589_v56  ;;  %v2246_v1 = vpack.c.bf16 %v2205_v40, %v2201_v41  ;;  %v12696_v35 = vld [vmem:[%s15595_s0 + $0x1e0] ss:$8 sps:$4 sm:$0xff]   ;;  %v12698_v19 = vpop.f32.mrb[82].mxu0  ;;  %v9703_v39 = vpop.eup %9702  ;;  %6477 = vmatprep.subr.bf16.mxu0 %v12687_v32 }
 0x1b7   :  { %16025 = vst [vmem:[#allocation112_spill] sm:$0xff] %v12698_v19  ;;  %v12700_v36 = vpop.f32.mrb[82].mxu1  ;;  %v1755_v0 = vmul.bf16 %v10624_v59, %v1726_v10  ;;  %v2338_v20 = vmul.bf16 1065369472, %v9701_v18  ;;  %v9192_v46 = vld [vmem:[#allocation2 + $0x414] ss:$8 sps:$4 sm:$0xff]   ;;  %9718 = vpow.bf16 %v8447_v14  ;;  %6927 = vmatprep.subr.bf16.mxu1 %v12687_v32  ;;  %v9705_v40 = vpop.eup %9704  ;;  %6478 = vmatpush1.bf16.msra.mxu0 %v12696_v35 }
 0x1b8   :  { %16026 = vst [vmem:[#allocation113_spill] sm:$0xff] %v12700_v36  ;;  %v8448_v50 = vmul.bf16 3216621497, %v1633_v8  ;;  %v1728_v56 = vmul.bf16 1065369472, %v9703_v39  ;;  %9720 = vpow.bf16 %v8519_v11  ;;  %6928 = vmatpush1.bf16.msra.mxu1 %v12696_v35  ;;  %v10625_v8 = vld [vmem:[%s15596_s1 + $0xb8] sm:$0xff]  }
 0x1b9   :  { %v8520_v41 = vmul.bf16 3216621497, %v2245_v31  ;;  %v8449_v34 = vmul.bf16 3216621497, %v1634_v16  ;;  %v1868_v25 = vsub.bf16 %v1755_v0, %v9188_v45  ;;  %v2367_v36 = vmul.bf16 %v10624_v59, %v2338_v20  ;;  %v9193_v18 = vld [vmem:[#allocation2 + $0x614] ss:$8 sps:$4 sm:$0xff]   ;;  %5571 = vmatmul.mubr.bf16.gmra.mrb[188].mxu0 %v10625_v8  ;;  %v9707_v14 = vpop.eup %9706 }
 0x1ba   :  { %v2340_v10 = vmul.bf16 1065369472, %v9705_v40  ;;  %9722 = vpow.bf16 %v8448_v50  ;;  %v10626_v39 = vld [vmem:[%s15596_s1 + $0xf8] sm:$0xff]   ;;  %v12718_v59 = vmul.bf16 3216621497, %v2246_v1  ;;  %v16027_v45 = vld [vmem:[#allocation62_spill] sm:$0xff]  ;;  %6497 = vmatprep.mubr.bf16.mxu0 %v15903_v48  ;;  %v9709_v16 = vpop.eup %9708 }
 0x1bb   :  { %6021 = vmatmul.mubr.bf16.gmra.mrb[188].mxu1 %v10626_v39  ;;  %v10627_v11 = vld [vmem:[%s15595_s0 + $0x14] ss:$8 sps:$4 sm:$0xff]   ;;  %9724 = vpow.bf16 %v8520_v41  ;;  %v16028_v20 = vld [vmem:[#allocation69_spill] sm:$0xff]  ;;  %v1884_v50 = vand.u32 2147450879, %v1868_v25  ;;  %v2480_v40 = vsub.bf16 %v2367_v36, %v9190_v63  ;;  %v9711_v19 = vpop.eup %9710  ;;  %v16029_v1 = vld [vmem:[#allocation70_spill] sm:$0xff] }
 0x1bc   :  { %v1756_v31 = vmul.bf16 %v10627_v11, %v1728_v56  ;;  %v12722_v0 = vadd.f32 %v16028_v20, %v16027_v45  ;;  %6947 = vmatprep.mubr.bf16.mxu1 %v15903_v48  ;;  %v2368_v8 = vmul.bf16 %v10627_v11, %v2340_v10  ;;  %v1710_v39 = vadd.bf16 1065369472, %v9707_v14  ;;  %v9194_v56 = vld [vmem:[#allocation2 + $0x420] ss:$8 sps:$4 sm:$0xff]  }
 0x1bd   :  { %v1730_v29 = vmul.bf16 1065369472, %v9709_v16  ;;  %9726 = vpow.bf16 %v8449_v34  ;;  %v12728_v41 = vadd.f32 %v16029_v1, %v16021_v6  ;;  %v1902_v20 = vunpack.c.l.bf16 %v1884_v50  ;;  %v10628_v63 = vld [vmem:[%s15595_s0 + $0x20] ss:$8 sps:$4 sm:$0xff]   ;;  %v12736_v16 = vpop.f32.mrb[83].mxu1 }
 0x1be   :  { %v1869_v57 = vsub.bf16 %v1756_v31, %v9192_v46  ;;  %v1904_v53 = vunpack.c.h.bf16 %v1884_v50  ;;  %v2496_v17 = vand.u32 2147450879, %v2480_v40  ;;  %v2481_v52 = vsub.bf16 %v2368_v8, %v9193_v18  ;;  %v9713_v46 = vpop.eup %9712  ;;  %v12734_v31 = vpop.f32.mrb[83].mxu0  ;;  %16031 = vst [vmem:[#allocation70_spill] sm:$0xff] %v12736_v16  ;;  %v9196_v1 = vld [vmem:[#allocation2 + $0x620] ss:$8 sps:$4 sm:$0xff]  }
 0x1bf   :  { %v1757_v36 = vmul.bf16 %v10628_v63, %v1730_v29  ;;  %9728 = vrcp.bf16 %v1710_v39  ;;  %v2322_v25 = vadd.bf16 1065369472, %v9711_v19  ;;  %v1931_v10 = vadd.f32 %v12583_v9, %v1902_v20  ;;  %16030 = vst [vmem:[#allocation69_spill] sm:$0xff] %v12734_v31 }
 0x1c0   :  { %v1885_v62 = vand.u32 2147450879, %v1869_v57  ;;  %v2514_v34 = vunpack.c.l.bf16 %v2496_v17  ;;  %v2516_v14 = vunpack.c.h.bf16 %v2496_v17  ;;  %v2497_v11 = vand.u32 2147450879, %v2481_v52  ;;  %v9715_v50 = vpop.eup %9714 }
 0x1c1   :  { %v1870_v40 = vsub.bf16 %v1757_v36, %v9194_v56  ;;  %v2342_v8 = vmul.bf16 1065369472, %v9713_v46  ;;  %v9717_v6 = vpop.eup %9716  ;;  %v1932_v29 = vadd.f32 %v1931_v10, %v1904_v53  ;;  %9730 = vrcp.bf16 %v2322_v25 }
 0x1c2   :  { %v1903_v18 = vunpack.c.l.bf16 %v1885_v62  ;;  %v1905_v57 = vunpack.c.h.bf16 %v1885_v62  ;;  %v2543_v19 = vadd.f32 %v12593_v23, %v2514_v34  ;;  %v2515_v39 = vunpack.c.l.bf16 %v2497_v11  ;;  %v9719_v9 = vpop.eup %9718  ;;  %v12746_v34 = vld [vmem:[%s15595_s0 + $0x1f4] ss:$8 sps:$4 sm:$0xff]  }
 0x1c3   :  { %v2517_v43 = vunpack.c.h.bf16 %v2497_v11  ;;  %v1886_v52 = vand.u32 2147450879, %v1870_v40  ;;  %v2369_v20 = vmul.bf16 %v10628_v63, %v2342_v8  ;;  %v9721_v31 = vpop.eup %9720  ;;  %v1711_v62 = vadd.bf16 1065369472, %v9715_v50  ;;  %6479 = vmatprep.subr.bf16.mxu0 %v12746_v34  ;;  %6929 = vmatprep.subr.bf16.mxu1 %v12746_v34  ;;  %v16033_v8 = vld [vmem:[#allocation59_spill] sm:$0xff] }
 0x1c4   :  { %v1946_v17 = vadd.f32 %v12597_v33, %v1903_v18  ;;  %v2544_v16 = vadd.f32 %v2543_v19, %v2516_v14  ;;  %v2558_v30 = vadd.f32 %v12611_v24, %v2515_v39  ;;  %v2323_v56 = vadd.bf16 1065369472, %v9717_v6 }
 0x1c5   :  { %v9723_v36 = vpop.eup %9722  ;;  %v1906_v53 = vunpack.c.l.bf16 %v1886_v52  ;;  %v1908_v10 = vunpack.c.h.bf16 %v1886_v52  ;;  %v2482_v23 = vsub.bf16 %v2369_v20, %v9196_v1  ;;  %9732 = vrcp.bf16 %v1711_v62  ;;  %v12761_v1 = vpop.f32.mrb[84].mxu0 }
 0x1c6   :  { %v12741_v46 = vadd.f32 %v1946_v17, %v1905_v57  ;;  %v9725_v33 = vpop.eup %9724  ;;  %v12748_v63 = vadd.f32 %v2558_v30, %v2517_v43  ;;  %v1712_v25 = vadd.bf16 1065369472, %v9719_v9  ;;  %v2324_v14 = vadd.bf16 1065369472, %v9721_v31  ;;  %v16032_v57 = vld [vmem:[#allocation71_spill] sm:$0xff]  ;;  %v12767_v17 = vpop.f32.mrb[85].mxu0 }
 0x1c7   :  { %v1933_v24 = vadd.f32 %v1932_v29, %v1906_v53  ;;  %v2498_v11 = vand.u32 2147450879, %v2482_v23  ;;  %9734 = vrcp.bf16 %v2323_v56  ;;  %v1713_v6 = vadd.bf16 1065369472, %v9723_v36  ;;  %v16034_v30 = vld [vmem:[#allocation63_spill] sm:$0xff]  ;;  %16035 = vst [vmem:[#allocation71_spill] sm:$0xff] %v12761_v1 }
 0x1c8   :  { %v9727_v50 = vpop.eup %9726  ;;  %9736 = vrcp.bf16 %v1712_v25  ;;  %v2325_v18 = vadd.bf16 1065369472, %v9725_v33  ;;  %v2211_v40 = vadd.f32 %v16032_v57, %v16027_v45  ;;  %v1601_v43 = vadd.f32 %v16034_v30, %v16033_v8  ;;  %v12759_v31 = vld [vmem:[%s15595_s0 + $0x1f0] ss:$8 sps:$4 sm:$0xff]   ;;  %v12763_v29 = vpop.f32.mrb[84].mxu1  ;;  %16037 = vst [vmem:[#allocation114_spill] sm:$0xff] %v12767_v17 }
 0x1c9   :  { %16036 = vst [vmem:[#allocation63_spill] sm:$0xff] %v12763_v29  ;;  %v12765_v19 = vadd.f32 %v1933_v24, %v1908_v10  ;;  %v2518_v39 = vunpack.c.l.bf16 %v2498_v11  ;;  %v2520_v9 = vunpack.c.h.bf16 %v2498_v11  ;;  %9738 = vrcp.bf16 %v2324_v14  ;;  %v12769_v52 = vpop.f32.mrb[85].mxu1  ;;  %v16039_v36 = vld [vmem:[#allocation64_spill] sm:$0xff]  ;;  %6480 = vmatpush1.bf16.msra.mxu0 %v12759_v31  ;;  %6930 = vmatpush1.bf16.msra.mxu1 %v12759_v31  ;;  %v12776_v10 = vpop.f32.mrb[86].mxu0  ;;  %v9198_v24 = vld [vmem:[#allocation2 + $0x424] ss:$8 sps:$4 sm:$0xff]  }
 0x1ca   :  { %16038 = vst [vmem:[#allocation115_spill] sm:$0xff] %v12769_v52  ;;  %v9729_v20 = vpop.eup %9728  ;;  %9740 = vrcp.bf16 %v1713_v6  ;;  %v1714_v62 = vadd.bf16 1065369472, %v9727_v50  ;;  %v1635_v56 = vpack.c.bf16 %v1601_v43, %v12682_v2  ;;  %v16040_v53 = vld [vmem:[#allocation72_spill] sm:$0xff]  ;;  %v12778_v33 = vpop.f32.mrb[86].mxu1  ;;  %v16043_v11 = vld [vmem:[#allocation42_spill] sm:$0xff] }
 0x1cb   :  { %v2213_v23 = vadd.f32 %v16040_v53, %v16039_v36  ;;  %16041 = vst [vmem:[#allocation72_spill] sm:$0xff] %v12776_v10  ;;  %16042 = vst [vmem:[#allocation116_spill] sm:$0xff] %v12778_v33  ;;  %v2545_v25 = vadd.f32 %v2544_v16, %v2518_v39  ;;  %v1732_v14 = vmul.bf16 1065369472, %v9729_v20  ;;  %9742 = vrcp.bf16 %v2325_v18  ;;  %v12782_v50 = vpop.f32.mrb[87].mxu0  ;;  %v12784_v2 = vpop.f32.mrb[87].mxu1 }
 0x1cc   :  { %v1603_v6 = vadd.f32 %v16043_v11, %v16033_v8  ;;  %16044 = vst [vmem:[#allocation42_spill] sm:$0xff] %v12782_v50  ;;  %16045 = vst [vmem:[#allocation117_spill] sm:$0xff] %v12784_v2  ;;  %v10629_v57 = vld [vmem:[%s15595_s0 + $0x184] ss:$8 sps:$4 sm:$0xff]   ;;  %9744 = vrcp.bf16 %v1714_v62  ;;  %v8450_v30 = vmul.bf16 3216621497, %v1635_v56  ;;  %v12799_v8 = vpop.permute.xlu0 %2058  ;;  %v9731_v62 = vpop.eup %9730 }
 0x1cd   :  { %7365 = vmatprep.subr.bf16.mxu0 %v10629_v57  ;;  %7815 = vmatprep.subr.bf16.mxu1 %v10629_v57  ;;  %v2247_v16 = vpack.c.bf16 %v2213_v23, %v12722_v0  ;;  %v16046_v43 = vld [vmem:[#allocation73_spill] sm:$0xff]  ;;  %v12792_v39 = vadd.f32 %v2545_v25, %v2520_v9  ;;  %9746 = vpow.bf16 %v12718_v59  ;;  %v16049_v59 = vld [vmem:[#allocation74_spill] sm:$0xff]  ;;  %v16054_v45 = vld [vmem:[#allocation75_spill] sm:$0xff] }
 0x1ce   :  { %v2215_v18 = vadd.f32 %v16046_v43, %v16039_v36  ;;  %v10630_v20 = vld [vmem:[%s15595_s0 + $0x24] ss:$8 sps:$4 sm:$0xff]   ;;  %v1636_v11 = vpack.c.bf16 %v1603_v6, %v12728_v41  ;;  %16047 = vst [vmem:[#allocation73_spill] sm:$0xff] %v12799_v8  ;;  %9748 = vpow.bf16 %v8450_v30  ;;  %v12809_v41 = vpop.permute.xlu1 %2063  ;;  %v10633_v6 = vld [vmem:[%s15595_s0 + $0x180] ss:$8 sps:$4 sm:$0xff]   ;;  %v16061_v33 = vld [vmem:[#allocation80_spill] sm:$0xff] }
 0x1cf   :  { %v1758_v53 = vmul.bf16 %v10630_v20, %v1732_v14  ;;  %v10631_v0 = vld [vmem:[%s15596_s1] sm:$0xff]   ;;  %v8522_v56 = vmul.bf16 3216621497, %v2247_v16  ;;  %16050 = vst [vmem:[#allocation74_spill] sm:$0xff] %v12809_v41  ;;  %v2344_v43 = vmul.bf16 1065369472, %v9731_v62 }
 0x1d0   :  { %6498 = vmatmul.mubr.bf16.vlgmr.msra.gmra.mrb[192].mxu0 %v10631_v0  ;;  %v10632_v9 = vld [vmem:[%s15596_s1 + $0x40] sm:$0xff]   ;;  %v2248_v23 = vpack.c.bf16 %v2215_v18, %v2211_v40  ;;  %v8451_v36 = vmul.bf16 3216621497, %v1636_v11  ;;  %v16052_v16 = vld [vmem:[#allocation43_spill] sm:$0xff]  ;;  %v16053_v18 = vld [vmem:[#allocation78_spill] sm:$0xff]  ;;  %v9733_v62 = vpop.eup %9732 }
 0x1d1   :  { %6948 = vmatmul.mubr.bf16.vlgmr.msra.gmra.mrb[192].mxu1 %v10632_v9  ;;  %v16048_v25 = vld [vmem:[#allocation65_spill] sm:$0xff]  ;;  %7366 = vmatpush1.bf16.msra.mxu0 %v10633_v6  ;;  %v1871_v57 = vsub.bf16 %v1758_v53, %v9198_v24  ;;  %v16051_v9 = vld [vmem:[#allocation76_spill] sm:$0xff]  ;;  %9750 = vpow.bf16 %v8522_v56  ;;  %v12826_v24 = vpop.f32.mrb[88].mxu0  ;;  %v12828_v53 = vpop.f32.mrb[88].mxu1  ;;  %v16057_v11 = vld [vmem:[#allocation82_spill] sm:$0xff] }
 0x1d2   :  { %v1607_v14 = vadd.f32 %v16049_v59, %v16048_v25  ;;  %7816 = vmatpush1.bf16.msra.mxu1 %v10633_v6  ;;  %v9199_v0 = vld [vmem:[#allocation2 + $0x624] ss:$8 sps:$4 sm:$0xff]   ;;  %v12816_v30 = vadd.f32 %v16051_v9, %v16048_v25  ;;  %6507 = vmatprep.mubr.bf16.mxu0 %v15903_v48  ;;  %v8523_v40 = vmul.bf16 3216621497, %v2248_v23  ;;  %v1611_v59 = vadd.f32 %v16053_v18, %v16052_v16  ;;  %v16058_v56 = vld [vmem:[#allocation79_spill] sm:$0xff]  ;;  %v12836_v18 = vpop.f32.mrb[89].mxu0  ;;  %v9735_v2 = vpop.eup %9734 }
 0x1d3   :  { %6957 = vmatprep.mubr.bf16.mxu1 %v15903_v48  ;;  %v12824_v6 = vadd.f32 %v16054_v45, %v12799_v8  ;;  %16055 = vst [vmem:[#allocation76_spill] sm:$0xff] %v12826_v24  ;;  %16056 = vst [vmem:[#allocation78_spill] sm:$0xff] %v12828_v53  ;;  %7367 = vmatprep.subr.bf16.mxu0 %v16057_v11  ;;  %v1887_v9 = vand.u32 2147450879, %v1871_v57  ;;  %v2370_v25 = vmul.bf16 %v10630_v20, %v2344_v43  ;;  %v12838_v45 = vpop.f32.mrb[89].mxu1  ;;  %v12844_v57 = vpop.f32.mrb[90].mxu0 }
 0x1d4   :  { %7817 = vmatprep.subr.bf16.mxu1 %v16057_v11  ;;  %9752 = vpow.bf16 %v8451_v36  ;;  %v12834_v23 = vadd.f32 %v16058_v56, %v12809_v41  ;;  %16059 = vst [vmem:[#allocation75_spill] sm:$0xff] %v12836_v18  ;;  %16060 = vst [vmem:[#allocation82_spill] sm:$0xff] %v12838_v45  ;;  %v1734_v24 = vmul.bf16 1065369472, %v9733_v62  ;;  %v9200_v50 = vld [vmem:[#allocation2 + $0x430] ss:$8 sps:$4 sm:$0xff]   ;;  %v1637_v53 = vpack.c.bf16 %v1611_v59, %v1607_v14  ;;  %v9737_v20 = vpop.eup %9736 }
 0x1d5   :  { %9754 = vpow.bf16 %v8523_v40  ;;  %v12842_v11 = vadd.f32 %v16061_v33, %v16052_v16  ;;  %16062 = vst [vmem:[#allocation79_spill] sm:$0xff] %v12844_v57  ;;  %v16063_v36 = vld [vmem:[#allocation83_spill] sm:$0xff]  ;;  %v1907_v43 = vunpack.c.l.bf16 %v1887_v9  ;;  %v1909_v56 = vunpack.c.h.bf16 %v1887_v9  ;;  %v9739_v14 = vpop.eup %9738  ;;  %v12881_v28 = vpop.f32.mrb[90].mxu1 }
 0x1d6   :  { %7368 = vmatpush1.bf16.msra.mxu0 %v16063_v36  ;;  %7818 = vmatpush1.bf16.msra.mxu1 %v16063_v36  ;;  %v2483_v18 = vsub.bf16 %v2370_v25, %v9199_v0  ;;  %v2346_v45 = vmul.bf16 1065369472, %v9735_v2  ;;  %v9202_v10 = vld [vmem:[#allocation2 + $0x630] ss:$8 sps:$4 sm:$0xff]   ;;  %v1736_v59 = vmul.bf16 1065369472, %v9737_v20  ;;  %v9741_v9 = vpop.eup %9740 }
 0x1d7   :  { %7369 = vmatprep.subr.bf16.mxu0 %v12404_v47  ;;  %7819 = vmatprep.subr.bf16.mxu1 %v12404_v47  ;;  %v10634_v33 = vld [vmem:[%s15595_s0 + $0x30] ss:$8 sps:$4 sm:$0xff]   ;;  %v9204_v62 = vld [vmem:[#allocation2 + $0x434] ss:$8 sps:$4 sm:$0xff]   ;;  %v8452_v16 = vmul.bf16 3216621497, %v1637_v53  ;;  %v1948_v2 = vadd.f32 %v12741_v46, %v1907_v43  ;;  %v9743_v53 = vpop.eup %9742 }
 0x1d8   :  { %v1759_v40 = vmul.bf16 %v10634_v33, %v1734_v24  ;;  %v2499_v25 = vand.u32 2147450879, %v2483_v18  ;;  %v2371_v0 = vmul.bf16 %v10634_v33, %v2346_v45  ;;  %v2348_v57 = vmul.bf16 1065369472, %v9739_v14  ;;  %v10635_v47 = vld [vmem:[%s15596_s1 + $0x8] sm:$0xff]   ;;  %v9745_v43 = vpop.eup %9744 }
 0x1d9   :  { %6508 = vmatmul.mubr.bf16.gmra.mrb[196].mxu0 %v10635_v47  ;;  %v10636_v24 = vld [vmem:[%s15596_s1 + $0x48] sm:$0xff]   ;;  %v10637_v36 = vld [vmem:[%s15595_s0 + $0x34] ss:$8 sps:$4 sm:$0xff]   ;;  %v1738_v45 = vmul.bf16 1065369472, %v9741_v9  ;;  %9756 = vpow.bf16 %v8452_v16  ;;  %v1949_v14 = vadd.f32 %v1948_v2, %v1909_v56 }
 0x1da   :  { %6958 = vmatmul.mubr.bf16.gmra.mrb[196].mxu1 %v10636_v24  ;;  %v1872_v20 = vsub.bf16 %v1759_v40, %v9200_v50  ;;  %v1760_v46 = vmul.bf16 %v10637_v36, %v1736_v59  ;;  %v9205_v18 = vld [vmem:[#allocation2 + $0x634] ss:$8 sps:$4 sm:$0xff]   ;;  %6517 = vmatprep.mubr.bf16.mxu0 %v15903_v48  ;;  %v2519_v33 = vunpack.c.l.bf16 %v2499_v25  ;;  %v2521_v47 = vunpack.c.h.bf16 %v2499_v25  ;;  %v9206_v24 = vld [vmem:[#allocation2 + $0x440] ss:$8 sps:$4 sm:$0xff]   ;;  %v12869_v50 = vpop.eup %9746 }
 0x1db   :  { %6967 = vmatprep.mubr.bf16.mxu1 %v15903_v48  ;;  %v2484_v52 = vsub.bf16 %v2371_v0, %v9202_v10  ;;  %7370 = vmatpush1.bf16.msra.mxu0 %v12413_v22  ;;  %v2372_v9 = vmul.bf16 %v10637_v36, %v2348_v57  ;;  %v10638_v16 = vld [vmem:[%s15595_s0 + $0x40] ss:$8 sps:$4 sm:$0xff]   ;;  %v12876_v10 = vpop.eup %9748  ;;  %v1740_v25 = vmul.bf16 1065369472, %v9745_v43  ;;  %v9210_v43 = vld [vmem:[#allocation2 + $0x444] ss:$8 sps:$4 sm:$0xff]  }
 0x1dc   :  { %7820 = vmatpush1.bf16.msra.mxu1 %v12413_v22  ;;  %v1888_v40 = vand.u32 2147450879, %v1872_v20  ;;  %v1873_v59 = vsub.bf16 %v1760_v46, %v9204_v62  ;;  %v1761_v17 = vmul.bf16 %v10638_v16, %v1738_v45  ;;  %7371 = vmatprep.subr.bf16.mxu0 %v12503_v54  ;;  %v2560_v56 = vadd.f32 %v12748_v63, %v2519_v33  ;;  %v12879_v36 = vpop.eup %9750  ;;  %v12888_v33 = vpop.permute.xlu1 %1461 }
 0x1dd   :  { %7821 = vmatprep.subr.bf16.mxu1 %v12503_v54  ;;  %v2500_v2 = vand.u32 2147450879, %v2484_v52  ;;  %v2350_v22 = vmul.bf16 1065369472, %v9743_v53  ;;  %v2485_v57 = vsub.bf16 %v2372_v9, %v9205_v18  ;;  %16064 = vst [vmem:[#allocation80_spill] sm:$0xff] %v12888_v33  ;;  %v12903_v9 = vpop.f32.mrb[91].mxu1 }
 0x1de   :  { %v1910_v0 = vunpack.c.l.bf16 %v1888_v40  ;;  %v1912_v20 = vunpack.c.h.bf16 %v1888_v40  ;;  %v1889_v62 = vand.u32 2147450879, %v1873_v59  ;;  %v2561_v46 = vadd.f32 %v2560_v56, %v2521_v47  ;;  %v12901_v59 = vpop.f32.mrb[91].mxu0 }
 0x1df   :  { %v2522_v29 = vunpack.c.l.bf16 %v2500_v2  ;;  %v2524_v45 = vunpack.c.h.bf16 %v2500_v2  ;;  %v1874_v1 = vsub.bf16 %v1761_v17, %v9206_v24  ;;  %7372 = vmatpush1.bf16.msra.mxu0 %v12510_v12  ;;  %v12885_v54 = vpop.eup %9752  ;;  %v2501_v18 = vand.u32 2147450879, %v2485_v57 }
 0x1e0   :  { %7822 = vmatpush1.bf16.msra.mxu1 %v12510_v12  ;;  %v1935_v63 = vadd.f32 %v12765_v19, %v1910_v0  ;;  %v1911_v52 = vunpack.c.l.bf16 %v1889_v62  ;;  %v1913_v53 = vunpack.c.h.bf16 %v1889_v62  ;;  %7373 = vmatprep.subr.bf16.mxu0 %v12545_v15  ;;  %v12892_v17 = vpop.eup %9754  ;;  %v2373_v12 = vmul.bf16 %v10638_v16, %v2350_v22  ;;  %v12898_v19 = vld [vmem:[%s15595_s0 + $0x44] ss:$8 sps:$4 sm:$0xff]  }
 0x1e1   :  { %7823 = vmatprep.subr.bf16.mxu1 %v12545_v15  ;;  %v2547_v47 = vadd.f32 %v12792_v39, %v2522_v29  ;;  %v1890_v24 = vand.u32 2147450879, %v1874_v1  ;;  %v1762_v40 = vmul.bf16 %v12898_v19, %v1740_v25  ;;  %v10640_v15 = vld [vmem:[%s15596_s1 + $0x10] sm:$0xff]   ;;  %v2523_v16 = vunpack.c.l.bf16 %v2501_v18 }
 0x1e2   :  { %6518 = vmatmul.mubr.bf16.gmra.mrb[200].mxu0 %v10640_v15  ;;  %v10641_v1 = vld [vmem:[%s15596_s1 + $0x50] sm:$0xff]   ;;  %v1936_v29 = vadd.f32 %v1935_v63, %v1912_v20  ;;  %v1950_v39 = vadd.f32 %v1949_v14, %v1911_v52  ;;  %v2525_v56 = vunpack.c.h.bf16 %v2501_v18  ;;  %v2486_v0 = vsub.bf16 %v2373_v12, %v9208_v7  ;;  %v12916_v14 = vpop.permute.xlu0 %1456  ;;  %v12931_v12 = vpop.f32.mrb[92].mxu1 }
 0x1e3   :  { %6968 = vmatmul.mubr.bf16.gmra.mrb[200].mxu1 %v10641_v1  ;;  %6527 = vmatprep.mubr.bf16.mxu0 %v15903_v48  ;;  %v2548_v2 = vadd.f32 %v2547_v47, %v2524_v45  ;;  %v1914_v22 = vunpack.c.l.bf16 %v1890_v24  ;;  %v1916_v25 = vunpack.c.h.bf16 %v1890_v24  ;;  %v2562_v57 = vadd.f32 %v2561_v46, %v2523_v16  ;;  %16065 = vst [vmem:[#allocation83_spill] sm:$0xff] %v12916_v14  ;;  %v12938_v1 = vpop.f32.mrb[93].mxu1 }
 0x1e4   :  { %6977 = vmatprep.mubr.bf16.mxu1 %v15903_v48  ;;  %7374 = vmatpush1.bf16.msra.mxu0 %v12554_v3  ;;  %v1951_v62 = vadd.f32 %v1950_v39, %v1913_v53  ;;  %v1875_v15 = vsub.bf16 %v1762_v40, %v9210_v43  ;;  %v2326_v20 = vadd.bf16 1065369472, %v12869_v50  ;;  %v9757_v63 = vpop.eup %9756  ;;  %v2502_v52 = vand.u32 2147450879, %v2486_v0  ;;  %v12925_v50 = vpop.permute.xlu1 %2073 }
 0x1e5   :  { %7824 = vmatpush1.bf16.msra.mxu1 %v12554_v3  ;;  %7375 = vmatprep.subr.bf16.mxu0 %v12641_v27  ;;  %v1937_v45 = vadd.f32 %v1936_v29, %v1914_v22  ;;  %v1715_v7 = vadd.bf16 1065369472, %v12876_v10  ;;  %v2327_v18 = vadd.bf16 1065369472, %v12879_v36  ;;  %v12922_v47 = vadd.f32 %v2562_v57, %v2525_v56  ;;  %16066 = vst [vmem:[#allocation118_spill] sm:$0xff] %v12925_v50  ;;  %v12947_v22 = vpop.f32.mrb[94].mxu1 }
 0x1e6   :  { %7825 = vmatprep.subr.bf16.mxu1 %v12641_v27  ;;  %v1891_v3 = vand.u32 2147450879, %v1875_v15  ;;  %9758 = vrcp.bf16 %v2326_v20  ;;  %v1716_v46 = vadd.bf16 1065369472, %v12885_v54  ;;  %v2526_v43 = vunpack.c.l.bf16 %v2502_v52  ;;  %v12929_v27 = vpop.f32.mrb[92].mxu0  ;;  %v12959_v0 = vpop.permute.xlu0 %2068 }
 0x1e7   :  { %v12927_v53 = vadd.f32 %v1937_v45, %v1916_v25  ;;  %v2528_v24 = vunpack.c.h.bf16 %v2502_v52  ;;  %9760 = vrcp.bf16 %v1715_v7  ;;  %v2328_v54 = vadd.bf16 1065369472, %v12892_v17  ;;  %v12936_v40 = vpop.f32.mrb[93].mxu0  ;;  %v10642_v17 = vld [vmem:[%s15596_s1 + $0x18] sm:$0xff]  }
 0x1e8   :  { %7376 = vmatpush1.bf16.msra.mxu0 %v12654_v44  ;;  %v1915_v10 = vunpack.c.l.bf16 %v1891_v3  ;;  %v1917_v36 = vunpack.c.h.bf16 %v1891_v3  ;;  %9762 = vrcp.bf16 %v2327_v18  ;;  %v2549_v29 = vadd.f32 %v2548_v2, %v2526_v43  ;;  %v12945_v56 = vpop.f32.mrb[94].mxu0  ;;  %v16072_v3 = vld [vmem:[#allocation84_spill] sm:$0xff] }
 0x1e9   :  { %7826 = vmatpush1.bf16.msra.mxu1 %v12654_v44  ;;  %7377 = vmatprep.subr.bf16.mxu0 %v12687_v32  ;;  %9764 = vrcp.bf16 %v1716_v46  ;;  %v1717_v39 = vadd.bf16 1065369472, %v9757_v63  ;;  %v16067_v16 = vpack.c.bf16 %v12834_v23, %v12824_v6  ;;  %v1638_v6 = vpack.c.bf16 %v12842_v11, %v12816_v30  ;;  %v16068_v23 = vld [vmem:[#allocation77_spill] sm:$0xff]  ;;  %v12961_v57 = vpop.f32.mrb[95].mxu0  ;;  %v12971_v11 = vpop.f32.mrb[95].mxu1 }
 0x1ea   :  { %7827 = vmatprep.subr.bf16.mxu1 %v12687_v32  ;;  %6528 = vmatmul.mubr.bf16.gmra.mrb[204].mxu0 %v10642_v17  ;;  %v10643_v32 = vld [vmem:[%s15596_s1 + $0x58] sm:$0xff]   ;;  %v1952_v2 = vadd.f32 %v1951_v62, %v1915_v10  ;;  %9766 = vrcp.bf16 %v2328_v54  ;;  %v2221_v25 = vadd.f32 %v16068_v23, %v12799_v8  ;;  %16069 = vst [vmem:[#allocation77_spill] sm:$0xff] %v12959_v0  ;;  %v16070_v62 = vld [vmem:[#allocation81_spill] sm:$0xff]  ;;  %v16078_v23 = vld [vmem:[#allocation22_spill] sm:$0xff] }
 0x1eb   :  { %v8524_v44 = vmul.bf16 3216621497, %v16067_v16  ;;  %6978 = vmatmul.mubr.bf16.gmra.mrb[204].mxu1 %v10643_v32  ;;  %6537 = vmatprep.mubr.bf16.mxu0 %v15903_v48  ;;  %v12965_v15 = vadd.f32 %v2549_v29, %v2528_v24  ;;  %9768 = vrcp.bf16 %v1717_v39  ;;  %v2225_v20 = vadd.f32 %v16070_v62, %v12809_v41  ;;  %v16074_v24 = vld [vmem:[#allocation88_spill] sm:$0xff]  ;;  %v16076_v54 = vld [vmem:[#allocation89_spill] sm:$0xff] }
 0x1ec   :  { %6987 = vmatprep.mubr.bf16.mxu1 %v15903_v48  ;;  %v1617_v30 = vadd.f32 %v12391_v60, %v12916_v14  ;;  %7378 = vmatpush1.bf16.msra.mxu0 %v12696_v35  ;;  %v12975_v63 = vadd.f32 %v1952_v2, %v1917_v36  ;;  %v8453_v45 = vmul.bf16 3216621497, %v1638_v6  ;;  %v1619_v52 = vadd.f32 %v12397_v26, %v12916_v14  ;;  %v16071_v60 = vld [vmem:[#allocation86_spill] sm:$0xff]  ;;  %v16075_v26 = vld [vmem:[#allocation85_spill] sm:$0xff] }
 0x1ed   :  { %7828 = vmatpush1.bf16.msra.mxu1 %v12696_v35  ;;  %9770 = vpow.bf16 %v8524_v44  ;;  %7379 = vmatprep.subr.bf16.mxu0 %v12746_v34  ;;  %v2250_v7 = vpack.c.bf16 %v2225_v20, %v2221_v25  ;;  %v1621_v18 = vadd.f32 %v16071_v60, %v12888_v33  ;;  %v2229_v46 = vadd.f32 %v16072_v3, %v12959_v0  ;;  %v16073_v35 = vld [vmem:[#allocation87_spill] sm:$0xff]  ;;  %v16077_v44 = vld [vmem:[#allocation6_spill] sm:$0xff] }
 0x1ee   :  { %7829 = vmatprep.subr.bf16.mxu1 %v12746_v34  ;;  %v2233_v43 = vadd.f32 %v16073_v35, %v12925_v50  ;;  %9772 = vpow.bf16 %v8453_v45  ;;  %v1623_v10 = vadd.f32 %v16074_v24, %v12888_v33  ;;  %v2231_v36 = vadd.f32 %v16075_v26, %v12959_v0  ;;  %v9211_v32 = vld [vmem:[#allocation2 + $0x644] ss:$8 sps:$4 sm:$0xff]  }
 0x1ef   :  { %v2235_v34 = vadd.f32 %v16076_v54, %v12925_v50  ;;  %v8525_v29 = vmul.bf16 3216621497, %v2250_v7  ;;  %v1639_v39 = vpack.c.bf16 %v1621_v18, %v1617_v30  ;;  %v2706_v17 = vadd.f32 %v12438_v55, %v16077_v44  ;;  %v16081_v26 = vld [vmem:[#allocation21_spill] sm:$0xff] }
 0x1f0   :  { %v2251_v16 = vpack.c.bf16 %v2233_v43, %v2229_v46  ;;  %7380 = vmatpush1.bf16.msra.mxu0 %v12759_v31  ;;  %v1640_v2 = vpack.c.bf16 %v1623_v10, %v1619_v52  ;;  %v12999_v25 = vadd.f32 %v12440_v58, %v16078_v23  ;;  %v13003_v62 = vadd.f32 %v12442_v51, %v16077_v44  ;;  %v13011_v52 = vpop.f32.mrb[96].mxu1  ;;  %v10644_v58 = vld [vmem:[%s15596_s1 + $0x20] sm:$0xff]   ;;  %v16080_v46 = vld [vmem:[#allocation90_spill] sm:$0xff]  ;;  %v9212_v10 = vld [vmem:[#allocation2 + $0x450] ss:$8 sps:$4 sm:$0xff]  }
 0x1f1   :  { %7830 = vmatpush1.bf16.msra.mxu1 %v12759_v31  ;;  %v2252_v6 = vpack.c.bf16 %v2235_v34, %v2231_v36  ;;  %v9759_v20 = vpop.eup %9758  ;;  %9774 = vpow.bf16 %v8525_v29  ;;  %v8454_v30 = vmul.bf16 3216621497, %v1639_v39  ;;  %v13007_v55 = vadd.f32 %v12444_v38, %v16078_v23  ;;  %v13009_v31 = vpop.f32.mrb[96].mxu0  ;;  %v10645_v51 = vld [vmem:[%s15596_s1 + $0x60] sm:$0xff]   ;;  %v16079_v38 = vld [vmem:[#allocation8_spill] sm:$0xff] }
 0x1f2   :  { %v8526_v45 = vmul.bf16 3216621497, %v2251_v16  ;;  %6538 = vmatmul.mubr.bf16.gmra.mrb[208].mxu0 %v10644_v58  ;;  %v9761_v7 = vpop.eup %9760  ;;  %v2352_v60 = vmul.bf16 1065369472, %v9759_v20  ;;  %v8455_v18 = vmul.bf16 3216621497, %v1640_v2  ;;  %v2710_v35 = vadd.f32 %v16080_v46, %v16079_v38 }
 0x1f3   :  { %6988 = vmatmul.mubr.bf16.gmra.mrb[208].mxu1 %v10645_v51  ;;  %v8527_v3 = vmul.bf16 3216621497, %v2252_v6  ;;  %6547 = vmatprep.mubr.bf16.mxu0 %v15903_v48  ;;  %v9763_v43 = vpop.eup %9762  ;;  %v1742_v24 = vmul.bf16 1065369472, %v9761_v7  ;;  %9776 = vpow.bf16 %v8454_v30  ;;  %v13025_v36 = vadd.f32 %v12450_v49, %v16081_v26  ;;  %v13031_v34 = vpop.f32.mrb[97].mxu0 }
 0x1f4   :  { %6997 = vmatprep.mubr.bf16.mxu1 %v15903_v48  ;;  %v13029_v54 = vadd.f32 %v12458_v5, %v16079_v38  ;;  %v13033_v29 = vpop.f32.mrb[97].mxu1  ;;  %v9765_v39 = vpop.eup %9764  ;;  %v2374_v16 = vmul.bf16 %v12898_v19, %v2352_v60  ;;  %v2354_v2 = vmul.bf16 1065369472, %v9763_v43  ;;  %v9214_v6 = vld [vmem:[#allocation2 + $0x650] ss:$8 sps:$4 sm:$0xff]   ;;  %9778 = vpow.bf16 %v8526_v45 }
 0x1f5   :  { %v2784_v20 = vpack.c.bf16 %v2710_v35, %v2706_v17  ;;  %v13036_v30 = vpop.f32.mrb[98].mxu0  ;;  %v9767_v58 = vpop.eup %9766  ;;  %v10646_v49 = vld [vmem:[%s15595_s0 + $0x50] ss:$8 sps:$4 sm:$0xff]   ;;  %v1744_v51 = vmul.bf16 1065369472, %v9765_v39  ;;  %9780 = vpow.bf16 %v8455_v18 }
 0x1f6   :  { %v1763_v5 = vmul.bf16 %v10646_v49, %v1742_v24  ;;  %v9216_v7 = vld [vmem:[#allocation2 + $0x454] ss:$8 sps:$4 sm:$0xff]   ;;  %v9769_v38 = vpop.eup %9768  ;;  %v2487_v19 = vsub.bf16 %v2374_v16, %v9211_v32  ;;  %v2375_v60 = vmul.bf16 %v10646_v49, %v2354_v2  ;;  %v2356_v43 = vmul.bf16 1065369472, %v9767_v58  ;;  %v9221_v39 = vld [vmem:[#allocation2 + $0x460] ss:$8 sps:$4 sm:$0xff]  }
 0x1f7   :  { %v9217_v45 = vld [vmem:[#allocation2 + $0x654] ss:$8 sps:$4 sm:$0xff]   ;;  %9782 = vpow.bf16 %v8527_v3  ;;  %v1746_v24 = vmul.bf16 1065369472, %v9769_v38  ;;  %v8576_v50 = vmul.bf16 3216621497, %v2784_v20 }
 0x1f8   :  { %v9771_v17 = vpop.eup %9770  ;;  %v1876_v35 = vsub.bf16 %v1763_v5, %v9212_v10  ;;  %v10647_v23 = vld [vmem:[%s15595_s0 + $0x54] ss:$8 sps:$4 sm:$0xff]   ;;  %v2503_v18 = vand.u32 2147450879, %v2487_v19  ;;  %v2488_v33 = vsub.bf16 %v2375_v60, %v9214_v6  ;;  %v13049_v3 = vld [vmem:[%s15595_s0 + $0x60] ss:$8 sps:$4 sm:$0xff]  }
 0x1f9   :  { %v1764_v44 = vmul.bf16 %v10647_v23, %v1744_v51  ;;  %v2376_v0 = vmul.bf16 %v10647_v23, %v2356_v43  ;;  %v2329_v46 = vadd.bf16 1065369472, %v9771_v17  ;;  %v9773_v14 = vpop.eup %9772  ;;  %v1765_v10 = vmul.bf16 %v13049_v3, %v1746_v24  ;;  %v10649_v38 = vld [vmem:[%s15596_s1 + $0x28] sm:$0xff]   ;;  %v13061_v17 = vpop.f32.mrb[98].mxu1 }
 0x1fa   :  { %v1892_v32 = vand.u32 2147450879, %v1876_v35  ;;  %9784 = vpow.bf16 %v8576_v50  ;;  %6548 = vmatmul.mubr.bf16.gmra.mrb[212].mxu0 %v10649_v38  ;;  %v10650_v23 = vld [vmem:[%s15596_s1 + $0x68] sm:$0xff]   ;;  %v2527_v2 = vunpack.c.l.bf16 %v2503_v18  ;;  %v2504_v6 = vand.u32 2147450879, %v2488_v33 }
 0x1fb   :  { %v1877_v16 = vsub.bf16 %v1764_v44, %v9216_v7  ;;  %6998 = vmatmul.mubr.bf16.gmra.mrb[212].mxu1 %v10650_v23  ;;  %v2529_v44 = vunpack.c.h.bf16 %v2503_v18  ;;  %v2489_v20 = vsub.bf16 %v2376_v0, %v9217_v45  ;;  %6557 = vmatprep.mubr.bf16.mxu0 %v15903_v48  ;;  %v1878_v5 = vsub.bf16 %v1765_v10, %v9221_v39  ;;  %v13065_v39 = vpop.f32.mrb[99].mxu0  ;;  %v13067_v10 = vpop.f32.mrb[99].mxu1 }
 0x1fc   :  { %7007 = vmatprep.mubr.bf16.mxu1 %v15903_v48  ;;  %v1918_v58 = vunpack.c.l.bf16 %v1892_v32  ;;  %v1920_v50 = vunpack.c.h.bf16 %v1892_v32  ;;  %v9775_v51 = vpop.eup %9774  ;;  %v2564_v7 = vadd.f32 %v12922_v47, %v2527_v2  ;;  %v2530_v19 = vunpack.c.l.bf16 %v2504_v6 }
 0x1fd   :  { %v1893_v49 = vand.u32 2147450879, %v1877_v16  ;;  %v2532_v60 = vunpack.c.h.bf16 %v2504_v6  ;;  %v2505_v43 = vand.u32 2147450879, %v2489_v20  ;;  %v1894_v45 = vand.u32 2147450879, %v1878_v5 }
 0x1fe   :  { %v1939_v35 = vadd.f32 %v12927_v53, %v1918_v58  ;;  %v9777_v24 = vpop.eup %9776  ;;  %v2565_v18 = vadd.f32 %v2564_v7, %v2529_v44  ;;  %v2551_v38 = vadd.f32 %v12965_v15, %v2530_v19  ;;  %9786 = vrcp.bf16 %v2329_v46 }
 0x1ff   :  { %v1919_v33 = vunpack.c.l.bf16 %v1893_v49  ;;  %v1921_v0 = vunpack.c.h.bf16 %v1893_v49  ;;  %v2531_v32 = vunpack.c.l.bf16 %v2505_v43  ;;  %v2533_v16 = vunpack.c.h.bf16 %v2505_v43  ;;  %v9779_v47 = vpop.eup %9778 }
 0x200   :  { %v1940_v23 = vadd.f32 %v1939_v35, %v1920_v50  ;;  %v1922_v6 = vunpack.c.l.bf16 %v1894_v45  ;;  %v1924_v20 = vunpack.c.h.bf16 %v1894_v45  ;;  %v9781_v53 = vpop.eup %9780  ;;  %v13070_v58 = vadd.f32 %v2551_v38, %v2532_v60  ;;  %v10651_v50 = vld [vmem:[%s15596_s1 + $0x30] sm:$0xff]   ;;  %v16083_v38 = vld [vmem:[#allocation5_spill] sm:$0xff] }
 0x201   :  { %v1954_v2 = vadd.f32 %v12975_v63, %v1919_v33  ;;  %v2566_v49 = vadd.f32 %v2565_v18, %v2531_v32  ;;  %v1718_v44 = vadd.bf16 1065369472, %v9773_v14  ;;  %v2330_v19 = vadd.bf16 1065369472, %v9775_v51  ;;  %v10652_v63 = vld [vmem:[%s15596_s1 + $0x70] sm:$0xff]  }
 0x202   :  { %v9783_v5 = vpop.eup %9782  ;;  %v1941_v7 = vadd.f32 %v1940_v23, %v1922_v6  ;;  %v1719_v43 = vadd.bf16 1065369472, %v9777_v24  ;;  %6558 = vmatmul.mubr.bf16.gmra.mrb[216].mxu0 %v10651_v50  ;;  %v2331_v14 = vadd.bf16 1065369472, %v9779_v47  ;;  %v1720_v46 = vadd.bf16 1065369472, %v9781_v53 }
 0x203   :  { %v13072_v15 = vadd.f32 %v1954_v2, %v1921_v0  ;;  %7008 = vmatmul.mubr.bf16.gmra.mrb[216].mxu1 %v10652_v63  ;;  %v13080_v60 = vadd.f32 %v2566_v49, %v2533_v16  ;;  %9788 = vrcp.bf16 %v1718_v44  ;;  %6567 = vmatprep.mubr.bf16.mxu0 %v15903_v48  ;;  %v2332_v35 = vadd.bf16 1065369472, %v9783_v5  ;;  %v16084_v32 = vld [vmem:[#allocation91_spill] sm:$0xff]  ;;  %v16085_v23 = vld [vmem:[#allocation24_spill] sm:$0xff]  ;;  %v13101_v53 = vpop.f32.mrb[100].mxu1 }
 0x204   :  { %7017 = vmatprep.mubr.bf16.mxu1 %v15903_v48  ;;  %v13084_v51 = vadd.f32 %v1941_v7, %v1924_v20  ;;  %9790 = vrcp.bf16 %v2330_v19  ;;  %v16082_v33 = vpack.c.bf16 %v13025_v36, %v12999_v25  ;;  %v2785_v24 = vpack.c.bf16 %v13029_v54, %v13003_v62  ;;  %v16086_v2 = vld [vmem:[#allocation92_spill] sm:$0xff]  ;;  %v16087_v20 = vld [vmem:[#allocation93_spill] sm:$0xff]  ;;  %v13099_v36 = vpop.f32.mrb[100].mxu0  ;;  %v13108_v5 = vpop.f32.mrb[101].mxu1  ;;  %v16090_v7 = vld [vmem:[#allocation7_spill] sm:$0xff] }
 0x205   :  { %v9785_v45 = vpop.eup %9784  ;;  %9792 = vrcp.bf16 %v1719_v43  ;;  %v3162_v18 = vadd.f32 %v12460_v37, %v16081_v26  ;;  %v2716_v16 = vadd.f32 %v16084_v32, %v16083_v38  ;;  %v3166_v6 = vadd.f32 %v16086_v2, %v16085_v23  ;;  %v16088_v37 = vld [vmem:[#allocation94_spill] sm:$0xff]  ;;  %v13106_v44 = vpop.f32.mrb[101].mxu0  ;;  %16089 = vst [vmem:[#allocation81_spill] sm:$0xff] %v13108_v5  ;;  %v16091_v19 = vld [vmem:[#allocation95_spill] sm:$0xff]  ;;  %v16093_v63 = vld [vmem:[#allocation96_spill] sm:$0xff] }
 0x206   :  { %v8608_v0 = vmul.bf16 3216621497, %v16082_v33  ;;  %9794 = vrcp.bf16 %v2331_v14  ;;  %v2864_v47 = vadd.bf16 1065369472, %v9785_v45  ;;  %v2718_v25 = vadd.f32 %v16087_v20, %v16083_v38  ;;  %v16092_v50 = vld [vmem:[#allocation23_spill] sm:$0xff]  ;;  %v16094_v33 = vld [vmem:[#allocation98_spill] sm:$0xff] }
 0x207   :  { %9796 = vrcp.bf16 %v1720_v46  ;;  %v8577_v62 = vmul.bf16 3216621497, %v2785_v24  ;;  %v3235_v54 = vpack.c.bf16 %v3162_v18, %v13007_v55  ;;  %v3168_v49 = vadd.f32 %v16088_v37, %v16085_v23  ;;  %v13116_v45 = vpop.f32.mrb[102].mxu0  ;;  %v13118_v55 = vpop.f32.mrb[102].mxu1  ;;  %v16097_v18 = vld [vmem:[#allocation99_spill] sm:$0xff]  ;;  %v16098_v2 = vld [vmem:[#allocation10_spill] sm:$0xff] }
 0x208   :  { %9798 = vrcp.bf16 %v2332_v35  ;;  %v2720_v43 = vadd.f32 %v16091_v19, %v16090_v7  ;;  %v3170_v14 = vadd.f32 %v16093_v63, %v16092_v50  ;;  %v2722_v46 = vadd.f32 %v16094_v33, %v16090_v7  ;;  %16095 = vst [vmem:[#allocation86_spill] sm:$0xff] %v13116_v45  ;;  %16096 = vst [vmem:[#allocation84_spill] sm:$0xff] %v13118_v55  ;;  %v16099_v35 = vld [vmem:[#allocation100_spill] sm:$0xff]  ;;  %v13124_v37 = vpop.f32.mrb[103].mxu0  ;;  %v13126_v19 = vpop.f32.mrb[103].mxu1 }
 0x209   :  { %9800 = vrcp.bf16 %v2864_v47  ;;  %v8609_v24 = vmul.bf16 3216621497, %v3235_v54  ;;  %v3172_v32 = vadd.f32 %v16097_v18, %v16092_v50  ;;  %v2726_v20 = vadd.f32 %v16099_v35, %v16098_v2  ;;  %16100 = vst [vmem:[#allocation87_spill] sm:$0xff] %v13124_v37  ;;  %16101 = vst [vmem:[#allocation88_spill] sm:$0xff] %v13126_v19  ;;  %v10653_v7 = vld [vmem:[%s15596_s1 + $0x38] sm:$0xff]   ;;  %v16102_v18 = vld [vmem:[#allocation26_spill] sm:$0xff] }
 0x20a   :  { %9802 = vpow.bf16 %v8608_v0  ;;  %v2786_v63 = vpack.c.bf16 %v2720_v43, %v2716_v16  ;;  %v3236_v23 = vpack.c.bf16 %v3170_v14, %v3166_v6  ;;  %v2787_v33 = vpack.c.bf16 %v2722_v46, %v2718_v25  ;;  %6568 = vmatmul.mubr.bf16.gmra.mrb[220].mxu0 %v10653_v7  ;;  %v10654_v47 = vld [vmem:[%s15596_s1 + $0x78] sm:$0xff]   ;;  %v16103_v35 = vld [vmem:[#allocation101_spill] sm:$0xff]  ;;  %v16104_v0 = vld [vmem:[#allocation102_spill] sm:$0xff]  ;;  %v9787_v6 = vpop.eup %9786 }
 0x20b   :  { %7018 = vmatmul.mubr.bf16.gmra.mrb[220].mxu1 %v10654_v47  ;;  %9804 = vpow.bf16 %v8577_v62  ;;  %v3237_v54 = vpack.c.bf16 %v3172_v32, %v3168_v49  ;;  %v3176_v50 = vadd.f32 %v16103_v35, %v16102_v18  ;;  %v13138_v16 = vadd.f32 %v16104_v0, %v16098_v2  ;;  %7397 = vmatprep.mubr.bf16.mxu0 %v15903_v48  ;;  %v9223_v46 = vld [vmem:[#allocation2 + $0x660] ss:$8 sps:$4 sm:$0xff]   ;;  %v16105_v49 = vld [vmem:[#allocation103_spill] sm:$0xff] }
 0x20c   :  { %7847 = vmatprep.mubr.bf16.mxu1 %v15903_v48  ;;  %9806 = vpow.bf16 %v8609_v24  ;;  %v8578_v25 = vmul.bf16 3216621497, %v2786_v63  ;;  %v8610_v7 = vmul.bf16 3216621497, %v3236_v23  ;;  %v8579_v43 = vmul.bf16 3216621497, %v2787_v33 }
 0x20d   :  { %v2358_v14 = vmul.bf16 1065369472, %v9787_v6  ;;  %v8611_v62 = vmul.bf16 3216621497, %v3237_v54  ;;  %v13144_v32 = vadd.f32 %v16105_v49, %v16102_v18  ;;  %v16106_v47 = vld [vmem:[#allocation9_spill] sm:$0xff]  ;;  %v13158_v63 = vpop.f32.mrb[104].mxu0 }
 0x20e   :  { %v2730_v35 = vadd.f32 %v12574_v13, %v16106_v47  ;;  %v9789_v0 = vpop.eup %9788  ;;  %9808 = vpow.bf16 %v8578_v25  ;;  %v16107_v2 = vld [vmem:[#allocation25_spill] sm:$0xff]  ;;  %v13152_v24 = vadd.f32 %v12578_v4, %v16106_v47  ;;  %16108 = vst [vmem:[#allocation85_spill] sm:$0xff] %v13158_v63  ;;  %v13160_v33 = vpop.f32.mrb[104].mxu1  ;;  %v9230_v4 = vld [vmem:[#allocation2 + $0x470] ss:$8 sps:$4 sm:$0xff]  }
 0x20f   :  { %v3180_v38 = vadd.f32 %v12576_v61, %v16107_v2  ;;  %v13156_v23 = vadd.f32 %v12580_v42, %v16107_v2  ;;  %16109 = vst [vmem:[#allocation89_spill] sm:$0xff] %v13160_v33  ;;  %v9791_v54 = vpop.eup %9790  ;;  %v2377_v13 = vmul.bf16 %v13049_v3, %v2358_v14  ;;  %v1748_v6 = vmul.bf16 1065369472, %v9789_v0  ;;  %v9225_v25 = vld [vmem:[#allocation2 + $0x464] ss:$8 sps:$4 sm:$0xff]   ;;  %v13165_v2 = vpop.f32.mrb[105].mxu0 }
 0x210   :  { %v9226_v49 = vld [vmem:[#allocation2 + $0x664] ss:$8 sps:$4 sm:$0xff]   ;;  %9810 = vpow.bf16 %v8610_v7  ;;  %v2788_v61 = vpack.c.bf16 %v2730_v35, %v2726_v20  ;;  %v9793_v18 = vpop.eup %9792  ;;  %v2360_v26 = vmul.bf16 1065369472, %v9791_v54  ;;  %16110 = vst [vmem:[#allocation90_spill] sm:$0xff] %v13165_v2  ;;  %v13167_v41 = vpop.f32.mrb[105].mxu1 }
 0x211   :  { %9812 = vpow.bf16 %v8579_v43  ;;  %v3238_v47 = vpack.c.bf16 %v3180_v38, %v3176_v50  ;;  %16111 = vst [vmem:[#allocation91_spill] sm:$0xff] %v13167_v41  ;;  %v9795_v8 = vpop.eup %9794  ;;  %v2490_v33 = vsub.bf16 %v2377_v13, %v9223_v46  ;;  %v10655_v3 = vld [vmem:[%s15595_s0 + $0x64] ss:$8 sps:$4 sm:$0xff]   ;;  %v1750_v20 = vmul.bf16 1065369472, %v9793_v18  ;;  %v13172_v35 = vpop.f32.mrb[106].mxu0 }
 0x212   :  { %v1766_v7 = vmul.bf16 %v10655_v3, %v1748_v6  ;;  %v9232_v14 = vld [vmem:[#allocation2 + $0x670] ss:$8 sps:$4 sm:$0xff]   ;;  %9814 = vpow.bf16 %v8611_v62  ;;  %16112 = vst [vmem:[#allocation92_spill] sm:$0xff] %v13172_v35  ;;  %v9797_v38 = vpop.eup %9796  ;;  %v2378_v50 = vmul.bf16 %v10655_v3, %v2360_v26  ;;  %v2362_v43 = vmul.bf16 1065369472, %v9795_v8  ;;  %v10656_v46 = vld [vmem:[%s15596_s1 + $0x80] sm:$0xff]  }
 0x213   :  { %v8580_v0 = vmul.bf16 3216621497, %v2788_v61  ;;  %v13174_v54 = vmul.bf16 3216621497, %v3238_v47  ;;  %7398 = vmatmul.mubr.bf16.vlgmr.msra.gmra.mrb[224].mxu0 %v10656_v46  ;;  %v10657_v13 = vld [vmem:[%s15596_s1 + $0xc0] sm:$0xff]   ;;  %v9799_v18 = vpop.eup %9798 }
 0x214   :  { %7848 = vmatmul.mubr.bf16.vlgmr.msra.gmra.mrb[224].mxu1 %v10657_v13  ;;  %v2506_v62 = vand.u32 2147450879, %v2490_v33  ;;  %v1879_v6 = vsub.bf16 %v1766_v7, %v9225_v25  ;;  %v10658_v8 = vld [vmem:[%s15595_s0 + $0x70] ss:$8 sps:$4 sm:$0xff]   ;;  %v1752_v47 = vmul.bf16 1065369472, %v9797_v38  ;;  %7407 = vmatprep.mubr.bf16.mxu0 %v15903_v48  ;;  %v9801_v61 = vpop.eup %9800  ;;  %v2491_v3 = vsub.bf16 %v2378_v50, %v9226_v49 }
 0x215   :  { %v1767_v26 = vmul.bf16 %v10658_v8, %v1750_v20  ;;  %7857 = vmatprep.mubr.bf16.mxu1 %v15903_v48  ;;  %v2379_v46 = vmul.bf16 %v10658_v8, %v2362_v43  ;;  %v9234_v42 = vld [vmem:[#allocation2 + $0x474] ss:$8 sps:$4 sm:$0xff]   ;;  %v2364_v35 = vmul.bf16 1065369472, %v9799_v18  ;;  %9816 = vpow.bf16 %v8580_v0  ;;  %v13187_v13 = vpop.eup %9802 }
 0x216   :  { %v2534_v33 = vunpack.c.l.bf16 %v2506_v62  ;;  %v2536_v25 = vunpack.c.h.bf16 %v2506_v62  ;;  %v1895_v7 = vand.u32 2147450879, %v1879_v6  ;;  %v13189_v2 = vpop.eup %9804  ;;  %v2507_v20 = vand.u32 2147450879, %v2491_v3  ;;  %v10659_v63 = vld [vmem:[%s15595_s0 + $0x74] ss:$8 sps:$4 sm:$0xff]  }
 0x217   :  { %v1880_v41 = vsub.bf16 %v1767_v26, %v9230_v4  ;;  %v2492_v38 = vsub.bf16 %v2379_v46, %v9232_v14  ;;  %v1768_v19 = vmul.bf16 %v10659_v63, %v1752_v47  ;;  %v2380_v49 = vmul.bf16 %v10659_v63, %v2364_v35  ;;  %v13194_v50 = vpop.eup %9806  ;;  %v9235_v62 = vld [vmem:[#allocation2 + $0x674] ss:$8 sps:$4 sm:$0xff]   ;;  %v13200_v63 = vpop.f32.mrb[106].mxu1 }
 0x218   :  { %v2553_v43 = vadd.f32 %v13070_v58, %v2534_v33  ;;  %v1923_v0 = vunpack.c.l.bf16 %v1895_v7  ;;  %v1925_v18 = vunpack.c.h.bf16 %v1895_v7  ;;  %v2535_v6 = vunpack.c.l.bf16 %v2507_v20  ;;  %16113 = vst [vmem:[#allocation93_spill] sm:$0xff] %v13200_v63  ;;  %v13214_v63 = vpop.f32.mrb[107].mxu1 }
 0x219   :  { %v1896_v8 = vand.u32 2147450879, %v1880_v41  ;;  %v2537_v4 = vunpack.c.h.bf16 %v2507_v20  ;;  %v2508_v26 = vand.u32 2147450879, %v2492_v38  ;;  %v1881_v37 = vsub.bf16 %v1768_v19, %v9234_v42  ;;  %v13197_v3 = vpop.eup %9808  ;;  %v10660_v20 = vld [vmem:[%s15596_s1 + $0x88] sm:$0xff]   ;;  %16115 = vst [vmem:[#allocation95_spill] sm:$0xff] %v13214_v63 }
 0x21a   :  { %v2554_v14 = vadd.f32 %v2553_v43, %v2536_v25  ;;  %v1956_v46 = vadd.f32 %v13072_v15, %v1923_v0  ;;  %v2568_v58 = vadd.f32 %v13080_v60, %v2535_v6  ;;  %v10661_v19 = vld [vmem:[%s15596_s1 + $0xc8] sm:$0xff]   ;;  %v2493_v38 = vsub.bf16 %v2380_v49, %v9235_v62 }
 0x21b   :  { %v1926_v55 = vunpack.c.l.bf16 %v1896_v8  ;;  %v1928_v47 = vunpack.c.h.bf16 %v1896_v8  ;;  %v9811_v35 = vpop.eup %9810  ;;  %v2538_v33 = vunpack.c.l.bf16 %v2508_v26  ;;  %v2540_v7 = vunpack.c.h.bf16 %v2508_v26  ;;  %7408 = vmatmul.mubr.bf16.gmra.mrb[228].mxu0 %v10660_v20  ;;  %v9239_v60 = vld [vmem:[#allocation2 + $0x80] ss:$8 sps:$4 sm:$0xff]   ;;  %v13212_v20 = vpop.f32.mrb[107].mxu0 }
 0x21c   :  { %v1897_v41 = vand.u32 2147450879, %v1881_v37  ;;  %7858 = vmatmul.mubr.bf16.gmra.mrb[228].mxu1 %v10661_v19  ;;  %v9813_v15 = vpop.eup %9812  ;;  %v1957_v42 = vadd.f32 %v1956_v46, %v1925_v18  ;;  %v2881_v43 = vmul.bf16 1065369472, %v9801_v61  ;;  %7417 = vmatprep.mubr.bf16.mxu0 %v15903_v48  ;;  %v2569_v0 = vadd.f32 %v2568_v58, %v2537_v4  ;;  %16114 = vst [vmem:[#allocation94_spill] sm:$0xff] %v13212_v20  ;;  %v16116_v58 = vld [vmem:[#allocation97_spill] sm:$0xff] }
 0x21d   :  { %v1943_v25 = vadd.f32 %v13084_v51, %v1926_v55  ;;  %7867 = vmatprep.mubr.bf16.mxu1 %v15903_v48  ;;  %v9815_v37 = vpop.eup %9814  ;;  %v2555_v8 = vadd.f32 %v2554_v14, %v2538_v33  ;;  %v2509_v18 = vand.u32 2147450879, %v2493_v38  ;;  %v13219_v51 = vld [vmem:[%s15595_s0 + $0x80] ss:$8 sps:$4 sm:$0xff]   ;;  %v3314_v61 = vadd.bf16 1065369472, %v13187_v13 }
 0x21e   :  { %v1927_v6 = vunpack.c.l.bf16 %v1897_v41  ;;  %v1929_v26 = vunpack.c.h.bf16 %v1897_v41  ;;  %v2912_v55 = vmul.bf16 %v13219_v51, %v2881_v43  ;;  %v2865_v4 = vadd.bf16 1065369472, %v13189_v2 }
 0x21f   :  { %v1944_v19 = vadd.f32 %v1943_v25, %v1928_v47  ;;  %v2556_v49 = vadd.f32 %v2555_v8, %v2540_v7  ;;  %v3315_v14 = vadd.bf16 1065369472, %v13194_v50  ;;  %v2539_v47 = vunpack.c.l.bf16 %v2509_v18  ;;  %v10663_v8 = vld [vmem:[%s15596_s1 + $0x90] sm:$0xff]  }
 0x220   :  { %v1958_v62 = vadd.f32 %v1957_v42, %v1927_v6  ;;  %v9817_v46 = vpop.eup %9816  ;;  %v2541_v41 = vunpack.c.h.bf16 %v2509_v18  ;;  %v3025_v25 = vsub.bf16 %v2912_v55, %v9239_v60  ;;  %9818 = vrcp.bf16 %v3314_v61  ;;  %v13236_v6 = vpop.f32.mrb[108].mxu0  ;;  %v16122_v55 = vld [vmem:[#allocation12_spill] sm:$0xff] }
 0x221   :  { %v1960_v33 = vadd.f32 %v1944_v19, %v16116_v58  ;;  %v2866_v63 = vadd.bf16 1065369472, %v13197_v3  ;;  %v3316_v20 = vadd.bf16 1065369472, %v9811_v35  ;;  %v2570_v13 = vadd.f32 %v2569_v0, %v2539_v47  ;;  %v10664_v3 = vld [vmem:[%s15596_s1 + $0xd0] sm:$0xff]   ;;  %16118 = vst [vmem:[#allocation98_spill] sm:$0xff] %v13236_v6 }
 0x222   :  { %v1959_v38 = vadd.f32 %v1958_v62, %v1929_v26  ;;  %v3041_v7 = vand.u32 2147450879, %v3025_v25  ;;  %9820 = vrcp.bf16 %v2865_v4  ;;  %v2867_v50 = vadd.bf16 1065369472, %v9813_v15  ;;  %v16123_v61 = vld [vmem:[#allocation104_spill] sm:$0xff]  ;;  %v13253_v62 = vpop.f32.mrb[109].mxu0 }
 0x223   :  { %v13227_v43 = vadd.f32 %v2556_v49, %v1960_v33  ;;  %9822 = vrcp.bf16 %v3315_v14  ;;  %v3317_v42 = vadd.bf16 1065369472, %v9815_v37  ;;  %7418 = vmatmul.mubr.bf16.gmra.mrb[232].mxu0 %v10663_v8  ;;  %v2571_v35 = vadd.f32 %v2570_v13, %v2541_v41  ;;  %16124 = vst [vmem:[#allocation101_spill] sm:$0xff] %v13253_v62  ;;  %v16126_v14 = vld [vmem:[#allocation27_spill] sm:$0xff]  ;;  %v16133_v25 = vld [vmem:[#allocation108_spill] sm:$0xff]  ;;  %v16134_v13 = vld [vmem:[#allocation38_spill] sm:$0xff] }
 0x224   :  { %v1961_v2 = vadd.f32 %v1959_v38, %v12595_v21  ;;  %7868 = vmatmul.mubr.bf16.gmra.mrb[232].mxu1 %v10664_v3  ;;  %v3057_v60 = vunpack.c.l.bf16 %v3041_v7  ;;  %v3059_v0 = vunpack.c.h.bf16 %v3041_v7  ;;  %9824 = vrcp.bf16 %v2866_v63  ;;  %v13238_v21 = vpop.f32.mrb[108].mxu1  ;;  %7427 = vmatprep.mubr.bf16.mxu0 %v15903_v48  ;;  %v16131_v33 = vld [vmem:[#allocation107_spill] sm:$0xff]  ;;  %v16135_v7 = vld [vmem:[#allocation109_spill] sm:$0xff] }
 0x225   :  { %16117 = vst [vmem:[#allocation96_spill] sm:$0xff] %v13227_v43  ;;  %16119 = vst [vmem:[#allocation99_spill] sm:$0xff] %v13238_v21  ;;  %7877 = vmatprep.mubr.bf16.mxu1 %v15903_v48  ;;  %9826 = vrcp.bf16 %v3316_v20  ;;  %v2868_v15 = vadd.bf16 1065369472, %v9817_v46  ;;  %v16120_v37 = vpack.c.bf16 %v13152_v24, %v13138_v16  ;;  %v3239_v19 = vpack.c.bf16 %v13156_v23, %v13144_v32  ;;  %v13255_v4 = vpop.f32.mrb[109].mxu1  ;;  %v16127_v16 = vld [vmem:[#allocation105_spill] sm:$0xff] }
 0x226   :  { %v13247_v18 = vadd.f32 %v2571_v35, %v1961_v2  ;;  %v13249_v63 = vadd.f32 %v3059_v0, %v3057_v60  ;;  %9828 = vrcp.bf16 %v2867_v50  ;;  %v2736_v49 = vadd.f32 %v16123_v61, %v16122_v55  ;;  %16125 = vst [vmem:[#allocation102_spill] sm:$0xff] %v13255_v4  ;;  %v16128_v46 = vld [vmem:[#allocation106_spill] sm:$0xff]  ;;  %v13261_v23 = vpop.f32.mrb[110].mxu0  ;;  %v13263_v58 = vpop.f32.mrb[110].mxu1  ;;  %v16132_v41 = vld [vmem:[#allocation11_spill] sm:$0xff]  ;;  %v16140_v0 = vld [vmem:[#allocation56_spill] sm:$0xff] }
 0x227   :  { %v8581_v26 = vmul.bf16 3216621497, %v16120_v37  ;;  %9830 = vrcp.bf16 %v3317_v42  ;;  %v8613_v20 = vmul.bf16 3216621497, %v3239_v19  ;;  %v3186_v24 = vadd.f32 %v16127_v16, %v16126_v14  ;;  %16129 = vst [vmem:[#allocation103_spill] sm:$0xff] %v13261_v23  ;;  %16130 = vst [vmem:[#allocation97_spill] sm:$0xff] %v13263_v58 }
 0x228   :  { %16121 = vst [vmem:[#allocation100_spill] sm:$0xff] %v13247_v18  ;;  %v2738_v32 = vadd.f32 %v16128_v46, %v16122_v55  ;;  %9832 = vrcp.bf16 %v2868_v15  ;;  %v3188_v47 = vadd.f32 %v16131_v33, %v16126_v14  ;;  %v2740_v38 = vadd.f32 %v16133_v25, %v16132_v41  ;;  %v13271_v50 = vpop.f32.mrb[111].mxu0  ;;  %v16137_v42 = vld [vmem:[#allocation110_spill] sm:$0xff]  ;;  %v16138_v3 = vld [vmem:[#allocation111_spill] sm:$0xff]  ;;  %v16141_v61 = vld [vmem:[#allocation45_spill] sm:$0xff] }
 0x229   :  { %v3190_v2 = vadd.f32 %v16135_v7, %v16134_v13  ;;  %16136 = vst [vmem:[#allocation104_spill] sm:$0xff] %v13271_v50  ;;  %9834 = vpow.bf16 %v13174_v54  ;;  %v2742_v8 = vadd.f32 %v16137_v42, %v16132_v41  ;;  %v3192_v35 = vadd.f32 %v16138_v3, %v16134_v13  ;;  %v16139_v60 = vld [vmem:[#allocation14_spill] sm:$0xff]  ;;  %v16143_v54 = vld [vmem:[#allocation67_spill] sm:$0xff]  ;;  %v10665_v42 = vld [vmem:[%s15596_s1 + $0x98] sm:$0xff]  }
 0x22a   :  { %v2746_v15 = vadd.f32 %v16140_v0, %v16139_v60  ;;  %9836 = vpow.bf16 %v8581_v26  ;;  %v2790_v37 = vpack.c.bf16 %v2740_v38, %v2736_v49  ;;  %v16142_v16 = vld [vmem:[#allocation66_spill] sm:$0xff]  ;;  %v13286_v7 = vadd.f32 %v16143_v54, %v16139_v60  ;;  %v10666_v26 = vld [vmem:[%s15596_s1 + $0xd8] sm:$0xff]  }
 0x22b   :  { %v3240_v19 = vpack.c.bf16 %v3190_v2, %v3186_v24  ;;  %v13282_v46 = vadd.f32 %v16142_v16, %v16141_v61  ;;  %9838 = vpow.bf16 %v8613_v20  ;;  %v2791_v33 = vpack.c.bf16 %v2742_v8, %v2738_v32  ;;  %7428 = vmatmul.mubr.bf16.gmra.mrb[236].mxu0 %v10665_v42  ;;  %v9819_v49 = vpop.eup %9818  ;;  %v9241_v24 = vld [vmem:[#allocation2 + $0x280] ss:$8 sps:$4 sm:$0xff]   ;;  %v16144_v32 = vld [vmem:[#allocation68_spill] sm:$0xff]  ;;  %v16147_v42 = vld [vmem:[#allocation47_spill] sm:$0xff] }
 0x22c   :  { %v3241_v25 = vpack.c.bf16 %v3192_v35, %v3188_v47  ;;  %7878 = vmatmul.mubr.bf16.gmra.mrb[236].mxu1 %v10666_v26  ;;  %v8582_v38 = vmul.bf16 3216621497, %v2790_v37  ;;  %v13296_v47 = vadd.f32 %v16144_v32, %v16141_v61  ;;  %v16145_v2 = vld [vmem:[#allocation13_spill] sm:$0xff]  ;;  %v16146_v8 = vld [vmem:[#allocation112_spill] sm:$0xff]  ;;  %7437 = vmatprep.mubr.bf16.mxu0 %v15903_v48  ;;  %v3331_v0 = vmul.bf16 1065369472, %v9819_v49 }
 0x22d   :  { %v8614_v20 = vmul.bf16 3216621497, %v3240_v19  ;;  %v2750_v3 = vadd.f32 %v16146_v8, %v16145_v2  ;;  %7887 = vmatprep.mubr.bf16.mxu1 %v15903_v48  ;;  %v9821_v35 = vpop.eup %9820  ;;  %v8583_v16 = vmul.bf16 3216621497, %v2791_v33  ;;  %v16148_v26 = vld [vmem:[#allocation113_spill] sm:$0xff] }
 0x22e   :  { %v8615_v54 = vmul.bf16 3216621497, %v3241_v25  ;;  %v13304_v60 = vadd.f32 %v16148_v26, %v16147_v42  ;;  %v9823_v37 = vpop.eup %9822  ;;  %v2883_v19 = vmul.bf16 1065369472, %v9821_v35  ;;  %v9243_v13 = vld [vmem:[#allocation2 + $0x84] ss:$8 sps:$4 sm:$0xff]   ;;  %9840 = vpow.bf16 %v8582_v38 }
 0x22f   :  { %v2792_v32 = vpack.c.bf16 %v2750_v3, %v2746_v15  ;;  %v16149_v61 = vld [vmem:[#allocation69_spill] sm:$0xff]  ;;  %v9825_v41 = vpop.eup %9824  ;;  %v3362_v14 = vmul.bf16 %v13219_v51, %v3331_v0  ;;  %v3333_v55 = vmul.bf16 1065369472, %v9823_v37  ;;  %9842 = vpow.bf16 %v8614_v20  ;;  %v13313_v25 = vpop.f32.mrb[111].mxu1  ;;  %v9250_v20 = vld [vmem:[#allocation2 + $0x290] ss:$8 sps:$4 sm:$0xff]  }
 0x230   :  { %v13308_v8 = vadd.f32 %v16149_v61, %v16145_v2  ;;  %v9244_v49 = vld [vmem:[#allocation2 + $0x284] ss:$8 sps:$4 sm:$0xff]   ;;  %16150 = vst [vmem:[#allocation105_spill] sm:$0xff] %v13313_v25  ;;  %v9827_v26 = vpop.eup %9826  ;;  %v2885_v3 = vmul.bf16 1065369472, %v9825_v41  ;;  %9844 = vpow.bf16 %v8583_v16 }
 0x231   :  { %v10667_v15 = vld [vmem:[%s15595_s0 + $0x84] ss:$8 sps:$4 sm:$0xff]   ;;  %v9248_v61 = vld [vmem:[#allocation2 + $0x90] ss:$8 sps:$4 sm:$0xff]   ;;  %v8584_v35 = vmul.bf16 3216621497, %v2792_v32  ;;  %v9829_v2 = vpop.eup %9828  ;;  %v3475_v51 = vsub.bf16 %v3362_v14, %v9241_v24  ;;  %9846 = vpow.bf16 %v8615_v54 }
 0x232   :  { %v2913_v38 = vmul.bf16 %v10667_v15, %v2883_v19  ;;  %v3363_v0 = vmul.bf16 %v10667_v15, %v3333_v55  ;;  %v3335_v37 = vmul.bf16 1065369472, %v9827_v26  ;;  %v9831_v50 = vpop.eup %9830  ;;  %v10668_v25 = vld [vmem:[%s15595_s0 + $0x90] ss:$8 sps:$4 sm:$0xff]   ;;  %v2887_v23 = vmul.bf16 1065369472, %v9829_v2 }
 0x233   :  { %v2914_v58 = vmul.bf16 %v10668_v25, %v2885_v3  ;;  %v9252_v4 = vld [vmem:[#allocation2 + $0x94] ss:$8 sps:$4 sm:$0xff]   ;;  %9848 = vpow.bf16 %v8584_v35  ;;  %v9833_v41 = vpop.eup %9832  ;;  %v3491_v19 = vand.u32 2147450879, %v3475_v51  ;;  %v3337_v62 = vmul.bf16 1065369472, %v9831_v50 }
 0x234   :  { %v3026_v33 = vsub.bf16 %v2913_v38, %v9243_v13  ;;  %v3476_v16 = vsub.bf16 %v3363_v0, %v9244_v49  ;;  %v3364_v32 = vmul.bf16 %v10668_v25, %v3335_v37  ;;  %v10669_v55 = vld [vmem:[%s15596_s1 + $0xa0] sm:$0xff]   ;;  %v9835_v13 = vpop.eup %9834  ;;  %v10671_v54 = vld [vmem:[%s15595_s0 + $0x94] ss:$8 sps:$4 sm:$0xff]   ;;  %v2889_v25 = vmul.bf16 1065369472, %v9833_v41 }
 0x235   :  { %7438 = vmatmul.mubr.bf16.gmra.mrb[240].mxu0 %v10669_v55  ;;  %v10670_v14 = vld [vmem:[%s15596_s1 + $0xe0] sm:$0xff]   ;;  %v3027_v2 = vsub.bf16 %v2914_v58, %v9248_v61  ;;  %v2915_v49 = vmul.bf16 %v10671_v54, %v2887_v23  ;;  %v9837_v50 = vpop.eup %9836  ;;  %v3507_v26 = vunpack.c.l.bf16 %v3491_v19  ;;  %v3509_v15 = vunpack.c.h.bf16 %v3491_v19  ;;  %v9253_v23 = vld [vmem:[#allocation2 + $0x294] ss:$8 sps:$4 sm:$0xff]  }
 0x236   :  { %7888 = vmatmul.mubr.bf16.gmra.mrb[240].mxu1 %v10670_v14  ;;  %v3042_v24 = vand.u32 2147450879, %v3026_v33  ;;  %7447 = vmatprep.mubr.bf16.mxu0 %v15903_v48  ;;  %v3492_v38 = vand.u32 2147450879, %v3476_v16  ;;  %v3477_v3 = vsub.bf16 %v3364_v32, %v9250_v20  ;;  %v9839_v35 = vpop.eup %9838  ;;  %v9257_v43 = vld [vmem:[#allocation2 + $0xa0] ss:$8 sps:$4 sm:$0xff]   ;;  %v3365_v20 = vmul.bf16 %v10671_v54, %v3337_v62 }
 0x237   :  { %7897 = vmatprep.mubr.bf16.mxu1 %v15903_v48  ;;  %v3043_v33 = vand.u32 2147450879, %v3027_v2  ;;  %v3028_v58 = vsub.bf16 %v2915_v49, %v9252_v4  ;;  %v3539_v61 = vadd.f32 %v3509_v15, %v3507_v26  ;;  %v13336_v49 = vld [vmem:[%s15595_s0 + $0xa0] ss:$8 sps:$4 sm:$0xff]   ;;  %v13341_v62 = vpop.f32.mrb[112].mxu1 }
 0x238   :  { %v3058_v51 = vunpack.c.l.bf16 %v3042_v24  ;;  %v3060_v0 = vunpack.c.h.bf16 %v3042_v24  ;;  %v3508_v37 = vunpack.c.l.bf16 %v3492_v38  ;;  %v3510_v55 = vunpack.c.h.bf16 %v3492_v38  ;;  %16152 = vst [vmem:[#allocation107_spill] sm:$0xff] %v13341_v62 }
 0x239   :  { %v3493_v14 = vand.u32 2147450879, %v3477_v3  ;;  %v3061_v21 = vunpack.c.l.bf16 %v3043_v33  ;;  %v3063_v6 = vunpack.c.h.bf16 %v3043_v33  ;;  %v3044_v18 = vand.u32 2147450879, %v3028_v58  ;;  %v9841_v45 = vpop.eup %9840  ;;  %v13339_v33 = vpop.f32.mrb[112].mxu0 }
 0x23a   :  { %v3104_v41 = vadd.f32 %v3060_v0, %v3058_v51  ;;  %v3554_v5 = vadd.f32 %v3510_v55, %v3508_v37  ;;  %v9843_v32 = vpop.eup %9842  ;;  %v2916_v26 = vmul.bf16 %v13336_v49, %v2889_v25  ;;  %v3478_v3 = vsub.bf16 %v3365_v20, %v9253_v23  ;;  %16151 = vst [vmem:[#allocation106_spill] sm:$0xff] %v13339_v33 }
 0x23b   :  { %v3511_v19 = vunpack.c.l.bf16 %v3493_v14  ;;  %v3513_v16 = vunpack.c.h.bf16 %v3493_v14  ;;  %v3090_v24 = vadd.f32 %v13249_v63, %v3061_v21  ;;  %v3062_v2 = vunpack.c.l.bf16 %v3044_v18  ;;  %v9845_v15 = vpop.eup %9844  ;;  %v10673_v21 = vld [vmem:[%s15596_s1 + $0xa8] sm:$0xff]  }
 0x23c   :  { %v3064_v4 = vunpack.c.h.bf16 %v3044_v18  ;;  %v3318_v51 = vadd.bf16 1065369472, %v9835_v13  ;;  %v2869_v0 = vadd.bf16 1065369472, %v9837_v50  ;;  %v10674_v18 = vld [vmem:[%s15596_s1 + $0xe8] sm:$0xff]   ;;  %v9847_v63 = vpop.eup %9846  ;;  %v3029_v58 = vsub.bf16 %v2916_v26, %v9257_v43  ;;  %v13349_v50 = vpop.f32.mrb[113].mxu0 }
 0x23d   :  { %v3540_v38 = vadd.f32 %v3539_v61, %v3511_v19  ;;  %7448 = vmatmul.mubr.bf16.gmra.mrb[244].mxu0 %v10673_v21  ;;  %v3091_v54 = vadd.f32 %v3090_v24, %v3063_v6  ;;  %v3105_v25 = vadd.f32 %v3104_v41, %v3062_v2  ;;  %v3319_v13 = vadd.bf16 1065369472, %v9839_v35  ;;  %16153 = vst [vmem:[#allocation108_spill] sm:$0xff] %v13349_v50  ;;  %v13351_v61 = vpop.f32.mrb[113].mxu1  ;;  %v13359_v35 = vpop.f32.mrb[114].mxu0 }
 0x23e   :  { %7898 = vmatmul.mubr.bf16.gmra.mrb[244].mxu1 %v10674_v18  ;;  %16154 = vst [vmem:[#allocation109_spill] sm:$0xff] %v13351_v61  ;;  %7457 = vmatprep.mubr.bf16.mxu0 %v15903_v48  ;;  %v9849_v37 = vpop.eup %9848  ;;  %v3494_v14 = vand.u32 2147450879, %v3478_v3  ;;  %9850 = vrcp.bf16 %v3318_v51  ;;  %v2870_v23 = vadd.bf16 1065369472, %v9841_v45  ;;  %16155 = vst [vmem:[#allocation110_spill] sm:$0xff] %v13359_v35 }
 0x23f   :  { %7907 = vmatprep.mubr.bf16.mxu1 %v15903_v48  ;;  %v13355_v55 = vadd.f32 %v3540_v38, %v3513_v16  ;;  %v13357_v19 = vadd.f32 %v3105_v25, %v3064_v4  ;;  %v3045_v6 = vand.u32 2147450879, %v3029_v58  ;;  %9852 = vrcp.bf16 %v2869_v0  ;;  %v13361_v41 = vpop.f32.mrb[114].mxu1  ;;  %v13363_v26 = vpop.f32.mrb[115].mxu0  ;;  %v16160_v18 = vld [vmem:[#allocation70_spill] sm:$0xff] }
 0x240   :  { %v3320_v43 = vadd.bf16 1065369472, %v9843_v32  ;;  %16156 = vst [vmem:[#allocation111_spill] sm:$0xff] %v13361_v41  ;;  %v3512_v20 = vunpack.c.l.bf16 %v3494_v14  ;;  %v3514_v24 = vunpack.c.h.bf16 %v3494_v14  ;;  %9854 = vrcp.bf16 %v3319_v13  ;;  %16157 = vst [vmem:[#allocation56_spill] sm:$0xff] %v13363_v26  ;;  %v13365_v16 = vpop.f32.mrb[115].mxu1  ;;  %v16161_v13 = vld [vmem:[#allocation16_spill] sm:$0xff] }
 0x241   :  { %v2871_v2 = vadd.bf16 1065369472, %v9845_v15  ;;  %16158 = vst [vmem:[#allocation66_spill] sm:$0xff] %v13365_v16  ;;  %v3065_v38 = vunpack.c.l.bf16 %v3045_v6  ;;  %v3067_v3 = vunpack.c.h.bf16 %v3045_v6  ;;  %9856 = vrcp.bf16 %v2870_v23  ;;  %v16163_v14 = vld [vmem:[#allocation52_spill] sm:$0xff]  ;;  %v13380_v6 = vpop.f32.mrb[116].mxu0 }
 0x242   :  { %v3321_v45 = vadd.bf16 1065369472, %v9847_v63  ;;  %v3555_v4 = vadd.f32 %v3554_v5, %v3512_v20  ;;  %9858 = vrcp.bf16 %v3320_v43  ;;  %v2872_v51 = vadd.bf16 1065369472, %v9849_v37  ;;  %v16162_v63 = vld [vmem:[#allocation71_spill] sm:$0xff]  ;;  %16165 = vst [vmem:[#allocation67_spill] sm:$0xff] %v13380_v6 }
 0x243   :  { %v16159_v32 = vpack.c.bf16 %v13304_v60, %v13282_v46  ;;  %v3092_v21 = vadd.f32 %v3091_v54, %v3065_v38  ;;  %9860 = vrcp.bf16 %v2871_v2  ;;  %v2793_v15 = vpack.c.bf16 %v13308_v8, %v13286_v7  ;;  %v16164_v37 = vld [vmem:[#allocation63_spill] sm:$0xff]  ;;  %v13382_v60 = vpop.f32.mrb[116].mxu1  ;;  %v13393_v20 = vpop.f32.mrb[117].mxu0  ;;  %v16169_v2 = vld [vmem:[#allocation114_spill] sm:$0xff] }
 0x244   :  { %v3202_v25 = vadd.f32 %v16160_v18, %v16147_v42  ;;  %v13374_v58 = vadd.f32 %v3555_v4, %v3514_v24  ;;  %9862 = vrcp.bf16 %v3321_v45  ;;  %v2756_v5 = vadd.f32 %v16162_v63, %v16161_v13  ;;  %16166 = vst [vmem:[#allocation68_spill] sm:$0xff] %v13382_v60  ;;  %v10675_v46 = vld [vmem:[%s15596_s1 + $0xb0] sm:$0xff]   ;;  %16167 = vst [vmem:[#allocation112_spill] sm:$0xff] %v13393_v20  ;;  %v13395_v24 = vpop.f32.mrb[117].mxu1  ;;  %v16175_v18 = vld [vmem:[#allocation53_spill] sm:$0xff] }
 0x245   :  { %v8616_v0 = vmul.bf16 3216621497, %v16159_v32  ;;  %v3206_v23 = vadd.f32 %v16164_v37, %v16163_v14  ;;  %7458 = vmatmul.mubr.bf16.gmra.mrb[248].mxu0 %v10675_v46  ;;  %v10676_v7 = vld [vmem:[%s15596_s1 + $0xf0] sm:$0xff]   ;;  %v13390_v8 = vadd.f32 %v3092_v21, %v3067_v3  ;;  %9864 = vrcp.bf16 %v2872_v51  ;;  %16168 = vst [vmem:[#allocation113_spill] sm:$0xff] %v13395_v24  ;;  %v16172_v51 = vld [vmem:[#allocation72_spill] sm:$0xff]  ;;  %v13405_v21 = vpop.f32.mrb[118].mxu0 }
 0x246   :  { %7908 = vmatmul.mubr.bf16.gmra.mrb[248].mxu1 %v10676_v7  ;;  %v8585_v54 = vmul.bf16 3216621497, %v2793_v15  ;;  %v3243_v43 = vpack.c.bf16 %v3202_v25, %v13296_v47  ;;  %7467 = vmatprep.mubr.bf16.mxu0 %v15903_v48  ;;  %v2758_v38 = vadd.f32 %v16169_v2, %v16161_v13  ;;  %v16170_v45 = vld [vmem:[#allocation115_spill] sm:$0xff]  ;;  %16173 = vst [vmem:[#allocation69_spill] sm:$0xff] %v13405_v21  ;;  %v13407_v47 = vpop.f32.mrb[118].mxu1  ;;  %v16176_v25 = vld [vmem:[#allocation116_spill] sm:$0xff] }
 0x247   :  { %7917 = vmatprep.mubr.bf16.mxu1 %v15903_v48  ;;  %9866 = vpow.bf16 %v8616_v0  ;;  %v3208_v3 = vadd.f32 %v16170_v45, %v16163_v14  ;;  %v16171_v4 = vld [vmem:[#allocation15_spill] sm:$0xff]  ;;  %16174 = vst [vmem:[#allocation70_spill] sm:$0xff] %v13407_v47  ;;  %v3210_v63 = vadd.f32 %v16176_v25, %v16175_v18  ;;  %v16177_v48 = vld [vmem:[#allocation42_spill] sm:$0xff]  ;;  %v13413_v37 = vpop.f32.mrb[119].mxu0  ;;  %v13415_v46 = vpop.f32.mrb[119].mxu1  ;;  %v16180_v2 = vld [vmem:[#allocation117_spill] sm:$0xff] }
 0x248   :  { %v2760_v32 = vadd.f32 %v16172_v51, %v16171_v4  ;;  %9868 = vpow.bf16 %v8585_v54  ;;  %v8617_v15 = vmul.bf16 3216621497, %v3243_v43  ;;  %v2762_v0 = vadd.f32 %v16177_v48, %v16171_v4  ;;  %16178 = vst [vmem:[#allocation71_spill] sm:$0xff] %v13413_v37  ;;  %16179 = vst [vmem:[#allocation63_spill] sm:$0xff] %v13415_v46  ;;  %v16181_v51 = vld [vmem:[#allocation18_spill] sm:$0xff]  ;;  %v16182_v14 = vld [vmem:[#allocation76_spill] sm:$0xff] }
 0x249   :  { %v3212_v45 = vadd.f32 %v16180_v2, %v16175_v18  ;;  %v13421_v13 = vadd.f32 %v16182_v14, %v16181_v51  ;;  %v16183_v54 = vld [vmem:[#allocation60_spill] sm:$0xff]  ;;  %v16184_v43 = vld [vmem:[#allocation78_spill] sm:$0xff]  ;;  %v9851_v25 = vpop.eup %9850  ;;  %v3244_v48 = vpack.c.bf16 %v3210_v63, %v3206_v23  ;;  %v16185_v37 = vld [vmem:[#allocation75_spill] sm:$0xff] }
 0x24a   :  { %v2794_v7 = vpack.c.bf16 %v2760_v32, %v2756_v5  ;;  %v13425_v42 = vadd.f32 %v16184_v43, %v16183_v54  ;;  %v9259_v47 = vld [vmem:[#allocation2 + $0x2a0] ss:$8 sps:$4 sm:$0xff]   ;;  %9870 = vpow.bf16 %v8617_v15  ;;  %v2795_v4 = vpack.c.bf16 %v2762_v0, %v2758_v38  ;;  %v9853_v5 = vpop.eup %9852  ;;  %v9261_v2 = vld [vmem:[#allocation2 + $0xa4] ss:$8 sps:$4 sm:$0xff]   ;;  %v16188_v23 = vld [vmem:[#allocation79_spill] sm:$0xff] }
 0x24b   :  { %v13429_v46 = vadd.f32 %v16185_v37, %v16181_v51  ;;  %v3339_v32 = vmul.bf16 1065369472, %v9851_v25  ;;  %v3245_v21 = vpack.c.bf16 %v3212_v45, %v3208_v3  ;;  %v16186_v14 = vld [vmem:[#allocation82_spill] sm:$0xff]  ;;  %v9855_v43 = vpop.eup %9854  ;;  %v2891_v20 = vmul.bf16 1065369472, %v9853_v5  ;;  %v16187_v15 = vld [vmem:[#allocation17_spill] sm:$0xff] }
 0x24c   :  { %v8586_v18 = vmul.bf16 3216621497, %v2794_v7  ;;  %v13433_v24 = vadd.f32 %v16186_v14, %v16183_v54  ;;  %v8618_v60 = vmul.bf16 3216621497, %v3244_v48  ;;  %v8587_v6 = vmul.bf16 3216621497, %v2795_v4  ;;  %v9857_v63 = vpop.eup %9856 }
 0x24d   :  { %v13437_v38 = vadd.f32 %v16188_v23, %v16187_v15  ;;  %v3366_v0 = vmul.bf16 %v13336_v49, %v3339_v32  ;;  %v3341_v37 = vmul.bf16 1065369472, %v9855_v43  ;;  %v9262_v25 = vld [vmem:[#allocation2 + $0x2a4] ss:$8 sps:$4 sm:$0xff]   ;;  %v8619_v7 = vmul.bf16 3216621497, %v3245_v21  ;;  %v9859_v45 = vpop.eup %9858 }
 0x24e   :  { %9872 = vpow.bf16 %v8586_v18  ;;  %v10677_v3 = vld [vmem:[%s15596_s1 + $0xb8] sm:$0xff]   ;;  %v10679_v48 = vld [vmem:[%s15595_s0 + $0xa4] ss:$8 sps:$4 sm:$0xff]   ;;  %v2893_v5 = vmul.bf16 1065369472, %v9857_v63  ;;  %v9861_v18 = vpop.eup %9860 }
 0x24f   :  { %7468 = vmatmul.mubr.bf16.gmra.mrb[252].mxu0 %v10677_v3  ;;  %v10678_v4 = vld [vmem:[%s15596_s1 + $0xf8] sm:$0xff]   ;;  %v2917_v49 = vmul.bf16 %v10679_v48, %v2891_v20  ;;  %9874 = vpow.bf16 %v8618_v60  ;;  %v3479_v14 = vsub.bf16 %v3366_v0, %v9259_v47  ;;  %v3367_v43 = vmul.bf16 %v10679_v48, %v3341_v37  ;;  %v9863_v54 = vpop.eup %9862 }
 0x250   :  { %7918 = vmatmul.mubr.bf16.gmra.mrb[252].mxu1 %v10678_v4  ;;  %v9266_v32 = vld [vmem:[#allocation2 + $0xb0] ss:$8 sps:$4 sm:$0xff]   ;;  %v3343_v23 = vmul.bf16 1065369472, %v9859_v45  ;;  %9876 = vpow.bf16 %v8587_v6  ;;  %v2895_v20 = vmul.bf16 1065369472, %v9861_v18  ;;  %v9865_v60 = vpop.eup %9864 }
 0x251   :  { %v9268_v3 = vld [vmem:[#allocation2 + $0x2b0] ss:$8 sps:$4 sm:$0xff]   ;;  %v3030_v4 = vsub.bf16 %v2917_v49, %v9261_v2  ;;  %v9270_v63 = vld [vmem:[#allocation2 + $0xb4] ss:$8 sps:$4 sm:$0xff]   ;;  %9878 = vpow.bf16 %v8619_v7  ;;  %v3495_v26 = vand.u32 2147450879, %v3479_v14  ;;  %v3480_v41 = vsub.bf16 %v3367_v43, %v9262_v25 }
 0x252   :  { %v10680_v51 = vld [vmem:[%s15595_s0 + $0xb0] ss:$8 sps:$4 sm:$0xff]   ;;  %v3345_v35 = vmul.bf16 1065369472, %v9863_v54  ;;  %v9867_v47 = vpop.eup %9866  ;;  %v10681_v6 = vld [vmem:[%s15595_s0 + $0xb4] ss:$8 sps:$4 sm:$0xff]  }
 0x253   :  { %v2918_v16 = vmul.bf16 %v10680_v51, %v2893_v5  ;;  %v3368_v21 = vmul.bf16 %v10680_v51, %v3343_v23  ;;  %v3046_v0 = vand.u32 2147450879, %v3030_v4  ;;  %v2919_v2 = vmul.bf16 %v10681_v6, %v2895_v20  ;;  %v9869_v48 = vpop.eup %9868 }
 0x254   :  { %v2897_v45 = vmul.bf16 1065369472, %v9865_v60  ;;  %v3515_v49 = vunpack.c.l.bf16 %v3495_v26  ;;  %v3517_v5 = vunpack.c.h.bf16 %v3495_v26  ;;  %v3496_v18 = vand.u32 2147450879, %v3480_v41 }
 0x255   :  { %v3031_v37 = vsub.bf16 %v2918_v16, %v9266_v32  ;;  %v3481_v61 = vsub.bf16 %v3368_v21, %v9268_v3  ;;  %v3066_v7 = vunpack.c.l.bf16 %v3046_v0  ;;  %v3068_v50 = vunpack.c.h.bf16 %v3046_v0  ;;  %v9871_v51 = vpop.eup %9870  ;;  %v9271_v3 = vld [vmem:[#allocation2 + $0x2b4] ss:$8 sps:$4 sm:$0xff]   ;;  %v9275_v0 = vld [vmem:[#allocation2 + $0xc0] ss:$8 sps:$4 sm:$0xff]  }
 0x256   :  { %v3032_v25 = vsub.bf16 %v2919_v2, %v9270_v63  ;;  %v3542_v54 = vadd.f32 %v13355_v55, %v3515_v49  ;;  %v3516_v43 = vunpack.c.l.bf16 %v3496_v18  ;;  %v3518_v16 = vunpack.c.h.bf16 %v3496_v18 }
 0x257   :  { %v3047_v14 = vand.u32 2147450879, %v3031_v37  ;;  %v3497_v32 = vand.u32 2147450879, %v3481_v61  ;;  %v3107_v23 = vadd.f32 %v13357_v19, %v3066_v7  ;;  %v3369_v19 = vmul.bf16 %v10681_v6, %v3345_v35 }
 0x258   :  { %v3048_v60 = vand.u32 2147450879, %v3032_v25  ;;  %v3543_v62 = vadd.f32 %v3542_v54, %v3517_v5  ;;  %v3557_v26 = vadd.f32 %v13374_v58, %v3516_v43  ;;  %v13464_v5 = vld [vmem:[%s15595_s0 + $0xc0] ss:$8 sps:$4 sm:$0xff]   ;;  %v3322_v54 = vadd.bf16 1065369472, %v9867_v47 }
 0x259   :  { %v3069_v4 = vunpack.c.l.bf16 %v3047_v14  ;;  %v3071_v20 = vunpack.c.h.bf16 %v3047_v14  ;;  %v3519_v41 = vunpack.c.l.bf16 %v3497_v32  ;;  %v3521_v21 = vunpack.c.h.bf16 %v3497_v32  ;;  %v9873_v37 = vpop.eup %9872  ;;  %v13467_v43 = vpop.f32.mrb[120].mxu0 }
 0x25a   :  { %v3108_v63 = vadd.f32 %v3107_v23, %v3068_v50  ;;  %v3070_v55 = vunpack.c.l.bf16 %v3048_v60  ;;  %v3072_v49 = vunpack.c.h.bf16 %v3048_v60  ;;  %v9875_v18 = vpop.eup %9874  ;;  %v3558_v61 = vadd.f32 %v3557_v26, %v3518_v16  ;;  %v13473_v23 = vpop.f32.mrb[121].mxu0 }
 0x25b   :  { %v3094_v2 = vadd.f32 %v13390_v8, %v3069_v4  ;;  %v3544_v33 = vadd.f32 %v3543_v62, %v3519_v41  ;;  %v2920_v58 = vmul.bf16 %v13464_v5, %v2897_v45  ;;  %v9877_v7 = vpop.eup %9876  ;;  %v2873_v50 = vadd.bf16 1065369472, %v9869_v48  ;;  %v13469_v8 = vpop.f32.mrb[120].mxu1 }
 0x25c   :  { %v3109_v25 = vadd.f32 %v3108_v63, %v3070_v55  ;;  %v9879_v32 = vpop.eup %9878  ;;  %v3482_v62 = vsub.bf16 %v3369_v19, %v9271_v3  ;;  %v3323_v6 = vadd.bf16 1065369472, %v9871_v51  ;;  %v13475_v4 = vpop.f32.mrb[121].mxu1  ;;  %9880 = vrcp.bf16 %v3322_v54 }
 0x25d   :  { %v3095_v14 = vadd.f32 %v3094_v2, %v3071_v20  ;;  %v13471_v16 = vadd.f32 %v3544_v33, %v3521_v21  ;;  %v3033_v35 = vsub.bf16 %v2920_v58, %v9275_v0  ;;  %v2874_v20 = vadd.bf16 1065369472, %v9873_v37  ;;  %v13479_v48 = vpop.f32.mrb[122].mxu0  ;;  %v13481_v60 = vpop.f32.mrb[122].mxu1  ;;  %v16190_v0 = vld [vmem:[#allocation61_spill] sm:$0xff] }
 0x25e   :  { %v13477_v45 = vadd.f32 %v3109_v25, %v3072_v49  ;;  %v3324_v47 = vadd.bf16 1065369472, %v9875_v18  ;;  %v3498_v26 = vand.u32 2147450879, %v3482_v62  ;;  %9882 = vrcp.bf16 %v2873_v50  ;;  %v13488_v2 = vpop.f32.mrb[123].mxu0  ;;  %v13490_v37 = vpop.f32.mrb[123].mxu1 }
 0x25f   :  { %v3049_v41 = vand.u32 2147450879, %v3033_v35  ;;  %v2875_v33 = vadd.bf16 1065369472, %v9877_v7  ;;  %9884 = vrcp.bf16 %v3323_v6  ;;  %v3325_v21 = vadd.bf16 1065369472, %v9879_v32 }
 0x260   :  { %v16189_v51 = vpack.c.bf16 %v13437_v38, %v13421_v13  ;;  %v3220_v63 = vadd.f32 %v12881_v28, %v16190_v0  ;;  %v3520_v55 = vunpack.c.l.bf16 %v3498_v26  ;;  %v3522_v49 = vunpack.c.h.bf16 %v3498_v26  ;;  %v16191_v28 = vld [vmem:[#allocation20_spill] sm:$0xff]  ;;  %v16193_v26 = vld [vmem:[#allocation19_spill] sm:$0xff] }
 0x261   :  { %v3073_v18 = vunpack.c.l.bf16 %v3049_v41  ;;  %v3075_v19 = vunpack.c.h.bf16 %v3049_v41  ;;  %9886 = vrcp.bf16 %v2874_v20  ;;  %v2772_v7 = vadd.f32 %v12901_v59, %v16187_v15  ;;  %v16192_v59 = vld [vmem:[#allocation46_spill] sm:$0xff]  ;;  %v16194_v41 = vld [vmem:[#allocation55_spill] sm:$0xff] }
 0x262   :  { %v8588_v3 = vmul.bf16 3216621497, %v16189_v51  ;;  %v3246_v58 = vpack.c.bf16 %v3220_v63, %v13425_v42  ;;  %v3222_v13 = vadd.f32 %v12903_v9, %v16190_v0  ;;  %v3559_v38 = vadd.f32 %v3558_v61, %v3520_v55  ;;  %v13507_v61 = vpop.f32.mrb[124].mxu0  ;;  %v16196_v63 = vld [vmem:[#allocation28_spill] sm:$0xff] }
 0x263   :  { %v3096_v25 = vadd.f32 %v3095_v14, %v3073_v18  ;;  %9888 = vrcp.bf16 %v3324_v47  ;;  %v2776_v54 = vadd.f32 %v12929_v27, %v16191_v28  ;;  %v2797_v32 = vpack.c.bf16 %v2772_v7, %v13429_v46  ;;  %v13509_v14 = vpop.f32.mrb[124].mxu1  ;;  %v13513_v20 = vpop.f32.mrb[125].mxu0  ;;  %v16197_v18 = vld [vmem:[#allocation32_spill] sm:$0xff] }
 0x264   :  { %9890 = vrcp.bf16 %v2875_v33  ;;  %v8620_v50 = vmul.bf16 3216621497, %v3246_v58  ;;  %v3247_v62 = vpack.c.bf16 %v3222_v13, %v13433_v24  ;;  %v13501_v35 = vadd.f32 %v3559_v38, %v3522_v49  ;;  %v13515_v24 = vpop.f32.mrb[125].mxu1  ;;  %v9279_v13 = vld [vmem:[#allocation2 + $0xc4] ss:$8 sps:$4 sm:$0xff]  }
 0x265   :  { %v13503_v42 = vadd.f32 %v3096_v25, %v3075_v19  ;;  %9892 = vrcp.bf16 %v3325_v21  ;;  %v3226_v9 = vadd.f32 %v12931_v12, %v16192_v59  ;;  %v8589_v27 = vmul.bf16 3216621497, %v2797_v32  ;;  %v13523_v21 = vpop.f32.mrb[126].mxu0  ;;  %v13525_v51 = vpop.f32.mrb[126].mxu1 }
 0x266   :  { %9894 = vpow.bf16 %v8588_v3  ;;  %v8621_v6 = vmul.bf16 3216621497, %v3247_v62  ;;  %v2778_v46 = vadd.f32 %v12936_v40, %v16191_v28  ;;  %v3228_v47 = vadd.f32 %v12938_v1, %v16192_v59  ;;  %16195 = vst [vmem:[#allocation114_spill] sm:$0xff] %v13525_v51 }
 0x267   :  { %9896 = vpow.bf16 %v8620_v50  ;;  %v2780_v12 = vadd.f32 %v12945_v56, %v16193_v26  ;;  %v3230_v33 = vadd.f32 %v12947_v22, %v16194_v41  ;;  %v2782_v40 = vadd.f32 %v12961_v57, %v16193_v26  ;;  %v9881_v55 = vpop.eup %9880  ;;  %v9277_v56 = vld [vmem:[#allocation2 + $0x2c0] ss:$8 sps:$4 sm:$0xff]   ;;  %v9280_v57 = vld [vmem:[#allocation2 + $0x2c4] ss:$8 sps:$4 sm:$0xff]   ;;  %v13569_v26 = vpop.f32.mrb[127].mxu1 }
 0x268   :  { %9898 = vpow.bf16 %v8589_v27  ;;  %v3232_v3 = vadd.f32 %v12971_v11, %v16194_v41  ;;  %v13533_v1 = vadd.f32 %v13009_v31, %v16196_v63  ;;  %v13537_v19 = vadd.f32 %v13011_v52, %v16197_v18  ;;  %16201 = vst [vmem:[#allocation72_spill] sm:$0xff] %v13569_v26 }
 0x269   :  { %9900 = vpow.bf16 %v8621_v6  ;;  %v2798_v49 = vpack.c.bf16 %v2780_v12, %v2776_v54  ;;  %v3248_v22 = vpack.c.bf16 %v3230_v33, %v3226_v9  ;;  %v9883_v58 = vpop.eup %9882  ;;  %v3347_v7 = vmul.bf16 1065369472, %v9881_v55 }
 0x26a   :  { %v2799_v38 = vpack.c.bf16 %v2782_v40, %v2778_v46  ;;  %v3249_v25 = vpack.c.bf16 %v3232_v3, %v3228_v47  ;;  %v13541_v11 = vadd.f32 %v13031_v34, %v16196_v63  ;;  %v9885_v31 = vpop.eup %9884  ;;  %v2899_v50 = vmul.bf16 1065369472, %v9883_v58  ;;  %v10683_v46 = vld [vmem:[%s15595_s0 + $0xc4] ss:$8 sps:$4 sm:$0xff]  }
 0x26b   :  { %v8590_v32 = vmul.bf16 3216621497, %v2798_v49  ;;  %v8622_v62 = vmul.bf16 3216621497, %v3248_v22  ;;  %v13545_v54 = vadd.f32 %v13033_v29, %v16197_v18  ;;  %v3370_v52 = vmul.bf16 %v13464_v5, %v3347_v7  ;;  %v16198_v47 = vld [vmem:[#allocation29_spill] sm:$0xff] }
 0x26c   :  { %v3349_v9 = vmul.bf16 1065369472, %v9885_v31  ;;  %v8591_v27 = vmul.bf16 3216621497, %v2799_v38  ;;  %v8623_v6 = vmul.bf16 3216621497, %v3249_v25  ;;  %v9887_v12 = vpop.eup %9886  ;;  %v2921_v34 = vmul.bf16 %v10683_v46, %v2899_v50 }
 0x26d   :  { %9902 = vpow.bf16 %v8590_v32  ;;  %v13553_v33 = vadd.f32 %v13036_v30, %v16198_v47  ;;  %v16199_v40 = vld [vmem:[#allocation33_spill] sm:$0xff]  ;;  %v3483_v5 = vsub.bf16 %v3370_v52, %v9277_v56  ;;  %v2901_v49 = vmul.bf16 1065369472, %v9887_v12  ;;  %v9284_v22 = vld [vmem:[#allocation2 + $0xd0] ss:$8 sps:$4 sm:$0xff]   ;;  %v13561_v30 = vpop.f32.mrb[127].mxu0 }
 0x26e   :  { %v13557_v29 = vadd.f32 %v13061_v17, %v16199_v40  ;;  %v9889_v3 = vpop.eup %9888  ;;  %v3371_v55 = vmul.bf16 %v10683_v46, %v3349_v9  ;;  %9904 = vpow.bf16 %v8622_v62  ;;  %v3034_v7 = vsub.bf16 %v2921_v34, %v9279_v13  ;;  %v9286_v25 = vld [vmem:[#allocation2 + $0x2d0] ss:$8 sps:$4 sm:$0xff]   ;;  %16200 = vst [vmem:[#allocation115_spill] sm:$0xff] %v13561_v30  ;;  %v9288_v46 = vld [vmem:[#allocation2 + $0xd4] ss:$8 sps:$4 sm:$0xff]  }
 0x26f   :  { %v9891_v58 = vpop.eup %9890  ;;  %v3351_v38 = vmul.bf16 1065369472, %v9889_v3  ;;  %9906 = vpow.bf16 %v8591_v27  ;;  %v3499_v32 = vand.u32 2147450879, %v3483_v5  ;;  %v10684_v56 = vld [vmem:[%s15595_s0 + $0xd0] ss:$8 sps:$4 sm:$0xff]  }
 0x270   :  { %v9893_v50 = vpop.eup %9892  ;;  %v3484_v17 = vsub.bf16 %v3371_v55, %v9280_v57  ;;  %v2922_v52 = vmul.bf16 %v10684_v56, %v2901_v49  ;;  %v2903_v9 = vmul.bf16 1065369472, %v9891_v58  ;;  %v3050_v12 = vand.u32 2147450879, %v3034_v7  ;;  %v10685_v49 = vld [vmem:[%s15595_s0 + $0xd4] ss:$8 sps:$4 sm:$0xff]  }
 0x271   :  { %v9895_v62 = vpop.eup %9894  ;;  %v3372_v13 = vmul.bf16 %v10684_v56, %v3351_v38  ;;  %v3353_v34 = vmul.bf16 1065369472, %v9893_v50  ;;  %9908 = vpow.bf16 %v8623_v6  ;;  %v3523_v3 = vunpack.c.l.bf16 %v3499_v32 }
 0x272   :  { %v9897_v27 = vpop.eup %9896  ;;  %v3525_v31 = vunpack.c.h.bf16 %v3499_v32  ;;  %v3500_v18 = vand.u32 2147450879, %v3484_v17  ;;  %v3035_v63 = vsub.bf16 %v2922_v52, %v9284_v22  ;;  %v3074_v5 = vunpack.c.l.bf16 %v3050_v12  ;;  %v9289_v32 = vld [vmem:[#allocation2 + $0x2d4] ss:$8 sps:$4 sm:$0xff]  }
 0x273   :  { %v9899_v41 = vpop.eup %9898  ;;  %v3076_v57 = vunpack.c.h.bf16 %v3050_v12  ;;  %v3485_v55 = vsub.bf16 %v3372_v13, %v9286_v25  ;;  %v2923_v58 = vmul.bf16 %v10685_v49, %v2903_v9  ;;  %v3546_v38 = vadd.f32 %v13471_v16, %v3523_v3 }
 0x274   :  { %v9901_v7 = vpop.eup %9900  ;;  %v3524_v6 = vunpack.c.l.bf16 %v3500_v18  ;;  %v3526_v50 = vunpack.c.h.bf16 %v3500_v18  ;;  %v3051_v56 = vand.u32 2147450879, %v3035_v63  ;;  %v3111_v22 = vadd.f32 %v13477_v45, %v3074_v5 }
 0x275   :  { %v3501_v17 = vand.u32 2147450879, %v3485_v55  ;;  %v3036_v52 = vsub.bf16 %v2923_v58, %v9288_v46  ;;  %v3373_v12 = vmul.bf16 %v10685_v49, %v3353_v34  ;;  %v3547_v25 = vadd.f32 %v3546_v38, %v3525_v31  ;;  %v13575_v31 = vpop.f32.mrb[128].mxu0 }
 0x276   :  { %v3561_v13 = vadd.f32 %v13501_v35, %v3524_v6  ;;  %v3077_v59 = vunpack.c.l.bf16 %v3051_v56  ;;  %v3079_v28 = vunpack.c.h.bf16 %v3051_v56  ;;  %v3112_v9 = vadd.f32 %v3111_v22, %v3076_v57  ;;  %v13577_v35 = vpop.f32.mrb[128].mxu1 }
 0x277   :  { %v3527_v0 = vunpack.c.l.bf16 %v3501_v17  ;;  %v3529_v15 = vunpack.c.h.bf16 %v3501_v17  ;;  %v3052_v26 = vand.u32 2147450879, %v3036_v52  ;;  %v3486_v63 = vsub.bf16 %v3373_v12, %v9289_v32 }
 0x278   :  { %v9903_v30 = vpop.eup %9902  ;;  %v3562_v16 = vadd.f32 %v3561_v13, %v3526_v50  ;;  %v3098_v18 = vadd.f32 %v13503_v42, %v3077_v59  ;;  %v2876_v3 = vadd.bf16 1065369472, %v9895_v62  ;;  %v3326_v34 = vadd.bf16 1065369472, %v9897_v27  ;;  %v13583_v62 = vpop.f32.mrb[129].mxu0 }
 0x279   :  { %v9905_v51 = vpop.eup %9904  ;;  %v3548_v45 = vadd.f32 %v3547_v25, %v3527_v0  ;;  %v3078_v5 = vunpack.c.l.bf16 %v3052_v26  ;;  %v3080_v46 = vunpack.c.h.bf16 %v3052_v26  ;;  %v3502_v49 = vand.u32 2147450879, %v3486_v63  ;;  %v13585_v0 = vpop.f32.mrb[129].mxu1  ;;  %v16204_v63 = vld [vmem:[#allocation34_spill] sm:$0xff] }
 0x27a   :  { %v9907_v55 = vpop.eup %9906  ;;  %v13579_v57 = vadd.f32 %v3098_v18, %v3079_v28  ;;  %9910 = vrcp.bf16 %v2876_v3  ;;  %v2877_v58 = vadd.bf16 1065369472, %v9899_v41  ;;  %v3327_v59 = vadd.bf16 1065369472, %v9901_v7  ;;  %v13587_v56 = vpop.f32.mrb[130].mxu0 }
 0x27b   :  { %v13581_v38 = vadd.f32 %v3548_v45, %v3529_v15  ;;  %v3113_v42 = vadd.f32 %v3112_v9, %v3078_v5  ;;  %9912 = vrcp.bf16 %v3326_v34  ;;  %v3528_v27 = vunpack.c.l.bf16 %v3502_v49  ;;  %v13589_v28 = vpop.f32.mrb[130].mxu1  ;;  %v13593_v22 = vpop.f32.mrb[131].mxu0  ;;  %v16206_v45 = vld [vmem:[#allocation31_spill] sm:$0xff]  ;;  %v16207_v5 = vld [vmem:[#allocation86_spill] sm:$0xff] }
 0x27c   :  { %v9909_v26 = vpop.eup %9908  ;;  %v3530_v6 = vunpack.c.h.bf16 %v3502_v49  ;;  %9914 = vrcp.bf16 %v2877_v58  ;;  %v2878_v50 = vadd.bf16 1065369472, %v9903_v30  ;;  %v3328_v15 = vadd.bf16 1065369472, %v9905_v51  ;;  %v13595_v7 = vpop.f32.mrb[131].mxu1  ;;  %v16209_v49 = vld [vmem:[#allocation84_spill] sm:$0xff] }
 0x27d   :  { %v13591_v32 = vadd.f32 %v3113_v42, %v3080_v46  ;;  %9916 = vrcp.bf16 %v3327_v59  ;;  %v2879_v41 = vadd.bf16 1065369472, %v9907_v55  ;;  %v3563_v17 = vadd.f32 %v3562_v16, %v3528_v27  ;;  %v16203_v16 = vld [vmem:[#allocation30_spill] sm:$0xff]  ;;  %v13622_v34 = vpop.f32.mrb[132].mxu1  ;;  %v16211_v59 = vld [vmem:[#allocation87_spill] sm:$0xff]  ;;  %v16212_v27 = vld [vmem:[#allocation88_spill] sm:$0xff] }
 0x27e   :  { %9918 = vrcp.bf16 %v2878_v50  ;;  %v3329_v52 = vadd.bf16 1065369472, %v9909_v26  ;;  %v16202_v12 = vpack.c.bf16 %v13553_v33, %v13533_v1  ;;  %v4134_v25 = vpack.c.bf16 %v13557_v29, %v13537_v19  ;;  %v13628_v42 = vpop.f32.mrb[133].mxu1  ;;  %v16213_v50 = vld [vmem:[#allocation36_spill] sm:$0xff] }
 0x27f   :  { %9920 = vrcp.bf16 %v3328_v15  ;;  %v3612_v13 = vadd.f32 %v13065_v39, %v16198_v47  ;;  %v4062_v51 = vadd.f32 %v13067_v10, %v16199_v40  ;;  %v13606_v9 = vadd.f32 %v3563_v17, %v3530_v6  ;;  %v16205_v10 = vld [vmem:[#allocation81_spill] sm:$0xff]  ;;  %16210 = vst [vmem:[#allocation116_spill] sm:$0xff] %v13628_v42  ;;  %v9298_v40 = vld [vmem:[#allocation2 + $0x2f0] ss:$8 sps:$4 sm:$0xff]  }
 0x280   :  { %v8640_v30 = vmul.bf16 3216621497, %v16202_v12  ;;  %9922 = vrcp.bf16 %v2879_v41  ;;  %v3616_v18 = vadd.f32 %v13099_v36, %v16203_v16  ;;  %v4066_v1 = vadd.f32 %v13101_v53, %v16204_v63  ;;  %v13620_v36 = vpop.f32.mrb[132].mxu0  ;;  %v16214_v15 = vld [vmem:[#allocation85_spill] sm:$0xff] }
 0x281   :  { %9924 = vrcp.bf16 %v3329_v52  ;;  %v8672_v33 = vmul.bf16 3216621497, %v4134_v25  ;;  %v3685_v3 = vpack.c.bf16 %v3612_v13, %v13541_v11  ;;  %v4135_v19 = vpack.c.bf16 %v4062_v51, %v13545_v54  ;;  %v16208_v11 = vld [vmem:[#allocation35_spill] sm:$0xff]  ;;  %v13626_v58 = vpop.f32.mrb[133].mxu0  ;;  %v13640_v52 = vpop.f32.mrb[134].mxu1  ;;  %v16218_v13 = vld [vmem:[#allocation89_spill] sm:$0xff] }
 0x282   :  { %9926 = vpow.bf16 %v8640_v30  ;;  %v3618_v39 = vadd.f32 %v13106_v44, %v16203_v16  ;;  %v4068_v29 = vadd.f32 %v16205_v10, %v16204_v63  ;;  %v3620_v46 = vadd.f32 %v16207_v5, %v16206_v45  ;;  %v13638_v17 = vpop.f32.mrb[134].mxu0  ;;  %16216 = vst [vmem:[#allocation117_spill] sm:$0xff] %v13640_v52  ;;  %v16217_v25 = vld [vmem:[#allocation39_spill] sm:$0xff]  ;;  %v9290_v5 = vld [vmem:[#allocation2 + $0xe0] ss:$8 sps:$4 sm:$0xff]  }
 0x283   :  { %9928 = vpow.bf16 %v8672_v33  ;;  %v8641_v53 = vmul.bf16 3216621497, %v3685_v3  ;;  %v8673_v55 = vmul.bf16 3216621497, %v4135_v19  ;;  %v4070_v54 = vadd.f32 %v16209_v49, %v16208_v11  ;;  %16215 = vst [vmem:[#allocation42_spill] sm:$0xff] %v13638_v17  ;;  %v13650_v3 = vpop.f32.mrb[135].mxu0 }
 0x284   :  { %v3686_v44 = vpack.c.bf16 %v3620_v46, %v3616_v18  ;;  %v3622_v26 = vadd.f32 %v16211_v59, %v16206_v45  ;;  %v4072_v6 = vadd.f32 %v16212_v27, %v16208_v11  ;;  %v13636_v41 = vadd.f32 %v16214_v15, %v16213_v50  ;;  %v16219_v18 = vld [vmem:[#allocation90_spill] sm:$0xff]  ;;  %16220 = vst [vmem:[#allocation76_spill] sm:$0xff] %v13650_v3  ;;  %v16221_v15 = vld [vmem:[#allocation91_spill] sm:$0xff] }
 0x285   :  { %v9911_v12 = vpop.eup %9910  ;;  %9930 = vpow.bf16 %v8641_v53  ;;  %v4136_v30 = vpack.c.bf16 %v4070_v54, %v4066_v1  ;;  %v13644_v51 = vadd.f32 %v16218_v13, %v16217_v25  ;;  %v13648_v33 = vadd.f32 %v16219_v18, %v16213_v50  ;;  %v9292_v53 = vld [vmem:[#allocation2 + $0x2e0] ss:$8 sps:$4 sm:$0xff]   ;;  %v9294_v45 = vld [vmem:[#allocation2 + $0xe4] ss:$8 sps:$4 sm:$0xff]   ;;  %v9296_v16 = vld [vmem:[#allocation2 + $0xf0] ss:$8 sps:$4 sm:$0xff]  }
 0x286   :  { %v9913_v19 = vpop.eup %9912  ;;  %v2905_v10 = vmul.bf16 1065369472, %v9911_v12  ;;  %9932 = vpow.bf16 %v8673_v55  ;;  %v8642_v46 = vmul.bf16 3216621497, %v3686_v44  ;;  %v3687_v49 = vpack.c.bf16 %v3622_v26, %v3618_v39  ;;  %v10686_v18 = vld [vmem:[%s15595_s0 + $0xe0] ss:$8 sps:$4 sm:$0xff]  }
 0x287   :  { %v9915_v59 = vpop.eup %9914  ;;  %v3355_v27 = vmul.bf16 1065369472, %v9913_v19  ;;  %v8674_v1 = vmul.bf16 3216621497, %v4136_v30  ;;  %v4137_v54 = vpack.c.bf16 %v4072_v6, %v4068_v29  ;;  %v13654_v13 = vadd.f32 %v16221_v15, %v16217_v25  ;;  %v9295_v19 = vld [vmem:[#allocation2 + $0x2e4] ss:$8 sps:$4 sm:$0xff]  }
 0x288   :  { %v9917_v11 = vpop.eup %9916  ;;  %v2924_v50 = vmul.bf16 %v10686_v18, %v2905_v10  ;;  %v2907_v12 = vmul.bf16 1065369472, %v9915_v59  ;;  %9934 = vpow.bf16 %v8642_v46  ;;  %v8643_v55 = vmul.bf16 3216621497, %v3687_v49  ;;  %v10687_v15 = vld [vmem:[%s15595_s0 + $0xe4] ss:$8 sps:$4 sm:$0xff]  }
 0x289   :  { %v9919_v39 = vpop.eup %9918  ;;  %v3374_v44 = vmul.bf16 %v10686_v18, %v3355_v27  ;;  %v3357_v26 = vmul.bf16 1065369472, %v9917_v11  ;;  %9936 = vpow.bf16 %v8674_v1  ;;  %v8675_v29 = vmul.bf16 3216621497, %v4137_v54 }
 0x28a   :  { %v9921_v6 = vpop.eup %9920  ;;  %v3037_v30 = vsub.bf16 %v2924_v50, %v9290_v5  ;;  %v2925_v25 = vmul.bf16 %v10687_v15, %v2907_v12  ;;  %v2909_v63 = vmul.bf16 1065369472, %v9919_v39  ;;  %9938 = vpow.bf16 %v8643_v55  ;;  %v10688_v50 = vld [vmem:[%s15595_s0 + $0xf0] ss:$8 sps:$4 sm:$0xff]  }
 0x28b   :  { %v9923_v10 = vpop.eup %9922  ;;  %v3487_v59 = vsub.bf16 %v3374_v44, %v9292_v53  ;;  %v3375_v46 = vmul.bf16 %v10687_v15, %v3357_v26  ;;  %v3359_v49 = vmul.bf16 1065369472, %v9921_v6  ;;  %9940 = vpow.bf16 %v8675_v29 }
 0x28c   :  { %v9925_v11 = vpop.eup %9924  ;;  %v3053_v27 = vand.u32 2147450879, %v3037_v30  ;;  %v3038_v1 = vsub.bf16 %v2925_v25, %v9294_v45  ;;  %v2926_v5 = vmul.bf16 %v10688_v50, %v2909_v63  ;;  %v2911_v54 = vmul.bf16 1065369472, %v9923_v10  ;;  %v13665_v25 = vpop.f32.mrb[135].mxu1 }
 0x28d   :  { %v9927_v18 = vpop.eup %9926  ;;  %v3503_v12 = vand.u32 2147450879, %v3487_v59  ;;  %v3488_v39 = vsub.bf16 %v3375_v46, %v9295_v19  ;;  %v3376_v47 = vmul.bf16 %v10688_v50, %v3359_v49  ;;  %v3361_v55 = vmul.bf16 1065369472, %v9925_v11  ;;  %16222 = vst [vmem:[#allocation78_spill] sm:$0xff] %v13665_v25 }
 0x28e   :  { %v9929_v3 = vpop.eup %9928  ;;  %v3081_v53 = vunpack.c.l.bf16 %v3053_v27  ;;  %v3083_v44 = vunpack.c.h.bf16 %v3053_v27  ;;  %v3054_v26 = vand.u32 2147450879, %v3038_v1  ;;  %v3039_v6 = vsub.bf16 %v2926_v5, %v9296_v16 }
 0x28f   :  { %v3531_v29 = vunpack.c.l.bf16 %v3503_v12  ;;  %v3533_v15 = vunpack.c.h.bf16 %v3503_v12  ;;  %v3504_v30 = vand.u32 2147450879, %v3488_v39  ;;  %v3489_v45 = vsub.bf16 %v3376_v47, %v9298_v40  ;;  %v9300_v47 = vld [vmem:[#allocation2 + $0xf4] ss:$8 sps:$4 sm:$0xff]  }
 0x290   :  { %v9931_v52 = vpop.eup %9930  ;;  %v3100_v63 = vadd.f32 %v13579_v57, %v3081_v53  ;;  %v3082_v10 = vunpack.c.l.bf16 %v3054_v26  ;;  %v3084_v17 = vunpack.c.h.bf16 %v3054_v26  ;;  %v3055_v59 = vand.u32 2147450879, %v3039_v6  ;;  %v9301_v40 = vld [vmem:[#allocation2 + $0x2f4] ss:$8 sps:$4 sm:$0xff]  }
 0x291   :  { %v9933_v19 = vpop.eup %9932  ;;  %v3550_v46 = vadd.f32 %v13581_v38, %v3531_v29  ;;  %v3532_v49 = vunpack.c.l.bf16 %v3504_v30  ;;  %v3534_v11 = vunpack.c.h.bf16 %v3504_v30  ;;  %v3505_v27 = vand.u32 2147450879, %v3489_v45  ;;  %v10689_v38 = vld [vmem:[%s15595_s0 + $0xf4] ss:$8 sps:$4 sm:$0xff]  }
 0x292   :  { %v3101_v1 = vadd.f32 %v3100_v63, %v3083_v44  ;;  %v3115_v16 = vadd.f32 %v13591_v32, %v3082_v10  ;;  %v3085_v50 = vunpack.c.l.bf16 %v3055_v59  ;;  %v3087_v5 = vunpack.c.h.bf16 %v3055_v59  ;;  %v13674_v59 = vpop.f32.mrb[136].mxu0 }
 0x293   :  { %v9935_v12 = vpop.eup %9934  ;;  %v3551_v39 = vadd.f32 %v3550_v46, %v3533_v15  ;;  %v3565_v57 = vadd.f32 %v13606_v9, %v3532_v49  ;;  %v3535_v53 = vunpack.c.l.bf16 %v3505_v27  ;;  %v3537_v26 = vunpack.c.h.bf16 %v3505_v27  ;;  %v13676_v15 = vpop.f32.mrb[136].mxu1 }
 0x294   :  { %v9937_v6 = vpop.eup %9936  ;;  %v3116_v25 = vadd.f32 %v3115_v16, %v3084_v17  ;;  %v3102_v42 = vadd.f32 %v3101_v1, %v3085_v50  ;;  %v2927_v44 = vmul.bf16 %v10689_v38, %v2911_v54  ;;  %v3377_v29 = vmul.bf16 %v10689_v38, %v3361_v55  ;;  %v13678_v1 = vpop.f32.mrb[137].mxu0  ;;  %v16224_v50 = vld [vmem:[#allocation96_spill] sm:$0xff] }
 0x295   :  { %v9939_v32 = vpop.eup %9938  ;;  %v3566_v30 = vadd.f32 %v3565_v57, %v3534_v11  ;;  %v3552_v45 = vadd.f32 %v3551_v39, %v3535_v53  ;;  %v3764_v63 = vadd.bf16 1065369472, %v9927_v18  ;;  %v4214_v10 = vadd.bf16 1065369472, %v9929_v3  ;;  %v13680_v16 = vpop.f32.mrb[137].mxu1 }
 0x296   :  { %v9941_v9 = vpop.eup %9940  ;;  %v3103_v46 = vadd.f32 %v3102_v42, %v3087_v5  ;;  %v3040_v49 = vsub.bf16 %v2927_v44, %v9300_v47  ;;  %v3490_v17 = vsub.bf16 %v3377_v29, %v9301_v40  ;;  %v3765_v27 = vadd.bf16 1065369472, %v9931_v52  ;;  %16223 = vst [vmem:[#allocation75_spill] sm:$0xff] %v13680_v16  ;;  %v13683_v57 = vpop.f32.mrb[138].mxu0  ;;  %v16230_v29 = vld [vmem:[#allocation37_spill] sm:$0xff] }
 0x297   :  { %v3553_v54 = vadd.f32 %v3552_v45, %v3537_v26  ;;  %9942 = vrcp.bf16 %v3764_v63  ;;  %v4215_v55 = vadd.bf16 1065369472, %v9933_v19  ;;  %v3766_v11 = vadd.bf16 1065369472, %v9935_v12  ;;  %16225 = vst [vmem:[#allocation82_spill] sm:$0xff] %v13683_v57  ;;  %v13685_v53 = vpop.f32.mrb[138].mxu1 }
 0x298   :  { %v3119_v18 = vadd.f32 %v3103_v46, %v16224_v50  ;;  %v3056_v3 = vand.u32 2147450879, %v3040_v49  ;;  %v3506_v39 = vand.u32 2147450879, %v3490_v17  ;;  %9944 = vrcp.bf16 %v4214_v10  ;;  %16226 = vst [vmem:[#allocation79_spill] sm:$0xff] %v13685_v53  ;;  %v13689_v19 = vpop.f32.mrb[139].mxu0 }
 0x299   :  { %9946 = vrcp.bf16 %v3765_v27  ;;  %v4216_v42 = vadd.bf16 1065369472, %v9937_v6  ;;  %v3767_v52 = vadd.bf16 1065369472, %v9939_v32  ;;  %v4217_v5 = vadd.bf16 1065369472, %v9941_v9 }
 0x29a   :  { %v13687_v47 = vadd.f32 %v3553_v54, %v3119_v18  ;;  %v3086_v40 = vunpack.c.l.bf16 %v3056_v3  ;;  %v3088_v26 = vunpack.c.h.bf16 %v3056_v3  ;;  %v3536_v38 = vunpack.c.l.bf16 %v3506_v39  ;;  %16228 = vst [vmem:[#allocation86_spill] sm:$0xff] %v13689_v19  ;;  %v13691_v12 = vpop.f32.mrb[139].mxu1  ;;  %v16231_v45 = vld [vmem:[#allocation92_spill] sm:$0xff]  ;;  %v16233_v46 = vld [vmem:[#allocation93_spill] sm:$0xff]  ;;  %v16234_v9 = vld [vmem:[#allocation94_spill] sm:$0xff]  ;;  %v13703_v18 = vpop.f32.mrb[140].mxu0 }
 0x29b   :  { %16229 = vst [vmem:[#allocation84_spill] sm:$0xff] %v13691_v12  ;;  %v3538_v44 = vunpack.c.h.bf16 %v3506_v39  ;;  %9948 = vrcp.bf16 %v4215_v55  ;;  %v3630_v63 = vadd.f32 %v16231_v45, %v16230_v29  ;;  %v16232_v10 = vld [vmem:[#allocation40_spill] sm:$0xff]  ;;  %v3632_v17 = vadd.f32 %v16234_v9, %v16230_v29  ;;  %v16235_v50 = vld [vmem:[#allocation95_spill] sm:$0xff]  ;;  %16236 = vst [vmem:[#allocation87_spill] sm:$0xff] %v13703_v18  ;;  %v13705_v3 = vpop.f32.mrb[140].mxu1 }
 0x29c   :  { %16227 = vst [vmem:[#allocation81_spill] sm:$0xff] %v13687_v47  ;;  %v4080_v49 = vadd.f32 %v16233_v46, %v16232_v10  ;;  %v3117_v6 = vadd.f32 %v3116_v25, %v3086_v40  ;;  %v3567_v32 = vadd.f32 %v3566_v30, %v3536_v38  ;;  %9950 = vrcp.bf16 %v3766_v11  ;;  %16237 = vst [vmem:[#allocation88_spill] sm:$0xff] %v13705_v3  ;;  %v13708_v30 = vpop.f32.mrb[141].mxu0  ;;  %v13710_v11 = vpop.f32.mrb[141].mxu1  ;;  %v16240_v40 = vld [vmem:[#allocation100_spill] sm:$0xff]  ;;  %v16241_v46 = vld [vmem:[#allocation41_spill] sm:$0xff] }
 0x29d   :  { %9952 = vrcp.bf16 %v4216_v42  ;;  %v3688_v27 = vpack.c.bf16 %v3630_v63, %v13636_v41  ;;  %v4082_v55 = vadd.f32 %v16235_v50, %v16232_v10  ;;  %v3689_v25 = vpack.c.bf16 %v3632_v17, %v13648_v33  ;;  %16238 = vst [vmem:[#allocation85_spill] sm:$0xff] %v13708_v30  ;;  %16239 = vst [vmem:[#allocation89_spill] sm:$0xff] %v13710_v11  ;;  %v16247_v17 = vld [vmem:[#allocation102_spill] sm:$0xff]  ;;  %v16249_v50 = vld [vmem:[#allocation44_spill] sm:$0xff] }
 0x29e   :  { %v4138_v54 = vpack.c.bf16 %v4080_v49, %v13644_v51  ;;  %v3118_v39 = vadd.f32 %v3117_v6, %v3088_v26  ;;  %v3568_v45 = vadd.f32 %v3567_v32, %v3538_v44  ;;  %9954 = vrcp.bf16 %v3767_v52  ;;  %v16242_v49 = vld [vmem:[#allocation98_spill] sm:$0xff]  ;;  %v16243_v26 = vld [vmem:[#allocation48_spill] sm:$0xff]  ;;  %v16244_v44 = vld [vmem:[#allocation99_spill] sm:$0xff]  ;;  %v13718_v6 = vpop.f32.mrb[142].mxu0 }
 0x29f   :  { %9956 = vrcp.bf16 %v4217_v5  ;;  %v8644_v41 = vmul.bf16 3216621497, %v3688_v27  ;;  %v4139_v51 = vpack.c.bf16 %v4082_v55, %v13654_v13  ;;  %v8645_v63 = vmul.bf16 3216621497, %v3689_v25  ;;  %16245 = vst [vmem:[#allocation90_spill] sm:$0xff] %v13718_v6  ;;  %v16246_v32 = vld [vmem:[#allocation101_spill] sm:$0xff] }
 0x2a0   :  { %v8676_v42 = vmul.bf16 3216621497, %v4138_v54  ;;  %v3120_v38 = vadd.f32 %v3118_v39, %v16240_v40  ;;  %v3636_v9 = vadd.f32 %v16242_v49, %v16241_v46  ;;  %v4086_v52 = vadd.f32 %v16244_v44, %v16243_v26  ;;  %v16250_v55 = vld [vmem:[#allocation103_spill] sm:$0xff]  ;;  %v16251_v25 = vld [vmem:[#allocation49_spill] sm:$0xff] }
 0x2a1   :  { %9958 = vpow.bf16 %v8644_v41  ;;  %v8677_v33 = vmul.bf16 3216621497, %v4139_v51  ;;  %v3638_v5 = vadd.f32 %v16246_v32, %v16241_v46  ;;  %v4088_v27 = vadd.f32 %v16247_v17, %v16243_v26  ;;  %v16252_v40 = vld [vmem:[#allocation97_spill] sm:$0xff]  ;;  %v16253_v51 = vld [vmem:[#allocation104_spill] sm:$0xff] }
 0x2a2   :  { %v9943_v13 = vpop.eup %9942  ;;  %v13724_v54 = vadd.f32 %v3568_v45, %v3120_v38  ;;  %9960 = vpow.bf16 %v8676_v42  ;;  %v3640_v39 = vadd.f32 %v16250_v55, %v16249_v50  ;;  %v4090_v49 = vadd.f32 %v16252_v40, %v16251_v25  ;;  %v9302_v41 = vld [vmem:[#allocation2 + $0x480] ss:$8 sps:$4 sm:$0xff]  }
 0x2a3   :  { %v9945_v44 = vpop.eup %9944  ;;  %v3781_v10 = vmul.bf16 1065369472, %v9943_v13  ;;  %9962 = vpow.bf16 %v8645_v63  ;;  %v3642_v32 = vadd.f32 %v16253_v51, %v16249_v50  ;;  %v16254_v46 = vld [vmem:[#allocation105_spill] sm:$0xff] }
 0x2a4   :  { %16248 = vst [vmem:[#allocation91_spill] sm:$0xff] %v13724_v54  ;;  %v4092_v17 = vadd.f32 %v16254_v46, %v16251_v25  ;;  %v9947_v26 = vpop.eup %9946  ;;  %v4231_v45 = vmul.bf16 1065369472, %v9945_v44  ;;  %v9304_v38 = vld [vmem:[#allocation2 + $0x680] ss:$8 sps:$4 sm:$0xff]   ;;  %9964 = vpow.bf16 %v8677_v33  ;;  %v3690_v42 = vpack.c.bf16 %v3640_v39, %v3636_v9 }
 0x2a5   :  { %v4140_v29 = vpack.c.bf16 %v4090_v49, %v4086_v52  ;;  %v10690_v55 = vld [vmem:[%s15595_s0 + $0x80] ss:$8 sps:$4 sm:$0xff]   ;;  %v3783_v13 = vmul.bf16 1065369472, %v9947_v26  ;;  %v9306_v54 = vld [vmem:[#allocation2 + $0x484] ss:$8 sps:$4 sm:$0xff]   ;;  %v3691_v63 = vpack.c.bf16 %v3642_v32, %v3638_v5 }
 0x2a6   :  { %v3812_v40 = vmul.bf16 %v10690_v55, %v3781_v10  ;;  %v4141_v6 = vpack.c.bf16 %v4092_v17, %v4088_v27  ;;  %v9949_v11 = vpop.eup %9948  ;;  %v4262_v51 = vmul.bf16 %v10690_v55, %v4231_v45  ;;  %v8646_v50 = vmul.bf16 3216621497, %v3690_v42  ;;  %v16255_v46 = vld [vmem:[#allocation50_spill] sm:$0xff]  ;;  %v9308_v17 = vld [vmem:[#allocation2 + $0x490] ss:$8 sps:$4 sm:$0xff]  }
 0x2a7   :  { %v8678_v30 = vmul.bf16 3216621497, %v4140_v29  ;;  %v16256_v25 = vld [vmem:[#allocation106_spill] sm:$0xff]  ;;  %v9951_v33 = vpop.eup %9950  ;;  %v4233_v10 = vmul.bf16 1065369472, %v9949_v11 }
 0x2a8   :  { %v13739_v44 = vadd.f32 %v16256_v25, %v16255_v46  ;;  %v3925_v9 = vsub.bf16 %v3812_v40, %v9302_v41  ;;  %v10691_v52 = vld [vmem:[%s15595_s0 + $0x84] ss:$8 sps:$4 sm:$0xff]   ;;  %v13744_v49 = vmul.bf16 3216621497, %v3691_v63  ;;  %v9953_v5 = vpop.eup %9952  ;;  %v4375_v27 = vsub.bf16 %v4262_v51, %v9304_v38  ;;  %v13748_v40 = vpop.f32.mrb[142].mxu1 }
 0x2a9   :  { %v3813_v39 = vmul.bf16 %v10691_v52, %v3783_v13  ;;  %v9307_v26 = vld [vmem:[#allocation2 + $0x684] ss:$8 sps:$4 sm:$0xff]   ;;  %v3785_v32 = vmul.bf16 1065369472, %v9951_v33  ;;  %9966 = vpow.bf16 %v8646_v50  ;;  %v13746_v29 = vmul.bf16 3216621497, %v4141_v6  ;;  %v9955_v25 = vpop.eup %9954 }
 0x2aa   :  { %v3941_v45 = vand.u32 2147450879, %v3925_v9  ;;  %v4263_v41 = vmul.bf16 %v10691_v52, %v4233_v10  ;;  %v4235_v55 = vmul.bf16 1065369472, %v9953_v5  ;;  %16257 = vst [vmem:[#allocation96_spill] sm:$0xff] %v13748_v40  ;;  %v9957_v3 = vpop.eup %9956  ;;  %9968 = vpow.bf16 %v8678_v30  ;;  %v13753_v9 = vpop.f32.mrb[143].mxu0 }
 0x2ab   :  { %v3926_v42 = vsub.bf16 %v3813_v39, %v9306_v54  ;;  %v4391_v13 = vand.u32 2147450879, %v4375_v27  ;;  %v10692_v11 = vld [vmem:[%s15595_s0 + $0x90] ss:$8 sps:$4 sm:$0xff]   ;;  %v3787_v51 = vmul.bf16 1065369472, %v9955_v25 }
 0x2ac   :  { %v3814_v63 = vmul.bf16 %v10692_v11, %v3785_v32  ;;  %v9310_v38 = vld [vmem:[#allocation2 + $0x690] ss:$8 sps:$4 sm:$0xff]   ;;  %v3957_v50 = vunpack.c.l.bf16 %v3941_v45  ;;  %v3959_v6 = vunpack.c.h.bf16 %v3941_v45  ;;  %v4376_v18 = vsub.bf16 %v4263_v41, %v9307_v26  ;;  %16258 = vst [vmem:[#allocation92_spill] sm:$0xff] %v13753_v9  ;;  %v13755_v54 = vpop.f32.mrb[143].mxu1  ;;  %v9959_v52 = vpop.eup %9958  ;;  %v9312_v40 = vld [vmem:[#allocation2 + $0x494] ss:$8 sps:$4 sm:$0xff]  }
 0x2ad   :  { %v3942_v33 = vand.u32 2147450879, %v3926_v42  ;;  %16259 = vst [vmem:[#allocation93_spill] sm:$0xff] %v13755_v54  ;;  %v4407_v39 = vunpack.c.l.bf16 %v4391_v13  ;;  %v4409_v10 = vunpack.c.h.bf16 %v4391_v13  ;;  %v4264_v27 = vmul.bf16 %v10692_v11, %v4235_v55  ;;  %v9961_v12 = vpop.eup %9960  ;;  %v10693_v26 = vld [vmem:[%s15595_s0 + $0x94] ss:$8 sps:$4 sm:$0xff]  }
 0x2ae   :  { %v3927_v5 = vsub.bf16 %v3814_v63, %v9308_v17  ;;  %v3989_v19 = vadd.f32 %v3959_v6, %v3957_v50  ;;  %v4392_v25 = vand.u32 2147450879, %v4376_v18  ;;  %v9963_v30 = vpop.eup %9962  ;;  %v3815_v41 = vmul.bf16 %v10693_v26, %v3787_v51  ;;  %v9313_v11 = vld [vmem:[#allocation2 + $0x694] ss:$8 sps:$4 sm:$0xff]  }
 0x2af   :  { %v3958_v32 = vunpack.c.l.bf16 %v3942_v33  ;;  %v3960_v53 = vunpack.c.h.bf16 %v3942_v33  ;;  %v4439_v47 = vadd.f32 %v4409_v10, %v4407_v39  ;;  %v4377_v42 = vsub.bf16 %v4264_v27, %v9310_v38  ;;  %v9965_v54 = vpop.eup %9964  ;;  %v13760_v38 = vpop.f32.mrb[144].mxu0 }
 0x2b0   :  { %v3943_v45 = vand.u32 2147450879, %v3927_v5  ;;  %v4408_v13 = vunpack.c.l.bf16 %v4392_v25  ;;  %v4410_v17 = vunpack.c.h.bf16 %v4392_v25  ;;  %v4237_v55 = vmul.bf16 1065369472, %v9957_v3  ;;  %v13762_v5 = vpop.f32.mrb[144].mxu1 }
 0x2b1   :  { %v4004_v9 = vadd.f32 %v3960_v53, %v3958_v32  ;;  %v4393_v6 = vand.u32 2147450879, %v4377_v42  ;;  %v3928_v33 = vsub.bf16 %v3815_v41, %v9312_v40  ;;  %v3768_v39 = vadd.bf16 1065369472, %v9959_v52  ;;  %v13764_v32 = vpop.f32.mrb[145].mxu0  ;;  %v13766_v3 = vpop.f32.mrb[145].mxu1 }
 0x2b2   :  { %v3961_v63 = vunpack.c.l.bf16 %v3943_v45  ;;  %v3963_v50 = vunpack.c.h.bf16 %v3943_v45  ;;  %v4454_v18 = vadd.f32 %v4410_v17, %v4408_v13  ;;  %v4265_v57 = vmul.bf16 %v10693_v26, %v4237_v55  ;;  %16260 = vst [vmem:[#allocation94_spill] sm:$0xff] %v13764_v32  ;;  %16261 = vst [vmem:[#allocation95_spill] sm:$0xff] %v13766_v3  ;;  %v13770_v13 = vpop.f32.mrb[146].mxu0 }
 0x2b3   :  { %v4218_v10 = vadd.bf16 1065369472, %v9961_v12  ;;  %v4411_v51 = vunpack.c.l.bf16 %v4393_v6  ;;  %v4413_v16 = vunpack.c.h.bf16 %v4393_v6  ;;  %v3944_v53 = vand.u32 2147450879, %v3928_v33  ;;  %16262 = vst [vmem:[#allocation100_spill] sm:$0xff] %v13770_v13  ;;  %v16264_v6 = vld [vmem:[#allocation54_spill] sm:$0xff] }
 0x2b4   :  { %v3990_v27 = vadd.f32 %v3989_v19, %v3961_v63  ;;  %v9967_v25 = vpop.eup %9966  ;;  %v4378_v45 = vsub.bf16 %v4265_v57, %v9313_v11  ;;  %9970 = vrcp.bf16 %v3768_v39  ;;  %v3769_v40 = vadd.bf16 1065369472, %v9963_v30  ;;  %v13772_v19 = vpop.f32.mrb[146].mxu1  ;;  %v16265_v33 = vld [vmem:[#allocation107_spill] sm:$0xff] }
 0x2b5   :  { %v4219_v42 = vadd.bf16 1065369472, %v9965_v54  ;;  %v4440_v12 = vadd.f32 %v4439_v47, %v4411_v51  ;;  %v3962_v52 = vunpack.c.l.bf16 %v3944_v53  ;;  %v3964_v41 = vunpack.c.h.bf16 %v3944_v53  ;;  %16263 = vst [vmem:[#allocation98_spill] sm:$0xff] %v13772_v19  ;;  %v9969_v17 = vpop.eup %9968  ;;  %v13776_v57 = vpop.f32.mrb[147].mxu0  ;;  %v16269_v53 = vld [vmem:[#allocation109_spill] sm:$0xff] }
 0x2b6   :  { %v13768_v26 = vadd.f32 %v3990_v27, %v3963_v50  ;;  %v4394_v55 = vand.u32 2147450879, %v4378_v45  ;;  %9972 = vrcp.bf16 %v4218_v10  ;;  %v3770_v63 = vadd.bf16 1065369472, %v9967_v25  ;;  %16266 = vst [vmem:[#allocation99_spill] sm:$0xff] %v13776_v57  ;;  %v13778_v30 = vpop.f32.mrb[147].mxu1 }
 0x2b7   :  { %v4096_v3 = vadd.f32 %v16265_v33, %v16264_v6  ;;  %16267 = vst [vmem:[#allocation101_spill] sm:$0xff] %v13778_v30  ;;  %v13780_v54 = vadd.f32 %v4440_v12, %v4413_v16  ;;  %v4005_v47 = vadd.f32 %v4004_v9, %v3962_v52  ;;  %9974 = vrcp.bf16 %v3769_v40  ;;  %v16268_v27 = vld [vmem:[#allocation108_spill] sm:$0xff]  ;;  %v16270_v45 = vld [vmem:[#allocation51_spill] sm:$0xff]  ;;  %v16271_v33 = vld [vmem:[#allocation110_spill] sm:$0xff] }
 0x2b8   :  { %v4220_v11 = vadd.bf16 1065369472, %v9969_v17  ;;  %v4412_v50 = vunpack.c.l.bf16 %v4394_v55  ;;  %v4414_v39 = vunpack.c.h.bf16 %v4394_v55  ;;  %9976 = vrcp.bf16 %v4219_v42  ;;  %v16272_v9 = vld [vmem:[#allocation57_spill] sm:$0xff]  ;;  %v16273_v40 = vld [vmem:[#allocation111_spill] sm:$0xff]  ;;  %v16274_v52 = vld [vmem:[#allocation56_spill] sm:$0xff] }
 0x2b9   :  { %v3648_v51 = vadd.f32 %v16268_v27, %v16255_v46  ;;  %v13784_v10 = vadd.f32 %v4005_v47, %v3964_v41  ;;  %9978 = vrcp.bf16 %v3770_v63  ;;  %v4098_v25 = vadd.f32 %v16269_v53, %v16264_v6  ;;  %v16275_v17 = vld [vmem:[#allocation66_spill] sm:$0xff]  ;;  %v16277_v47 = vld [vmem:[#allocation67_spill] sm:$0xff]  ;;  %v13800_v53 = vpop.f32.mrb[148].mxu0 }
 0x2ba   :  { %v3650_v30 = vadd.f32 %v16271_v33, %v16270_v45  ;;  %v4455_v16 = vadd.f32 %v4454_v18, %v4412_v50  ;;  %9980 = vrcp.bf16 %v4220_v11  ;;  %v4100_v12 = vadd.f32 %v16273_v40, %v16272_v9  ;;  %v16276_v63 = vld [vmem:[#allocation58_spill] sm:$0xff]  ;;  %16278 = vst [vmem:[#allocation102_spill] sm:$0xff] %v13800_v53  ;;  %v13802_v18 = vpop.f32.mrb[148].mxu1  ;;  %v13807_v40 = vpop.f32.mrb[149].mxu0 }
 0x2bb   :  { %v3652_v42 = vadd.f32 %v16274_v52, %v16270_v45  ;;  %9982 = vpow.bf16 %v13744_v49  ;;  %v4102_v55 = vadd.f32 %v16275_v17, %v16272_v9  ;;  %v3656_v27 = vadd.f32 %v16277_v47, %v16276_v63  ;;  %16279 = vst [vmem:[#allocation103_spill] sm:$0xff] %v13802_v18  ;;  %16280 = vst [vmem:[#allocation97_spill] sm:$0xff] %v13807_v40  ;;  %v13809_v49 = vpop.f32.mrb[149].mxu1  ;;  %v16282_v52 = vld [vmem:[#allocation62_spill] sm:$0xff]  ;;  %v16283_v17 = vld [vmem:[#allocation68_spill] sm:$0xff]  ;;  %v13815_v6 = vpop.f32.mrb[150].mxu0 }
 0x2bc   :  { %v3692_v41 = vpack.c.bf16 %v3650_v30, %v13739_v44  ;;  %v13804_v11 = vadd.f32 %v4455_v16, %v4414_v39  ;;  %9984 = vpow.bf16 %v13746_v29  ;;  %v4142_v50 = vpack.c.bf16 %v4100_v12, %v4096_v3  ;;  %16281 = vst [vmem:[#allocation104_spill] sm:$0xff] %v13809_v49  ;;  %v16284_v47 = vld [vmem:[#allocation112_spill] sm:$0xff]  ;;  %16285 = vst [vmem:[#allocation105_spill] sm:$0xff] %v13815_v6  ;;  %v16286_v29 = vld [vmem:[#allocation113_spill] sm:$0xff] }
 0x2bd   :  { %v3693_v33 = vpack.c.bf16 %v3652_v42, %v3648_v51  ;;  %v4143_v30 = vpack.c.bf16 %v4102_v55, %v4098_v25  ;;  %v4106_v9 = vadd.f32 %v16283_v17, %v16282_v52  ;;  %v3658_v45 = vadd.f32 %v16284_v47, %v16276_v63  ;;  %v16287_v51 = vld [vmem:[#allocation59_spill] sm:$0xff]  ;;  %v16288_v12 = vld [vmem:[#allocation69_spill] sm:$0xff]  ;;  %v16289_v25 = vld [vmem:[#allocation64_spill] sm:$0xff] }
 0x2be   :  { %v8648_v44 = vmul.bf16 3216621497, %v3692_v41  ;;  %v8680_v39 = vmul.bf16 3216621497, %v4142_v50  ;;  %v4108_v3 = vadd.f32 %v16286_v29, %v16282_v52  ;;  %v3660_v42 = vadd.f32 %v16288_v12, %v16287_v51  ;;  %v16290_v55 = vld [vmem:[#allocation70_spill] sm:$0xff]  ;;  %v16291_v17 = vld [vmem:[#allocation71_spill] sm:$0xff] }
 0x2bf   :  { %v8649_v16 = vmul.bf16 3216621497, %v3693_v33  ;;  %v9971_v46 = vpop.eup %9970  ;;  %v8681_v41 = vmul.bf16 3216621497, %v4143_v30  ;;  %v4110_v49 = vadd.f32 %v16290_v55, %v16289_v25  ;;  %v3662_v40 = vadd.f32 %v16291_v17, %v16287_v51  ;;  %v9314_v63 = vld [vmem:[#allocation2 + $0x4a0] ss:$8 sps:$4 sm:$0xff]  }
 0x2c0   :  { %9986 = vpow.bf16 %v8648_v44  ;;  %v3789_v47 = vmul.bf16 1065369472, %v9971_v46  ;;  %v3694_v50 = vpack.c.bf16 %v3660_v42, %v3656_v27  ;;  %v16292_v33 = vld [vmem:[#allocation63_spill] sm:$0xff]  ;;  %v9316_v52 = vld [vmem:[#allocation2 + $0x6a0] ss:$8 sps:$4 sm:$0xff]  }
 0x2c1   :  { %9988 = vpow.bf16 %v8680_v39  ;;  %v4112_v6 = vadd.f32 %v16292_v33, %v16289_v25  ;;  %v9973_v29 = vpop.eup %9972  ;;  %v4144_v12 = vpack.c.bf16 %v4110_v49, %v4106_v9  ;;  %v3695_v18 = vpack.c.bf16 %v3662_v40, %v3658_v45  ;;  %v16293_v44 = vld [vmem:[#allocation65_spill] sm:$0xff] }
 0x2c2   :  { %9990 = vpow.bf16 %v8649_v16  ;;  %v13829_v30 = vadd.f32 %v13467_v43, %v16293_v44  ;;  %v9975_v55 = vpop.eup %9974  ;;  %v10694_v46 = vld [vmem:[%s15595_s0 + $0xa0] ss:$8 sps:$4 sm:$0xff]   ;;  %v4239_v39 = vmul.bf16 1065369472, %v9973_v29  ;;  %v9318_v27 = vld [vmem:[#allocation2 + $0x4a4] ss:$8 sps:$4 sm:$0xff]  }
 0x2c3   :  { %v3816_v17 = vmul.bf16 %v10694_v46, %v3789_v47  ;;  %9992 = vpow.bf16 %v8681_v41  ;;  %v8650_v42 = vmul.bf16 3216621497, %v3694_v50  ;;  %v9977_v33 = vpop.eup %9976  ;;  %v3791_v25 = vmul.bf16 1065369472, %v9975_v55  ;;  %v9319_v53 = vld [vmem:[#allocation2 + $0x6a4] ss:$8 sps:$4 sm:$0xff]  }
 0x2c4   :  { %v8682_v51 = vmul.bf16 3216621497, %v4144_v12  ;;  %v8651_v16 = vmul.bf16 3216621497, %v3695_v18  ;;  %v4145_v9 = vpack.c.bf16 %v4112_v6, %v4108_v3  ;;  %v9979_v45 = vpop.eup %9978  ;;  %v4266_v49 = vmul.bf16 %v10694_v46, %v4239_v39  ;;  %v10695_v47 = vld [vmem:[%s15595_s0 + $0xa4] ss:$8 sps:$4 sm:$0xff]  }
 0x2c5   :  { %v3929_v40 = vsub.bf16 %v3816_v17, %v9314_v63  ;;  %v4241_v43 = vmul.bf16 1065369472, %v9977_v33  ;;  %9994 = vpow.bf16 %v8650_v42  ;;  %v9981_v57 = vpop.eup %9980  ;;  %v3817_v29 = vmul.bf16 %v10695_v47, %v3791_v25  ;;  %v9320_v41 = vld [vmem:[#allocation2 + $0x4b0] ss:$8 sps:$4 sm:$0xff]   ;;  %v13842_v25 = vpop.f32.mrb[150].mxu1 }
 0x2c6   :  { %v3793_v19 = vmul.bf16 1065369472, %v9979_v45  ;;  %9996 = vpow.bf16 %v8682_v51  ;;  %v13837_v50 = vmul.bf16 3216621497, %v4145_v9  ;;  %v9983_v12 = vpop.eup %9982  ;;  %v4379_v6 = vsub.bf16 %v4266_v49, %v9316_v52  ;;  %v10696_v17 = vld [vmem:[%s15595_s0 + $0xb0] ss:$8 sps:$4 sm:$0xff]  }
 0x2c7   :  { %v3945_v18 = vand.u32 2147450879, %v3929_v40  ;;  %v4267_v3 = vmul.bf16 %v10695_v47, %v4241_v43  ;;  %v4243_v63 = vmul.bf16 1065369472, %v9981_v57  ;;  %v9985_v55 = vpop.eup %9984  ;;  %v3930_v46 = vsub.bf16 %v3817_v29, %v9318_v27  ;;  %v9322_v42 = vld [vmem:[#allocation2 + $0x6b0] ss:$8 sps:$4 sm:$0xff]  }
 0x2c8   :  { %v3818_v39 = vmul.bf16 %v10696_v17, %v3793_v19  ;;  %v3771_v33 = vadd.bf16 1065369472, %v9983_v12  ;;  %9998 = vpow.bf16 %v8651_v16  ;;  %16294 = vst [vmem:[#allocation106_spill] sm:$0xff] %v13842_v25  ;;  %v4395_v45 = vand.u32 2147450879, %v4379_v6  ;;  %v13844_v57 = vpop.f32.mrb[151].mxu0 }
 0x2c9   :  { %v3965_v51 = vunpack.c.l.bf16 %v3945_v18  ;;  %v3967_v9 = vunpack.c.h.bf16 %v3945_v18  ;;  %v4380_v13 = vsub.bf16 %v4267_v3, %v9319_v53  ;;  %v3946_v40 = vand.u32 2147450879, %v3930_v46  ;;  %16295 = vst [vmem:[#allocation107_spill] sm:$0xff] %v13844_v57  ;;  %v13846_v27 = vpop.f32.mrb[151].mxu1 }
 0x2ca   :  { %v3931_v52 = vsub.bf16 %v3818_v39, %v9320_v41  ;;  %v4268_v49 = vmul.bf16 %v10696_v17, %v4243_v63  ;;  %10000 = vrcp.bf16 %v3771_v33  ;;  %16296 = vst [vmem:[#allocation108_spill] sm:$0xff] %v13846_v27  ;;  %v4415_v47 = vunpack.c.l.bf16 %v4395_v45 }
 0x2cb   :  { %v9987_v43 = vpop.eup %9986  ;;  %v3992_v19 = vadd.f32 %v13768_v26, %v3965_v51  ;;  %v4417_v29 = vunpack.c.h.bf16 %v4395_v45  ;;  %v4396_v16 = vand.u32 2147450879, %v4380_v13  ;;  %v3966_v25 = vunpack.c.l.bf16 %v3946_v40 }
 0x2cc   :  { %v9989_v12 = vpop.eup %9988  ;;  %v3968_v32 = vunpack.c.h.bf16 %v3946_v40  ;;  %v3947_v18 = vand.u32 2147450879, %v3931_v52  ;;  %v4381_v6 = vsub.bf16 %v4268_v49, %v9322_v42  ;;  %v4442_v41 = vadd.f32 %v13780_v54, %v4415_v47 }
 0x2cd   :  { %v9991_v53 = vpop.eup %9990  ;;  %v3993_v3 = vadd.f32 %v3992_v19, %v3967_v9  ;;  %v4416_v63 = vunpack.c.l.bf16 %v4396_v16  ;;  %v4418_v46 = vunpack.c.h.bf16 %v4396_v16  ;;  %v4007_v39 = vadd.f32 %v13784_v10, %v3966_v25 }
 0x2ce   :  { %v9993_v17 = vpop.eup %9992  ;;  %v3969_v33 = vunpack.c.l.bf16 %v3947_v18  ;;  %v3971_v27 = vunpack.c.h.bf16 %v3947_v18  ;;  %v4397_v26 = vand.u32 2147450879, %v4381_v6  ;;  %v4443_v51 = vadd.f32 %v4442_v41, %v4417_v29  ;;  %v16297_v6 = vld [vmem:[#allocation73_spill] sm:$0xff] }
 0x2cf   :  { %v4457_v13 = vadd.f32 %v13804_v11, %v4416_v63  ;;  %v4221_v45 = vadd.bf16 1065369472, %v9985_v55  ;;  %v3772_v57 = vadd.bf16 1065369472, %v9987_v43  ;;  %v13852_v52 = vadd.f32 %v4007_v39, %v3968_v32  ;;  %v13858_v11 = vpop.f32.mrb[152].mxu0  ;;  %v13860_v55 = vpop.f32.mrb[152].mxu1 }
 0x2d0   :  { %v9995_v40 = vpop.eup %9994  ;;  %v3994_v42 = vadd.f32 %v3993_v3, %v3969_v33  ;;  %v4419_v9 = vunpack.c.l.bf16 %v4397_v26  ;;  %v4421_v49 = vunpack.c.h.bf16 %v4397_v26  ;;  %v4222_v47 = vadd.bf16 1065369472, %v9989_v12  ;;  %v13864_v41 = vpop.f32.mrb[153].mxu0  ;;  %v16298_v39 = vld [vmem:[#allocation43_spill] sm:$0xff]  ;;  %v16299_v26 = vld [vmem:[#allocation74_spill] sm:$0xff] }
 0x2d1   :  { %v9997_v54 = vpop.eup %9996  ;;  %v13854_v19 = vadd.f32 %v4457_v13, %v4418_v46  ;;  %10002 = vrcp.bf16 %v4221_v45  ;;  %v3773_v10 = vadd.bf16 1065369472, %v9991_v53  ;;  %v4223_v29 = vadd.bf16 1065369472, %v9993_v17  ;;  %v13866_v12 = vpop.f32.mrb[153].mxu1 }
 0x2d2   :  { %v13856_v25 = vadd.f32 %v3994_v42, %v3971_v27  ;;  %v4444_v16 = vadd.f32 %v4443_v51, %v4419_v9  ;;  %10004 = vrcp.bf16 %v3772_v57  ;;  %v3774_v43 = vadd.bf16 1065369472, %v9995_v40  ;;  %v13872_v63 = vpop.f32.mrb[154].mxu0  ;;  %v13874_v46 = vpop.f32.mrb[154].mxu1  ;;  %v9324_v40 = vld [vmem:[#allocation2 + $0x4b4] ss:$8 sps:$4 sm:$0xff]  }
 0x2d3   :  { %v9999_v32 = vpop.eup %9998  ;;  %10006 = vrcp.bf16 %v4222_v47  ;;  %v4224_v18 = vadd.bf16 1065369472, %v9997_v54  ;;  %v4116_v3 = vadd.f32 %v13469_v8, %v16297_v6  ;;  %v3668_v53 = vadd.f32 %v13473_v23, %v16293_v44  ;;  %v13882_v13 = vpop.f32.mrb[155].mxu0  ;;  %v10697_v54 = vld [vmem:[%s15595_s0 + $0xb4] ss:$8 sps:$4 sm:$0xff]  }
 0x2d4   :  { %v13868_v27 = vadd.f32 %v4444_v16, %v4421_v49  ;;  %10008 = vrcp.bf16 %v3773_v10  ;;  %v3775_v57 = vadd.bf16 1065369472, %v9999_v32  ;;  %v4118_v8 = vadd.f32 %v13475_v4, %v16297_v6  ;;  %16300 = vst [vmem:[#allocation109_spill] sm:$0xff] %v13882_v13  ;;  %v13884_v45 = vpop.f32.mrb[155].mxu1  ;;  %v16302_v49 = vld [vmem:[#allocation83_spill] sm:$0xff] }
 0x2d5   :  { %v10001_v17 = vpop.eup %10000  ;;  %10010 = vrcp.bf16 %v4223_v29  ;;  %v3670_v33 = vadd.f32 %v13479_v48, %v16298_v39  ;;  %v4120_v51 = vadd.f32 %v13481_v60, %v16299_v26  ;;  %16301 = vst [vmem:[#allocation110_spill] sm:$0xff] %v13884_v45  ;;  %v3672_v42 = vadd.f32 %v13488_v2, %v16298_v39 }
 0x2d6   :  { %v3795_v23 = vmul.bf16 1065369472, %v10001_v17  ;;  %10012 = vrcp.bf16 %v3774_v43  ;;  %v4122_v9 = vadd.f32 %v13490_v37, %v16299_v26  ;;  %v3676_v60 = vadd.f32 %v13507_v61, %v16302_v49  ;;  %v16303_v37 = vld [vmem:[#allocation77_spill] sm:$0xff]  ;;  %v16306_v17 = vld [vmem:[#allocation114_spill] sm:$0xff] }
 0x2d7   :  { %10014 = vrcp.bf16 %v4224_v18  ;;  %v3696_v4 = vpack.c.bf16 %v3670_v33, %v13829_v30  ;;  %v4146_v48 = vpack.c.bf16 %v4120_v51, %v4116_v3  ;;  %v3697_v10 = vpack.c.bf16 %v3672_v42, %v3668_v53  ;;  %v16305_v53 = vld [vmem:[#allocation118_spill] sm:$0xff]  ;;  %v13911_v33 = vpop.f32.mrb[156].mxu0 }
 0x2d8   :  { %v3819_v47 = vmul.bf16 %v10697_v54, %v3795_v23  ;;  %10016 = vrcp.bf16 %v3775_v57  ;;  %v4147_v16 = vpack.c.bf16 %v4122_v9, %v4118_v8  ;;  %v4126_v32 = vadd.f32 %v13509_v14, %v16303_v37  ;;  %v16304_v57 = vld [vmem:[#allocation80_spill] sm:$0xff]  ;;  %16307 = vst [vmem:[#allocation111_spill] sm:$0xff] %v13911_v33  ;;  %v13913_v14 = vpop.f32.mrb[156].mxu1  ;;  %v13923_v9 = vpop.f32.mrb[157].mxu0 }
 0x2d9   :  { %10018 = vpow.bf16 %v13837_v50  ;;  %v8652_v2 = vmul.bf16 3216621497, %v3696_v4  ;;  %v8684_v29 = vmul.bf16 3216621497, %v4146_v48  ;;  %v8653_v43 = vmul.bf16 3216621497, %v3697_v10 }
 0x2da   :  { %v3932_v30 = vsub.bf16 %v3819_v47, %v9324_v40  ;;  %v8685_v18 = vmul.bf16 3216621497, %v4147_v16  ;;  %v13901_v61 = vadd.f32 %v13513_v20, %v16302_v49  ;;  %v13905_v3 = vadd.f32 %v13515_v24, %v16303_v37  ;;  %16308 = vst [vmem:[#allocation56_spill] sm:$0xff] %v13913_v14  ;;  %v16309_v20 = vld [vmem:[#allocation115_spill] sm:$0xff]  ;;  %v16310_v24 = vld [vmem:[#allocation72_spill] sm:$0xff]  ;;  %16311 = vst [vmem:[#allocation66_spill] sm:$0xff] %v13923_v9 }
 0x2db   :  { %10020 = vpow.bf16 %v8652_v2  ;;  %v3680_v50 = vadd.f32 %v13523_v21, %v16304_v57  ;;  %v4130_v8 = vadd.f32 %v16306_v17, %v16305_v53  ;;  %v13917_v40 = vadd.f32 %v16309_v20, %v16304_v57  ;;  %v13925_v21 = vpop.f32.mrb[157].mxu1  ;;  %v9325_v47 = vld [vmem:[#allocation2 + $0x6b4] ss:$8 sps:$4 sm:$0xff]   ;;  %v13927_v2 = vpop.f32.mrb[158].mxu0  ;;  %v9326_v57 = vld [vmem:[#allocation2 + $0x4c0] ss:$8 sps:$4 sm:$0xff]  }
 0x2dc   :  { %v10003_v51 = vpop.eup %10002  ;;  %v3948_v23 = vand.u32 2147450879, %v3932_v30  ;;  %10022 = vpow.bf16 %v8684_v29  ;;  %v13921_v42 = vadd.f32 %v16310_v24, %v16305_v53  ;;  %16312 = vst [vmem:[#allocation67_spill] sm:$0xff] %v13925_v21  ;;  %16313 = vst [vmem:[#allocation68_spill] sm:$0xff] %v13927_v2  ;;  %v9328_v37 = vld [vmem:[#allocation2 + $0x6c0] ss:$8 sps:$4 sm:$0xff]  }
 0x2dd   :  { %v10005_v4 = vpop.eup %10004  ;;  %v4245_v48 = vmul.bf16 1065369472, %v10003_v51  ;;  %10024 = vpow.bf16 %v8653_v43  ;;  %v3698_v10 = vpack.c.bf16 %v3680_v50, %v3676_v60  ;;  %v4148_v16 = vpack.c.bf16 %v4130_v8, %v4126_v32  ;;  %v10698_v60 = vld [vmem:[%s15595_s0 + $0xc0] ss:$8 sps:$4 sm:$0xff]   ;;  %v9330_v8 = vld [vmem:[#allocation2 + $0x4c4] ss:$8 sps:$4 sm:$0xff]  }
 0x2de   :  { %v10007_v29 = vpop.eup %10006  ;;  %v3970_v30 = vunpack.c.l.bf16 %v3948_v23  ;;  %v3972_v17 = vunpack.c.h.bf16 %v3948_v23  ;;  %v3797_v20 = vmul.bf16 1065369472, %v10005_v4  ;;  %10026 = vpow.bf16 %v8685_v18  ;;  %v13946_v14 = vpop.f32.mrb[159].mxu0 }
 0x2df   :  { %v10009_v24 = vpop.eup %10008  ;;  %v4269_v53 = vmul.bf16 %v10697_v54, %v4245_v48  ;;  %v4247_v49 = vmul.bf16 1065369472, %v10007_v29  ;;  %v8654_v26 = vmul.bf16 3216621497, %v3698_v10  ;;  %v13929_v39 = vmul.bf16 3216621497, %v4148_v16 }
 0x2e0   :  { %v10011_v51 = vpop.eup %10010  ;;  %v4009_v43 = vadd.f32 %v13852_v52, %v3970_v30  ;;  %v3820_v32 = vmul.bf16 %v10698_v60, %v3797_v20  ;;  %v3799_v50 = vmul.bf16 1065369472, %v10009_v24  ;;  %v9331_v10 = vld [vmem:[#allocation2 + $0x6c4] ss:$8 sps:$4 sm:$0xff]   ;;  %v9332_v24 = vld [vmem:[#allocation2 + $0x4d0] ss:$8 sps:$4 sm:$0xff]  }
 0x2e1   :  { %v10013_v18 = vpop.eup %10012  ;;  %v4382_v4 = vsub.bf16 %v4269_v53, %v9325_v47  ;;  %v4270_v54 = vmul.bf16 %v10698_v60, %v4247_v49  ;;  %v4249_v48 = vmul.bf16 1065369472, %v10011_v51  ;;  %10028 = vpow.bf16 %v8654_v26  ;;  %v10699_v52 = vld [vmem:[%s15595_s0 + $0xc4] ss:$8 sps:$4 sm:$0xff]   ;;  %v10700_v26 = vld [vmem:[%s15595_s0 + $0xd0] ss:$8 sps:$4 sm:$0xff]  }
 0x2e2   :  { %v10015_v16 = vpop.eup %10014  ;;  %v4010_v29 = vadd.f32 %v4009_v43, %v3972_v17  ;;  %v3933_v6 = vsub.bf16 %v3820_v32, %v9326_v57  ;;  %v3821_v30 = vmul.bf16 %v10699_v52, %v3799_v50  ;;  %v3801_v20 = vmul.bf16 1065369472, %v10013_v18  ;;  %v13943_v50 = vpop.f32.mrb[158].mxu1  ;;  %16315 = vst [vmem:[#allocation113_spill] sm:$0xff] %v13946_v14 }
 0x2e3   :  { %v10017_v44 = vpop.eup %10016  ;;  %v4398_v2 = vand.u32 2147450879, %v4382_v4  ;;  %v4383_v21 = vsub.bf16 %v4270_v54, %v9328_v37  ;;  %v4271_v23 = vmul.bf16 %v10699_v52, %v4249_v48  ;;  %v4251_v9 = vmul.bf16 1065369472, %v10015_v16  ;;  %16314 = vst [vmem:[#allocation112_spill] sm:$0xff] %v13943_v50 }
 0x2e4   :  { %v10019_v53 = vpop.eup %10018  ;;  %v3949_v49 = vand.u32 2147450879, %v3933_v6  ;;  %v3934_v47 = vsub.bf16 %v3821_v30, %v9330_v8  ;;  %v3822_v57 = vmul.bf16 %v10700_v26, %v3801_v20  ;;  %v3803_v17 = vmul.bf16 1065369472, %v10017_v44  ;;  %v13948_v44 = vpop.f32.mrb[159].mxu1 }
 0x2e5   :  { %v4420_v51 = vunpack.c.l.bf16 %v4398_v2  ;;  %v4422_v43 = vunpack.c.h.bf16 %v4398_v2  ;;  %v4399_v60 = vand.u32 2147450879, %v4383_v21  ;;  %v4384_v32 = vsub.bf16 %v4271_v23, %v9331_v10  ;;  %16316 = vst [vmem:[#allocation69_spill] sm:$0xff] %v13948_v44 }
 0x2e6   :  { %v10021_v18 = vpop.eup %10020  ;;  %v3973_v4 = vunpack.c.l.bf16 %v3949_v49  ;;  %v3975_v37 = vunpack.c.h.bf16 %v3949_v49  ;;  %v3950_v54 = vand.u32 2147450879, %v3934_v47  ;;  %v3935_v48 = vsub.bf16 %v3822_v57, %v9332_v24 }
 0x2e7   :  { %v10023_v16 = vpop.eup %10022  ;;  %v4459_v6 = vadd.f32 %v13854_v19, %v4420_v51  ;;  %v4423_v8 = vunpack.c.l.bf16 %v4399_v60  ;;  %v4425_v52 = vunpack.c.h.bf16 %v4399_v60  ;;  %v4400_v30 = vand.u32 2147450879, %v4384_v32  ;;  %v9334_v19 = vld [vmem:[#allocation2 + $0x6d0] ss:$8 sps:$4 sm:$0xff]   ;;  %v9336_v51 = vld [vmem:[#allocation2 + $0x4d4] ss:$8 sps:$4 sm:$0xff]  }
 0x2e8   :  { %v10025_v2 = vpop.eup %10024  ;;  %v3996_v21 = vadd.f32 %v13856_v25, %v3973_v4  ;;  %v3974_v23 = vunpack.c.l.bf16 %v3950_v54  ;;  %v3976_v10 = vunpack.c.h.bf16 %v3950_v54  ;;  %v3951_v20 = vand.u32 2147450879, %v3935_v48  ;;  %v13955_v25 = vld [vmem:[%s15595_s0 + $0xd4] ss:$8 sps:$4 sm:$0xff]  }
 0x2e9   :  { %v10027_v50 = vpop.eup %10026  ;;  %v4460_v49 = vadd.f32 %v4459_v6, %v4422_v43  ;;  %v4446_v24 = vadd.f32 %v13868_v27, %v4423_v8  ;;  %v4424_v47 = vunpack.c.l.bf16 %v4400_v30  ;;  %v4426_v57 = vunpack.c.h.bf16 %v4400_v30 }
 0x2ea   :  { %v3997_v60 = vadd.f32 %v3996_v21, %v3975_v37  ;;  %v4011_v32 = vadd.f32 %v4010_v29, %v3974_v23  ;;  %v3977_v33 = vunpack.c.l.bf16 %v3951_v20  ;;  %v3979_v14 = vunpack.c.h.bf16 %v3951_v20  ;;  %v13962_v21 = vpop.f32.mrb[160].mxu0  ;;  %v13964_v23 = vpop.f32.mrb[160].mxu1 }
 0x2eb   :  { %v4447_v45 = vadd.f32 %v4446_v24, %v4425_v52  ;;  %v4461_v44 = vadd.f32 %v4460_v49, %v4424_v47  ;;  %v4272_v13 = vmul.bf16 %v10700_v26, %v4251_v9  ;;  %v3823_v43 = vmul.bf16 %v13955_v25, %v3803_v17 }
 0x2ec   :  { %v10029_v4 = vpop.eup %10028  ;;  %v4012_v27 = vadd.f32 %v4011_v32, %v3976_v10  ;;  %v3998_v54 = vadd.f32 %v3997_v60, %v3977_v33  ;;  %v4225_v48 = vadd.bf16 1065369472, %v10019_v53  ;;  %v3776_v6 = vadd.bf16 1065369472, %v10021_v18  ;;  %v16318_v18 = vld [vmem:[#allocation6_spill] sm:$0xff] }
 0x2ed   :  { %v13958_v8 = vadd.f32 %v4461_v44, %v4426_v57  ;;  %v4385_v29 = vsub.bf16 %v4272_v13, %v9334_v19  ;;  %v3936_v37 = vsub.bf16 %v3823_v43, %v9336_v51  ;;  %v4226_v30 = vadd.bf16 1065369472, %v10023_v16  ;;  %v13975_v44 = vpop.f32.mrb[161].mxu1  ;;  %v16320_v43 = vld [vmem:[#allocation8_spill] sm:$0xff] }
 0x2ee   :  { %v13960_v52 = vadd.f32 %v3998_v54, %v3979_v14  ;;  %10030 = vrcp.bf16 %v4225_v48  ;;  %v3777_v9 = vadd.bf16 1065369472, %v10025_v2  ;;  %v4227_v26 = vadd.bf16 1065369472, %v10027_v50  ;;  %v13973_v50 = vpop.f32.mrb[161].mxu0  ;;  %v13979_v57 = vpop.f32.mrb[162].mxu1 }
 0x2ef   :  { %v4401_v17 = vand.u32 2147450879, %v4385_v29  ;;  %v3952_v20 = vand.u32 2147450879, %v3936_v37  ;;  %10032 = vrcp.bf16 %v3776_v6  ;;  %v3778_v33 = vadd.bf16 1065369472, %v10029_v4 }
 0x2f0   :  { %10034 = vrcp.bf16 %v4226_v30  ;;  %v16317_v53 = vpack.c.bf16 %v13917_v40, %v13901_v61  ;;  %v4149_v14 = vpack.c.bf16 %v13921_v42, %v13905_v3  ;;  %v4603_v16 = vadd.f32 %v13575_v31, %v16318_v18  ;;  %v13977_v47 = vpop.f32.mrb[162].mxu0  ;;  %v16319_v40 = vld [vmem:[#allocation22_spill] sm:$0xff]  ;;  %v13987_v19 = vpop.f32.mrb[163].mxu1  ;;  %v16321_v54 = vld [vmem:[#allocation21_spill] sm:$0xff]  ;;  %v16323_v30 = vld [vmem:[#allocation24_spill] sm:$0xff] }
 0x2f1   :  { %v4427_v2 = vunpack.c.l.bf16 %v4401_v17  ;;  %v4429_v10 = vunpack.c.h.bf16 %v4401_v17  ;;  %v3978_v49 = vunpack.c.l.bf16 %v3952_v20  ;;  %v3980_v24 = vunpack.c.h.bf16 %v3952_v20  ;;  %v13985_v42 = vpop.f32.mrb[163].mxu0  ;;  %v16322_v37 = vld [vmem:[#allocation5_spill] sm:$0xff] }
 0x2f2   :  { %v8655_v13 = vmul.bf16 3216621497, %v16317_v53  ;;  %10036 = vrcp.bf16 %v3777_v9  ;;  %v8687_v61 = vmul.bf16 3216621497, %v4149_v14  ;;  %v5053_v3 = vadd.f32 %v13577_v35, %v16319_v40  ;;  %v16326_v14 = vld [vmem:[#allocation42_spill] sm:$0xff] }
 0x2f3   :  { %v4605_v31 = vadd.f32 %v13583_v62, %v16318_v18  ;;  %v4448_v51 = vadd.f32 %v4447_v45, %v4427_v2  ;;  %v4013_v60 = vadd.f32 %v4012_v27, %v3978_v49  ;;  %10038 = vrcp.bf16 %v4227_v26  ;;  %v16327_v2 = vld [vmem:[#allocation23_spill] sm:$0xff]  ;;  %v14018_v49 = vpop.f32.mrb[164].mxu0 }
 0x2f4   :  { %v5055_v32 = vadd.f32 %v13585_v0, %v16319_v40  ;;  %10040 = vrcp.bf16 %v3778_v33  ;;  %v4607_v4 = vadd.f32 %v13587_v56, %v16320_v43  ;;  %v5057_v35 = vadd.f32 %v13589_v28, %v16321_v54  ;;  %v16324_v33 = vld [vmem:[#allocation116_spill] sm:$0xff] }
 0x2f5   :  { %v4609_v62 = vadd.f32 %v13593_v22, %v16320_v43  ;;  %v13997_v48 = vadd.f32 %v4448_v51, %v4429_v10  ;;  %v13999_v6 = vadd.f32 %v4013_v60, %v3980_v24  ;;  %10042 = vpow.bf16 %v13929_v39  ;;  %v16330_v51 = vld [vmem:[#allocation78_spill] sm:$0xff] }
 0x2f6   :  { %v5059_v45 = vadd.f32 %v13595_v7, %v16321_v54  ;;  %10044 = vpow.bf16 %v8655_v13  ;;  %v4681_v0 = vpack.c.bf16 %v4607_v4, %v4603_v16  ;;  %v5131_v27 = vpack.c.bf16 %v5057_v35, %v5053_v3  ;;  %v16325_v13 = vld [vmem:[#allocation7_spill] sm:$0xff] }
 0x2f7   :  { %v4682_v29 = vpack.c.bf16 %v4609_v62, %v4605_v31  ;;  %10046 = vpow.bf16 %v8687_v61  ;;  %v4613_v28 = vadd.f32 %v13620_v36, %v16322_v37  ;;  %v5063_v22 = vadd.f32 %v13622_v34, %v16323_v30  ;;  %v16328_v36 = vld [vmem:[#allocation117_spill] sm:$0xff]  ;;  %v14020_v34 = vpop.f32.mrb[164].mxu1  ;;  %v9337_v3 = vld [vmem:[#allocation2 + $0x6d4] ss:$8 sps:$4 sm:$0xff]  }
 0x2f8   :  { %v5132_v56 = vpack.c.bf16 %v5059_v45, %v5055_v32  ;;  %v8736_v9 = vmul.bf16 3216621497, %v4681_v0  ;;  %v8768_v26 = vmul.bf16 3216621497, %v5131_v27  ;;  %v4615_v39 = vadd.f32 %v13626_v58, %v16322_v37  ;;  %v16329_v58 = vld [vmem:[#allocation76_spill] sm:$0xff]  ;;  %v14028_v32 = vpop.f32.mrb[165].mxu0 }
 0x2f9   :  { %v8737_v17 = vmul.bf16 3216621497, %v4682_v29  ;;  %v10031_v20 = vpop.eup %10030  ;;  %v14012_v53 = vadd.f32 %v16324_v33, %v16323_v30  ;;  %v4617_v16 = vadd.f32 %v16326_v14, %v16325_v13  ;;  %v5067_v10 = vadd.f32 %v16328_v36, %v16327_v2  ;;  %v14030_v4 = vpop.f32.mrb[165].mxu1  ;;  %v9338_v45 = vld [vmem:[#allocation2 + $0x4e0] ss:$8 sps:$4 sm:$0xff]  }
 0x2fa   :  { %v8769_v7 = vmul.bf16 3216621497, %v5132_v56  ;;  %v10033_v24 = vpop.eup %10032  ;;  %v4253_v61 = vmul.bf16 1065369472, %v10031_v20  ;;  %10048 = vpow.bf16 %v8736_v9  ;;  %v4619_v31 = vadd.f32 %v16329_v58, %v16325_v13  ;;  %v14032_v29 = vpop.f32.mrb[166].mxu0 }
 0x2fb   :  { %v14026_v60 = vadd.f32 %v16330_v51, %v16327_v2  ;;  %v10035_v35 = vpop.eup %10034  ;;  %v3805_v62 = vmul.bf16 1065369472, %v10033_v24  ;;  %10050 = vpow.bf16 %v8768_v26  ;;  %v4683_v0 = vpack.c.bf16 %v4617_v16, %v4613_v28  ;;  %v9340_v20 = vld [vmem:[#allocation2 + $0x6e0] ss:$8 sps:$4 sm:$0xff]  }
 0x2fc   :  { %v5133_v27 = vpack.c.bf16 %v5067_v10, %v5063_v22  ;;  %v4273_v56 = vmul.bf16 %v13955_v25, %v4253_v61  ;;  %v4255_v9 = vmul.bf16 1065369472, %v10035_v35  ;;  %10052 = vpow.bf16 %v8737_v17  ;;  %v10702_v36 = vld [vmem:[%s15595_s0 + $0xe0] ss:$8 sps:$4 sm:$0xff]   ;;  %v9342_v10 = vld [vmem:[#allocation2 + $0x4e4] ss:$8 sps:$4 sm:$0xff]  }
 0x2fd   :  { %v4684_v33 = vpack.c.bf16 %v4619_v31, %v4615_v39  ;;  %v10037_v14 = vpop.eup %10036  ;;  %v3824_v58 = vmul.bf16 %v10702_v36, %v3805_v62  ;;  %10054 = vpow.bf16 %v8769_v7  ;;  %v8738_v24 = vmul.bf16 3216621497, %v4683_v0  ;;  %v9343_v39 = vld [vmem:[#allocation2 + $0x6e4] ss:$8 sps:$4 sm:$0xff]  }
 0x2fe   :  { %v8770_v51 = vmul.bf16 3216621497, %v5133_v27  ;;  %v10039_v26 = vpop.eup %10038  ;;  %v4386_v28 = vsub.bf16 %v4273_v56, %v9337_v3  ;;  %v4274_v22 = vmul.bf16 %v10702_v36, %v4255_v9  ;;  %v3807_v16 = vmul.bf16 1065369472, %v10037_v14  ;;  %v10703_v3 = vld [vmem:[%s15595_s0 + $0xe4] ss:$8 sps:$4 sm:$0xff]  }
 0x2ff   :  { %v14038_v2 = vmul.bf16 3216621497, %v4684_v33  ;;  %v10041_v25 = vpop.eup %10040  ;;  %v3937_v61 = vsub.bf16 %v3824_v58, %v9338_v45  ;;  %v4257_v17 = vmul.bf16 1065369472, %v10039_v26  ;;  %10056 = vpow.bf16 %v8738_v24  ;;  %v9344_v14 = vld [vmem:[#allocation2 + $0x4f0] ss:$8 sps:$4 sm:$0xff]  }
 0x300   :  { %v10043_v35 = vpop.eup %10042  ;;  %v4402_v62 = vand.u32 2147450879, %v4386_v28  ;;  %v4387_v7 = vsub.bf16 %v4274_v22, %v9340_v20  ;;  %v3825_v0 = vmul.bf16 %v10703_v3, %v3807_v16  ;;  %v3809_v27 = vmul.bf16 1065369472, %v10041_v25  ;;  %v14048_v22 = vld [vmem:[%s15595_s0 + $0xf0] ss:$8 sps:$4 sm:$0xff]  }
 0x301   :  { %v10045_v56 = vpop.eup %10044  ;;  %v3953_v9 = vand.u32 2147450879, %v3937_v61  ;;  %v4275_v33 = vmul.bf16 %v10703_v3, %v4257_v17  ;;  %v4228_v45 = vadd.bf16 1065369472, %v10043_v35  ;;  %10058 = vpow.bf16 %v8770_v51  ;;  %v14052_v35 = vpop.f32.mrb[166].mxu1 }
 0x302   :  { %v10047_v36 = vpop.eup %10046  ;;  %v4428_v58 = vunpack.c.l.bf16 %v4402_v62  ;;  %v4430_v24 = vunpack.c.h.bf16 %v4402_v62  ;;  %v4403_v26 = vand.u32 2147450879, %v4387_v7  ;;  %v3938_v31 = vsub.bf16 %v3825_v0, %v9342_v10 }
 0x303   :  { %v3981_v13 = vunpack.c.l.bf16 %v3953_v9  ;;  %v3983_v28 = vunpack.c.h.bf16 %v3953_v9  ;;  %v4388_v20 = vsub.bf16 %v4275_v33, %v9343_v39  ;;  %v3826_v16 = vmul.bf16 %v14048_v22, %v3809_v27  ;;  %v14056_v27 = vpop.f32.mrb[167].mxu0 }
 0x304   :  { %v4463_v25 = vadd.f32 %v13958_v8, %v4428_v58  ;;  %v4431_v61 = vunpack.c.l.bf16 %v4403_v26  ;;  %v4433_v17 = vunpack.c.h.bf16 %v4403_v26  ;;  %v3954_v51 = vand.u32 2147450879, %v3938_v31  ;;  %16331 = vst [vmem:[#allocation70_spill] sm:$0xff] %v14056_v27  ;;  %v14058_v8 = vpop.f32.mrb[167].mxu1 }
 0x305   :  { %v10049_v62 = vpop.eup %10048  ;;  %v4000_v10 = vadd.f32 %v13960_v52, %v3981_v13  ;;  %v4404_v7 = vand.u32 2147450879, %v4388_v20  ;;  %v3939_v3 = vsub.bf16 %v3826_v16, %v9344_v14  ;;  %10060 = vrcp.bf16 %v4228_v45  ;;  %16332 = vst [vmem:[#allocation71_spill] sm:$0xff] %v14058_v8  ;;  %v9355_v8 = vld [vmem:[#allocation2 + $0x304] ss:$8 sps:$4 sm:$0xff]  }
 0x306   :  { %v10051_v39 = vpop.eup %10050  ;;  %v4464_v0 = vadd.f32 %v4463_v25, %v4430_v24  ;;  %v4450_v9 = vadd.f32 %v13997_v48, %v4431_v61  ;;  %v3982_v33 = vunpack.c.l.bf16 %v3954_v51  ;;  %v3984_v30 = vunpack.c.h.bf16 %v3954_v51 }
 0x307   :  { %v10053_v58 = vpop.eup %10052  ;;  %v4001_v31 = vadd.f32 %v4000_v10, %v3983_v28  ;;  %v4432_v26 = vunpack.c.l.bf16 %v4404_v7  ;;  %v4434_v37 = vunpack.c.h.bf16 %v4404_v7  ;;  %v3955_v54 = vand.u32 2147450879, %v3939_v3 }
 0x308   :  { %v10055_v43 = vpop.eup %10054  ;;  %v14060_v52 = vadd.f32 %v4450_v9, %v4433_v17  ;;  %v4015_v13 = vadd.f32 %v13999_v6, %v3982_v33  ;;  %v3779_v14 = vadd.bf16 1065369472, %v10045_v56  ;;  %v4229_v45 = vadd.bf16 1065369472, %v10047_v36  ;;  %v14074_v9 = vpop.f32.mrb[168].mxu0 }
 0x309   :  { %v4465_v24 = vadd.f32 %v4464_v0, %v4432_v26  ;;  %v3985_v48 = vunpack.c.l.bf16 %v3955_v54  ;;  %v3987_v20 = vunpack.c.h.bf16 %v3955_v54  ;;  %v4761_v16 = vadd.bf16 1065369472, %v10049_v62  ;;  %v16334_v54 = vld [vmem:[#allocation10_spill] sm:$0xff]  ;;  %16336 = vst [vmem:[#allocation63_spill] sm:$0xff] %v14074_v9  ;;  %v14076_v33 = vpop.f32.mrb[168].mxu1  ;;  %v14084_v26 = vpop.f32.mrb[169].mxu0 }
 0x30a   :  { %v10057_v25 = vpop.eup %10056  ;;  %v14063_v61 = vadd.f32 %v4015_v13, %v3984_v30  ;;  %10062 = vrcp.bf16 %v3779_v14  ;;  %v5211_v51 = vadd.bf16 1065369472, %v10051_v39  ;;  %v4762_v28 = vadd.bf16 1065369472, %v10053_v58  ;;  %v16335_v39 = vld [vmem:[#allocation26_spill] sm:$0xff]  ;;  %16337 = vst [vmem:[#allocation114_spill] sm:$0xff] %v14076_v33 }
 0x30b   :  { %v14065_v10 = vadd.f32 %v4465_v24, %v4434_v37  ;;  %v4002_v7 = vadd.f32 %v4001_v31, %v3985_v48  ;;  %10064 = vrcp.bf16 %v4229_v45  ;;  %v5212_v17 = vadd.bf16 1065369472, %v10055_v43  ;;  %v16339_v58 = vld [vmem:[#allocation9_spill] sm:$0xff]  ;;  %v16340_v31 = vld [vmem:[#allocation82_spill] sm:$0xff]  ;;  %16341 = vst [vmem:[#allocation115_spill] sm:$0xff] %v14084_v26  ;;  %v14086_v13 = vpop.f32.mrb[169].mxu1 }
 0x30c   :  { %v10059_v3 = vpop.eup %10058  ;;  %10066 = vrcp.bf16 %v4761_v16  ;;  %v4763_v6 = vadd.bf16 1065369472, %v10057_v25  ;;  %v16333_v56 = vpack.c.bf16 %v14026_v60, %v14012_v53  ;;  %v4623_v62 = vadd.f32 %v13674_v59, %v16334_v54  ;;  %v16338_v53 = vld [vmem:[#allocation75_spill] sm:$0xff]  ;;  %16342 = vst [vmem:[#allocation72_spill] sm:$0xff] %v14086_v13  ;;  %v16343_v14 = vld [vmem:[#allocation81_spill] sm:$0xff]  ;;  %v14095_v16 = vpop.f32.mrb[170].mxu0 }
 0x30d   :  { %v4003_v30 = vadd.f32 %v4002_v7, %v3987_v20  ;;  %10068 = vrcp.bf16 %v5211_v51  ;;  %v5213_v0 = vadd.bf16 1065369472, %v10059_v3  ;;  %v5073_v37 = vadd.f32 %v13676_v15, %v16335_v39  ;;  %v16344_v45 = vld [vmem:[#allocation25_spill] sm:$0xff]  ;;  %v16345_v24 = vld [vmem:[#allocation79_spill] sm:$0xff]  ;;  %v16346_v20 = vld [vmem:[#allocation86_spill] sm:$0xff]  ;;  %16347 = vst [vmem:[#allocation116_spill] sm:$0xff] %v14095_v16 }
 0x30e   :  { %v8771_v36 = vmul.bf16 3216621497, %v16333_v56  ;;  %10070 = vrcp.bf16 %v4762_v28  ;;  %v4625_v43 = vadd.f32 %v13678_v1, %v16334_v54  ;;  %v5075_v60 = vadd.f32 %v16338_v53, %v16335_v39  ;;  %v14097_v25 = vpop.f32.mrb[170].mxu1  ;;  %v16349_v7 = vld [vmem:[#allocation84_spill] sm:$0xff] }
 0x30f   :  { %v4627_v59 = vadd.f32 %v16340_v31, %v16339_v58  ;;  %v14089_v15 = vadd.f32 %v4003_v30, %v16343_v14  ;;  %10072 = vrcp.bf16 %v5212_v17  ;;  %v5077_v48 = vadd.f32 %v16345_v24, %v16344_v45  ;;  %16348 = vst [vmem:[#allocation42_spill] sm:$0xff] %v14097_v25  ;;  %v16350_v56 = vld [vmem:[#allocation12_spill] sm:$0xff]  ;;  %v16351_v30 = vld [vmem:[#allocation87_spill] sm:$0xff]  ;;  %v14103_v17 = vpop.f32.mrb[171].mxu0  ;;  %v14105_v31 = vpop.f32.mrb[171].mxu1 }
 0x310   :  { %v4629_v1 = vadd.f32 %v16346_v20, %v16339_v58  ;;  %v10061_v51 = vpop.eup %10060  ;;  %10074 = vrcp.bf16 %v4763_v6  ;;  %v5079_v3 = vadd.f32 %v16349_v7, %v16344_v45  ;;  %v4633_v53 = vadd.f32 %v16351_v30, %v16350_v56  ;;  %16352 = vst [vmem:[#allocation117_spill] sm:$0xff] %v14103_v17  ;;  %16353 = vst [vmem:[#allocation76_spill] sm:$0xff] %v14105_v31  ;;  %v9346_v24 = vld [vmem:[#allocation2 + $0x6f0] ss:$8 sps:$4 sm:$0xff]  }
 0x311   :  { %v4685_v28 = vpack.c.bf16 %v4627_v59, %v4623_v62  ;;  %v4259_v14 = vmul.bf16 1065369472, %v10061_v51  ;;  %10076 = vrcp.bf16 %v5213_v0  ;;  %v5135_v20 = vpack.c.bf16 %v5077_v48, %v5073_v37  ;;  %v16354_v62 = vld [vmem:[#allocation27_spill] sm:$0xff]  ;;  %v16355_v59 = vld [vmem:[#allocation88_spill] sm:$0xff]  ;;  %v16356_v51 = vld [vmem:[#allocation85_spill] sm:$0xff] }
 0x312   :  { %v4686_v58 = vpack.c.bf16 %v4629_v1, %v4625_v43  ;;  %10078 = vpow.bf16 %v14038_v2  ;;  %v5136_v6 = vpack.c.bf16 %v5079_v3, %v5075_v60  ;;  %v14110_v54 = vadd.f32 %v16355_v59, %v16354_v62  ;;  %v16357_v37 = vld [vmem:[#allocation89_spill] sm:$0xff]  ;;  %v16358_v48 = vld [vmem:[#allocation11_spill] sm:$0xff]  ;;  %v16359_v1 = vld [vmem:[#allocation90_spill] sm:$0xff] }
 0x313   :  { %v8740_v39 = vmul.bf16 3216621497, %v4685_v28  ;;  %v4276_v7 = vmul.bf16 %v14048_v22, %v4259_v14  ;;  %10080 = vpow.bf16 %v8771_v36  ;;  %v8772_v30 = vmul.bf16 3216621497, %v5135_v20  ;;  %v16360_v22 = vld [vmem:[#allocation38_spill] sm:$0xff]  ;;  %v16361_v36 = vld [vmem:[#allocation96_spill] sm:$0xff] }
 0x314   :  { %v8741_v45 = vmul.bf16 3216621497, %v4686_v58  ;;  %v8773_v40 = vmul.bf16 3216621497, %v5136_v6  ;;  %v14115_v0 = vadd.f32 %v16356_v51, %v16350_v56  ;;  %v14119_v2 = vadd.f32 %v16357_v37, %v16354_v62  ;;  %v14129_v58 = vpop.f32.mrb[172].mxu1  ;;  %v16364_v59 = vld [vmem:[#allocation92_spill] sm:$0xff] }
 0x315   :  { %10082 = vpow.bf16 %v8740_v39  ;;  %v10063_v43 = vpop.eup %10062  ;;  %v4389_v60 = vsub.bf16 %v4276_v7, %v9346_v24  ;;  %v4637_v28 = vadd.f32 %v16359_v1, %v16358_v48  ;;  %v14125_v3 = vadd.f32 %v16361_v36, %v16360_v22  ;;  %v14127_v39 = vpop.f32.mrb[172].mxu0  ;;  %16363 = vst [vmem:[#allocation75_spill] sm:$0xff] %v14129_v58  ;;  %v9348_v6 = vld [vmem:[#allocation2 + $0x4f4] ss:$8 sps:$4 sm:$0xff]   ;;  %v16365_v24 = vld [vmem:[#allocation93_spill] sm:$0xff] }
 0x316   :  { %10084 = vpow.bf16 %v8772_v30  ;;  %16362 = vst [vmem:[#allocation78_spill] sm:$0xff] %v14127_v39  ;;  %v10065_v14 = vpop.eup %10064  ;;  %v3811_v20 = vmul.bf16 1065369472, %v10063_v43  ;;  %v14133_v51 = vadd.f32 %v16364_v59, %v16358_v48  ;;  %v14137_v7 = vadd.f32 %v16365_v24, %v16360_v22  ;;  %v14139_v30 = vpop.f32.mrb[173].mxu0  ;;  %v9349_v56 = vld [vmem:[#allocation2 + $0x6f4] ss:$8 sps:$4 sm:$0xff]  }
 0x317   :  { %10086 = vpow.bf16 %v8741_v45  ;;  %16366 = vst [vmem:[#allocation82_spill] sm:$0xff] %v14139_v30  ;;  %v14141_v37 = vpop.f32.mrb[173].mxu1  ;;  %v10067_v1 = vpop.eup %10066  ;;  %v4405_v36 = vand.u32 2147450879, %v4389_v60  ;;  %v4261_v62 = vmul.bf16 1065369472, %v10065_v14  ;;  %v4687_v43 = vpack.c.bf16 %v4637_v28, %v4633_v53 }
 0x318   :  { %16367 = vst [vmem:[#allocation81_spill] sm:$0xff] %v14141_v37  ;;  %10088 = vpow.bf16 %v8773_v40  ;;  %v10069_v18 = vpop.eup %10068  ;;  %v10705_v45 = vld [vmem:[%s15595_s0 + $0xf4] ss:$8 sps:$4 sm:$0xff]   ;;  %v4778_v48 = vmul.bf16 1065369472, %v10067_v1  ;;  %v14155_v24 = vpop.f32.mrb[174].mxu0 }
 0x319   :  { %v3827_v59 = vmul.bf16 %v10705_v45, %v3811_v20  ;;  %v9350_v58 = vld [vmem:[#allocation2 + $0x100] ss:$8 sps:$4 sm:$0xff]   ;;  %v10071_v37 = vpop.eup %10070  ;;  %v4435_v60 = vunpack.c.l.bf16 %v4405_v36  ;;  %v4437_v14 = vunpack.c.h.bf16 %v4405_v36  ;;  %v4277_v30 = vmul.bf16 %v10705_v45, %v4261_v62  ;;  %v9354_v28 = vld [vmem:[#allocation2 + $0x104] ss:$8 sps:$4 sm:$0xff]   ;;  %16368 = vst [vmem:[#allocation79_spill] sm:$0xff] %v14155_v24 }
 0x31a   :  { %v5228_v40 = vmul.bf16 1065369472, %v10069_v18  ;;  %v9352_v53 = vld [vmem:[#allocation2 + $0x300] ss:$8 sps:$4 sm:$0xff]   ;;  %v10073_v39 = vpop.eup %10072  ;;  %v4780_v17 = vmul.bf16 1065369472, %v10071_v37 }
 0x31b   :  { %v3940_v31 = vsub.bf16 %v3827_v59, %v9348_v6  ;;  %v10706_v20 = vld [vmem:[%s15595_s0 + $0x100] ss:$8 sps:$4 sm:$0xff]   ;;  %v14153_v25 = vmul.bf16 3216621497, %v4687_v43  ;;  %v10075_v22 = vpop.eup %10074  ;;  %v4452_v16 = vadd.f32 %v14060_v52, %v4435_v60  ;;  %v4390_v36 = vsub.bf16 %v4277_v30, %v9349_v56  ;;  %v10707_v6 = vld [vmem:[%s15595_s0 + $0x104] ss:$8 sps:$4 sm:$0xff]  }
 0x31c   :  { %v4809_v1 = vmul.bf16 %v10706_v20, %v4778_v48  ;;  %v5259_v62 = vmul.bf16 %v10706_v20, %v5228_v40  ;;  %v5230_v18 = vmul.bf16 1065369472, %v10073_v39  ;;  %v10077_v45 = vpop.eup %10076  ;;  %v4810_v59 = vmul.bf16 %v10707_v6, %v4780_v17 }
 0x31d   :  { %v3956_v13 = vand.u32 2147450879, %v3940_v31  ;;  %v4782_v48 = vmul.bf16 1065369472, %v10075_v22  ;;  %v10079_v37 = vpop.eup %10078  ;;  %v4453_v43 = vadd.f32 %v4452_v16, %v4437_v14  ;;  %v4406_v33 = vand.u32 2147450879, %v4390_v36 }
 0x31e   :  { %v4922_v26 = vsub.bf16 %v4809_v1, %v9350_v58  ;;  %v5372_v9 = vsub.bf16 %v5259_v62, %v9352_v53  ;;  %v5260_v24 = vmul.bf16 %v10707_v6, %v5230_v18  ;;  %v10081_v27 = vpop.eup %10080  ;;  %v4923_v39 = vsub.bf16 %v4810_v59, %v9354_v28  ;;  %v9356_v28 = vld [vmem:[#allocation2 + $0x110] ss:$8 sps:$4 sm:$0xff]   ;;  %v14166_v18 = vpop.f32.mrb[174].mxu1 }
 0x31f   :  { %v3986_v52 = vunpack.c.l.bf16 %v3956_v13  ;;  %v3988_v56 = vunpack.c.h.bf16 %v3956_v13  ;;  %v14162_v31 = vadd.f32 %v4453_v43, %v14089_v15  ;;  %v4436_v58 = vunpack.c.l.bf16 %v4406_v33  ;;  %16370 = vst [vmem:[#allocation84_spill] sm:$0xff] %v14166_v18 }
 0x320   :  { %v4938_v30 = vand.u32 2147450879, %v4922_v26  ;;  %v10083_v60 = vpop.eup %10082  ;;  %v4438_v40 = vunpack.c.h.bf16 %v4406_v33  ;;  %v5388_v20 = vand.u32 2147450879, %v5372_v9  ;;  %v4939_v53 = vand.u32 2147450879, %v4923_v39 }
 0x321   :  { %16369 = vst [vmem:[#allocation86_spill] sm:$0xff] %v14162_v31  ;;  %v10085_v17 = vpop.eup %10084  ;;  %v4017_v22 = vadd.f32 %v14063_v61, %v3986_v52  ;;  %v4467_v36 = vadd.f32 %v14065_v10, %v4436_v58  ;;  %v5373_v26 = vsub.bf16 %v5260_v24, %v9355_v8  ;;  %v10708_v52 = vld [vmem:[%s15595_s0 + $0x110] ss:$8 sps:$4 sm:$0xff]   ;;  %v14171_v10 = vpop.f32.mrb[175].mxu0 }
 0x322   :  { %v4954_v16 = vunpack.c.l.bf16 %v4938_v30  ;;  %v4956_v14 = vunpack.c.h.bf16 %v4938_v30  ;;  %v10087_v1 = vpop.eup %10086  ;;  %v5404_v62 = vunpack.c.l.bf16 %v5388_v20  ;;  %v5406_v13 = vunpack.c.h.bf16 %v5388_v20  ;;  %16371 = vst [vmem:[#allocation87_spill] sm:$0xff] %v14171_v10  ;;  %v14173_v39 = vpop.f32.mrb[175].mxu1  ;;  %v16373_v8 = vld [vmem:[#allocation91_spill] sm:$0xff] }
 0x323   :  { %v10089_v15 = vpop.eup %10088  ;;  %v4018_v6 = vadd.f32 %v4017_v22, %v3988_v56  ;;  %v4955_v33 = vunpack.c.l.bf16 %v4939_v53  ;;  %v4957_v9 = vunpack.c.h.bf16 %v4939_v53  ;;  %v4468_v43 = vadd.f32 %v4467_v36, %v4438_v40  ;;  %16372 = vst [vmem:[#allocation88_spill] sm:$0xff] %v14173_v39  ;;  %v9358_v20 = vld [vmem:[#allocation2 + $0x310] ss:$8 sps:$4 sm:$0xff]  }
 0x324   :  { %v4986_v59 = vadd.f32 %v4956_v14, %v4954_v16  ;;  %v5436_v31 = vadd.f32 %v5406_v13, %v5404_v62  ;;  %v5389_v61 = vand.u32 2147450879, %v5373_v26  ;;  %v4811_v30 = vmul.bf16 %v10708_v52, %v4782_v48 }
 0x325   :  { %v4020_v24 = vadd.f32 %v4018_v6, %v16373_v8  ;;  %v14176_v58 = vadd.f32 %v4957_v9, %v4955_v33  ;;  %v5232_v56 = vmul.bf16 1065369472, %v10077_v45  ;;  %v4764_v22 = vadd.bf16 1065369472, %v10079_v37  ;;  %v14194_v8 = vpop.f32.mrb[176].mxu0 }
 0x326   :  { %v5405_v16 = vunpack.c.l.bf16 %v5389_v61  ;;  %v5407_v40 = vunpack.c.h.bf16 %v5389_v61  ;;  %v4924_v14 = vsub.bf16 %v4811_v30, %v9356_v28  ;;  %v5214_v53 = vadd.bf16 1065369472, %v10081_v27  ;;  %v16377_v30 = vld [vmem:[#allocation45_spill] sm:$0xff]  ;;  %16378 = vst [vmem:[#allocation85_spill] sm:$0xff] %v14194_v8 }
 0x327   :  { %v14178_v36 = vadd.f32 %v4468_v43, %v4020_v24  ;;  %v5261_v62 = vmul.bf16 %v10708_v52, %v5232_v56  ;;  %10090 = vrcp.bf16 %v4764_v22  ;;  %v4765_v48 = vadd.bf16 1065369472, %v10083_v60 }
 0x328   :  { %v14180_v13 = vadd.f32 %v5407_v40, %v5405_v16  ;;  %v4940_v26 = vand.u32 2147450879, %v4924_v14  ;;  %10092 = vrcp.bf16 %v5214_v53  ;;  %v5215_v39 = vadd.bf16 1065369472, %v10085_v17  ;;  %v16387_v40 = vld [vmem:[#allocation100_spill] sm:$0xff]  ;;  %v16388_v53 = vld [vmem:[#allocation47_spill] sm:$0xff] }
 0x329   :  { %v5374_v6 = vsub.bf16 %v5261_v62, %v9358_v20  ;;  %10094 = vrcp.bf16 %v4765_v48  ;;  %v4766_v33 = vadd.bf16 1065369472, %v10087_v1  ;;  %v5216_v45 = vadd.bf16 1065369472, %v10089_v15  ;;  %v16376_v1 = vld [vmem:[#allocation14_spill] sm:$0xff] }
 0x32a   :  { %v4958_v9 = vunpack.c.l.bf16 %v4940_v26  ;;  %v4960_v37 = vunpack.c.h.bf16 %v4940_v26  ;;  %10096 = vrcp.bf16 %v5215_v39  ;;  %v16374_v27 = vpack.c.bf16 %v14125_v3, %v14110_v54  ;;  %v14196_v54 = vpop.f32.mrb[176].mxu1  ;;  %v16389_v62 = vld [vmem:[#allocation98_spill] sm:$0xff] }
 0x32b   :  { %v5390_v43 = vand.u32 2147450879, %v5374_v6  ;;  %10098 = vrcp.bf16 %v4766_v33  ;;  %v16375_v60 = vpack.c.bf16 %v14133_v51, %v14115_v0  ;;  %v5138_v17 = vpack.c.bf16 %v14137_v7, %v14119_v2  ;;  %16379 = vst [vmem:[#allocation89_spill] sm:$0xff] %v14196_v54  ;;  %v14199_v51 = vpop.f32.mrb[177].mxu0  ;;  %v14201_v2 = vpop.f32.mrb[177].mxu1  ;;  %v16392_v33 = vld [vmem:[#allocation99_spill] sm:$0xff] }
 0x32c   :  { %v8774_v28 = vmul.bf16 3216621497, %v16374_v27  ;;  %v4987_v52 = vadd.f32 %v4986_v59, %v4958_v9  ;;  %10100 = vrcp.bf16 %v5216_v45  ;;  %v4643_v15 = vadd.f32 %v13760_v38, %v16376_v1  ;;  %16380 = vst [vmem:[#allocation90_spill] sm:$0xff] %v14199_v51  ;;  %16381 = vst [vmem:[#allocation96_spill] sm:$0xff] %v14201_v2  ;;  %v16382_v38 = vld [vmem:[#allocation94_spill] sm:$0xff]  ;;  %v14209_v20 = vpop.f32.mrb[178].mxu0 }
 0x32d   :  { %v8743_v61 = vmul.bf16 3216621497, %v16375_v60  ;;  %v5093_v39 = vadd.f32 %v13762_v5, %v16377_v30  ;;  %v5408_v3 = vunpack.c.l.bf16 %v5390_v43  ;;  %v5410_v24 = vunpack.c.h.bf16 %v5390_v43  ;;  %v16383_v5 = vld [vmem:[#allocation95_spill] sm:$0xff]  ;;  %16384 = vst [vmem:[#allocation92_spill] sm:$0xff] %v14209_v20  ;;  %v14211_v22 = vpop.f32.mrb[178].mxu1  ;;  %v14217_v26 = vpop.f32.mrb[179].mxu0 }
 0x32e   :  { %10102 = vpow.bf16 %v14153_v25  ;;  %v8775_v0 = vmul.bf16 3216621497, %v5138_v17  ;;  %v14203_v7 = vadd.f32 %v4987_v52, %v4960_v37  ;;  %v4645_v59 = vadd.f32 %v16382_v38, %v16376_v1  ;;  %16385 = vst [vmem:[#allocation93_spill] sm:$0xff] %v14211_v22  ;;  %v16386_v25 = vld [vmem:[#allocation13_spill] sm:$0xff]  ;;  %16390 = vst [vmem:[#allocation91_spill] sm:$0xff] %v14217_v26  ;;  %v14219_v6 = vpop.f32.mrb[179].mxu1 }
 0x32f   :  { %10104 = vpow.bf16 %v8774_v28  ;;  %v5095_v56 = vadd.f32 %v16383_v5, %v16377_v30  ;;  %v5437_v16 = vadd.f32 %v5436_v31, %v5408_v3  ;;  %v4647_v14 = vadd.f32 %v16387_v40, %v16386_v25  ;;  %16391 = vst [vmem:[#allocation94_spill] sm:$0xff] %v14219_v6  ;;  %v16393_v9 = vld [vmem:[#allocation101_spill] sm:$0xff]  ;;  %v16394_v27 = vld [vmem:[#allocation16_spill] sm:$0xff]  ;;  %v16395_v31 = vld [vmem:[#allocation102_spill] sm:$0xff] }
 0x330   :  { %10106 = vpow.bf16 %v8743_v61  ;;  %v5097_v48 = vadd.f32 %v16389_v62, %v16388_v53  ;;  %v4649_v45 = vadd.f32 %v16392_v33, %v16386_v25  ;;  %v5099_v37 = vadd.f32 %v16393_v9, %v16388_v53  ;;  %v16396_v17 = vld [vmem:[#allocation52_spill] sm:$0xff]  ;;  %v16397_v52 = vld [vmem:[#allocation103_spill] sm:$0xff]  ;;  %v16398_v33 = vld [vmem:[#allocation97_spill] sm:$0xff] }
 0x331   :  { %10108 = vpow.bf16 %v8775_v0  ;;  %v14227_v28 = vadd.f32 %v16395_v31, %v16394_v27  ;;  %v14229_v43 = vadd.f32 %v5437_v16, %v5410_v24  ;;  %v4689_v60 = vpack.c.bf16 %v4647_v14, %v4643_v15  ;;  %v9360_v0 = vld [vmem:[#allocation2 + $0x114] ss:$8 sps:$4 sm:$0xff]  }
 0x332   :  { %v5139_v61 = vpack.c.bf16 %v5097_v48, %v5093_v39  ;;  %v14233_v3 = vadd.f32 %v16397_v52, %v16396_v17  ;;  %v10091_v38 = vpop.eup %10090  ;;  %v9361_v5 = vld [vmem:[#allocation2 + $0x314] ss:$8 sps:$4 sm:$0xff]   ;;  %v4690_v40 = vpack.c.bf16 %v4649_v45, %v4645_v59  ;;  %v5140_v62 = vpack.c.bf16 %v5099_v37, %v5095_v56  ;;  %v16401_v48 = vld [vmem:[#allocation105_spill] sm:$0xff]  ;;  %v16403_v37 = vld [vmem:[#allocation106_spill] sm:$0xff] }
 0x333   :  { %v14237_v9 = vadd.f32 %v16398_v33, %v16394_v27  ;;  %v16399_v31 = vld [vmem:[#allocation104_spill] sm:$0xff]  ;;  %v10093_v24 = vpop.eup %10092  ;;  %v4784_v15 = vmul.bf16 1065369472, %v10091_v38  ;;  %v8744_v39 = vmul.bf16 3216621497, %v4689_v60  ;;  %v16400_v14 = vld [vmem:[#allocation15_spill] sm:$0xff] }
 0x334   :  { %v14241_v53 = vadd.f32 %v16399_v31, %v16396_v17  ;;  %v8776_v16 = vmul.bf16 3216621497, %v5139_v61  ;;  %v14245_v52 = vadd.f32 %v16401_v48, %v16400_v14  ;;  %v10095_v25 = vpop.eup %10094  ;;  %v5234_v30 = vmul.bf16 1065369472, %v10093_v24  ;;  %v16402_v45 = vld [vmem:[#allocation53_spill] sm:$0xff] }
 0x335   :  { %v8745_v59 = vmul.bf16 3216621497, %v4690_v40  ;;  %v8777_v56 = vmul.bf16 3216621497, %v5140_v62  ;;  %v14249_v33 = vadd.f32 %v16403_v37, %v16402_v45  ;;  %v10097_v27 = vpop.eup %10096  ;;  %v10709_v31 = vld [vmem:[%s15595_s0 + $0x114] ss:$8 sps:$4 sm:$0xff]   ;;  %10110 = vpow.bf16 %v8744_v39 }
 0x336   :  { %v4812_v38 = vmul.bf16 %v10709_v31, %v4784_v15  ;;  %v4786_v60 = vmul.bf16 1065369472, %v10095_v25  ;;  %v9362_v61 = vld [vmem:[#allocation2 + $0x120] ss:$8 sps:$4 sm:$0xff]   ;;  %v10099_v17 = vpop.eup %10098  ;;  %v5262_v24 = vmul.bf16 %v10709_v31, %v5234_v30  ;;  %v5236_v40 = vmul.bf16 1065369472, %v10097_v27 }
 0x337   :  { %v9364_v62 = vld [vmem:[#allocation2 + $0x320] ss:$8 sps:$4 sm:$0xff]   ;;  %10112 = vpow.bf16 %v8776_v16  ;;  %v10101_v1 = vpop.eup %10100  ;;  %v4788_v26 = vmul.bf16 1065369472, %v10099_v17  ;;  %v9366_v39 = vld [vmem:[#allocation2 + $0x124] ss:$8 sps:$4 sm:$0xff]  }
 0x338   :  { %v4925_v6 = vsub.bf16 %v4812_v38, %v9360_v0  ;;  %v10710_v15 = vld [vmem:[%s15595_s0 + $0x120] ss:$8 sps:$4 sm:$0xff]   ;;  %10114 = vpow.bf16 %v8745_v59  ;;  %v5375_v48 = vsub.bf16 %v5262_v24, %v9361_v5  ;;  %v5238_v30 = vmul.bf16 1065369472, %v10101_v1  ;;  %v9367_v27 = vld [vmem:[#allocation2 + $0x324] ss:$8 sps:$4 sm:$0xff]  }
 0x339   :  { %v4813_v25 = vmul.bf16 %v10710_v15, %v4786_v60  ;;  %v10103_v22 = vpop.eup %10102  ;;  %v5263_v20 = vmul.bf16 %v10710_v15, %v5236_v40  ;;  %10116 = vpow.bf16 %v8777_v56  ;;  %v10711_v0 = vld [vmem:[%s15595_s0 + $0x124] ss:$8 sps:$4 sm:$0xff]  }
 0x33a   :  { %v10105_v16 = vpop.eup %10104  ;;  %v4941_v31 = vand.u32 2147450879, %v4925_v6  ;;  %v4814_v38 = vmul.bf16 %v10711_v0, %v4788_v26  ;;  %v4767_v37 = vadd.bf16 1065369472, %v10103_v22  ;;  %v5391_v60 = vand.u32 2147450879, %v5375_v48 }
 0x33b   :  { %v4926_v2 = vsub.bf16 %v4813_v25, %v9362_v61  ;;  %v10107_v51 = vpop.eup %10106  ;;  %v5376_v17 = vsub.bf16 %v5263_v20, %v9364_v62  ;;  %v5264_v54 = vmul.bf16 %v10711_v0, %v5238_v30  ;;  %v5217_v59 = vadd.bf16 1065369472, %v10105_v16 }
 0x33c   :  { %v10109_v8 = vpop.eup %10108  ;;  %v4959_v5 = vunpack.c.l.bf16 %v4941_v31  ;;  %v4961_v24 = vunpack.c.h.bf16 %v4941_v31  ;;  %v4927_v40 = vsub.bf16 %v4814_v38, %v9366_v39  ;;  %v5409_v56 = vunpack.c.l.bf16 %v5391_v60 }
 0x33d   :  { %v4942_v1 = vand.u32 2147450879, %v4926_v2  ;;  %v5411_v15 = vunpack.c.h.bf16 %v5391_v60  ;;  %v5392_v6 = vand.u32 2147450879, %v5376_v17  ;;  %v5377_v61 = vsub.bf16 %v5264_v54, %v9367_v27 }
 0x33e   :  { %v5002_v25 = vadd.f32 %v14176_v58, %v4959_v5  ;;  %v4943_v26 = vand.u32 2147450879, %v4927_v40  ;;  %v5452_v22 = vadd.f32 %v14180_v13, %v5409_v56  ;;  %10118 = vrcp.bf16 %v4767_v37 }
 0x33f   :  { %v4962_v10 = vunpack.c.l.bf16 %v4942_v1  ;;  %v4964_v18 = vunpack.c.h.bf16 %v4942_v1  ;;  %v5412_v48 = vunpack.c.l.bf16 %v5392_v6  ;;  %v5414_v20 = vunpack.c.h.bf16 %v5392_v6  ;;  %v14276_v6 = vpop.f32.mrb[180].mxu1 }
 0x340   :  { %v5393_v62 = vand.u32 2147450879, %v5377_v61  ;;  %v5003_v30 = vadd.f32 %v5002_v25, %v4961_v24  ;;  %v4963_v31 = vunpack.c.l.bf16 %v4943_v26  ;;  %v4965_v2 = vunpack.c.h.bf16 %v4943_v26  ;;  %v10111_v39 = vpop.eup %10110  ;;  %v14282_v25 = vpop.f32.mrb[181].mxu1 }
 0x341   :  { %v4989_v16 = vadd.f32 %v14203_v7, %v4962_v10  ;;  %v5453_v0 = vadd.f32 %v5452_v22, %v5411_v15  ;;  %v5439_v38 = vadd.f32 %v14229_v43, %v5412_v48  ;;  %v4768_v13 = vadd.bf16 1065369472, %v10107_v51  ;;  %v14274_v15 = vpop.f32.mrb[180].mxu0  ;;  %v16406_v48 = vld [vmem:[#allocation107_spill] sm:$0xff] }
 0x342   :  { %v5413_v54 = vunpack.c.l.bf16 %v5393_v62  ;;  %v5415_v27 = vunpack.c.h.bf16 %v5393_v62  ;;  %v10113_v58 = vpop.eup %10112  ;;  %v5004_v17 = vadd.f32 %v5003_v30, %v4963_v31  ;;  %10120 = vrcp.bf16 %v5217_v59  ;;  %v14280_v61 = vpop.f32.mrb[181].mxu0  ;;  %v16407_v62 = vld [vmem:[#allocation108_spill] sm:$0xff] }
 0x343   :  { %v14268_v60 = vadd.f32 %v4989_v16, %v4964_v18  ;;  %v10115_v5 = vpop.eup %10114  ;;  %v14270_v1 = vadd.f32 %v5439_v38, %v5414_v20  ;;  %v5218_v10 = vadd.bf16 1065369472, %v10109_v8  ;;  %10122 = vrcp.bf16 %v4768_v13  ;;  %v16408_v16 = vld [vmem:[#allocation18_spill] sm:$0xff] }
 0x344   :  { %v5454_v24 = vadd.f32 %v5453_v0, %v5413_v54  ;;  %v10117_v7 = vpop.eup %10116  ;;  %v14272_v40 = vadd.f32 %v5004_v17, %v4965_v2  ;;  %v4769_v56 = vadd.bf16 1065369472, %v10111_v39  ;;  %v5219_v43 = vadd.bf16 1065369472, %v10113_v58  ;;  %v16409_v2 = vld [vmem:[#allocation60_spill] sm:$0xff]  ;;  %v14298_v0 = vpop.f32.mrb[182].mxu0 }
 0x345   :  { %10124 = vrcp.bf16 %v5218_v10  ;;  %v4770_v51 = vadd.bf16 1065369472, %v10115_v5  ;;  %v5220_v37 = vadd.bf16 1065369472, %v10117_v7  ;;  %v16404_v8 = vpack.c.bf16 %v14245_v52, %v14227_v28  ;;  %v14300_v28 = vpop.f32.mrb[182].mxu1  ;;  %v14307_v38 = vpop.f32.mrb[183].mxu0 }
 0x346   :  { %v14278_v18 = vadd.f32 %v5454_v24, %v5415_v27  ;;  %10126 = vrcp.bf16 %v4769_v56  ;;  %v16405_v26 = vpack.c.bf16 %v14249_v33, %v14233_v3  ;;  %v4659_v20 = vadd.f32 %v16406_v48, %v16400_v14  ;;  %16410 = vst [vmem:[#allocation95_spill] sm:$0xff] %v14307_v38  ;;  %v14309_v54 = vpop.f32.mrb[183].mxu1  ;;  %v16413_v58 = vld [vmem:[#allocation61_spill] sm:$0xff]  ;;  %v9368_v56 = vld [vmem:[#allocation2 + $0x130] ss:$8 sps:$4 sm:$0xff]  }
 0x347   :  { %v8746_v59 = vmul.bf16 3216621497, %v16404_v8  ;;  %10128 = vrcp.bf16 %v5219_v43  ;;  %v5109_v30 = vadd.f32 %v16407_v62, %v16402_v45  ;;  %v4663_v31 = vadd.f32 %v13858_v11, %v16408_v16  ;;  %16411 = vst [vmem:[#allocation100_spill] sm:$0xff] %v14309_v54  ;;  %v14324_v8 = vpop.f32.mrb[184].mxu1 }
 0x348   :  { %v8778_v22 = vmul.bf16 3216621497, %v16405_v26  ;;  %v5113_v39 = vadd.f32 %v13860_v55, %v16409_v2  ;;  %10130 = vrcp.bf16 %v4770_v51  ;;  %v4692_v3 = vpack.c.bf16 %v4659_v20, %v14237_v9  ;;  %v16412_v55 = vld [vmem:[#allocation17_spill] sm:$0xff]  ;;  %v16417_v51 = vld [vmem:[#allocation111_spill] sm:$0xff]  ;;  %16419 = vst [vmem:[#allocation99_spill] sm:$0xff] %v14324_v8  ;;  %v16420_v20 = vld [vmem:[#allocation46_spill] sm:$0xff] }
 0x349   :  { %v4665_v52 = vadd.f32 %v13864_v41, %v16408_v16  ;;  %v5115_v33 = vadd.f32 %v13866_v12, %v16409_v2  ;;  %10132 = vrcp.bf16 %v5220_v37  ;;  %v5142_v11 = vpack.c.bf16 %v5109_v30, %v14241_v53  ;;  %v16414_v41 = vld [vmem:[#allocation109_spill] sm:$0xff]  ;;  %v16415_v12 = vld [vmem:[#allocation110_spill] sm:$0xff]  ;;  %v9373_v2 = vld [vmem:[#allocation2 + $0x334] ss:$8 sps:$4 sm:$0xff]  }
 0x34a   :  { %v4667_v27 = vadd.f32 %v13872_v63, %v16412_v55  ;;  %v5117_v17 = vadd.f32 %v13874_v46, %v16413_v58  ;;  %10134 = vpow.bf16 %v8746_v59  ;;  %v8747_v9 = vmul.bf16 3216621497, %v4692_v3  ;;  %v16416_v63 = vld [vmem:[#allocation20_spill] sm:$0xff]  ;;  %v14322_v46 = vpop.f32.mrb[184].mxu0  ;;  %v10119_v59 = vpop.eup %10118 }
 0x34b   :  { %v4669_v13 = vadd.f32 %v16414_v41, %v16412_v55  ;;  %v5119_v5 = vadd.f32 %v16415_v12, %v16413_v58  ;;  %10136 = vpow.bf16 %v8778_v22  ;;  %v8779_v24 = vmul.bf16 3216621497, %v5142_v11  ;;  %16418 = vst [vmem:[#allocation98_spill] sm:$0xff] %v14322_v46  ;;  %v16421_v22 = vld [vmem:[#allocation56_spill] sm:$0xff]  ;;  %v14330_v30 = vpop.f32.mrb[185].mxu0  ;;  %v16424_v11 = vld [vmem:[#allocation66_spill] sm:$0xff] }
 0x34c   :  { %v4693_v10 = vpack.c.bf16 %v4667_v27, %v4663_v31  ;;  %v5143_v7 = vpack.c.bf16 %v5117_v17, %v5113_v39  ;;  %10138 = vpow.bf16 %v8747_v9  ;;  %v4673_v37 = vadd.f32 %v16417_v51, %v16416_v63  ;;  %16422 = vst [vmem:[#allocation101_spill] sm:$0xff] %v14330_v30  ;;  %v14332_v31 = vpop.f32.mrb[185].mxu1  ;;  %v9370_v41 = vld [vmem:[#allocation2 + $0x330] ss:$8 sps:$4 sm:$0xff]  }
 0x34d   :  { %v4694_v53 = vpack.c.bf16 %v4669_v13, %v4665_v52  ;;  %v5144_v43 = vpack.c.bf16 %v5119_v5, %v5115_v33  ;;  %10140 = vpow.bf16 %v8779_v24  ;;  %v14328_v62 = vadd.f32 %v16421_v22, %v16420_v20  ;;  %16423 = vst [vmem:[#allocation102_spill] sm:$0xff] %v14332_v31  ;;  %v10121_v39 = vpop.eup %10120  ;;  %v16425_v13 = vld [vmem:[#allocation67_spill] sm:$0xff]  ;;  %v16427_v24 = vld [vmem:[#allocation68_spill] sm:$0xff]  ;;  %v14346_v51 = vpop.f32.mrb[186].mxu1  ;;  %v9376_v31 = vld [vmem:[#allocation2 + $0x340] ss:$8 sps:$4 sm:$0xff]  }
 0x34e   :  { %v8748_v26 = vmul.bf16 3216621497, %v4693_v10  ;;  %v8780_v48 = vmul.bf16 3216621497, %v5143_v7  ;;  %v4790_v3 = vmul.bf16 1065369472, %v10119_v59  ;;  %v14336_v27 = vadd.f32 %v16424_v11, %v16416_v63  ;;  %v10123_v17 = vpop.eup %10122 }
 0x34f   :  { %v8749_v52 = vmul.bf16 3216621497, %v4694_v53  ;;  %v8781_v33 = vmul.bf16 3216621497, %v5144_v43  ;;  %v5240_v9 = vmul.bf16 1065369472, %v10121_v39  ;;  %v14340_v12 = vadd.f32 %v16425_v13, %v16420_v20 }
 0x350   :  { %10142 = vpow.bf16 %v8748_v26  ;;  %v16426_v5 = vld [vmem:[#allocation19_spill] sm:$0xff]  ;;  %v14344_v7 = vpop.f32.mrb[186].mxu0  ;;  %16429 = vst [vmem:[#allocation97_spill] sm:$0xff] %v14346_v51  ;;  %v10125_v53 = vpop.eup %10124  ;;  %v4792_v22 = vmul.bf16 1065369472, %v10123_v17  ;;  %v16431_v11 = vld [vmem:[#allocation112_spill] sm:$0xff] }
 0x351   :  { %v4677_v10 = vadd.f32 %v16427_v24, %v16426_v5  ;;  %16428 = vst [vmem:[#allocation103_spill] sm:$0xff] %v14344_v7  ;;  %v10712_v43 = vld [vmem:[%s15595_s0 + $0x130] ss:$8 sps:$4 sm:$0xff]   ;;  %v9372_v39 = vld [vmem:[#allocation2 + $0x134] ss:$8 sps:$4 sm:$0xff]   ;;  %10144 = vpow.bf16 %v8780_v48  ;;  %v14355_v20 = vpop.f32.mrb[187].mxu0  ;;  %v10127_v63 = vpop.eup %10126 }
 0x352   :  { %v4815_v59 = vmul.bf16 %v10712_v43, %v4790_v3  ;;  %v16430_v26 = vld [vmem:[#allocation55_spill] sm:$0xff]  ;;  %16432 = vst [vmem:[#allocation104_spill] sm:$0xff] %v14355_v20  ;;  %v14357_v24 = vpop.f32.mrb[187].mxu1  ;;  %v5265_v58 = vmul.bf16 %v10712_v43, %v5240_v9  ;;  %v5242_v55 = vmul.bf16 1065369472, %v10125_v53  ;;  %10146 = vpow.bf16 %v8749_v52  ;;  %v10129_v45 = vpop.eup %10128 }
 0x353   :  { %v14353_v13 = vadd.f32 %v16431_v11, %v16430_v26  ;;  %16433 = vst [vmem:[#allocation105_spill] sm:$0xff] %v14357_v24  ;;  %v4695_v16 = vpack.c.bf16 %v4677_v10, %v4673_v37  ;;  %v10713_v48 = vld [vmem:[%s15595_s0 + $0x134] ss:$8 sps:$4 sm:$0xff]   ;;  %v4794_v17 = vmul.bf16 1065369472, %v10127_v63  ;;  %10148 = vpow.bf16 %v8781_v33  ;;  %v10131_v51 = vpop.eup %10130  ;;  %v14369_v63 = vpop.f32.mrb[188].mxu1 }
 0x354   :  { %v4928_v14 = vsub.bf16 %v4815_v59, %v9368_v56  ;;  %v4816_v3 = vmul.bf16 %v10713_v48, %v4792_v22  ;;  %v9374_v11 = vld [vmem:[#allocation2 + $0x140] ss:$8 sps:$4 sm:$0xff]   ;;  %v5378_v20 = vsub.bf16 %v5265_v58, %v9370_v41  ;;  %v5266_v7 = vmul.bf16 %v10713_v48, %v5242_v55  ;;  %v10133_v53 = vpop.eup %10132  ;;  %v14367_v59 = vpop.f32.mrb[188].mxu0  ;;  %16435 = vst [vmem:[#allocation107_spill] sm:$0xff] %v14369_v63 }
 0x355   :  { %v5244_v24 = vmul.bf16 1065369472, %v10129_v45  ;;  %v14362_v9 = vmul.bf16 3216621497, %v4695_v16  ;;  %v10714_v56 = vld [vmem:[%s15595_s0 + $0x140] ss:$8 sps:$4 sm:$0xff]   ;;  %v10135_v33 = vpop.eup %10134 }
 0x356   :  { %v4944_v52 = vand.u32 2147450879, %v4928_v14  ;;  %v4929_v37 = vsub.bf16 %v4816_v3, %v9372_v39  ;;  %v4817_v10 = vmul.bf16 %v10714_v56, %v4794_v17  ;;  %v4796_v43 = vmul.bf16 1065369472, %v10131_v51  ;;  %16434 = vst [vmem:[#allocation106_spill] sm:$0xff] %v14367_v59  ;;  %v14371_v16 = vpop.f32.mrb[189].mxu0  ;;  %v10137_v14 = vpop.eup %10136 }
 0x357   :  { %v5394_v58 = vand.u32 2147450879, %v5378_v20  ;;  %v5379_v55 = vsub.bf16 %v5266_v7, %v9373_v2  ;;  %v5267_v45 = vmul.bf16 %v10714_v56, %v5244_v24  ;;  %v5246_v41 = vmul.bf16 1065369472, %v10133_v53  ;;  %16436 = vst [vmem:[#allocation108_spill] sm:$0xff] %v14371_v16  ;;  %v14373_v22 = vpop.f32.mrb[189].mxu1  ;;  %v10139_v51 = vpop.eup %10138 }
 0x358   :  { %16437 = vst [vmem:[#allocation109_spill] sm:$0xff] %v14373_v22  ;;  %v4966_v39 = vunpack.c.l.bf16 %v4944_v52  ;;  %v4968_v48 = vunpack.c.h.bf16 %v4944_v52  ;;  %v4945_v3 = vand.u32 2147450879, %v4929_v37  ;;  %v4930_v30 = vsub.bf16 %v4817_v10, %v9374_v11  ;;  %v14375_v17 = vpop.f32.mrb[190].mxu0  ;;  %v10141_v20 = vpop.eup %10140 }
 0x359   :  { %16438 = vst [vmem:[#allocation110_spill] sm:$0xff] %v14375_v17  ;;  %v5416_v59 = vunpack.c.l.bf16 %v5394_v58  ;;  %v5418_v8 = vunpack.c.h.bf16 %v5394_v58  ;;  %v5395_v63 = vand.u32 2147450879, %v5379_v55  ;;  %v5380_v46 = vsub.bf16 %v5267_v45, %v9376_v31  ;;  %v9378_v58 = vld [vmem:[#allocation2 + $0x144] ss:$8 sps:$4 sm:$0xff]  }
 0x35a   :  { %v4991_v2 = vadd.f32 %v14268_v60, %v4966_v39  ;;  %v4967_v7 = vunpack.c.l.bf16 %v4945_v3  ;;  %v4969_v24 = vunpack.c.h.bf16 %v4945_v3  ;;  %v4946_v53 = vand.u32 2147450879, %v4930_v30  ;;  %v9379_v55 = vld [vmem:[#allocation2 + $0x344] ss:$8 sps:$4 sm:$0xff]  }
 0x35b   :  { %v5441_v56 = vadd.f32 %v14270_v1, %v5416_v59  ;;  %v5417_v22 = vunpack.c.l.bf16 %v5395_v63  ;;  %v5419_v16 = vunpack.c.h.bf16 %v5395_v63  ;;  %v5396_v52 = vand.u32 2147450879, %v5380_v46  ;;  %v10143_v37 = vpop.eup %10142  ;;  %v10715_v46 = vld [vmem:[%s15595_s0 + $0x144] ss:$8 sps:$4 sm:$0xff]  }
 0x35c   :  { %v4992_v11 = vadd.f32 %v4991_v2, %v4968_v48  ;;  %v5006_v10 = vadd.f32 %v14272_v40, %v4967_v7  ;;  %v4970_v17 = vunpack.c.l.bf16 %v4946_v53  ;;  %v4972_v54 = vunpack.c.h.bf16 %v4946_v53  ;;  %v10145_v31 = vpop.eup %10144  ;;  %v14384_v40 = vpop.f32.mrb[190].mxu1 }
 0x35d   :  { %v5442_v45 = vadd.f32 %v5441_v56, %v5418_v8  ;;  %v5456_v60 = vadd.f32 %v14278_v18, %v5417_v22  ;;  %v5420_v39 = vunpack.c.l.bf16 %v5396_v52  ;;  %v5422_v3 = vunpack.c.h.bf16 %v5396_v52  ;;  %v10147_v30 = vpop.eup %10146 }
 0x35e   :  { %v5007_v38 = vadd.f32 %v5006_v10, %v4969_v24  ;;  %v4993_v1 = vadd.f32 %v4992_v11, %v4970_v17  ;;  %v4818_v59 = vmul.bf16 %v10715_v46, %v4796_v43  ;;  %v5268_v63 = vmul.bf16 %v10715_v46, %v5246_v41  ;;  %v10149_v48 = vpop.eup %10148  ;;  %v14388_v24 = vpop.f32.mrb[191].mxu0 }
 0x35f   :  { %v5457_v2 = vadd.f32 %v5456_v60, %v5419_v16  ;;  %v5443_v7 = vadd.f32 %v5442_v45, %v5420_v39  ;;  %v4771_v53 = vadd.bf16 1065369472, %v10135_v33  ;;  %v5221_v8 = vadd.bf16 1065369472, %v10137_v14  ;;  %v14390_v17 = vpop.f32.mrb[191].mxu1  ;;  %v16439_v39 = vld [vmem:[#allocation113_spill] sm:$0xff] }
 0x360   :  { %v14386_v56 = vadd.f32 %v4993_v1, %v4972_v54  ;;  %v4931_v18 = vsub.bf16 %v4818_v59, %v9378_v58  ;;  %v5381_v22 = vsub.bf16 %v5268_v63, %v9379_v55  ;;  %v4772_v52 = vadd.bf16 1065369472, %v10139_v51  ;;  %v16442_v63 = vld [vmem:[#allocation32_spill] sm:$0xff] }
 0x361   :  { %v14392_v11 = vadd.f32 %v5443_v7, %v5422_v3  ;;  %10150 = vrcp.bf16 %v4771_v53  ;;  %v5222_v43 = vadd.bf16 1065369472, %v10141_v20  ;;  %v4773_v41 = vadd.bf16 1065369472, %v10143_v37  ;;  %v16440_v37 = vld [vmem:[#allocation69_spill] sm:$0xff]  ;;  %v14406_v7 = vpop.f32.mrb[192].mxu0 }
 0x362   :  { %v4947_v10 = vand.u32 2147450879, %v4931_v18  ;;  %v5397_v46 = vand.u32 2147450879, %v5381_v22  ;;  %10152 = vrcp.bf16 %v5221_v8  ;;  %v5223_v16 = vadd.bf16 1065369472, %v10145_v31 }
 0x363   :  { %10154 = vrcp.bf16 %v4772_v52  ;;  %v4774_v33 = vadd.bf16 1065369472, %v10147_v30  ;;  %v5224_v54 = vadd.bf16 1065369472, %v10149_v48  ;;  %v5145_v14 = vpack.c.bf16 %v14353_v13, %v14328_v62  ;;  %v16441_v30 = vld [vmem:[#allocation28_spill] sm:$0xff]  ;;  %v14408_v53 = vpop.f32.mrb[192].mxu1 }
 0x364   :  { %v4971_v51 = vunpack.c.l.bf16 %v4947_v10  ;;  %v4973_v58 = vunpack.c.h.bf16 %v4947_v10  ;;  %v5421_v55 = vunpack.c.l.bf16 %v5397_v46  ;;  %v5423_v45 = vunpack.c.h.bf16 %v5397_v46 }
 0x365   :  { %10156 = vrcp.bf16 %v5222_v43  ;;  %v8782_v60 = vmul.bf16 3216621497, %v5145_v14  ;;  %v4679_v20 = vadd.f32 %v16439_v39, %v16426_v5  ;;  %v5129_v3 = vadd.f32 %v16440_v37, %v16430_v26  ;;  %v16443_v43 = vld [vmem:[#allocation29_spill] sm:$0xff]  ;;  %v9384_v39 = vld [vmem:[#allocation2 + $0x154] ss:$8 sps:$4 sm:$0xff]  }
 0x366   :  { %v5008_v1 = vadd.f32 %v5007_v38, %v4971_v51  ;;  %v5458_v31 = vadd.f32 %v5457_v2, %v5421_v55  ;;  %10158 = vrcp.bf16 %v4773_v41  ;;  %v5503_v59 = vadd.f32 %v13962_v21, %v16441_v30  ;;  %v14416_v2 = vpop.f32.mrb[193].mxu0  ;;  %v9380_v51 = vld [vmem:[#allocation2 + $0x150] ss:$8 sps:$4 sm:$0xff]  }
 0x367   :  { %10160 = vrcp.bf16 %v5223_v16  ;;  %v4696_v62 = vpack.c.bf16 %v4679_v20, %v14336_v27  ;;  %v5146_v13 = vpack.c.bf16 %v5129_v3, %v14340_v12  ;;  %v5953_v48 = vadd.f32 %v13964_v23, %v16442_v63  ;;  %v14418_v27 = vpop.f32.mrb[193].mxu1  ;;  %v14422_v22 = vpop.f32.mrb[194].mxu0 }
 0x368   :  { %v14410_v8 = vadd.f32 %v5008_v1, %v4973_v58  ;;  %v14412_v38 = vadd.f32 %v5458_v31, %v5423_v45  ;;  %10162 = vrcp.bf16 %v4774_v33  ;;  %v5505_v21 = vadd.f32 %v13973_v50, %v16441_v30  ;;  %v14424_v52 = vpop.f32.mrb[194].mxu1  ;;  %v16444_v50 = vld [vmem:[#allocation33_spill] sm:$0xff]  ;;  %v14433_v16 = vpop.f32.mrb[195].mxu0  ;;  %v16445_v33 = vld [vmem:[#allocation30_spill] sm:$0xff]  ;;  %v10716_v31 = vld [vmem:[%s15595_s0 + $0x150] ss:$8 sps:$4 sm:$0xff]  }
 0x369   :  { %10164 = vrcp.bf16 %v5224_v54  ;;  %v8751_v12 = vmul.bf16 3216621497, %v4696_v62  ;;  %v8783_v18 = vmul.bf16 3216621497, %v5146_v13  ;;  %v5955_v23 = vadd.f32 %v13975_v44, %v16442_v63 }
 0x36a   :  { %10166 = vpow.bf16 %v14362_v9  ;;  %v5507_v41 = vadd.f32 %v13977_v47, %v16443_v43  ;;  %v5957_v10 = vadd.f32 %v13979_v57, %v16444_v50  ;;  %v5509_v46 = vadd.f32 %v13985_v42, %v16443_v43  ;;  %v16446_v9 = vld [vmem:[#allocation34_spill] sm:$0xff] }
 0x36b   :  { %10168 = vpow.bf16 %v8782_v60  ;;  %v5959_v44 = vadd.f32 %v13987_v19, %v16444_v50  ;;  %v14439_v54 = vadd.f32 %v14018_v49, %v16445_v33  ;;  %v14443_v14 = vadd.f32 %v14020_v34, %v16446_v9  ;;  %v9382_v60 = vld [vmem:[#allocation2 + $0x350] ss:$8 sps:$4 sm:$0xff]  }
 0x36c   :  { %v10151_v47 = vpop.eup %10150  ;;  %10170 = vpow.bf16 %v8751_v12  ;;  %v5581_v57 = vpack.c.bf16 %v5507_v41, %v5503_v59  ;;  %v6031_v58 = vpack.c.bf16 %v5957_v10, %v5953_v48  ;;  %v5582_v42 = vpack.c.bf16 %v5509_v46, %v5505_v21  ;;  %v10717_v46 = vld [vmem:[%s15595_s0 + $0x154] ss:$8 sps:$4 sm:$0xff]  }
 0x36d   :  { %v10153_v55 = vpop.eup %10152  ;;  %v4798_v45 = vmul.bf16 1065369472, %v10151_v47  ;;  %10172 = vpow.bf16 %v8783_v18  ;;  %v6032_v19 = vpack.c.bf16 %v5959_v44, %v5955_v23  ;;  %v14447_v49 = vadd.f32 %v14028_v32, %v16445_v33  ;;  %v16447_v32 = vld [vmem:[#allocation31_spill] sm:$0xff] }
 0x36e   :  { %v10155_v20 = vpop.eup %10154  ;;  %v5248_v37 = vmul.bf16 1065369472, %v10153_v55  ;;  %v8800_v34 = vmul.bf16 3216621497, %v5581_v57  ;;  %v8832_v3 = vmul.bf16 3216621497, %v6031_v58  ;;  %v14451_v1 = vadd.f32 %v14030_v4, %v16446_v9 }
 0x36f   :  { %v4819_v59 = vmul.bf16 %v10716_v31, %v4798_v45  ;;  %v4800_v62 = vmul.bf16 1065369472, %v10155_v20  ;;  %v8801_v13 = vmul.bf16 3216621497, %v5582_v42  ;;  %v8833_v48 = vmul.bf16 3216621497, %v6032_v19 }
 0x370   :  { %v10157_v21 = vpop.eup %10156  ;;  %v5269_v12 = vmul.bf16 %v10716_v31, %v5248_v37  ;;  %10174 = vpow.bf16 %v8800_v34  ;;  %v14458_v18 = vadd.f32 %v14032_v29, %v16447_v32  ;;  %v16448_v23 = vld [vmem:[#allocation35_spill] sm:$0xff]  ;;  %v9386_v45 = vld [vmem:[#allocation2 + $0x160] ss:$8 sps:$4 sm:$0xff]   ;;  %v14472_v9 = vpop.f32.mrb[195].mxu1 }
 0x371   :  { %v14462_v41 = vadd.f32 %v14052_v35, %v16448_v23  ;;  %v10159_v4 = vpop.eup %10158  ;;  %v4932_v10 = vsub.bf16 %v4819_v59, %v9380_v51  ;;  %v4820_v44 = vmul.bf16 %v10717_v46, %v4800_v62  ;;  %v5250_v47 = vmul.bf16 1065369472, %v10157_v21  ;;  %v9385_v57 = vld [vmem:[#allocation2 + $0x354] ss:$8 sps:$4 sm:$0xff]   ;;  %v10718_v59 = vld [vmem:[%s15595_s0 + $0x160] ss:$8 sps:$4 sm:$0xff]  }
 0x372   :  { %10176 = vpow.bf16 %v8832_v3  ;;  %v10161_v58 = vpop.eup %10160  ;;  %v5382_v42 = vsub.bf16 %v5269_v12, %v9382_v60  ;;  %v4802_v55 = vmul.bf16 1065369472, %v10159_v4  ;;  %v9388_v62 = vld [vmem:[#allocation2 + $0x360] ss:$8 sps:$4 sm:$0xff]  }
 0x373   :  { %10178 = vpow.bf16 %v8801_v13  ;;  %v10163_v35 = vpop.eup %10162  ;;  %v4948_v19 = vand.u32 2147450879, %v4932_v10  ;;  %v4933_v20 = vsub.bf16 %v4820_v44, %v9384_v39  ;;  %v5270_v51 = vmul.bf16 %v10717_v46, %v5250_v47 }
 0x374   :  { %v5252_v37 = vmul.bf16 1065369472, %v10161_v58  ;;  %v10165_v34 = vpop.eup %10164  ;;  %v5398_v31 = vand.u32 2147450879, %v5382_v42  ;;  %v4821_v3 = vmul.bf16 %v10718_v59, %v4802_v55  ;;  %v4804_v60 = vmul.bf16 1065369472, %v10163_v35 }
 0x375   :  { %10180 = vpow.bf16 %v8833_v48  ;;  %v10167_v21 = vpop.eup %10166  ;;  %v4974_v13 = vunpack.c.l.bf16 %v4948_v19  ;;  %v4976_v12 = vunpack.c.h.bf16 %v4948_v19  ;;  %v4949_v4 = vand.u32 2147450879, %v4933_v20  ;;  %v9390_v35 = vld [vmem:[#allocation2 + $0x164] ss:$8 sps:$4 sm:$0xff]  }
 0x376   :  { %v5383_v29 = vsub.bf16 %v5270_v51, %v9385_v57  ;;  %v10169_v39 = vpop.eup %10168  ;;  %v5424_v10 = vunpack.c.l.bf16 %v5398_v31  ;;  %v5426_v46 = vunpack.c.h.bf16 %v5398_v31  ;;  %v4934_v44 = vsub.bf16 %v4821_v3, %v9386_v45  ;;  %v10719_v57 = vld [vmem:[%s15595_s0 + $0x164] ss:$8 sps:$4 sm:$0xff]  }
 0x377   :  { %v5271_v47 = vmul.bf16 %v10718_v59, %v5252_v37  ;;  %v10171_v58 = vpop.eup %10170  ;;  %v4995_v42 = vadd.f32 %v14386_v56, %v4974_v13  ;;  %v4975_v33 = vunpack.c.l.bf16 %v4949_v4  ;;  %v4977_v55 = vunpack.c.h.bf16 %v4949_v4 }
 0x378   :  { %v5399_v50 = vand.u32 2147450879, %v5383_v29  ;;  %v10173_v48 = vpop.eup %10172  ;;  %v5445_v43 = vadd.f32 %v14392_v11, %v5424_v10  ;;  %v4950_v19 = vand.u32 2147450879, %v4934_v44  ;;  %v4822_v51 = vmul.bf16 %v10719_v57, %v4804_v60  ;;  %v9391_v44 = vld [vmem:[#allocation2 + $0x364] ss:$8 sps:$4 sm:$0xff]  }
 0x379   :  { %v5384_v20 = vsub.bf16 %v5271_v47, %v9388_v62  ;;  %v4996_v31 = vadd.f32 %v4995_v42, %v4976_v12  ;;  %v5010_v45 = vadd.f32 %v14410_v8, %v4975_v33  ;;  %v5254_v62 = vmul.bf16 1065369472, %v10165_v34 }
 0x37a   :  { %v5425_v37 = vunpack.c.l.bf16 %v5399_v50  ;;  %v5427_v59 = vunpack.c.h.bf16 %v5399_v50  ;;  %v5446_v56 = vadd.f32 %v5445_v43, %v5426_v46  ;;  %v4978_v3 = vunpack.c.l.bf16 %v4950_v19 }
 0x37b   :  { %v4980_v13 = vunpack.c.h.bf16 %v4950_v19  ;;  %v5400_v29 = vand.u32 2147450879, %v5384_v20  ;;  %v10175_v4 = vpop.eup %10174  ;;  %v5011_v63 = vadd.f32 %v5010_v45, %v4977_v55  ;;  %v4935_v10 = vsub.bf16 %v4822_v51, %v9390_v35  ;;  %v14483_v51 = vpop.f32.mrb[196].mxu0 }
 0x37c   :  { %v5460_v11 = vadd.f32 %v14412_v38, %v5425_v37  ;;  %v4997_v30 = vadd.f32 %v4996_v31, %v4978_v3  ;;  %v4775_v12 = vadd.bf16 1065369472, %v10167_v21  ;;  %v5272_v50 = vmul.bf16 %v10719_v57, %v5254_v62  ;;  %v14485_v31 = vpop.f32.mrb[196].mxu1 }
 0x37d   :  { %v10177_v47 = vpop.eup %10176  ;;  %v5428_v26 = vunpack.c.l.bf16 %v5400_v29  ;;  %v5430_v60 = vunpack.c.h.bf16 %v5400_v29  ;;  %v4951_v33 = vand.u32 2147450879, %v4935_v10  ;;  %v5225_v43 = vadd.bf16 1065369472, %v10169_v39  ;;  %v14489_v39 = vpop.f32.mrb[197].mxu0 }
 0x37e   :  { %v10179_v42 = vpop.eup %10178  ;;  %v5461_v8 = vadd.f32 %v5460_v11, %v5427_v59  ;;  %v14481_v46 = vadd.f32 %v4997_v30, %v4980_v13  ;;  %10182 = vrcp.bf16 %v4775_v12  ;;  %v4776_v55 = vadd.bf16 1065369472, %v10171_v58  ;;  %v14491_v30 = vpop.f32.mrb[197].mxu1  ;;  %v16454_v12 = vld [vmem:[#allocation36_spill] sm:$0xff] }
 0x37f   :  { %v5447_v19 = vadd.f32 %v5446_v56, %v5428_v26  ;;  %v4979_v38 = vunpack.c.l.bf16 %v4951_v33  ;;  %v4981_v35 = vunpack.c.h.bf16 %v4951_v33  ;;  %v5385_v34 = vsub.bf16 %v5272_v50, %v9391_v44  ;;  %v14500_v10 = vpop.f32.mrb[198].mxu0  ;;  %v16450_v44 = vld [vmem:[#allocation70_spill] sm:$0xff]  ;;  %v16456_v50 = vld [vmem:[#allocation39_spill] sm:$0xff] }
 0x380   :  { %v10181_v20 = vpop.eup %10180  ;;  %10184 = vrcp.bf16 %v5225_v43  ;;  %v5226_v45 = vadd.bf16 1065369472, %v10173_v48  ;;  %v5661_v57 = vadd.bf16 1065369472, %v10175_v4  ;;  %v6111_v37 = vadd.bf16 1065369472, %v10177_v47 }
 0x381   :  { %v14487_v21 = vadd.f32 %v5447_v19, %v5430_v60  ;;  %10186 = vrcp.bf16 %v4776_v55  ;;  %v5012_v26 = vadd.f32 %v5011_v63, %v4979_v38  ;;  %v5401_v58 = vand.u32 2147450879, %v5385_v34  ;;  %v14502_v63 = vpop.f32.mrb[198].mxu1  ;;  %v14508_v60 = vpop.f32.mrb[199].mxu0  ;;  %v16457_v43 = vld [vmem:[#allocation114_spill] sm:$0xff]  ;;  %v16458_v38 = vld [vmem:[#allocation115_spill] sm:$0xff] }
 0x382   :  { %v5662_v59 = vadd.bf16 1065369472, %v10179_v42  ;;  %10188 = vrcp.bf16 %v5226_v45  ;;  %v6112_v56 = vadd.bf16 1065369472, %v10181_v20  ;;  %v16449_v3 = vpack.c.bf16 %v14458_v18, %v14439_v54  ;;  %v16451_v54 = vld [vmem:[#allocation71_spill] sm:$0xff]  ;;  %16452 = vst [vmem:[#allocation111_spill] sm:$0xff] %v14508_v60 }
 0x383   :  { %v6033_v29 = vpack.c.bf16 %v14462_v41, %v14443_v14  ;;  %v14498_v11 = vadd.f32 %v5012_v26, %v4981_v35  ;;  %v5429_v48 = vunpack.c.l.bf16 %v5401_v58  ;;  %v5431_v4 = vunpack.c.h.bf16 %v5401_v58  ;;  %v14510_v14 = vpop.f32.mrb[199].mxu1  ;;  %v16455_v42 = vld [vmem:[#allocation63_spill] sm:$0xff]  ;;  %v16461_v26 = vld [vmem:[#allocation116_spill] sm:$0xff] }
 0x384   :  { %v8802_v13 = vmul.bf16 3216621497, %v16449_v3  ;;  %10190 = vrcp.bf16 %v5661_v57  ;;  %v5519_v47 = vadd.f32 %v16450_v44, %v16447_v32  ;;  %v5969_v18 = vadd.f32 %v16451_v54, %v16448_v23  ;;  %16453 = vst [vmem:[#allocation56_spill] sm:$0xff] %v14510_v14  ;;  %v16460_v57 = vld [vmem:[#allocation37_spill] sm:$0xff]  ;;  %v16465_v3 = vld [vmem:[#allocation42_spill] sm:$0xff] }
 0x385   :  { %10192 = vrcp.bf16 %v6111_v37  ;;  %v8834_v62 = vmul.bf16 3216621497, %v6033_v29  ;;  %v5462_v41 = vadd.f32 %v5461_v8, %v5429_v48  ;;  %v5523_v33 = vadd.f32 %v16455_v42, %v16454_v12  ;;  %v16459_v8 = vld [vmem:[#allocation72_spill] sm:$0xff]  ;;  %v14526_v37 = vpop.f32.mrb[200].mxu0  ;;  %v16468_v54 = vld [vmem:[#allocation117_spill] sm:$0xff] }
 0x386   :  { %10194 = vrcp.bf16 %v5662_v59  ;;  %v5973_v19 = vadd.f32 %v16457_v43, %v16456_v50  ;;  %v5584_v55 = vpack.c.bf16 %v5519_v47, %v14447_v49  ;;  %v6034_v20 = vpack.c.bf16 %v5969_v18, %v14451_v1  ;;  %16462 = vst [vmem:[#allocation66_spill] sm:$0xff] %v14526_v37  ;;  %v14528_v59 = vpop.f32.mrb[200].mxu1  ;;  %v16464_v1 = vld [vmem:[#allocation40_spill] sm:$0xff]  ;;  %v14532_v48 = vpop.f32.mrb[201].mxu0  ;;  %v16470_v43 = vld [vmem:[#allocation41_spill] sm:$0xff] }
 0x387   :  { %10196 = vrcp.bf16 %v6112_v56  ;;  %v5525_v35 = vadd.f32 %v16458_v38, %v16454_v12  ;;  %v14520_v34 = vadd.f32 %v5462_v41, %v5431_v4  ;;  %v5975_v45 = vadd.f32 %v16459_v8, %v16456_v50  ;;  %16463 = vst [vmem:[#allocation67_spill] sm:$0xff] %v14528_v59  ;;  %16466 = vst [vmem:[#allocation68_spill] sm:$0xff] %v14532_v48  ;;  %v14534_v4 = vpop.f32.mrb[201].mxu1  ;;  %v9392_v44 = vld [vmem:[#allocation2 + $0x170] ss:$8 sps:$4 sm:$0xff]  }
 0x388   :  { %10198 = vpow.bf16 %v8802_v13  ;;  %v5527_v58 = vadd.f32 %v16461_v26, %v16460_v57  ;;  %v8803_v49 = vmul.bf16 3216621497, %v5584_v55  ;;  %v8835_v56 = vmul.bf16 3216621497, %v6034_v20  ;;  %16467 = vst [vmem:[#allocation112_spill] sm:$0xff] %v14534_v4  ;;  %v16469_v41 = vld [vmem:[#allocation76_spill] sm:$0xff] }
 0x389   :  { %10200 = vpow.bf16 %v8834_v62  ;;  %v5977_v29 = vadd.f32 %v16465_v3, %v16464_v1  ;;  %v10183_v13 = vpop.eup %10182  ;;  %v5529_v18 = vadd.f32 %v16468_v54, %v16460_v57  ;;  %v5979_v42 = vadd.f32 %v16469_v41, %v16464_v1  ;;  %v16471_v62 = vld [vmem:[#allocation78_spill] sm:$0xff]  ;;  %v14544_v20 = vpop.f32.mrb[202].mxu0  ;;  %v9394_v3 = vld [vmem:[#allocation2 + $0x370] ss:$8 sps:$4 sm:$0xff]  }
 0x38a   :  { %v5585_v47 = vpack.c.bf16 %v5527_v58, %v5523_v33  ;;  %v14542_v55 = vadd.f32 %v16471_v62, %v16470_v43  ;;  %16472 = vst [vmem:[#allocation113_spill] sm:$0xff] %v14544_v20  ;;  %v14546_v38 = vpop.f32.mrb[202].mxu1  ;;  %v4806_v26 = vmul.bf16 1065369472, %v10183_v13  ;;  %10202 = vpow.bf16 %v8803_v49  ;;  %v16474_v33 = vld [vmem:[#allocation48_spill] sm:$0xff]  ;;  %v16475_v58 = vld [vmem:[#allocation75_spill] sm:$0xff] }
 0x38b   :  { %16473 = vst [vmem:[#allocation69_spill] sm:$0xff] %v14546_v38  ;;  %v10185_v8 = vpop.eup %10184  ;;  %v6035_v50 = vpack.c.bf16 %v5977_v29, %v5973_v19  ;;  %v14550_v12 = vadd.f32 %v16475_v58, %v16474_v33  ;;  %v14552_v54 = vpop.f32.mrb[203].mxu0  ;;  %10204 = vpow.bf16 %v8835_v56  ;;  %v5586_v57 = vpack.c.bf16 %v5529_v18, %v5525_v35  ;;  %v10720_v13 = vld [vmem:[%s15595_s0 + $0x170] ss:$8 sps:$4 sm:$0xff]   ;;  %v9396_v19 = vld [vmem:[#allocation2 + $0x174] ss:$8 sps:$4 sm:$0xff]  }
 0x38c   :  { %16476 = vst [vmem:[#allocation70_spill] sm:$0xff] %v14552_v54  ;;  %v10187_v41 = vpop.eup %10186  ;;  %v5256_v1 = vmul.bf16 1065369472, %v10185_v8  ;;  %v8804_v62 = vmul.bf16 3216621497, %v5585_v47  ;;  %v14554_v23 = vpop.f32.mrb[203].mxu1  ;;  %v4823_v32 = vmul.bf16 %v10720_v13, %v4806_v26  ;;  %v6036_v5 = vpack.c.bf16 %v5979_v42, %v5975_v45 }
 0x38d   :  { %16477 = vst [vmem:[#allocation71_spill] sm:$0xff] %v14554_v23  ;;  %v4808_v49 = vmul.bf16 1065369472, %v10187_v41  ;;  %v8836_v29 = vmul.bf16 3216621497, %v6035_v50  ;;  %v10189_v58 = vpop.eup %10188  ;;  %v16478_v8 = vld [vmem:[#allocation82_spill] sm:$0xff] }
 0x38e   :  { %v5273_v38 = vmul.bf16 %v10720_v13, %v5256_v1  ;;  %10206 = vpow.bf16 %v8804_v62  ;;  %v8805_v54 = vmul.bf16 3216621497, %v5586_v57  ;;  %v14561_v56 = vadd.f32 %v16478_v8, %v16470_v43  ;;  %v10721_v18 = vld [vmem:[%s15595_s0 + $0x174] ss:$8 sps:$4 sm:$0xff]   ;;  %v9398_v1 = vld [vmem:[#allocation2 + $0x500] ss:$8 sps:$4 sm:$0xff]  }
 0x38f   :  { %v10191_v35 = vpop.eup %10190  ;;  %v4936_v47 = vsub.bf16 %v4823_v32, %v9392_v44  ;;  %v4824_v23 = vmul.bf16 %v10721_v18, %v4808_v49  ;;  %v5258_v26 = vmul.bf16 1065369472, %v10189_v58  ;;  %v9397_v41 = vld [vmem:[#allocation2 + $0x374] ss:$8 sps:$4 sm:$0xff]   ;;  %10208 = vpow.bf16 %v8836_v29  ;;  %v10722_v49 = vld [vmem:[%s15595_s0 + $0x100] ss:$8 sps:$4 sm:$0xff]  }
 0x390   :  { %v10193_v50 = vpop.eup %10192  ;;  %v5386_v45 = vsub.bf16 %v5273_v38, %v9394_v3  ;;  %v5678_v42 = vmul.bf16 1065369472, %v10191_v35  ;;  %10210 = vpow.bf16 %v8805_v54  ;;  %v8837_v57 = vmul.bf16 3216621497, %v6036_v5  ;;  %v9400_v4 = vld [vmem:[#allocation2 + $0x700] ss:$8 sps:$4 sm:$0xff]  }
 0x391   :  { %v10195_v62 = vpop.eup %10194  ;;  %v4952_v13 = vand.u32 2147450879, %v4936_v47  ;;  %v4937_v8 = vsub.bf16 %v4824_v23, %v9396_v19  ;;  %v5274_v43 = vmul.bf16 %v10721_v18, %v5258_v26  ;;  %v6128_v20 = vmul.bf16 1065369472, %v10193_v50  ;;  %v9402_v37 = vld [vmem:[#allocation2 + $0x504] ss:$8 sps:$4 sm:$0xff]  }
 0x392   :  { %v10197_v32 = vpop.eup %10196  ;;  %v5402_v44 = vand.u32 2147450879, %v5386_v45  ;;  %v5709_v58 = vmul.bf16 %v10722_v49, %v5678_v42  ;;  %v5680_v29 = vmul.bf16 1065369472, %v10195_v62  ;;  %10212 = vpow.bf16 %v8837_v57 }
 0x393   :  { %v10199_v38 = vpop.eup %10198  ;;  %v4982_v3 = vunpack.c.l.bf16 %v4952_v13  ;;  %v4984_v35 = vunpack.c.h.bf16 %v4952_v13  ;;  %v4953_v54 = vand.u32 2147450879, %v4937_v8  ;;  %v5387_v5 = vsub.bf16 %v5274_v43, %v9397_v41  ;;  %v10723_v43 = vld [vmem:[%s15595_s0 + $0x104] ss:$8 sps:$4 sm:$0xff]  }
 0x394   :  { %v10201_v48 = vpop.eup %10200  ;;  %v5432_v47 = vunpack.c.l.bf16 %v5402_v44  ;;  %v5434_v23 = vunpack.c.h.bf16 %v5402_v44  ;;  %v5822_v19 = vsub.bf16 %v5709_v58, %v9398_v1  ;;  %v6159_v18 = vmul.bf16 %v10722_v49, %v6128_v20 }
 0x395   :  { %v4999_v26 = vadd.f32 %v14481_v46, %v4982_v3  ;;  %v4983_v50 = vunpack.c.l.bf16 %v4953_v54  ;;  %v4985_v45 = vunpack.c.h.bf16 %v4953_v54  ;;  %v5403_v59 = vand.u32 2147450879, %v5387_v5  ;;  %v10203_v42 = vpop.eup %10202  ;;  %v16479_v5 = vld [vmem:[#allocation86_spill] sm:$0xff] }
 0x396   :  { %v5449_v62 = vadd.f32 %v14487_v21, %v5432_v47  ;;  %v5838_v57 = vand.u32 2147450879, %v5822_v19  ;;  %v6272_v14 = vsub.bf16 %v6159_v18, %v9400_v4  ;;  %v5710_v41 = vmul.bf16 %v10723_v43, %v5680_v29  ;;  %v10205_v13 = vpop.eup %10204 }
 0x397   :  { %v5000_v8 = vadd.f32 %v4999_v26, %v4984_v35  ;;  %v5014_v20 = vadd.f32 %v14498_v11, %v4983_v50  ;;  %v5433_v1 = vunpack.c.l.bf16 %v5403_v59  ;;  %v5435_v46 = vunpack.c.h.bf16 %v5403_v59  ;;  %v9403_v11 = vld [vmem:[#allocation2 + $0x704] ss:$8 sps:$4 sm:$0xff]  }
 0x398   :  { %v5450_v44 = vadd.f32 %v5449_v62, %v5434_v23  ;;  %v5854_v49 = vunpack.c.l.bf16 %v5838_v57  ;;  %v5856_v58 = vunpack.c.h.bf16 %v5838_v57  ;;  %v6288_v3 = vand.u32 2147450879, %v6272_v14 }
 0x399   :  { %v10207_v54 = vpop.eup %10206  ;;  %v5016_v21 = vadd.f32 %v5000_v8, %v16479_v5  ;;  %v5015_v47 = vadd.f32 %v5014_v20, %v4985_v45  ;;  %v5464_v4 = vadd.f32 %v14520_v34, %v5433_v1  ;;  %v5823_v19 = vsub.bf16 %v5710_v41, %v9402_v37 }
 0x39a   :  { %v10209_v18 = vpop.eup %10208  ;;  %v14577_v60 = vadd.f32 %v5856_v58, %v5854_v49  ;;  %v6304_v29 = vunpack.c.l.bf16 %v6288_v3  ;;  %v6306_v35 = vunpack.c.h.bf16 %v6288_v3  ;;  %v6130_v26 = vmul.bf16 1065369472, %v10197_v32  ;;  %v14586_v32 = vpop.f32.mrb[204].mxu0 }
 0x39b   :  { %v10211_v50 = vpop.eup %10210  ;;  %v14579_v59 = vadd.f32 %v5450_v44, %v5016_v21  ;;  %v5017_v23 = vadd.f32 %v5015_v47, %v14178_v36  ;;  %v5465_v14 = vadd.f32 %v5464_v4, %v5435_v46  ;;  %v5839_v62 = vand.u32 2147450879, %v5823_v19  ;;  %v14588_v58 = vpop.f32.mrb[204].mxu1  ;;  %v16482_v47 = vld [vmem:[#allocation81_spill] sm:$0xff] }
 0x39c   :  { %v14582_v57 = vadd.f32 %v6306_v35, %v6304_v29  ;;  %v6160_v45 = vmul.bf16 %v10723_v43, %v6130_v26  ;;  %v5663_v8 = vadd.bf16 1065369472, %v10199_v38  ;;  %v6113_v34 = vadd.bf16 1065369472, %v10201_v48  ;;  %v14592_v48 = vpop.f32.mrb[205].mxu0  ;;  %v14594_v5 = vpop.f32.mrb[205].mxu1 }
 0x39d   :  { %v10213_v37 = vpop.eup %10212  ;;  %v14584_v41 = vadd.f32 %v5465_v14, %v5017_v23  ;;  %v5855_v20 = vunpack.c.l.bf16 %v5839_v62  ;;  %v5857_v1 = vunpack.c.h.bf16 %v5839_v62  ;;  %v5664_v49 = vadd.bf16 1065369472, %v10203_v42  ;;  %16480 = vst [vmem:[#allocation63_spill] sm:$0xff] %v14592_v48  ;;  %16481 = vst [vmem:[#allocation114_spill] sm:$0xff] %v14594_v5  ;;  %v14598_v19 = vpop.f32.mrb[206].mxu0  ;;  %v16488_v26 = vld [vmem:[#allocation84_spill] sm:$0xff] }
 0x39e   :  { %v6273_v44 = vsub.bf16 %v6160_v45, %v9403_v11  ;;  %10214 = vrcp.bf16 %v5663_v8  ;;  %v6114_v36 = vadd.bf16 1065369472, %v10205_v13  ;;  %v5665_v46 = vadd.bf16 1065369472, %v10207_v54  ;;  %16483 = vst [vmem:[#allocation115_spill] sm:$0xff] %v14598_v19  ;;  %v14600_v29 = vpop.f32.mrb[206].mxu1 }
 0x39f   :  { %v14590_v3 = vadd.f32 %v5857_v1, %v5855_v20  ;;  %10216 = vrcp.bf16 %v6113_v34  ;;  %v6115_v43 = vadd.bf16 1065369472, %v10209_v18  ;;  %v5666_v38 = vadd.bf16 1065369472, %v10211_v50  ;;  %16484 = vst [vmem:[#allocation72_spill] sm:$0xff] %v14600_v29  ;;  %v16485_v13 = vld [vmem:[#allocation44_spill] sm:$0xff] }
 0x3a0   :  { %v6289_v21 = vand.u32 2147450879, %v6273_v44  ;;  %10218 = vrcp.bf16 %v5664_v49  ;;  %v6116_v42 = vadd.bf16 1065369472, %v10213_v37  ;;  %v5985_v4 = vadd.f32 %v16482_v47, %v16474_v33  ;;  %v16486_v54 = vld [vmem:[#allocation79_spill] sm:$0xff]  ;;  %v16487_v18 = vld [vmem:[#allocation49_spill] sm:$0xff] }
 0x3a1   :  { %10220 = vrcp.bf16 %v6114_v36  ;;  %v5537_v35 = vadd.f32 %v16486_v54, %v16485_v13  ;;  %v5987_v11 = vadd.f32 %v16488_v26, %v16487_v18  ;;  %v16489_v50 = vld [vmem:[#allocation87_spill] sm:$0xff]  ;;  %v14608_v14 = vpop.f32.mrb[207].mxu0  ;;  %v14610_v62 = vpop.f32.mrb[207].mxu1  ;;  %v16492_v34 = vld [vmem:[#allocation88_spill] sm:$0xff]  ;;  %v16493_v47 = vld [vmem:[#allocation50_spill] sm:$0xff] }
 0x3a2   :  { %v5539_v23 = vadd.f32 %v16489_v50, %v16485_v13  ;;  %16490 = vst [vmem:[#allocation116_spill] sm:$0xff] %v14608_v14  ;;  %16491 = vst [vmem:[#allocation42_spill] sm:$0xff] %v14610_v62  ;;  %v6305_v45 = vunpack.c.l.bf16 %v6289_v21  ;;  %v6307_v8 = vunpack.c.h.bf16 %v6289_v21  ;;  %10222 = vrcp.bf16 %v5665_v46  ;;  %v16494_v54 = vld [vmem:[#allocation85_spill] sm:$0xff]  ;;  %v9406_v33 = vld [vmem:[#allocation2 + $0x710] ss:$8 sps:$4 sm:$0xff]  }
 0x3a3   :  { %v5989_v37 = vadd.f32 %v16492_v34, %v16487_v18  ;;  %10224 = vrcp.bf16 %v6115_v43  ;;  %v5587_v20 = vpack.c.bf16 %v5537_v35, %v14542_v55  ;;  %v6037_v1 = vpack.c.bf16 %v5987_v11, %v14550_v12  ;;  %v16495_v34 = vld [vmem:[#allocation54_spill] sm:$0xff]  ;;  %v16496_v43 = vld [vmem:[#allocation89_spill] sm:$0xff] }
 0x3a4   :  { %v5588_v49 = vpack.c.bf16 %v5539_v23, %v14561_v56  ;;  %v14617_v44 = vadd.f32 %v6307_v8, %v6305_v45  ;;  %10226 = vrcp.bf16 %v5666_v38  ;;  %v5543_v26 = vadd.f32 %v16494_v54, %v16493_v47  ;;  %v16497_v55 = vld [vmem:[#allocation90_spill] sm:$0xff]  ;;  %v16498_v56 = vld [vmem:[#allocation96_spill] sm:$0xff]  ;;  %v16499_v38 = vld [vmem:[#allocation51_spill] sm:$0xff] }
 0x3a5   :  { %v6038_v36 = vpack.c.bf16 %v5989_v37, %v5985_v4  ;;  %10228 = vrcp.bf16 %v6116_v42  ;;  %v8806_v21 = vmul.bf16 3216621497, %v5587_v20  ;;  %v8838_v46 = vmul.bf16 3216621497, %v6037_v1  ;;  %v16500_v4 = vld [vmem:[#allocation92_spill] sm:$0xff]  ;;  %v16501_v23 = vld [vmem:[#allocation57_spill] sm:$0xff] }
 0x3a6   :  { %v8807_v50 = vmul.bf16 3216621497, %v5588_v49  ;;  %v5993_v18 = vadd.f32 %v16496_v43, %v16495_v34  ;;  %v5545_v12 = vadd.f32 %v16497_v55, %v16493_v47  ;;  %v5995_v35 = vadd.f32 %v16498_v56, %v16495_v34  ;;  %v16502_v45 = vld [vmem:[#allocation93_spill] sm:$0xff]  ;;  %v16503_v8 = vld [vmem:[#allocation91_spill] sm:$0xff]  ;;  %v14633_v20 = vpop.f32.mrb[208].mxu0  ;;  %v14635_v1 = vpop.f32.mrb[208].mxu1 }
 0x3a7   :  { %v8839_v13 = vmul.bf16 3216621497, %v6038_v36  ;;  %10230 = vpow.bf16 %v8806_v21  ;;  %v5547_v11 = vadd.f32 %v16500_v4, %v16499_v38  ;;  %v5997_v42 = vadd.f32 %v16502_v45, %v16501_v23  ;;  %16504 = vst [vmem:[#allocation117_spill] sm:$0xff] %v14633_v20  ;;  %16505 = vst [vmem:[#allocation76_spill] sm:$0xff] %v14635_v1  ;;  %v16506_v49 = vld [vmem:[#allocation94_spill] sm:$0xff]  ;;  %v14647_v56 = vpop.f32.mrb[209].mxu0 }
 0x3a8   :  { %v5549_v37 = vadd.f32 %v16503_v8, %v16499_v38  ;;  %10232 = vpow.bf16 %v8838_v46  ;;  %v5999_v36 = vadd.f32 %v16506_v49, %v16501_v23  ;;  %v16507_v54 = vld [vmem:[#allocation58_spill] sm:$0xff]  ;;  %16509 = vst [vmem:[#allocation78_spill] sm:$0xff] %v14647_v56  ;;  %v14649_v4 = vpop.f32.mrb[209].mxu1  ;;  %v9404_v8 = vld [vmem:[#allocation2 + $0x510] ss:$8 sps:$4 sm:$0xff]   ;;  %v14651_v47 = vpop.f32.mrb[210].mxu0 }
 0x3a9   :  { %v14641_v21 = vadd.f32 %v14274_v15, %v16507_v54  ;;  %v16508_v43 = vld [vmem:[#allocation62_spill] sm:$0xff]  ;;  %16510 = vst [vmem:[#allocation75_spill] sm:$0xff] %v14649_v4  ;;  %v10215_v45 = vpop.eup %10214  ;;  %10234 = vpow.bf16 %v8807_v50  ;;  %v5589_v38 = vpack.c.bf16 %v5547_v11, %v5543_v26  ;;  %v6039_v46 = vpack.c.bf16 %v5997_v42, %v5993_v18  ;;  %16511 = vst [vmem:[#allocation82_spill] sm:$0xff] %v14651_v47  ;;  %v14653_v49 = vpop.f32.mrb[210].mxu1  ;;  %v9408_v1 = vld [vmem:[#allocation2 + $0x514] ss:$8 sps:$4 sm:$0xff]  }
 0x3aa   :  { %v14645_v55 = vadd.f32 %v14276_v6, %v16508_v43  ;;  %v5590_v34 = vpack.c.bf16 %v5549_v37, %v5545_v12  ;;  %16512 = vst [vmem:[#allocation86_spill] sm:$0xff] %v14653_v49  ;;  %v10217_v15 = vpop.eup %10216  ;;  %v5682_v23 = vmul.bf16 1065369472, %v10215_v45  ;;  %10236 = vpow.bf16 %v8839_v13  ;;  %v10724_v11 = vld [vmem:[%s15595_s0 + $0x110] ss:$8 sps:$4 sm:$0xff]   ;;  %v14680_v5 = vpop.f32.mrb[211].mxu1 }
 0x3ab   :  { %v6040_v6 = vpack.c.bf16 %v5999_v36, %v5995_v35  ;;  %v14657_v56 = vadd.f32 %v14280_v61, %v16507_v54  ;;  %v10219_v4 = vpop.eup %10218  ;;  %v6132_v20 = vmul.bf16 1065369472, %v10217_v15  ;;  %v8808_v50 = vmul.bf16 3216621497, %v5589_v38  ;;  %v9409_v15 = vld [vmem:[#allocation2 + $0x714] ss:$8 sps:$4 sm:$0xff]  }
 0x3ac   :  { %v8840_v26 = vmul.bf16 3216621497, %v6039_v46  ;;  %v14661_v18 = vadd.f32 %v14282_v25, %v16508_v43  ;;  %v10221_v12 = vpop.eup %10220  ;;  %v5711_v42 = vmul.bf16 %v10724_v11, %v5682_v23  ;;  %v5684_v13 = vmul.bf16 1065369472, %v10219_v4  ;;  %v16513_v38 = vld [vmem:[#allocation59_spill] sm:$0xff]  ;;  %16515 = vst [vmem:[#allocation79_spill] sm:$0xff] %v14680_v5 }
 0x3ad   :  { %v8809_v35 = vmul.bf16 3216621497, %v5590_v34  ;;  %v14666_v37 = vmul.bf16 3216621497, %v6040_v6  ;;  %v10223_v61 = vpop.eup %10222  ;;  %v6161_v36 = vmul.bf16 %v10724_v11, %v6132_v20  ;;  %v6134_v45 = vmul.bf16 1065369472, %v10221_v12 }
 0x3ae   :  { %10238 = vpow.bf16 %v8808_v50  ;;  %v14670_v46 = vadd.f32 %v14298_v0, %v16513_v38  ;;  %v10225_v25 = vpop.eup %10224  ;;  %v5824_v43 = vsub.bf16 %v5711_v42, %v9404_v8  ;;  %v10725_v54 = vld [vmem:[%s15595_s0 + $0x114] ss:$8 sps:$4 sm:$0xff]   ;;  %v5686_v4 = vmul.bf16 1065369472, %v10223_v61  ;;  %v9410_v34 = vld [vmem:[#allocation2 + $0x520] ss:$8 sps:$4 sm:$0xff]  }
 0x3af   :  { %v5712_v23 = vmul.bf16 %v10725_v54, %v5684_v13  ;;  %10240 = vpow.bf16 %v8840_v26  ;;  %v10227_v6 = vpop.eup %10226  ;;  %v6274_v49 = vsub.bf16 %v6161_v36, %v9406_v33  ;;  %v6162_v20 = vmul.bf16 %v10725_v54, %v6134_v45  ;;  %v9412_v11 = vld [vmem:[#allocation2 + $0x720] ss:$8 sps:$4 sm:$0xff]  }
 0x3b0   :  { %v6136_v12 = vmul.bf16 1065369472, %v10225_v25  ;;  %10242 = vpow.bf16 %v8809_v35  ;;  %v10229_v50 = vpop.eup %10228  ;;  %v5840_v47 = vand.u32 2147450879, %v5824_v43  ;;  %v10726_v8 = vld [vmem:[%s15595_s0 + $0x120] ss:$8 sps:$4 sm:$0xff]  }
 0x3b1   :  { %v5825_v0 = vsub.bf16 %v5712_v23, %v9408_v1  ;;  %v5713_v42 = vmul.bf16 %v10726_v8, %v5686_v4  ;;  %v5688_v62 = vmul.bf16 1065369472, %v10227_v6  ;;  %v6290_v14 = vand.u32 2147450879, %v6274_v49  ;;  %v14678_v23 = vpop.f32.mrb[211].mxu0 }
 0x3b2   :  { %v6275_v13 = vsub.bf16 %v6162_v20, %v9409_v15  ;;  %v6163_v61 = vmul.bf16 %v10726_v8, %v6136_v12  ;;  %v6138_v29 = vmul.bf16 1065369472, %v10229_v50  ;;  %v10231_v26 = vpop.eup %10230  ;;  %v5858_v19 = vunpack.c.l.bf16 %v5840_v47  ;;  %16514 = vst [vmem:[#allocation81_spill] sm:$0xff] %v14678_v23 }
 0x3b3   :  { %v5860_v33 = vunpack.c.h.bf16 %v5840_v47  ;;  %v5841_v54 = vand.u32 2147450879, %v5825_v0  ;;  %v5826_v36 = vsub.bf16 %v5713_v42, %v9410_v34  ;;  %v10233_v45 = vpop.eup %10232  ;;  %v6308_v35 = vunpack.c.l.bf16 %v6290_v14 }
 0x3b4   :  { %v6310_v25 = vunpack.c.h.bf16 %v6290_v14  ;;  %v6291_v43 = vand.u32 2147450879, %v6275_v13  ;;  %v6276_v1 = vsub.bf16 %v6163_v61, %v9412_v11  ;;  %v10235_v4 = vpop.eup %10234  ;;  %v5887_v49 = vadd.f32 %v14577_v60, %v5858_v19  ;;  %v9414_v13 = vld [vmem:[#allocation2 + $0x524] ss:$8 sps:$4 sm:$0xff]  }
 0x3b5   :  { %v5859_v15 = vunpack.c.l.bf16 %v5841_v54  ;;  %v5861_v6 = vunpack.c.h.bf16 %v5841_v54  ;;  %v5842_v20 = vand.u32 2147450879, %v5826_v36  ;;  %v10237_v12 = vpop.eup %10236  ;;  %v6337_v47 = vadd.f32 %v14582_v57, %v6308_v35  ;;  %v9415_v61 = vld [vmem:[#allocation2 + $0x724] ss:$8 sps:$4 sm:$0xff]  }
 0x3b6   :  { %v6309_v50 = vunpack.c.l.bf16 %v6291_v43  ;;  %v6311_v34 = vunpack.c.h.bf16 %v6291_v43  ;;  %v6292_v0 = vand.u32 2147450879, %v6276_v1  ;;  %v5888_v8 = vadd.f32 %v5887_v49, %v5860_v33  ;;  %v10727_v57 = vld [vmem:[%s15595_s0 + $0x124] ss:$8 sps:$4 sm:$0xff]  }
 0x3b7   :  { %v5902_v14 = vadd.f32 %v14590_v3, %v5859_v15  ;;  %v5862_v11 = vunpack.c.l.bf16 %v5842_v20  ;;  %v5864_v42 = vunpack.c.h.bf16 %v5842_v20  ;;  %v6338_v5 = vadd.f32 %v6337_v47, %v6310_v25  ;;  %v14689_v20 = vpop.f32.mrb[212].mxu0  ;;  %v14691_v25 = vpop.f32.mrb[212].mxu1 }
 0x3b8   :  { %v6352_v23 = vadd.f32 %v14617_v44, %v6309_v50  ;;  %v6312_v60 = vunpack.c.l.bf16 %v6292_v0  ;;  %v6314_v19 = vunpack.c.h.bf16 %v6292_v0  ;;  %v5714_v35 = vmul.bf16 %v10727_v57, %v5688_v62  ;;  %16516 = vst [vmem:[#allocation84_spill] sm:$0xff] %v14689_v20  ;;  %16517 = vst [vmem:[#allocation87_spill] sm:$0xff] %v14691_v25 }
 0x3b9   :  { %v10239_v54 = vpop.eup %10238  ;;  %v5903_v36 = vadd.f32 %v5902_v14, %v5861_v6  ;;  %v5889_v48 = vadd.f32 %v5888_v8, %v5862_v11  ;;  %v6164_v33 = vmul.bf16 %v10727_v57, %v6138_v29  ;;  %v5667_v49 = vadd.bf16 1065369472, %v10231_v26  ;;  %v14695_v8 = vpop.f32.mrb[213].mxu0  ;;  %v16520_v11 = vld [vmem:[#allocation64_spill] sm:$0xff] }
 0x3ba   :  { %v10241_v43 = vpop.eup %10240  ;;  %v6353_v3 = vadd.f32 %v6352_v23, %v6311_v34  ;;  %v6339_v1 = vadd.f32 %v6338_v5, %v6312_v60  ;;  %v6117_v15 = vadd.bf16 1065369472, %v10233_v45  ;;  %v5827_v6 = vsub.bf16 %v5714_v35, %v9414_v13  ;;  %16518 = vst [vmem:[#allocation88_spill] sm:$0xff] %v14695_v8  ;;  %v14697_v14 = vpop.f32.mrb[213].mxu1 }
 0x3bb   :  { %v10243_v44 = vpop.eup %10242  ;;  %v14693_v47 = vadd.f32 %v5889_v48, %v5864_v42  ;;  %v6277_v50 = vsub.bf16 %v6164_v33, %v9415_v61  ;;  %v5668_v0 = vadd.bf16 1065369472, %v10235_v4  ;;  %16519 = vst [vmem:[#allocation85_spill] sm:$0xff] %v14697_v14  ;;  %10244 = vrcp.bf16 %v5667_v49  ;;  %v14705_v42 = vpop.f32.mrb[214].mxu0  ;;  %v9426_v14 = vld [vmem:[#allocation2 + $0x544] ss:$8 sps:$4 sm:$0xff]  }
 0x3bc   :  { %v14699_v29 = vadd.f32 %v6339_v1, %v6314_v19  ;;  %v6118_v5 = vadd.bf16 1065369472, %v10237_v12  ;;  %v5669_v62 = vadd.bf16 1065369472, %v10239_v54  ;;  %v5843_v26 = vand.u32 2147450879, %v5827_v6 }
 0x3bd   :  { %v6293_v45 = vand.u32 2147450879, %v6277_v50  ;;  %10246 = vrcp.bf16 %v6117_v15  ;;  %v6119_v23 = vadd.bf16 1065369472, %v10241_v43  ;;  %v5670_v34 = vadd.bf16 1065369472, %v10243_v44 }
 0x3be   :  { %10248 = vrcp.bf16 %v5668_v0  ;;  %v5591_v48 = vpack.c.bf16 %v14670_v46, %v14641_v21  ;;  %v6007_v4 = vadd.f32 %v14300_v28, %v16520_v11  ;;  %16521 = vst [vmem:[#allocation89_spill] sm:$0xff] %v14705_v42  ;;  %v14707_v13 = vpop.f32.mrb[214].mxu1  ;;  %v5863_v61 = vunpack.c.l.bf16 %v5843_v26  ;;  %v14709_v54 = vpop.f32.mrb[215].mxu0  ;;  %v16525_v21 = vld [vmem:[#allocation95_spill] sm:$0xff]  ;;  %v16526_v1 = vld [vmem:[#allocation100_spill] sm:$0xff]  ;;  %v16527_v6 = vld [vmem:[#allocation65_spill] sm:$0xff] }
 0x3bf   :  { %16522 = vst [vmem:[#allocation90_spill] sm:$0xff] %v14707_v13  ;;  %v5865_v60 = vunpack.c.h.bf16 %v5843_v26  ;;  %v6313_v12 = vunpack.c.l.bf16 %v6293_v45  ;;  %v6315_v19 = vunpack.c.h.bf16 %v6293_v45  ;;  %16523 = vst [vmem:[#allocation96_spill] sm:$0xff] %v14709_v54  ;;  %v14711_v57 = vpop.f32.mrb[215].mxu1  ;;  %10250 = vrcp.bf16 %v6118_v5  ;;  %v16528_v50 = vld [vmem:[#allocation98_spill] sm:$0xff] }
 0x3c0   :  { %16524 = vst [vmem:[#allocation92_spill] sm:$0xff] %v14711_v57  ;;  %v8810_v35 = vmul.bf16 3216621497, %v5591_v48  ;;  %v6041_v33 = vpack.c.bf16 %v6007_v4, %v14645_v55  ;;  %v5559_v46 = vadd.f32 %v16525_v21, %v16513_v38  ;;  %v5904_v28 = vadd.f32 %v5903_v36, %v5863_v61  ;;  %v16532_v4 = vld [vmem:[#allocation102_spill] sm:$0xff] }
 0x3c1   :  { %v6354_v43 = vadd.f32 %v6353_v3, %v6313_v12  ;;  %10252 = vrcp.bf16 %v5669_v62  ;;  %v6009_v49 = vadd.f32 %v16526_v1, %v16520_v11  ;;  %v5563_v0 = vadd.f32 %v16528_v50, %v16527_v6  ;;  %v16529_v3 = vld [vmem:[#allocation73_spill] sm:$0xff]  ;;  %v16530_v62 = vld [vmem:[#allocation99_spill] sm:$0xff] }
 0x3c2   :  { %10254 = vrcp.bf16 %v6119_v23  ;;  %v8842_v15 = vmul.bf16 3216621497, %v6041_v33  ;;  %v5592_v44 = vpack.c.bf16 %v5559_v46, %v14657_v56  ;;  %v14721_v5 = vadd.f32 %v5904_v28, %v5865_v60  ;;  %v16531_v23 = vld [vmem:[#allocation101_spill] sm:$0xff]  ;;  %v16533_v60 = vld [vmem:[#allocation43_spill] sm:$0xff]  ;;  %v16539_v46 = vld [vmem:[#allocation104_spill] sm:$0xff] }
 0x3c3   :  { %v14723_v26 = vadd.f32 %v6354_v43, %v6315_v19  ;;  %10256 = vrcp.bf16 %v5670_v34  ;;  %v6042_v55 = vpack.c.bf16 %v6009_v49, %v14661_v18  ;;  %v6013_v45 = vadd.f32 %v16530_v62, %v16529_v3  ;;  %v16534_v12 = vld [vmem:[#allocation103_spill] sm:$0xff]  ;;  %v14735_v34 = vpop.f32.mrb[216].mxu0  ;;  %v14737_v18 = vpop.f32.mrb[216].mxu1  ;;  %v16538_v33 = vld [vmem:[#allocation97_spill] sm:$0xff]  ;;  %v16544_v62 = vld [vmem:[#allocation106_spill] sm:$0xff] }
 0x3c4   :  { %10258 = vpow.bf16 %v14666_v37  ;;  %v8811_v36 = vmul.bf16 3216621497, %v5592_v44  ;;  %v5565_v48 = vadd.f32 %v16531_v23, %v16527_v6  ;;  %v6015_v61 = vadd.f32 %v16532_v4, %v16529_v3  ;;  %16535 = vst [vmem:[#allocation93_spill] sm:$0xff] %v14735_v34  ;;  %16536 = vst [vmem:[#allocation91_spill] sm:$0xff] %v14737_v18  ;;  %v16537_v37 = vld [vmem:[#allocation74_spill] sm:$0xff]  ;;  %v14745_v1 = vpop.f32.mrb[217].mxu0 }
 0x3c5   :  { %10260 = vpow.bf16 %v8810_v35  ;;  %v8843_v56 = vmul.bf16 3216621497, %v6042_v55  ;;  %v5567_v19 = vadd.f32 %v16534_v12, %v16533_v60  ;;  %v6017_v21 = vadd.f32 %v16538_v33, %v16537_v37  ;;  %v16540_v35 = vld [vmem:[#allocation105_spill] sm:$0xff]  ;;  %16541 = vst [vmem:[#allocation94_spill] sm:$0xff] %v14745_v1  ;;  %v14747_v49 = vpop.f32.mrb[217].mxu1  ;;  %v16543_v55 = vld [vmem:[#allocation83_spill] sm:$0xff] }
 0x3c6   :  { %10262 = vpow.bf16 %v8842_v15  ;;  %v5569_v28 = vadd.f32 %v16539_v46, %v16533_v60  ;;  %v6019_v43 = vadd.f32 %v16540_v35, %v16537_v37  ;;  %16542 = vst [vmem:[#allocation95_spill] sm:$0xff] %v14747_v49  ;;  %v10245_v44 = vpop.eup %10244  ;;  %v14751_v23 = vadd.f32 %v16544_v62, %v16543_v55  ;;  %v16545_v15 = vld [vmem:[#allocation77_spill] sm:$0xff]  ;;  %v16546_v4 = vld [vmem:[#allocation107_spill] sm:$0xff]  ;;  %v14757_v33 = vpop.f32.mrb[218].mxu0  ;;  %v16548_v62 = vld [vmem:[#allocation108_spill] sm:$0xff] }
 0x3c7   :  { %10264 = vpow.bf16 %v8811_v36  ;;  %v5593_v50 = vpack.c.bf16 %v5567_v19, %v5563_v0  ;;  %v14755_v12 = vadd.f32 %v16546_v4, %v16545_v15  ;;  %16547 = vst [vmem:[#allocation100_spill] sm:$0xff] %v14757_v33  ;;  %v5690_v60 = vmul.bf16 1065369472, %v10245_v44  ;;  %v9416_v35 = vld [vmem:[#allocation2 + $0x530] ss:$8 sps:$4 sm:$0xff]  }
 0x3c8   :  { %v10247_v46 = vpop.eup %10246  ;;  %v9418_v37 = vld [vmem:[#allocation2 + $0x730] ss:$8 sps:$4 sm:$0xff]   ;;  %10266 = vpow.bf16 %v8843_v56  ;;  %v6043_v3 = vpack.c.bf16 %v6017_v21, %v6013_v45  ;;  %v5594_v6 = vpack.c.bf16 %v5569_v28, %v5565_v48  ;;  %v9420_v0 = vld [vmem:[#allocation2 + $0x534] ss:$8 sps:$4 sm:$0xff]   ;;  %v6044_v38 = vpack.c.bf16 %v6019_v43, %v6015_v61  ;;  %v16549_v21 = vld [vmem:[#allocation109_spill] sm:$0xff] }
 0x3c9   :  { %v10249_v11 = vpop.eup %10248  ;;  %v6140_v36 = vmul.bf16 1065369472, %v10247_v46  ;;  %v8812_v19 = vmul.bf16 3216621497, %v5593_v50  ;;  %v14761_v49 = vadd.f32 %v16548_v62, %v16543_v55  ;;  %v10728_v4 = vld [vmem:[%s15595_s0 + $0x130] ss:$8 sps:$4 sm:$0xff]   ;;  %v14768_v28 = vadd.f32 %v16549_v21, %v16545_v15 }
 0x3ca   :  { %v5715_v33 = vmul.bf16 %v10728_v4, %v5690_v60  ;;  %v5692_v44 = vmul.bf16 1065369472, %v10249_v11  ;;  %v8844_v1 = vmul.bf16 3216621497, %v6043_v3  ;;  %v8813_v18 = vmul.bf16 3216621497, %v5594_v6  ;;  %v10251_v56 = vpop.eup %10250 }
 0x3cb   :  { %v6165_v45 = vmul.bf16 %v10728_v4, %v6140_v36  ;;  %10268 = vpow.bf16 %v8812_v19  ;;  %v8845_v48 = vmul.bf16 3216621497, %v6044_v38  ;;  %v10729_v50 = vld [vmem:[%s15595_s0 + $0x134] ss:$8 sps:$4 sm:$0xff]   ;;  %v6142_v62 = vmul.bf16 1065369472, %v10251_v56 }
 0x3cc   :  { %v10253_v61 = vpop.eup %10252  ;;  %v5828_v43 = vsub.bf16 %v5715_v33, %v9416_v35  ;;  %v5716_v46 = vmul.bf16 %v10729_v50, %v5692_v44  ;;  %v9421_v60 = vld [vmem:[#allocation2 + $0x734] ss:$8 sps:$4 sm:$0xff]   ;;  %10270 = vpow.bf16 %v8844_v1  ;;  %v9422_v36 = vld [vmem:[#allocation2 + $0x540] ss:$8 sps:$4 sm:$0xff]   ;;  %v14777_v21 = vpop.f32.mrb[218].mxu1 }
 0x3cd   :  { %v10255_v11 = vpop.eup %10254  ;;  %v6278_v6 = vsub.bf16 %v6165_v45, %v9418_v37  ;;  %v5694_v3 = vmul.bf16 1065369472, %v10253_v61  ;;  %10272 = vpow.bf16 %v8813_v18  ;;  %v16550_v38 = vld [vmem:[#allocation80_spill] sm:$0xff]  ;;  %v16551_v19 = vld [vmem:[#allocation110_spill] sm:$0xff]  ;;  %16552 = vst [vmem:[#allocation98_spill] sm:$0xff] %v14777_v21  ;;  %v6166_v55 = vmul.bf16 %v10729_v50, %v6142_v62  ;;  %v14782_v62 = vpop.f32.mrb[219].mxu0 }
 0x3ce   :  { %v14775_v4 = vadd.f32 %v16551_v19, %v16550_v38  ;;  %v10257_v33 = vpop.eup %10256  ;;  %v5844_v35 = vand.u32 2147450879, %v5828_v43  ;;  %v5829_v15 = vsub.bf16 %v5716_v46, %v9420_v0  ;;  %v6144_v34 = vmul.bf16 1065369472, %v10255_v11  ;;  %v10730_v37 = vld [vmem:[%s15595_s0 + $0x140] ss:$8 sps:$4 sm:$0xff]  }
 0x3cf   :  { %v10259_v44 = vpop.eup %10258  ;;  %v6294_v56 = vand.u32 2147450879, %v6278_v6  ;;  %v5717_v1 = vmul.bf16 %v10730_v37, %v5694_v3  ;;  %v9424_v45 = vld [vmem:[#allocation2 + $0x740] ss:$8 sps:$4 sm:$0xff]   ;;  %v5696_v18 = vmul.bf16 1065369472, %v10257_v33  ;;  %10274 = vpow.bf16 %v8845_v48 }
 0x3d0   :  { %v10261_v61 = vpop.eup %10260  ;;  %v5866_v19 = vunpack.c.l.bf16 %v5844_v35  ;;  %v5868_v57 = vunpack.c.h.bf16 %v5844_v35  ;;  %v5845_v54 = vand.u32 2147450879, %v5829_v15  ;;  %v6279_v21 = vsub.bf16 %v6166_v55, %v9421_v60  ;;  %16553 = vst [vmem:[#allocation99_spill] sm:$0xff] %v14782_v62  ;;  %v14784_v11 = vpop.f32.mrb[219].mxu1 }
 0x3d1   :  { %v10263_v13 = vpop.eup %10262  ;;  %v6316_v43 = vunpack.c.l.bf16 %v6294_v56  ;;  %v6318_v0 = vunpack.c.h.bf16 %v6294_v56  ;;  %v5830_v50 = vsub.bf16 %v5717_v1, %v9422_v36  ;;  %v6167_v46 = vmul.bf16 %v10730_v37, %v6144_v34  ;;  %16554 = vst [vmem:[#allocation101_spill] sm:$0xff] %v14784_v11  ;;  %v14791_v34 = vld [vmem:[%s15595_s0 + $0x144] ss:$8 sps:$4 sm:$0xff]  }
 0x3d2   :  { %v10265_v6 = vpop.eup %10264  ;;  %v5891_v3 = vadd.f32 %v14693_v47, %v5866_v19  ;;  %v5867_v42 = vunpack.c.l.bf16 %v5845_v54  ;;  %v5869_v33 = vunpack.c.h.bf16 %v5845_v54  ;;  %v6295_v48 = vand.u32 2147450879, %v6279_v21 }
 0x3d3   :  { %v10267_v8 = vpop.eup %10266  ;;  %v6341_v15 = vadd.f32 %v14699_v29, %v6316_v43  ;;  %v5846_v55 = vand.u32 2147450879, %v5830_v50  ;;  %v6280_v60 = vsub.bf16 %v6167_v46, %v9424_v45  ;;  %v5718_v36 = vmul.bf16 %v14791_v34, %v5696_v18 }
 0x3d4   :  { %v5892_v35 = vadd.f32 %v5891_v3, %v5868_v57  ;;  %v5906_v56 = vadd.f32 %v14721_v5, %v5867_v42  ;;  %v6317_v47 = vunpack.c.l.bf16 %v6295_v48  ;;  %v6319_v37 = vunpack.c.h.bf16 %v6295_v48  ;;  %v14796_v57 = vpop.f32.mrb[220].mxu0  ;;  %v14798_v42 = vpop.f32.mrb[220].mxu1 }
 0x3d5   :  { %v6342_v54 = vadd.f32 %v6341_v15, %v6318_v0  ;;  %v5870_v21 = vunpack.c.l.bf16 %v5846_v55  ;;  %v5872_v1 = vunpack.c.h.bf16 %v5846_v55  ;;  %v6296_v19 = vand.u32 2147450879, %v6280_v60  ;;  %v14806_v15 = vpop.f32.mrb[221].mxu1 }
 0x3d6   :  { %v10269_v11 = vpop.eup %10268  ;;  %v5907_v29 = vadd.f32 %v5906_v56, %v5869_v33  ;;  %v6356_v45 = vadd.f32 %v14723_v26, %v6317_v47  ;;  %v5831_v43 = vsub.bf16 %v5718_v36, %v9426_v14  ;;  %v6120_v50 = vadd.bf16 1065369472, %v10259_v44  ;;  %v14804_v44 = vpop.f32.mrb[221].mxu0 }
 0x3d7   :  { %v10271_v46 = vpop.eup %10270  ;;  %v5893_v62 = vadd.f32 %v5892_v35, %v5870_v21  ;;  %v6320_v25 = vunpack.c.l.bf16 %v6296_v19  ;;  %v6322_v20 = vunpack.c.h.bf16 %v6296_v19  ;;  %v5671_v18 = vadd.bf16 1065369472, %v10261_v61  ;;  %v14808_v35 = vpop.f32.mrb[222].mxu0 }
 0x3d8   :  { %v10273_v5 = vpop.eup %10272  ;;  %v14800_v0 = vadd.f32 %v6356_v45, %v6319_v37  ;;  %v5847_v3 = vand.u32 2147450879, %v5831_v43  ;;  %10276 = vrcp.bf16 %v6120_v50  ;;  %v6121_v48 = vadd.bf16 1065369472, %v10263_v13  ;;  %v14810_v56 = vpop.f32.mrb[222].mxu1 }
 0x3d9   :  { %v14802_v33 = vadd.f32 %v5893_v62, %v5872_v1  ;;  %v6343_v26 = vadd.f32 %v6342_v54, %v6320_v25  ;;  %10278 = vrcp.bf16 %v5671_v18  ;;  %v5672_v14 = vadd.bf16 1065369472, %v10265_v6  ;;  %v14814_v62 = vpop.f32.mrb[223].mxu0  ;;  %v14816_v6 = vpop.f32.mrb[223].mxu1  ;;  %v16555_v1 = vld [vmem:[#allocation118_spill] sm:$0xff] }
 0x3da   :  { %v10275_v61 = vpop.eup %10274  ;;  %v5871_v55 = vunpack.c.l.bf16 %v5847_v3  ;;  %v5873_v60 = vunpack.c.h.bf16 %v5847_v3  ;;  %10280 = vrcp.bf16 %v6121_v48  ;;  %v6122_v36 = vadd.bf16 1065369472, %v10267_v8 }
 0x3db   :  { %v14812_v47 = vadd.f32 %v6343_v26, %v6322_v20  ;;  %10282 = vrcp.bf16 %v5672_v14  ;;  %v5673_v13 = vadd.bf16 1065369472, %v10269_v11  ;;  %v6123_v25 = vadd.bf16 1065369472, %v10271_v46  ;;  %v16558_v26 = vld [vmem:[#allocation8_spill] sm:$0xff]  ;;  %v16559_v14 = vld [vmem:[#allocation21_spill] sm:$0xff] }
 0x3dc   :  { %v5908_v37 = vadd.f32 %v5907_v29, %v5871_v55  ;;  %10284 = vrcp.bf16 %v6122_v36  ;;  %v5674_v54 = vadd.bf16 1065369472, %v10273_v5  ;;  %v6124_v21 = vadd.bf16 1065369472, %v10275_v61  ;;  %v16556_v29 = vld [vmem:[#allocation6_spill] sm:$0xff]  ;;  %v14837_v5 = vpop.f32.mrb[224].mxu0 }
 0x3dd   :  { %10286 = vrcp.bf16 %v5673_v13  ;;  %v5595_v8 = vpack.c.bf16 %v14775_v4, %v14751_v23  ;;  %v6027_v19 = vadd.f32 %v14384_v40, %v16555_v1  ;;  %v5579_v20 = vadd.f32 %v14388_v24, %v16550_v38  ;;  %v16557_v4 = vld [vmem:[#allocation22_spill] sm:$0xff]  ;;  %v16560_v36 = vld [vmem:[#allocation5_spill] sm:$0xff] }
 0x3de   :  { %v14824_v11 = vadd.f32 %v5908_v37, %v5873_v60  ;;  %10288 = vrcp.bf16 %v6123_v25  ;;  %v6029_v45 = vadd.f32 %v14390_v17, %v16555_v1  ;;  %v6500_v43 = vadd.f32 %v14406_v7, %v16556_v29  ;;  %v14839_v17 = vpop.f32.mrb[224].mxu1  ;;  %v16561_v25 = vld [vmem:[#allocation24_spill] sm:$0xff]  ;;  %v9438_v1 = vld [vmem:[#allocation2 + $0x564] ss:$8 sps:$4 sm:$0xff]  }
 0x3df   :  { %10290 = vrcp.bf16 %v5674_v54  ;;  %v8814_v50 = vmul.bf16 3216621497, %v5595_v8  ;;  %v6045_v46 = vpack.c.bf16 %v6027_v19, %v14755_v12  ;;  %v5596_v23 = vpack.c.bf16 %v5579_v20, %v14761_v49  ;;  %v14843_v49 = vpop.f32.mrb[225].mxu0  ;;  %v14845_v48 = vpop.f32.mrb[225].mxu1  ;;  %v9427_v54 = vld [vmem:[#allocation2 + $0x744] ss:$8 sps:$4 sm:$0xff]  }
 0x3e0   :  { %10292 = vrcp.bf16 %v6124_v21  ;;  %v6046_v40 = vpack.c.bf16 %v6029_v45, %v14768_v28  ;;  %v6950_v24 = vadd.f32 %v14408_v53, %v16557_v4  ;;  %v6502_v18 = vadd.f32 %v14416_v2, %v16556_v29  ;;  %v14853_v55 = vpop.f32.mrb[226].mxu0  ;;  %v9428_v21 = vld [vmem:[#allocation2 + $0x550] ss:$8 sps:$4 sm:$0xff]   ;;  %v9432_v29 = vld [vmem:[#allocation2 + $0x554] ss:$8 sps:$4 sm:$0xff]  }
 0x3e1   :  { %10294 = vpow.bf16 %v8814_v50  ;;  %v8846_v7 = vmul.bf16 3216621497, %v6045_v46  ;;  %v8815_v3 = vmul.bf16 3216621497, %v5596_v23  ;;  %v6952_v12 = vadd.f32 %v14418_v27, %v16557_v4  ;;  %v9430_v45 = vld [vmem:[#allocation2 + $0x750] ss:$8 sps:$4 sm:$0xff]  }
 0x3e2   :  { %v8847_v28 = vmul.bf16 3216621497, %v6046_v40  ;;  %v6504_v53 = vadd.f32 %v14422_v22, %v16558_v26  ;;  %v6954_v2 = vadd.f32 %v14424_v52, %v16559_v14  ;;  %v6506_v61 = vadd.f32 %v14433_v16, %v16558_v26 }
 0x3e3   :  { %v10277_v60 = vpop.eup %10276  ;;  %10296 = vpow.bf16 %v8846_v7  ;;  %v6956_v27 = vadd.f32 %v14472_v9, %v16559_v14  ;;  %v14859_v13 = vadd.f32 %v14483_v51, %v16560_v36  ;;  %v14863_v22 = vadd.f32 %v14485_v31, %v16561_v25  ;;  %v10732_v7 = vld [vmem:[%s15595_s0 + $0x150] ss:$8 sps:$4 sm:$0xff]   ;;  %v9433_v14 = vld [vmem:[#allocation2 + $0x754] ss:$8 sps:$4 sm:$0xff]  }
 0x3e4   :  { %v10279_v37 = vpop.eup %10278  ;;  %v6146_v52 = vmul.bf16 1065369472, %v10277_v60  ;;  %10298 = vpow.bf16 %v8815_v3  ;;  %v6578_v16 = vpack.c.bf16 %v6504_v53, %v6500_v43  ;;  %v7028_v8 = vpack.c.bf16 %v6954_v2, %v6950_v24 }
 0x3e5   :  { %v10281_v19 = vpop.eup %10280  ;;  %v5698_v20 = vmul.bf16 1065369472, %v10279_v37  ;;  %10300 = vpow.bf16 %v8847_v28  ;;  %v6579_v9 = vpack.c.bf16 %v6506_v61, %v6502_v18  ;;  %v7029_v50 = vpack.c.bf16 %v6956_v27, %v6952_v12  ;;  %v10733_v61 = vld [vmem:[%s15595_s0 + $0x154] ss:$8 sps:$4 sm:$0xff]   ;;  %v9434_v37 = vld [vmem:[#allocation2 + $0x560] ss:$8 sps:$4 sm:$0xff]  }
 0x3e6   :  { %v10283_v51 = vpop.eup %10282  ;;  %v6168_v46 = vmul.bf16 %v14791_v34, %v6146_v52  ;;  %v6148_v23 = vmul.bf16 1065369472, %v10281_v19  ;;  %v8896_v31 = vmul.bf16 3216621497, %v6578_v16  ;;  %v8928_v40 = vmul.bf16 3216621497, %v7028_v8 }
 0x3e7   :  { %v10285_v4 = vpop.eup %10284  ;;  %v5719_v43 = vmul.bf16 %v10732_v7, %v5698_v20  ;;  %v5700_v24 = vmul.bf16 1065369472, %v10283_v51  ;;  %v14869_v3 = vmul.bf16 3216621497, %v6579_v9  ;;  %v14871_v26 = vmul.bf16 3216621497, %v7029_v50 }
 0x3e8   :  { %v10287_v28 = vpop.eup %10286  ;;  %v6281_v18 = vsub.bf16 %v6168_v46, %v9427_v54  ;;  %v6169_v12 = vmul.bf16 %v10732_v7, %v6148_v23  ;;  %v6150_v53 = vmul.bf16 1065369472, %v10285_v4  ;;  %10302 = vpow.bf16 %v8896_v31 }
 0x3e9   :  { %v10289_v34 = vpop.eup %10288  ;;  %v5832_v2 = vsub.bf16 %v5719_v43, %v9428_v21  ;;  %v5720_v60 = vmul.bf16 %v10733_v61, %v5700_v24  ;;  %v5702_v27 = vmul.bf16 1065369472, %v10287_v28  ;;  %10304 = vpow.bf16 %v8928_v40  ;;  %v10734_v21 = vld [vmem:[%s15595_s0 + $0x160] ss:$8 sps:$4 sm:$0xff]   ;;  %v14879_v40 = vpop.f32.mrb[226].mxu1 }
 0x3ea   :  { %v10291_v52 = vpop.eup %10290  ;;  %v6297_v16 = vand.u32 2147450879, %v6281_v18  ;;  %v6282_v8 = vsub.bf16 %v6169_v12, %v9430_v45  ;;  %v6170_v19 = vmul.bf16 %v10733_v61, %v6150_v53  ;;  %v6152_v20 = vmul.bf16 1065369472, %v10289_v34  ;;  %16562 = vst [vmem:[#allocation102_spill] sm:$0xff] %v14879_v40 }
 0x3eb   :  { %v10293_v54 = vpop.eup %10292  ;;  %v5848_v9 = vand.u32 2147450879, %v5832_v2  ;;  %v5833_v50 = vsub.bf16 %v5720_v60, %v9432_v29  ;;  %v5721_v51 = vmul.bf16 %v10734_v21, %v5702_v27  ;;  %v5704_v46 = vmul.bf16 1065369472, %v10291_v52 }
 0x3ec   :  { %v10295_v23 = vpop.eup %10294  ;;  %v6321_v31 = vunpack.c.l.bf16 %v6297_v16  ;;  %v6323_v4 = vunpack.c.h.bf16 %v6297_v16  ;;  %v6298_v7 = vand.u32 2147450879, %v6282_v8  ;;  %v6283_v43 = vsub.bf16 %v6170_v19, %v9433_v14  ;;  %v14883_v8 = vpop.f32.mrb[227].mxu0 }
 0x3ed   :  { %v5874_v24 = vunpack.c.l.bf16 %v5848_v9  ;;  %v5876_v45 = vunpack.c.h.bf16 %v5848_v9  ;;  %v5849_v28 = vand.u32 2147450879, %v5833_v50  ;;  %v5834_v18 = vsub.bf16 %v5721_v51, %v9434_v37  ;;  %16563 = vst [vmem:[#allocation103_spill] sm:$0xff] %v14883_v8  ;;  %v9436_v51 = vld [vmem:[#allocation2 + $0x760] ss:$8 sps:$4 sm:$0xff]  }
 0x3ee   :  { %v10297_v12 = vpop.eup %10296  ;;  %v6358_v29 = vadd.f32 %v14800_v0, %v6321_v31  ;;  %v6324_v53 = vunpack.c.l.bf16 %v6298_v7  ;;  %v6326_v34 = vunpack.c.h.bf16 %v6298_v7  ;;  %v6299_v2 = vand.u32 2147450879, %v6283_v43  ;;  %v14886_v0 = vpop.f32.mrb[227].mxu1  ;;  %v9439_v8 = vld [vmem:[#allocation2 + $0x764] ss:$8 sps:$4 sm:$0xff]  }
 0x3ef   :  { %v10299_v61 = vpop.eup %10298  ;;  %v5895_v60 = vadd.f32 %v14802_v33, %v5874_v24  ;;  %v5875_v27 = vunpack.c.l.bf16 %v5849_v28  ;;  %v5877_v52 = vunpack.c.h.bf16 %v5849_v28  ;;  %v5850_v16 = vand.u32 2147450879, %v5834_v18  ;;  %16564 = vst [vmem:[#allocation97_spill] sm:$0xff] %v14886_v0 }
 0x3f0   :  { %v10301_v14 = vpop.eup %10300  ;;  %v6359_v19 = vadd.f32 %v6358_v29, %v6323_v4  ;;  %v6345_v9 = vadd.f32 %v14812_v47, %v6324_v53  ;;  %v6325_v50 = vunpack.c.l.bf16 %v6299_v2  ;;  %v6327_v37 = vunpack.c.h.bf16 %v6299_v2  ;;  %v10735_v4 = vld [vmem:[%s15595_s0 + $0x164] ss:$8 sps:$4 sm:$0xff]  }
 0x3f1   :  { %v5896_v31 = vadd.f32 %v5895_v60, %v5876_v45  ;;  %v5910_v7 = vadd.f32 %v14824_v11, %v5875_v27  ;;  %v5878_v43 = vunpack.c.l.bf16 %v5850_v16  ;;  %v5880_v33 = vunpack.c.h.bf16 %v5850_v16 }
 0x3f2   :  { %v6346_v24 = vadd.f32 %v6345_v9, %v6326_v34  ;;  %v6360_v28 = vadd.f32 %v6359_v19, %v6325_v50  ;;  %v6171_v18 = vmul.bf16 %v10734_v21, %v6152_v20  ;;  %v5722_v29 = vmul.bf16 %v10735_v4, %v5704_v46  ;;  %v14894_v50 = vpop.f32.mrb[228].mxu0 }
 0x3f3   :  { %v10303_v47 = vpop.eup %10302  ;;  %v5911_v53 = vadd.f32 %v5910_v7, %v5877_v52  ;;  %v5897_v2 = vadd.f32 %v5896_v31, %v5878_v43  ;;  %v6154_v38 = vmul.bf16 1065369472, %v10293_v54  ;;  %v5675_v40 = vadd.bf16 1065369472, %v10295_v23  ;;  %v14896_v23 = vpop.f32.mrb[228].mxu1 }
 0x3f4   :  { %v10305_v0 = vpop.eup %10304  ;;  %v6361_v45 = vadd.f32 %v6360_v28, %v6327_v37  ;;  %v6284_v60 = vsub.bf16 %v6171_v18, %v9436_v51  ;;  %v5835_v11 = vsub.bf16 %v5722_v29, %v9438_v1  ;;  %v6125_v27 = vadd.bf16 1065369472, %v10297_v12  ;;  %v14898_v31 = vpop.f32.mrb[229].mxu0 }
 0x3f5   :  { %v14892_v16 = vadd.f32 %v5897_v2, %v5880_v33  ;;  %v6172_v34 = vmul.bf16 %v10735_v4, %v6154_v38  ;;  %10306 = vrcp.bf16 %v5675_v40  ;;  %v5676_v20 = vadd.bf16 1065369472, %v10299_v61  ;;  %v14900_v38 = vpop.f32.mrb[229].mxu1  ;;  %v16565_v33 = vld [vmem:[#allocation7_spill] sm:$0xff] }
 0x3f6   :  { %v6300_v21 = vand.u32 2147450879, %v6284_v60  ;;  %v5851_v19 = vand.u32 2147450879, %v5835_v11  ;;  %10308 = vrcp.bf16 %v6125_v27  ;;  %v6126_v46 = vadd.bf16 1065369472, %v10301_v14 }
 0x3f7   :  { %v6285_v9 = vsub.bf16 %v6172_v34, %v9439_v8  ;;  %10310 = vrcp.bf16 %v5676_v20  ;;  %v6658_v52 = vadd.bf16 1065369472, %v10303_v47  ;;  %v7108_v54 = vadd.bf16 1065369472, %v10305_v0  ;;  %v14906_v14 = vpop.f32.mrb[230].mxu0  ;;  %v14908_v0 = vpop.f32.mrb[230].mxu1 }
 0x3f8   :  { %v6328_v37 = vunpack.c.l.bf16 %v6300_v21  ;;  %v6330_v1 = vunpack.c.h.bf16 %v6300_v21  ;;  %v5879_v12 = vunpack.c.l.bf16 %v5851_v19  ;;  %v5881_v51 = vunpack.c.h.bf16 %v5851_v19  ;;  %v14912_v18 = vpop.f32.mrb[231].mxu0  ;;  %v14914_v4 = vpop.f32.mrb[231].mxu1  ;;  %v16567_v2 = vld [vmem:[#allocation111_spill] sm:$0xff]  ;;  %v16568_v27 = vld [vmem:[#allocation56_spill] sm:$0xff]  ;;  %v16569_v34 = vld [vmem:[#allocation10_spill] sm:$0xff] }
 0x3f9   :  { %v6301_v40 = vand.u32 2147450879, %v6285_v9  ;;  %10312 = vrcp.bf16 %v6126_v46  ;;  %v6512_v61 = vadd.f32 %v14489_v39, %v16560_v36  ;;  %v6962_v8 = vadd.f32 %v14491_v30, %v16561_v25  ;;  %v16566_v39 = vld [vmem:[#allocation23_spill] sm:$0xff]  ;;  %v16570_v20 = vld [vmem:[#allocation66_spill] sm:$0xff]  ;;  %v14934_v9 = vpop.f32.mrb[232].mxu0 }
 0x3fa   :  { %v6347_v7 = vadd.f32 %v6346_v24, %v6328_v37  ;;  %v5912_v43 = vadd.f32 %v5911_v53, %v5879_v12  ;;  %10314 = vrcp.bf16 %v6658_v52  ;;  %v6514_v28 = vadd.f32 %v14500_v10, %v16565_v33  ;;  %v16571_v19 = vld [vmem:[#allocation26_spill] sm:$0xff]  ;;  %v16572_v46 = vld [vmem:[#allocation67_spill] sm:$0xff]  ;;  %v16574_v52 = vld [vmem:[#allocation68_spill] sm:$0xff]  ;;  %v14942_v37 = vpop.f32.mrb[233].mxu0 }
 0x3fb   :  { %v6329_v29 = vunpack.c.l.bf16 %v6301_v40  ;;  %v6331_v47 = vunpack.c.h.bf16 %v6301_v40  ;;  %10316 = vrcp.bf16 %v7108_v54  ;;  %v6964_v30 = vadd.f32 %v14502_v63, %v16566_v39  ;;  %16575 = vst [vmem:[#allocation105_spill] sm:$0xff] %v14942_v37  ;;  %v16577_v40 = vld [vmem:[#allocation112_spill] sm:$0xff] }
 0x3fc   :  { %v14918_v36 = vadd.f32 %v6347_v7, %v6330_v1  ;;  %v14920_v25 = vadd.f32 %v5912_v43, %v5881_v51  ;;  %10318 = vpow.bf16 %v14869_v3  ;;  %v6580_v24 = vpack.c.bf16 %v6514_v28, %v14859_v13  ;;  %v14936_v13 = vpop.f32.mrb[232].mxu1  ;;  %v16578_v43 = vld [vmem:[#allocation9_spill] sm:$0xff] }
 0x3fd   :  { %v6362_v53 = vadd.f32 %v6361_v45, %v6329_v29  ;;  %10320 = vpow.bf16 %v14871_v26  ;;  %v7030_v10 = vpack.c.bf16 %v6964_v30, %v14863_v22  ;;  %v6516_v60 = vadd.f32 %v16567_v2, %v16565_v33  ;;  %16573 = vst [vmem:[#allocation104_spill] sm:$0xff] %v14936_v13  ;;  %v14944_v1 = vpop.f32.mrb[233].mxu1  ;;  %v16579_v33 = vld [vmem:[#allocation113_spill] sm:$0xff]  ;;  %v14952_v29 = vpop.f32.mrb[234].mxu0 }
 0x3fe   :  { %v8898_v11 = vmul.bf16 3216621497, %v6580_v24  ;;  %v6966_v63 = vadd.f32 %v16568_v27, %v16566_v39  ;;  %v6520_v21 = vadd.f32 %v16570_v20, %v16569_v34  ;;  %v6970_v3 = vadd.f32 %v16572_v46, %v16571_v19  ;;  %16576 = vst [vmem:[#allocation106_spill] sm:$0xff] %v14944_v1  ;;  %16580 = vst [vmem:[#allocation107_spill] sm:$0xff] %v14952_v29  ;;  %v9440_v39 = vld [vmem:[#allocation2 + $0x570] ss:$8 sps:$4 sm:$0xff]  }
 0x3ff   :  { %v14938_v26 = vadd.f32 %v6362_v53, %v6331_v47  ;;  %v8930_v22 = vmul.bf16 3216621497, %v7030_v10  ;;  %v6581_v45 = vpack.c.bf16 %v6516_v60, %v6512_v61  ;;  %v6522_v54 = vadd.f32 %v16574_v52, %v16569_v34  ;;  %v16581_v24 = vld [vmem:[#allocation25_spill] sm:$0xff]  ;;  %v10736_v20 = vld [vmem:[%s15595_s0 + $0x170] ss:$8 sps:$4 sm:$0xff]  }
 0x400   :  { %v10307_v12 = vpop.eup %10306  ;;  %10322 = vpow.bf16 %v8898_v11  ;;  %v7031_v51 = vpack.c.bf16 %v6966_v63, %v6962_v8  ;;  %v14948_v7 = vadd.f32 %v16577_v40, %v16571_v19  ;;  %v6524_v28 = vadd.f32 %v16579_v33, %v16578_v43  ;;  %v16582_v53 = vld [vmem:[#allocation69_spill] sm:$0xff]  ;;  %v9442_v8 = vld [vmem:[#allocation2 + $0x770] ss:$8 sps:$4 sm:$0xff]   ;;  %v16583_v63 = vld [vmem:[#allocation70_spill] sm:$0xff] }
 0x401   :  { %v10309_v61 = vpop.eup %10308  ;;  %v5706_v47 = vmul.bf16 1065369472, %v10307_v12  ;;  %10324 = vpow.bf16 %v8930_v22  ;;  %v8899_v30 = vmul.bf16 3216621497, %v6581_v45  ;;  %v6974_v10 = vadd.f32 %v16582_v53, %v16581_v24  ;;  %v9444_v52 = vld [vmem:[#allocation2 + $0x574] ss:$8 sps:$4 sm:$0xff]  }
 0x402   :  { %v10311_v2 = vpop.eup %10310  ;;  %v6156_v60 = vmul.bf16 1065369472, %v10309_v61  ;;  %v8931_v11 = vmul.bf16 3216621497, %v7031_v51  ;;  %v6582_v27 = vpack.c.bf16 %v6524_v28, %v6520_v21  ;;  %v6526_v34 = vadd.f32 %v16583_v63, %v16578_v43  ;;  %v10737_v21 = vld [vmem:[%s15595_s0 + $0x174] ss:$8 sps:$4 sm:$0xff]  }
 0x403   :  { %v5723_v19 = vmul.bf16 %v10736_v20, %v5706_v47  ;;  %v5708_v46 = vmul.bf16 1065369472, %v10311_v2  ;;  %10326 = vpow.bf16 %v8899_v30  ;;  %v7032_v22 = vpack.c.bf16 %v6974_v10, %v6970_v3  ;;  %v9445_v53 = vld [vmem:[#allocation2 + $0x774] ss:$8 sps:$4 sm:$0xff]   ;;  %v9446_v30 = vld [vmem:[#allocation2 + $0x180] ss:$8 sps:$4 sm:$0xff]  }
 0x404   :  { %v10313_v45 = vpop.eup %10312  ;;  %v6173_v12 = vmul.bf16 %v10736_v20, %v6156_v60  ;;  %10328 = vpow.bf16 %v8931_v11  ;;  %v8900_v40 = vmul.bf16 3216621497, %v6582_v27  ;;  %v6583_v33 = vpack.c.bf16 %v6526_v34, %v6522_v54  ;;  %v9448_v27 = vld [vmem:[#allocation2 + $0x380] ss:$8 sps:$4 sm:$0xff]  }
 0x405   :  { %v10315_v61 = vpop.eup %10314  ;;  %v5836_v51 = vsub.bf16 %v5723_v19, %v9440_v39  ;;  %v5724_v43 = vmul.bf16 %v10737_v21, %v5708_v46  ;;  %v6158_v28 = vmul.bf16 1065369472, %v10313_v45  ;;  %v8932_v63 = vmul.bf16 3216621497, %v7032_v22  ;;  %v10738_v19 = vld [vmem:[%s15595_s0 + $0x180] ss:$8 sps:$4 sm:$0xff]  }
 0x406   :  { %v10317_v47 = vpop.eup %10316  ;;  %v6286_v2 = vsub.bf16 %v6173_v12, %v9442_v8  ;;  %v6675_v29 = vmul.bf16 1065369472, %v10315_v61  ;;  %10330 = vpow.bf16 %v8900_v40  ;;  %v14964_v3 = vmul.bf16 3216621497, %v6583_v33  ;;  %v14969_v8 = vpop.f32.mrb[234].mxu1 }
 0x407   :  { %v10319_v10 = vpop.eup %10318  ;;  %v5852_v60 = vand.u32 2147450879, %v5836_v51  ;;  %v5837_v54 = vsub.bf16 %v5724_v43, %v9444_v52  ;;  %v6174_v11 = vmul.bf16 %v10737_v21, %v6158_v28  ;;  %v7125_v39 = vmul.bf16 1065369472, %v10317_v47  ;;  %16584 = vst [vmem:[#allocation108_spill] sm:$0xff] %v14969_v8  ;;  %v14973_v8 = vpop.f32.mrb[235].mxu0 }
 0x408   :  { %v10321_v34 = vpop.eup %10320  ;;  %v6302_v20 = vand.u32 2147450879, %v6286_v2  ;;  %v6706_v46 = vmul.bf16 %v10738_v19, %v6675_v29  ;;  %v6659_v22 = vadd.bf16 1065369472, %v10319_v10  ;;  %10332 = vpow.bf16 %v8932_v63  ;;  %16585 = vst [vmem:[#allocation109_spill] sm:$0xff] %v14973_v8 }
 0x409   :  { %v5882_v45 = vunpack.c.l.bf16 %v5852_v60  ;;  %v5884_v12 = vunpack.c.h.bf16 %v5852_v60  ;;  %v5853_v40 = vand.u32 2147450879, %v5837_v54  ;;  %v6287_v33 = vsub.bf16 %v6174_v11, %v9445_v53  ;;  %v14975_v60 = vpop.f32.mrb[235].mxu1 }
 0x40a   :  { %v6332_v61 = vunpack.c.l.bf16 %v6302_v20  ;;  %v6334_v52 = vunpack.c.h.bf16 %v6302_v20  ;;  %v6819_v51 = vsub.bf16 %v6706_v46, %v9446_v30  ;;  %v7156_v21 = vmul.bf16 %v10738_v19, %v7125_v39  ;;  %16586 = vst [vmem:[#allocation110_spill] sm:$0xff] %v14975_v60 }
 0x40b   :  { %v10323_v43 = vpop.eup %10322  ;;  %v5899_v28 = vadd.f32 %v14892_v16, %v5882_v45  ;;  %v5883_v47 = vunpack.c.l.bf16 %v5853_v40  ;;  %v5885_v2 = vunpack.c.h.bf16 %v5853_v40  ;;  %v6303_v1 = vand.u32 2147450879, %v6287_v33 }
 0x40c   :  { %v10325_v37 = vpop.eup %10324  ;;  %v6349_v29 = vadd.f32 %v14918_v36, %v6332_v61  ;;  %v6835_v63 = vand.u32 2147450879, %v6819_v51  ;;  %v7269_v10 = vsub.bf16 %v7156_v21, %v9448_v27  ;;  %10334 = vrcp.bf16 %v6659_v22 }
 0x40d   :  { %v5900_v53 = vadd.f32 %v5899_v28, %v5884_v12  ;;  %v5914_v30 = vadd.f32 %v14920_v25, %v5883_v47  ;;  %v6333_v54 = vunpack.c.l.bf16 %v6303_v1  ;;  %v6335_v11 = vunpack.c.h.bf16 %v6303_v1 }
 0x40e   :  { %v10327_v39 = vpop.eup %10326  ;;  %v6350_v16 = vadd.f32 %v6349_v29, %v6334_v52  ;;  %v6851_v20 = vunpack.c.l.bf16 %v6835_v63  ;;  %v6853_v19 = vunpack.c.h.bf16 %v6835_v63  ;;  %v7285_v46 = vand.u32 2147450879, %v7269_v10  ;;  %v16591_v10 = vld [vmem:[#allocation71_spill] sm:$0xff] }
 0x40f   :  { %v10329_v45 = vpop.eup %10328  ;;  %v5916_v36 = vadd.f32 %v5900_v53, %v14579_v59  ;;  %v5915_v40 = vadd.f32 %v5914_v30, %v5885_v2  ;;  %v6364_v27 = vadd.f32 %v14938_v26, %v6333_v54  ;;  %v7109_v22 = vadd.bf16 1065369472, %v10321_v34  ;;  %v14987_v2 = vpop.f32.mrb[236].mxu0  ;;  %v16592_v30 = vld [vmem:[#allocation12_spill] sm:$0xff] }
 0x410   :  { %v14980_v33 = vadd.f32 %v6853_v19, %v6851_v20  ;;  %v7301_v61 = vunpack.c.l.bf16 %v7285_v46  ;;  %v7303_v12 = vunpack.c.h.bf16 %v7285_v46  ;;  %v6660_v51 = vadd.bf16 1065369472, %v10323_v43  ;;  %16588 = vst [vmem:[#allocation22_spill] sm:$0xff] %v14987_v2  ;;  %v14989_v26 = vpop.f32.mrb[236].mxu1  ;;  %v14998_v54 = vpop.f32.mrb[237].mxu0  ;;  %v16596_v20 = vld [vmem:[#allocation63_spill] sm:$0xff] }
 0x411   :  { %v10331_v25 = vpop.eup %10330  ;;  %v14982_v21 = vadd.f32 %v6350_v16, %v5916_v36  ;;  %v5917_v1 = vadd.f32 %v5915_v40, %v14584_v41  ;;  %v6365_v52 = vadd.f32 %v6364_v27, %v6335_v11  ;;  %10336 = vrcp.bf16 %v7109_v22  ;;  %16589 = vst [vmem:[#allocation8_spill] sm:$0xff] %v14989_v26  ;;  %16593 = vst [vmem:[#allocation5_spill] sm:$0xff] %v14998_v54  ;;  %v15000_v11 = vpop.f32.mrb[237].mxu1  ;;  %v16600_v36 = vld [vmem:[#allocation11_spill] sm:$0xff]  ;;  %v16602_v22 = vld [vmem:[#allocation38_spill] sm:$0xff] }
 0x412   :  { %v14985_v28 = vadd.f32 %v7303_v12, %v7301_v61  ;;  %10338 = vrcp.bf16 %v6660_v51  ;;  %v7110_v59 = vadd.bf16 1065369472, %v10325_v37  ;;  %v6661_v47 = vadd.bf16 1065369472, %v10327_v39  ;;  %16594 = vst [vmem:[#allocation24_spill] sm:$0xff] %v15000_v11  ;;  %v16595_v39 = vld [vmem:[#allocation27_spill] sm:$0xff] }
 0x413   :  { %16587 = vst [vmem:[#allocation6_spill] sm:$0xff] %v14982_v21  ;;  %v10333_v34 = vpop.eup %10332  ;;  %v14991_v29 = vadd.f32 %v6365_v52, %v5917_v1  ;;  %v7111_v43 = vadd.bf16 1065369472, %v10329_v45  ;;  %v6662_v63 = vadd.bf16 1065369472, %v10331_v25  ;;  %10340 = vpow.bf16 %v14964_v3  ;;  %v16597_v3 = vld [vmem:[#allocation114_spill] sm:$0xff] }
 0x414   :  { %10342 = vrcp.bf16 %v7110_v59  ;;  %v7112_v41 = vadd.bf16 1065369472, %v10333_v34  ;;  %v6976_v53 = vadd.f32 %v16591_v10, %v16581_v24  ;;  %v6530_v37 = vadd.f32 %v14586_v32, %v16592_v30  ;;  %v15008_v45 = vpop.f32.mrb[238].mxu0  ;;  %v15010_v24 = vpop.f32.mrb[238].mxu1  ;;  %v16601_v40 = vld [vmem:[#allocation115_spill] sm:$0xff]  ;;  %v16603_v61 = vld [vmem:[#allocation72_spill] sm:$0xff] }
 0x415   :  { %16590 = vst [vmem:[#allocation21_spill] sm:$0xff] %v14991_v29  ;;  %10344 = vrcp.bf16 %v6661_v47  ;;  %v6980_v16 = vadd.f32 %v14588_v58, %v16595_v39  ;;  %v6532_v19 = vadd.f32 %v16596_v20, %v16592_v30  ;;  %v6982_v46 = vadd.f32 %v16597_v3, %v16595_v39  ;;  %16598 = vst [vmem:[#allocation7_spill] sm:$0xff] %v15008_v45  ;;  %v15017_v58 = vpop.f32.mrb[239].mxu0  ;;  %v15019_v51 = vpop.f32.mrb[239].mxu1  ;;  %v16606_v1 = vld [vmem:[#allocation116_spill] sm:$0xff]  ;;  %v16607_v59 = vld [vmem:[#allocation42_spill] sm:$0xff] }
 0x416   :  { %16599 = vst [vmem:[#allocation23_spill] sm:$0xff] %v15010_v24  ;;  %10346 = vrcp.bf16 %v7111_v43  ;;  %v7033_v32 = vpack.c.bf16 %v6976_v53, %v14948_v7  ;;  %v6534_v27 = vadd.f32 %v16601_v40, %v16600_v36  ;;  %v6984_v12 = vadd.f32 %v16603_v61, %v16602_v22  ;;  %16604 = vst [vmem:[#allocation111_spill] sm:$0xff] %v15017_v58  ;;  %v16608_v34 = vld [vmem:[#allocation14_spill] sm:$0xff]  ;;  %v16609_v7 = vld [vmem:[#allocation117_spill] sm:$0xff] }
 0x417   :  { %16605 = vst [vmem:[#allocation56_spill] sm:$0xff] %v15019_v51  ;;  %v10335_v25 = vpop.eup %10334  ;;  %10348 = vrcp.bf16 %v6662_v63  ;;  %v6536_v52 = vadd.f32 %v16606_v1, %v16600_v36  ;;  %v6986_v47 = vadd.f32 %v16607_v59, %v16602_v22  ;;  %v6540_v43 = vadd.f32 %v16609_v7, %v16608_v34  ;;  %v9450_v53 = vld [vmem:[#allocation2 + $0x184] ss:$8 sps:$4 sm:$0xff]   ;;  %v16611_v51 = vld [vmem:[#allocation76_spill] sm:$0xff]  ;;  %v16616_v7 = vld [vmem:[#allocation47_spill] sm:$0xff] }
 0x418   :  { %v6677_v10 = vmul.bf16 1065369472, %v10335_v25  ;;  %10350 = vrcp.bf16 %v7112_v41  ;;  %v8933_v30 = vmul.bf16 3216621497, %v7033_v32  ;;  %v6584_v39 = vpack.c.bf16 %v6534_v27, %v6530_v37  ;;  %v16610_v61 = vld [vmem:[#allocation45_spill] sm:$0xff]  ;;  %v16612_v25 = vld [vmem:[#allocation78_spill] sm:$0xff] }
 0x419   :  { %v7034_v20 = vpack.c.bf16 %v6984_v12, %v6980_v16  ;;  %v6585_v3 = vpack.c.bf16 %v6536_v52, %v6532_v19  ;;  %v7035_v40 = vpack.c.bf16 %v6986_v47, %v6982_v46  ;;  %v15029_v63 = vadd.f32 %v16611_v51, %v16610_v61  ;;  %v10739_v36 = vld [vmem:[%s15595_s0 + $0x184] ss:$8 sps:$4 sm:$0xff]   ;;  %v16613_v19 = vld [vmem:[#allocation75_spill] sm:$0xff]  ;;  %v9458_v26 = vld [vmem:[#allocation2 + $0x1a0] ss:$8 sps:$4 sm:$0xff]  }
 0x41a   :  { %v6707_v22 = vmul.bf16 %v10739_v36, %v6677_v10  ;;  %10352 = vpow.bf16 %v8933_v30  ;;  %v8902_v1 = vmul.bf16 3216621497, %v6584_v39  ;;  %v15036_v59 = vadd.f32 %v16612_v25, %v16608_v34  ;;  %v9451_v12 = vld [vmem:[#allocation2 + $0x384] ss:$8 sps:$4 sm:$0xff]   ;;  %v9457_v11 = vld [vmem:[#allocation2 + $0x394] ss:$8 sps:$4 sm:$0xff]  }
 0x41b   :  { %v8934_v41 = vmul.bf16 3216621497, %v7034_v20  ;;  %v8903_v37 = vmul.bf16 3216621497, %v6585_v3  ;;  %v8935_v16 = vmul.bf16 3216621497, %v7035_v40  ;;  %v15040_v46 = vadd.f32 %v16613_v19, %v16610_v61 }
 0x41c   :  { %v10337_v32 = vpop.eup %10336  ;;  %v6820_v27 = vsub.bf16 %v6707_v22, %v9450_v53  ;;  %10354 = vpow.bf16 %v8902_v1  ;;  %v16614_v51 = vld [vmem:[#allocation13_spill] sm:$0xff]  ;;  %v16615_v52 = vld [vmem:[#allocation82_spill] sm:$0xff]  ;;  %v9452_v20 = vld [vmem:[#allocation2 + $0x190] ss:$8 sps:$4 sm:$0xff]   ;;  %v15056_v22 = vpop.f32.mrb[240].mxu0 }
 0x41d   :  { %v6544_v47 = vadd.f32 %v16615_v52, %v16614_v51  ;;  %v16617_v10 = vld [vmem:[#allocation86_spill] sm:$0xff]  ;;  %v10339_v34 = vpop.eup %10338  ;;  %v7127_v39 = vmul.bf16 1065369472, %v10337_v32  ;;  %10356 = vpow.bf16 %v8934_v41  ;;  %v16618_v3 = vld [vmem:[#allocation81_spill] sm:$0xff]  ;;  %v16619_v61 = vld [vmem:[#allocation79_spill] sm:$0xff]  ;;  %16620 = vst [vmem:[#allocation10_spill] sm:$0xff] %v15056_v22 }
 0x41e   :  { %v15046_v30 = vadd.f32 %v16617_v10, %v16616_v7  ;;  %v15050_v40 = vadd.f32 %v16618_v3, %v16614_v51  ;;  %v15054_v53 = vadd.f32 %v16619_v61, %v16616_v7  ;;  %v15058_v1 = vpop.f32.mrb[240].mxu1  ;;  %v10341_v25 = vpop.eup %10340  ;;  %v6836_v19 = vand.u32 2147450879, %v6820_v27 }
 0x41f   :  { %16621 = vst [vmem:[#allocation66_spill] sm:$0xff] %v15058_v1  ;;  %v6679_v52 = vmul.bf16 1065369472, %v10339_v34  ;;  %10358 = vpow.bf16 %v8903_v37  ;;  %v6586_v10 = vpack.c.bf16 %v6544_v47, %v6540_v43  ;;  %v15060_v32 = vpop.f32.mrb[241].mxu0  ;;  %v15062_v41 = vpop.f32.mrb[241].mxu1  ;;  %v7157_v51 = vmul.bf16 %v10739_v36, %v7127_v39 }
 0x420   :  { %16622 = vst [vmem:[#allocation26_spill] sm:$0xff] %v15060_v32  ;;  %16623 = vst [vmem:[#allocation67_spill] sm:$0xff] %v15062_v41  ;;  %v10343_v58 = vpop.eup %10342  ;;  %v6663_v3 = vadd.bf16 1065369472, %v10341_v25  ;;  %10360 = vpow.bf16 %v8935_v16  ;;  %v15066_v61 = vpop.f32.mrb[242].mxu0  ;;  %v6852_v1 = vunpack.c.l.bf16 %v6836_v19  ;;  %v6854_v24 = vunpack.c.h.bf16 %v6836_v19 }
 0x421   :  { %16624 = vst [vmem:[#allocation68_spill] sm:$0xff] %v15066_v61  ;;  %v10345_v22 = vpop.eup %10344  ;;  %v10740_v43 = vld [vmem:[%s15595_s0 + $0x190] ss:$8 sps:$4 sm:$0xff]   ;;  %v7129_v27 = vmul.bf16 1065369472, %v10343_v58  ;;  %v7270_v32 = vsub.bf16 %v7157_v51, %v9451_v12 }
 0x422   :  { %v6708_v37 = vmul.bf16 %v10740_v43, %v6679_v52  ;;  %v9454_v47 = vld [vmem:[#allocation2 + $0x390] ss:$8 sps:$4 sm:$0xff]   ;;  %v10347_v34 = vpop.eup %10346  ;;  %v6681_v36 = vmul.bf16 1065369472, %v10345_v22  ;;  %v9456_v39 = vld [vmem:[#allocation2 + $0x194] ss:$8 sps:$4 sm:$0xff]   ;;  %10362 = vrcp.bf16 %v6663_v3  ;;  %v6898_v7 = vadd.f32 %v6854_v24, %v6852_v1 }
 0x423   :  { %v8904_v16 = vmul.bf16 3216621497, %v6586_v10  ;;  %v10349_v25 = vpop.eup %10348  ;;  %v7158_v61 = vmul.bf16 %v10740_v43, %v7129_v27  ;;  %v7131_v45 = vmul.bf16 1065369472, %v10347_v34  ;;  %v7286_v29 = vand.u32 2147450879, %v7270_v32 }
 0x424   :  { %v6821_v41 = vsub.bf16 %v6708_v37, %v9452_v20  ;;  %v10351_v19 = vpop.eup %10350  ;;  %v10741_v52 = vld [vmem:[%s15595_s0 + $0x194] ss:$8 sps:$4 sm:$0xff]   ;;  %v6683_v54 = vmul.bf16 1065369472, %v10349_v25  ;;  %v10742_v32 = vld [vmem:[%s15595_s0 + $0x1a0] ss:$8 sps:$4 sm:$0xff]  }
 0x425   :  { %v6709_v58 = vmul.bf16 %v10741_v52, %v6681_v36  ;;  %10364 = vpow.bf16 %v8904_v16  ;;  %v7271_v22 = vsub.bf16 %v7158_v61, %v9454_v47  ;;  %v7159_v51 = vmul.bf16 %v10741_v52, %v7131_v45  ;;  %v10353_v3 = vpop.eup %10352  ;;  %v9460_v37 = vld [vmem:[#allocation2 + $0x3a0] ss:$8 sps:$4 sm:$0xff]   ;;  %v15077_v47 = vpop.f32.mrb[242].mxu1 }
 0x426   :  { %v6837_v12 = vand.u32 2147450879, %v6821_v41  ;;  %v7133_v10 = vmul.bf16 1065369472, %v10351_v19  ;;  %v7302_v24 = vunpack.c.l.bf16 %v7286_v29  ;;  %v7304_v20 = vunpack.c.h.bf16 %v7286_v29  ;;  %16625 = vst [vmem:[#allocation112_spill] sm:$0xff] %v15077_v47 }
 0x427   :  { %v6822_v1 = vsub.bf16 %v6709_v58, %v9456_v39  ;;  %v6710_v43 = vmul.bf16 %v10742_v32, %v6683_v54  ;;  %v7287_v36 = vand.u32 2147450879, %v7271_v22  ;;  %v7272_v25 = vsub.bf16 %v7159_v51, %v9457_v11  ;;  %v10355_v2 = vpop.eup %10354  ;;  %v15080_v22 = vpop.f32.mrb[243].mxu0 }
 0x428   :  { %v6855_v27 = vunpack.c.l.bf16 %v6837_v12  ;;  %v6857_v34 = vunpack.c.h.bf16 %v6837_v12  ;;  %v7348_v16 = vadd.f32 %v7304_v20, %v7302_v24  ;;  %v7160_v45 = vmul.bf16 %v10742_v32, %v7133_v10  ;;  %v10357_v19 = vpop.eup %10356  ;;  %16626 = vst [vmem:[#allocation9_spill] sm:$0xff] %v15080_v22  ;;  %v15082_v11 = vpop.f32.mrb[243].mxu1 }
 0x429   :  { %v6838_v41 = vand.u32 2147450879, %v6822_v1  ;;  %v6823_v61 = vsub.bf16 %v6710_v43, %v9458_v26  ;;  %v7305_v39 = vunpack.c.l.bf16 %v7287_v36  ;;  %v7307_v52 = vunpack.c.h.bf16 %v7287_v36  ;;  %16627 = vst [vmem:[#allocation113_spill] sm:$0xff] %v15082_v11 }
 0x42a   :  { %v6884_v29 = vadd.f32 %v14980_v33, %v6855_v27  ;;  %v7288_v58 = vand.u32 2147450879, %v7272_v25  ;;  %v10359_v60 = vpop.eup %10358  ;;  %v7273_v12 = vsub.bf16 %v7160_v45, %v9460_v37 }
 0x42b   :  { %v6856_v54 = vunpack.c.l.bf16 %v6838_v41  ;;  %v6858_v21 = vunpack.c.h.bf16 %v6838_v41  ;;  %v6839_v8 = vand.u32 2147450879, %v6823_v61  ;;  %v10361_v51 = vpop.eup %10360  ;;  %v7334_v10 = vadd.f32 %v14985_v28, %v7305_v39  ;;  %v9462_v28 = vld [vmem:[#allocation2 + $0x1a4] ss:$8 sps:$4 sm:$0xff]  }
 0x42c   :  { %v6885_v26 = vadd.f32 %v6884_v29, %v6857_v34  ;;  %v7306_v24 = vunpack.c.l.bf16 %v7288_v58  ;;  %v7308_v20 = vunpack.c.h.bf16 %v7288_v58  ;;  %v7289_v43 = vand.u32 2147450879, %v7273_v12 }
 0x42d   :  { %v6899_v1 = vadd.f32 %v6898_v7, %v6856_v54  ;;  %v6859_v33 = vunpack.c.l.bf16 %v6839_v8  ;;  %v6861_v32 = vunpack.c.h.bf16 %v6839_v8  ;;  %v10363_v27 = vpop.eup %10362  ;;  %v7335_v36 = vadd.f32 %v7334_v10, %v7307_v52  ;;  %v15089_v52 = vpop.f32.mrb[244].mxu0 }
 0x42e   :  { %v7349_v25 = vadd.f32 %v7348_v16, %v7306_v24  ;;  %v7113_v41 = vadd.bf16 1065369472, %v10353_v3  ;;  %v6664_v61 = vadd.bf16 1065369472, %v10355_v2  ;;  %v7309_v22 = vunpack.c.l.bf16 %v7289_v43  ;;  %v15091_v3 = vpop.f32.mrb[244].mxu1 }
 0x42f   :  { %v6900_v37 = vadd.f32 %v6899_v1, %v6858_v21  ;;  %v6886_v45 = vadd.f32 %v6885_v26, %v6859_v33  ;;  %v7311_v47 = vunpack.c.h.bf16 %v7289_v43  ;;  %v6685_v34 = vmul.bf16 1065369472, %v10363_v27  ;;  %16628 = vst [vmem:[#allocation25_spill] sm:$0xff] %v15091_v3  ;;  %v15096_v21 = vld [vmem:[%s15595_s0 + $0x1a4] ss:$8 sps:$4 sm:$0xff]   ;;  %v15108_v26 = vpop.f32.mrb[245].mxu1 }
 0x430   :  { %v10365_v11 = vpop.eup %10364  ;;  %v15085_v13 = vadd.f32 %v7349_v25, %v7308_v20  ;;  %10366 = vrcp.bf16 %v7113_v41  ;;  %v7114_v29 = vadd.bf16 1065369472, %v10357_v19  ;;  %v7336_v8 = vadd.f32 %v7335_v36, %v7309_v22  ;;  %v15106_v22 = vpop.f32.mrb[245].mxu0  ;;  %16631 = vst [vmem:[#allocation70_spill] sm:$0xff] %v15108_v26  ;;  %v16638_v33 = vld [vmem:[#allocation88_spill] sm:$0xff]  ;;  %v16641_v36 = vld [vmem:[#allocation85_spill] sm:$0xff] }
 0x431   :  { %v15087_v7 = vadd.f32 %v6886_v45, %v6861_v32  ;;  %10368 = vrcp.bf16 %v6664_v61  ;;  %v6665_v39 = vadd.bf16 1065369472, %v10359_v60  ;;  %v6711_v2 = vmul.bf16 %v15096_v21, %v6685_v34  ;;  %16630 = vst [vmem:[#allocation69_spill] sm:$0xff] %v15106_v22  ;;  %v15114_v20 = vpop.f32.mrb[246].mxu0  ;;  %v15116_v1 = vpop.f32.mrb[246].mxu1  ;;  %v16642_v41 = vld [vmem:[#allocation15_spill] sm:$0xff] }
 0x432   :  { %10370 = vrcp.bf16 %v7114_v29  ;;  %v7115_v16 = vadd.bf16 1065369472, %v10361_v51  ;;  %v6666_v58 = vadd.bf16 1065369472, %v10365_v11  ;;  %v15099_v19 = vadd.f32 %v7336_v8, %v7311_v47  ;;  %v16632_v11 = vld [vmem:[#allocation16_spill] sm:$0xff]  ;;  %16634 = vst [vmem:[#allocation71_spill] sm:$0xff] %v15114_v20 }
 0x433   :  { %10372 = vrcp.bf16 %v6665_v39  ;;  %v16629_v60 = vpack.c.bf16 %v15046_v30, %v15029_v63  ;;  %v6587_v12 = vpack.c.bf16 %v15050_v40, %v15036_v59  ;;  %v6824_v10 = vsub.bf16 %v6711_v2, %v9462_v28  ;;  %v16633_v47 = vld [vmem:[#allocation84_spill] sm:$0xff]  ;;  %16635 = vst [vmem:[#allocation12_spill] sm:$0xff] %v15116_v1  ;;  %v16637_v59 = vld [vmem:[#allocation87_spill] sm:$0xff]  ;;  %v15122_v43 = vpop.f32.mrb[247].mxu0  ;;  %v15124_v27 = vpop.f32.mrb[247].mxu1  ;;  %v16643_v61 = vld [vmem:[#allocation89_spill] sm:$0xff] }
 0x434   :  { %10374 = vrcp.bf16 %v7115_v16  ;;  %v7037_v51 = vpack.c.bf16 %v15054_v53, %v15040_v46  ;;  %v6550_v24 = vadd.f32 %v16633_v47, %v16632_v11  ;;  %v16636_v30 = vld [vmem:[#allocation52_spill] sm:$0xff]  ;;  %v6552_v32 = vadd.f32 %v16638_v33, %v16632_v11  ;;  %16639 = vst [vmem:[#allocation27_spill] sm:$0xff] %v15122_v43  ;;  %16640 = vst [vmem:[#allocation63_spill] sm:$0xff] %v15124_v27  ;;  %v16644_v34 = vld [vmem:[#allocation53_spill] sm:$0xff] }
 0x435   :  { %v8936_v54 = vmul.bf16 3216621497, %v16629_v60  ;;  %10376 = vrcp.bf16 %v6666_v58  ;;  %v8905_v63 = vmul.bf16 3216621497, %v6587_v12  ;;  %v7000_v40 = vadd.f32 %v16637_v59, %v16636_v30  ;;  %v16645_v28 = vld [vmem:[#allocation90_spill] sm:$0xff]  ;;  %v16646_v8 = vld [vmem:[#allocation96_spill] sm:$0xff] }
 0x436   :  { %v6840_v46 = vand.u32 2147450879, %v6824_v10  ;;  %v8937_v53 = vmul.bf16 3216621497, %v7037_v51  ;;  %v7002_v25 = vadd.f32 %v16641_v36, %v16636_v30  ;;  %v6554_v45 = vadd.f32 %v16643_v61, %v16642_v41  ;;  %v16647_v58 = vld [vmem:[#allocation92_spill] sm:$0xff]  ;;  %v16648_v51 = vld [vmem:[#allocation18_spill] sm:$0xff] }
 0x437   :  { %10378 = vpow.bf16 %v8936_v54  ;;  %v7004_v29 = vadd.f32 %v16645_v28, %v16644_v34  ;;  %v6556_v39 = vadd.f32 %v16646_v8, %v16642_v41  ;;  %v7006_v60 = vadd.f32 %v16647_v58, %v16644_v34  ;;  %v16649_v11 = vld [vmem:[#allocation93_spill] sm:$0xff]  ;;  %v16650_v59 = vld [vmem:[#allocation60_spill] sm:$0xff]  ;;  %v16651_v33 = vld [vmem:[#allocation91_spill] sm:$0xff] }
 0x438   :  { %10380 = vpow.bf16 %v8905_v63  ;;  %v6860_v2 = vunpack.c.l.bf16 %v6840_v46  ;;  %v6862_v16 = vunpack.c.h.bf16 %v6840_v46  ;;  %v6588_v54 = vpack.c.bf16 %v6554_v45, %v6550_v24  ;;  %v16652_v41 = vld [vmem:[#allocation94_spill] sm:$0xff]  ;;  %v15146_v46 = vpop.f32.mrb[248].mxu0  ;;  %v16655_v34 = vld [vmem:[#allocation95_spill] sm:$0xff]  ;;  %v16657_v58 = vld [vmem:[#allocation100_spill] sm:$0xff] }
 0x439   :  { %10382 = vpow.bf16 %v8937_v53  ;;  %v7038_v12 = vpack.c.bf16 %v7004_v29, %v7000_v40  ;;  %v6589_v10 = vpack.c.bf16 %v6556_v39, %v6552_v32  ;;  %v6560_v47 = vadd.f32 %v16649_v11, %v16648_v51  ;;  %16653 = vst [vmem:[#allocation114_spill] sm:$0xff] %v15146_v46  ;;  %v15148_v53 = vpop.f32.mrb[248].mxu1  ;;  %v9463_v8 = vld [vmem:[#allocation2 + $0x3a4] ss:$8 sps:$4 sm:$0xff]   ;;  %v9468_v46 = vld [vmem:[#allocation2 + $0x1b4] ss:$8 sps:$4 sm:$0xff]  }
 0x43a   :  { %v6901_v63 = vadd.f32 %v6900_v37, %v6860_v2  ;;  %v7039_v30 = vpack.c.bf16 %v7006_v60, %v7002_v25  ;;  %v15140_v36 = vadd.f32 %v16651_v33, %v16650_v59  ;;  %v15144_v61 = vadd.f32 %v16652_v41, %v16648_v51  ;;  %16654 = vst [vmem:[#allocation11_spill] sm:$0xff] %v15148_v53  ;;  %v16656_v2 = vld [vmem:[#allocation17_spill] sm:$0xff]  ;;  %v9464_v33 = vld [vmem:[#allocation2 + $0x1b0] ss:$8 sps:$4 sm:$0xff]  }
 0x43b   :  { %v10367_v24 = vpop.eup %10366  ;;  %v8906_v40 = vmul.bf16 3216621497, %v6588_v54  ;;  %v8938_v32 = vmul.bf16 3216621497, %v7038_v12  ;;  %v8907_v45 = vmul.bf16 3216621497, %v6589_v10  ;;  %v15152_v37 = vadd.f32 %v16655_v34, %v16650_v59 }
 0x43c   :  { %v10369_v25 = vpop.eup %10368  ;;  %v15154_v28 = vadd.f32 %v6901_v63, %v6862_v16  ;;  %v7135_v29 = vmul.bf16 1065369472, %v10367_v24  ;;  %v8939_v39 = vmul.bf16 3216621497, %v7039_v30  ;;  %v6564_v60 = vadd.f32 %v16657_v58, %v16656_v2  ;;  %v16658_v54 = vld [vmem:[#allocation61_spill] sm:$0xff]  ;;  %v16659_v12 = vld [vmem:[#allocation98_spill] sm:$0xff] }
 0x43d   :  { %v10371_v51 = vpop.eup %10370  ;;  %v6687_v11 = vmul.bf16 1065369472, %v10369_v25  ;;  %10384 = vpow.bf16 %v8906_v40  ;;  %v15160_v10 = vadd.f32 %v16659_v12, %v16658_v54  ;;  %v16660_v59 = vld [vmem:[#allocation99_spill] sm:$0xff]  ;;  %v15166_v16 = vpop.f32.mrb[249].mxu0 }
 0x43e   :  { %v15164_v41 = vadd.f32 %v16660_v59, %v16656_v2  ;;  %16661 = vst [vmem:[#allocation115_spill] sm:$0xff] %v15166_v16  ;;  %v15168_v63 = vpop.f32.mrb[249].mxu1  ;;  %v10373_v30 = vpop.eup %10372  ;;  %v7161_v24 = vmul.bf16 %v15096_v21, %v7135_v29  ;;  %v7137_v34 = vmul.bf16 1065369472, %v10371_v51  ;;  %v9466_v58 = vld [vmem:[#allocation2 + $0x3b0] ss:$8 sps:$4 sm:$0xff]   ;;  %10386 = vpow.bf16 %v8938_v32 }
 0x43f   :  { %16662 = vst [vmem:[#allocation38_spill] sm:$0xff] %v15168_v63  ;;  %v6590_v25 = vpack.c.bf16 %v6564_v60, %v6560_v47  ;;  %v15171_v40 = vpop.f32.mrb[250].mxu0  ;;  %v10375_v53 = vpop.eup %10374  ;;  %v10744_v12 = vld [vmem:[%s15595_s0 + $0x1b0] ss:$8 sps:$4 sm:$0xff]   ;;  %v6689_v59 = vmul.bf16 1065369472, %v10373_v30  ;;  %10388 = vpow.bf16 %v8907_v45 }
 0x440   :  { %16663 = vst [vmem:[#allocation72_spill] sm:$0xff] %v15171_v40  ;;  %v6712_v2 = vmul.bf16 %v10744_v12, %v6687_v11  ;;  %v10377_v16 = vpop.eup %10376  ;;  %v7274_v21 = vsub.bf16 %v7161_v24, %v9463_v8  ;;  %v7162_v29 = vmul.bf16 %v10744_v12, %v7137_v34  ;;  %v7139_v51 = vmul.bf16 1065369472, %v10375_v53  ;;  %v9469_v32 = vld [vmem:[#allocation2 + $0x3b4] ss:$8 sps:$4 sm:$0xff]  }
 0x441   :  { %10390 = vpow.bf16 %v8939_v39  ;;  %v10745_v40 = vld [vmem:[%s15595_s0 + $0x1b4] ss:$8 sps:$4 sm:$0xff]   ;;  %v6691_v11 = vmul.bf16 1065369472, %v10377_v16  ;;  %v9470_v30 = vld [vmem:[#allocation2 + $0x1c0] ss:$8 sps:$4 sm:$0xff]  }
 0x442   :  { %v10379_v47 = vpop.eup %10378  ;;  %v6825_v60 = vsub.bf16 %v6712_v2, %v9464_v33  ;;  %v6713_v26 = vmul.bf16 %v10745_v40, %v6689_v59  ;;  %v15181_v27 = vmul.bf16 3216621497, %v6590_v25  ;;  %v7290_v43 = vand.u32 2147450879, %v7274_v21  ;;  %v15186_v39 = vld [vmem:[%s15595_s0 + $0x1c0] ss:$8 sps:$4 sm:$0xff]  }
 0x443   :  { %v10381_v45 = vpop.eup %10380  ;;  %v7275_v63 = vsub.bf16 %v7162_v29, %v9466_v58  ;;  %v7163_v1 = vmul.bf16 %v10745_v40, %v7139_v51  ;;  %v7116_v8 = vadd.bf16 1065369472, %v10379_v47  ;;  %v6714_v33 = vmul.bf16 %v15186_v39, %v6691_v11  ;;  %v15190_v47 = vpop.f32.mrb[250].mxu1 }
 0x444   :  { %v10383_v24 = vpop.eup %10382  ;;  %v6841_v53 = vand.u32 2147450879, %v6825_v60  ;;  %v6826_v34 = vsub.bf16 %v6713_v26, %v9468_v46  ;;  %v6667_v12 = vadd.bf16 1065369472, %v10381_v45  ;;  %v7310_v16 = vunpack.c.l.bf16 %v7290_v43 }
 0x445   :  { %v7312_v2 = vunpack.c.h.bf16 %v7290_v43  ;;  %v7291_v25 = vand.u32 2147450879, %v7275_v63  ;;  %v7276_v59 = vsub.bf16 %v7163_v1, %v9469_v32  ;;  %v6827_v40 = vsub.bf16 %v6714_v33, %v9470_v30  ;;  %v15196_v30 = vpop.f32.mrb[251].mxu1 }
 0x446   :  { %v6863_v20 = vunpack.c.l.bf16 %v6841_v53  ;;  %v6865_v21 = vunpack.c.h.bf16 %v6841_v53  ;;  %v6842_v58 = vand.u32 2147450879, %v6826_v34  ;;  %v7351_v29 = vadd.f32 %v15085_v13, %v7310_v16  ;;  %v15194_v53 = vpop.f32.mrb[251].mxu0 }
 0x447   :  { %v7313_v51 = vunpack.c.l.bf16 %v7291_v25  ;;  %v7315_v26 = vunpack.c.h.bf16 %v7291_v25  ;;  %v7292_v46 = vand.u32 2147450879, %v7276_v59  ;;  %v6843_v45 = vand.u32 2147450879, %v6827_v40 }
 0x448   :  { %v6888_v60 = vadd.f32 %v15087_v7, %v6863_v20  ;;  %v6864_v22 = vunpack.c.l.bf16 %v6842_v58  ;;  %v6866_v11 = vunpack.c.h.bf16 %v6842_v58  ;;  %v10385_v3 = vpop.eup %10384  ;;  %v7352_v43 = vadd.f32 %v7351_v29, %v7312_v2 }
 0x449   :  { %v7338_v1 = vadd.f32 %v15099_v19, %v7313_v51  ;;  %v7314_v63 = vunpack.c.l.bf16 %v7292_v46  ;;  %v7316_v32 = vunpack.c.h.bf16 %v7292_v46  ;;  %v10387_v13 = vpop.eup %10386  ;;  %v6867_v16 = vunpack.c.l.bf16 %v6843_v45 }
 0x44a   :  { %v6889_v34 = vadd.f32 %v6888_v60, %v6865_v21  ;;  %v6903_v33 = vadd.f32 %v15154_v28, %v6864_v22  ;;  %v6869_v25 = vunpack.c.h.bf16 %v6843_v45  ;;  %v10389_v7 = vpop.eup %10388  ;;  %10392 = vrcp.bf16 %v7116_v8  ;;  %v16666_v60 = vld [vmem:[#allocation20_spill] sm:$0xff]  ;;  %v16667_v45 = vld [vmem:[#allocation46_spill] sm:$0xff] }
 0x44b   :  { %v15199_v20 = vadd.f32 %v7338_v1, %v7315_v26  ;;  %v7353_v59 = vadd.f32 %v7352_v43, %v7314_v63  ;;  %v7117_v2 = vadd.bf16 1065369472, %v10383_v24  ;;  %10394 = vrcp.bf16 %v6667_v12  ;;  %v16665_v12 = vld [vmem:[#allocation101_spill] sm:$0xff]  ;;  %v15224_v63 = vpop.f32.mrb[252].mxu1 }
 0x44c   :  { %v10391_v58 = vpop.eup %10390  ;;  %v15201_v19 = vadd.f32 %v6903_v33, %v6866_v11  ;;  %v6890_v40 = vadd.f32 %v6889_v34, %v6867_v16  ;;  %v6668_v29 = vadd.bf16 1065369472, %v10385_v3  ;;  %v7118_v21 = vadd.bf16 1065369472, %v10387_v13 }
 0x44d   :  { %v15203_v51 = vadd.f32 %v7353_v59, %v7316_v32  ;;  %10396 = vrcp.bf16 %v7117_v2  ;;  %v6669_v46 = vadd.bf16 1065369472, %v10389_v7  ;;  %v7119_v28 = vadd.bf16 1065369472, %v10391_v58  ;;  %v16671_v58 = vld [vmem:[#allocation32_spill] sm:$0xff] }
 0x44e   :  { %v15205_v22 = vadd.f32 %v6890_v40, %v6869_v25  ;;  %10398 = vrcp.bf16 %v6668_v29  ;;  %v16664_v26 = vpack.c.bf16 %v15160_v10, %v15140_v36  ;;  %v6591_v24 = vpack.c.bf16 %v15164_v41, %v15144_v61  ;;  %v15222_v10 = vpop.f32.mrb[252].mxu0  ;;  %v16668_v41 = vld [vmem:[#allocation19_spill] sm:$0xff]  ;;  %v16670_v25 = vld [vmem:[#allocation28_spill] sm:$0xff] }
 0x44f   :  { %10400 = vrcp.bf16 %v7118_v21  ;;  %v7016_v3 = vadd.f32 %v16665_v12, %v16658_v54  ;;  %v6570_v11 = vadd.f32 %v14796_v57, %v16666_v60  ;;  %v7020_v43 = vadd.f32 %v14798_v42, %v16667_v45  ;;  %v15229_v32 = vpop.f32.mrb[253].mxu0  ;;  %v15231_v42 = vpop.f32.mrb[253].mxu1  ;;  %v9472_v12 = vld [vmem:[#allocation2 + $0x3c0] ss:$8 sps:$4 sm:$0xff]  }
 0x450   :  { %v8940_v8 = vmul.bf16 3216621497, %v16664_v26  ;;  %10402 = vrcp.bf16 %v6669_v46  ;;  %v6572_v1 = vadd.f32 %v14804_v44, %v16666_v60  ;;  %v7022_v36 = vadd.f32 %v14806_v15, %v16667_v45  ;;  %v16669_v44 = vld [vmem:[#allocation55_spill] sm:$0xff]  ;;  %v15240_v33 = vpop.f32.mrb[254].mxu0 }
 0x451   :  { %10404 = vrcp.bf16 %v7119_v28  ;;  %v8909_v61 = vmul.bf16 3216621497, %v6591_v24  ;;  %v7041_v54 = vpack.c.bf16 %v7016_v3, %v15152_v37  ;;  %v6574_v57 = vadd.f32 %v14808_v35, %v16668_v41  ;;  %v15242_v37 = vpop.f32.mrb[254].mxu1  ;;  %v16672_v3 = vld [vmem:[#allocation29_spill] sm:$0xff] }
 0x452   :  { %10406 = vpow.bf16 %v15181_v27  ;;  %v7024_v15 = vadd.f32 %v14810_v56, %v16669_v44  ;;  %v6576_v13 = vadd.f32 %v14814_v62, %v16668_v41  ;;  %v7026_v34 = vadd.f32 %v14816_v6, %v16669_v44  ;;  %v15246_v27 = vpop.f32.mrb[255].mxu0  ;;  %v15248_v59 = vpop.f32.mrb[255].mxu1 }
 0x453   :  { %10408 = vpow.bf16 %v8940_v8  ;;  %v8941_v35 = vmul.bf16 3216621497, %v7041_v54  ;;  %v6592_v16 = vpack.c.bf16 %v6574_v57, %v6570_v11  ;;  %v7400_v7 = vadd.f32 %v14837_v5, %v16670_v25  ;;  %v16674_v11 = vld [vmem:[#allocation102_spill] sm:$0xff] }
 0x454   :  { %10410 = vpow.bf16 %v8909_v61  ;;  %v7042_v56 = vpack.c.bf16 %v7024_v15, %v7020_v43  ;;  %v6593_v62 = vpack.c.bf16 %v6576_v13, %v6572_v1  ;;  %v7043_v2 = vpack.c.bf16 %v7026_v34, %v7022_v36  ;;  %v9474_v1 = vld [vmem:[#allocation2 + $0x1c4] ss:$8 sps:$4 sm:$0xff]   ;;  %v16675_v36 = vld [vmem:[#allocation103_spill] sm:$0xff] }
 0x455   :  { %10412 = vpow.bf16 %v8941_v35  ;;  %v8910_v6 = vmul.bf16 3216621497, %v6592_v16  ;;  %v7850_v40 = vadd.f32 %v14839_v17, %v16671_v58  ;;  %v15254_v29 = vadd.f32 %v14843_v49, %v16670_v25  ;;  %v10393_v21 = vpop.eup %10392  ;;  %v16673_v17 = vld [vmem:[#allocation33_spill] sm:$0xff]  ;;  %v9476_v25 = vld [vmem:[#allocation2 + $0x1d0] ss:$8 sps:$4 sm:$0xff]  }
 0x456   :  { %v8942_v46 = vmul.bf16 3216621497, %v7042_v56  ;;  %v8911_v5 = vmul.bf16 3216621497, %v6593_v62  ;;  %v8943_v28 = vmul.bf16 3216621497, %v7043_v2  ;;  %v15258_v26 = vadd.f32 %v14845_v48, %v16671_v58  ;;  %v10395_v8 = vpop.eup %10394 }
 0x457   :  { %v7141_v24 = vmul.bf16 1065369472, %v10393_v21  ;;  %10414 = vpow.bf16 %v8910_v6  ;;  %v7404_v60 = vadd.f32 %v14853_v55, %v16672_v3  ;;  %v7854_v45 = vadd.f32 %v16674_v11, %v16673_v17  ;;  %v16676_v48 = vld [vmem:[#allocation97_spill] sm:$0xff]  ;;  %v9478_v21 = vld [vmem:[#allocation2 + $0x3d0] ss:$8 sps:$4 sm:$0xff]  }
 0x458   :  { %v10397_v49 = vpop.eup %10396  ;;  %v6693_v43 = vmul.bf16 1065369472, %v10395_v8  ;;  %10416 = vpow.bf16 %v8942_v46  ;;  %v15266_v61 = vadd.f32 %v16675_v36, %v16672_v3  ;;  %v15270_v54 = vadd.f32 %v16676_v48, %v16673_v17  ;;  %v9475_v55 = vld [vmem:[#allocation2 + $0x3c4] ss:$8 sps:$4 sm:$0xff]   ;;  %v9480_v3 = vld [vmem:[#allocation2 + $0x1d4] ss:$8 sps:$4 sm:$0xff]  }
 0x459   :  { %v10399_v41 = vpop.eup %10398  ;;  %v7164_v57 = vmul.bf16 %v15186_v39, %v7141_v24  ;;  %v7143_v44 = vmul.bf16 1065369472, %v10397_v49  ;;  %10418 = vpow.bf16 %v8911_v5  ;;  %v7478_v15 = vpack.c.bf16 %v7404_v60, %v7400_v7  ;;  %v10747_v34 = vld [vmem:[%s15595_s0 + $0x1c4] ss:$8 sps:$4 sm:$0xff]   ;;  %v10748_v7 = vld [vmem:[%s15595_s0 + $0x1d0] ss:$8 sps:$4 sm:$0xff]  }
 0x45a   :  { %v10401_v13 = vpop.eup %10400  ;;  %v6715_v35 = vmul.bf16 %v10747_v34, %v6693_v43  ;;  %v6695_v16 = vmul.bf16 1065369472, %v10399_v41  ;;  %10420 = vpow.bf16 %v8943_v28  ;;  %v7928_v56 = vpack.c.bf16 %v7854_v45, %v7850_v40 }
 0x45b   :  { %v10403_v62 = vpop.eup %10402  ;;  %v7277_v2 = vsub.bf16 %v7164_v57, %v9472_v12  ;;  %v7165_v6 = vmul.bf16 %v10747_v34, %v7143_v44  ;;  %v7145_v58 = vmul.bf16 1065369472, %v10401_v13  ;;  %v15276_v39 = vmul.bf16 3216621497, %v7478_v15 }
 0x45c   :  { %v10405_v46 = vpop.eup %10404  ;;  %v6828_v5 = vsub.bf16 %v6715_v35, %v9474_v1  ;;  %v6716_v8 = vmul.bf16 %v10748_v7, %v6695_v16  ;;  %v6697_v24 = vmul.bf16 1065369472, %v10403_v62  ;;  %v15281_v60 = vmul.bf16 3216621497, %v7928_v56  ;;  %v10749_v1 = vld [vmem:[%s15595_s0 + $0x1d4] ss:$8 sps:$4 sm:$0xff]  }
 0x45d   :  { %v10407_v28 = vpop.eup %10406  ;;  %v7293_v40 = vand.u32 2147450879, %v7277_v2  ;;  %v7278_v17 = vsub.bf16 %v7165_v6, %v9475_v55  ;;  %v7166_v12 = vmul.bf16 %v10748_v7, %v7145_v58  ;;  %v7147_v11 = vmul.bf16 1065369472, %v10405_v46 }
 0x45e   :  { %v10409_v45 = vpop.eup %10408  ;;  %v6844_v49 = vand.u32 2147450879, %v6828_v5  ;;  %v6829_v43 = vsub.bf16 %v6716_v8, %v9476_v25  ;;  %v6717_v36 = vmul.bf16 %v10749_v1, %v6697_v24  ;;  %v6670_v48 = vadd.bf16 1065369472, %v10407_v28 }
 0x45f   :  { %v10411_v41 = vpop.eup %10410  ;;  %v7317_v57 = vunpack.c.l.bf16 %v7293_v40  ;;  %v7319_v44 = vunpack.c.h.bf16 %v7293_v40  ;;  %v7294_v15 = vand.u32 2147450879, %v7278_v17  ;;  %v7279_v13 = vsub.bf16 %v7166_v12, %v9478_v21  ;;  %v9481_v12 = vld [vmem:[#allocation2 + $0x3d4] ss:$8 sps:$4 sm:$0xff]  }
 0x460   :  { %v10413_v34 = vpop.eup %10412  ;;  %v6868_v35 = vunpack.c.l.bf16 %v6844_v49  ;;  %v6870_v16 = vunpack.c.h.bf16 %v6844_v49  ;;  %v6845_v55 = vand.u32 2147450879, %v6829_v43  ;;  %v6830_v56 = vsub.bf16 %v6717_v36, %v9480_v3 }
 0x461   :  { %v7340_v62 = vadd.f32 %v15199_v20, %v7317_v57  ;;  %v7318_v2 = vunpack.c.l.bf16 %v7294_v15  ;;  %v7320_v25 = vunpack.c.h.bf16 %v7294_v15  ;;  %v7295_v6 = vand.u32 2147450879, %v7279_v13 }
 0x462   :  { %v10415_v58 = vpop.eup %10414  ;;  %v6905_v46 = vadd.f32 %v15201_v19, %v6868_v35  ;;  %v6871_v5 = vunpack.c.l.bf16 %v6845_v55  ;;  %v6873_v7 = vunpack.c.h.bf16 %v6845_v55  ;;  %v6846_v8 = vand.u32 2147450879, %v6830_v56 }
 0x463   :  { %v10417_v24 = vpop.eup %10416  ;;  %v7341_v28 = vadd.f32 %v7340_v62, %v7319_v44  ;;  %v7355_v21 = vadd.f32 %v15203_v51, %v7318_v2  ;;  %v7321_v40 = vunpack.c.l.bf16 %v7295_v6  ;;  %v7323_v17 = vunpack.c.h.bf16 %v7295_v6 }
 0x464   :  { %v10419_v49 = vpop.eup %10418  ;;  %v6906_v3 = vadd.f32 %v6905_v46, %v6870_v16  ;;  %v6892_v20 = vadd.f32 %v15205_v22, %v6871_v5  ;;  %v6872_v43 = vunpack.c.l.bf16 %v6846_v8  ;;  %v6874_v36 = vunpack.c.h.bf16 %v6846_v8 }
 0x465   :  { %v10421_v57 = vpop.eup %10420  ;;  %v7356_v15 = vadd.f32 %v7355_v21, %v7320_v25  ;;  %v7342_v13 = vadd.f32 %v7341_v28, %v7321_v40  ;;  %v7167_v19 = vmul.bf16 %v10749_v1, %v7147_v11  ;;  %10422 = vrcp.bf16 %v6670_v48  ;;  %v16677_v1 = vld [vmem:[#allocation30_spill] sm:$0xff] }
 0x466   :  { %v15290_v35 = vadd.f32 %v6892_v20, %v6873_v7  ;;  %v6907_v55 = vadd.f32 %v6906_v3, %v6872_v43  ;;  %v7120_v44 = vadd.bf16 1065369472, %v10409_v45  ;;  %v6671_v56 = vadd.bf16 1065369472, %v10411_v41  ;;  %v16678_v41 = vld [vmem:[#allocation34_spill] sm:$0xff]  ;;  %v16682_v43 = vld [vmem:[#allocation39_spill] sm:$0xff] }
 0x467   :  { %v15292_v51 = vadd.f32 %v7342_v13, %v7323_v17  ;;  %v7280_v62 = vsub.bf16 %v7167_v19, %v9481_v12  ;;  %v7121_v2 = vadd.bf16 1065369472, %v10413_v34  ;;  %v6672_v6 = vadd.bf16 1065369472, %v10415_v58  ;;  %v16681_v17 = vld [vmem:[#allocation36_spill] sm:$0xff] }
 0x468   :  { %v15294_v16 = vadd.f32 %v6907_v55, %v6874_v36  ;;  %10424 = vrcp.bf16 %v7120_v44  ;;  %v7122_v22 = vadd.bf16 1065369472, %v10417_v24  ;;  %v6673_v46 = vadd.bf16 1065369472, %v10419_v49  ;;  %v9482_v3 = vld [vmem:[#allocation2 + $0x1e0] ss:$8 sps:$4 sm:$0xff]  }
 0x469   :  { %v7296_v5 = vand.u32 2147450879, %v7280_v62  ;;  %10426 = vrcp.bf16 %v6671_v56  ;;  %v7123_v25 = vadd.bf16 1065369472, %v10421_v57  ;;  %v7479_v11 = vpack.c.bf16 %v15266_v61, %v15254_v29  ;;  %v16685_v56 = vld [vmem:[#allocation106_spill] sm:$0xff] }
 0x46a   :  { %10428 = vrcp.bf16 %v7121_v2  ;;  %v7929_v45 = vpack.c.bf16 %v15270_v54, %v15258_v26  ;;  %v7410_v48 = vadd.f32 %v14894_v50, %v16677_v1  ;;  %v7860_v34 = vadd.f32 %v14896_v23, %v16678_v41  ;;  %v16679_v26 = vld [vmem:[#allocation31_spill] sm:$0xff]  ;;  %v16686_v2 = vld [vmem:[#allocation37_spill] sm:$0xff] }
 0x46b   :  { %v7322_v58 = vunpack.c.l.bf16 %v7296_v5  ;;  %v7324_v7 = vunpack.c.h.bf16 %v7296_v5  ;;  %10430 = vrcp.bf16 %v6672_v6  ;;  %v8961_v8 = vmul.bf16 3216621497, %v7479_v11  ;;  %v16680_v54 = vld [vmem:[#allocation35_spill] sm:$0xff]  ;;  %v16688_v11 = vld [vmem:[#allocation40_spill] sm:$0xff] }
 0x46c   :  { %10432 = vrcp.bf16 %v7122_v22  ;;  %v8993_v24 = vmul.bf16 3216621497, %v7929_v45  ;;  %v7412_v28 = vadd.f32 %v14898_v31, %v16677_v1  ;;  %v7862_v29 = vadd.f32 %v14900_v38, %v16678_v41  ;;  %v16687_v6 = vld [vmem:[#allocation107_spill] sm:$0xff]  ;;  %v16689_v45 = vld [vmem:[#allocation108_spill] sm:$0xff] }
 0x46d   :  { %v7357_v61 = vadd.f32 %v7356_v15, %v7322_v58  ;;  %10434 = vrcp.bf16 %v6673_v46  ;;  %v7414_v50 = vadd.f32 %v14906_v14, %v16679_v26  ;;  %v7864_v23 = vadd.f32 %v14908_v0, %v16680_v54 }
 0x46e   :  { %10436 = vrcp.bf16 %v7123_v25  ;;  %v7416_v21 = vadd.f32 %v14912_v18, %v16679_v26  ;;  %v7866_v40 = vadd.f32 %v14914_v4, %v16680_v54  ;;  %v7420_v31 = vadd.f32 %v14934_v9, %v16681_v17  ;;  %v16683_v18 = vld [vmem:[#allocation104_spill] sm:$0xff]  ;;  %v9484_v25 = vld [vmem:[#allocation2 + $0x3e0] ss:$8 sps:$4 sm:$0xff]   ;;  %v9487_v26 = vld [vmem:[#allocation2 + $0x3e4] ss:$8 sps:$4 sm:$0xff]  }
 0x46f   :  { %v15318_v12 = vadd.f32 %v7357_v61, %v7324_v7  ;;  %10438 = vpow.bf16 %v15276_v39  ;;  %v7480_v38 = vpack.c.bf16 %v7414_v50, %v7410_v48  ;;  %v7930_v49 = vpack.c.bf16 %v7864_v23, %v7860_v34  ;;  %v16684_v39 = vld [vmem:[#allocation105_spill] sm:$0xff]  ;;  %v9488_v50 = vld [vmem:[#allocation2 + $0x1f0] ss:$8 sps:$4 sm:$0xff]  }
 0x470   :  { %v10423_v14 = vpop.eup %10422  ;;  %10440 = vpow.bf16 %v15281_v60  ;;  %v7481_v0 = vpack.c.bf16 %v7416_v21, %v7412_v28  ;;  %v7931_v20 = vpack.c.bf16 %v7866_v40, %v7862_v29  ;;  %v7870_v36 = vadd.f32 %v16683_v18, %v16682_v43  ;;  %v10750_v60 = vld [vmem:[%s15595_s0 + $0x1e0] ss:$8 sps:$4 sm:$0xff]   ;;  %v10751_v40 = vld [vmem:[%s15595_s0 + $0x1e4] ss:$8 sps:$4 sm:$0xff]  }
 0x471   :  { %v6699_v57 = vmul.bf16 1065369472, %v10423_v14  ;;  %10442 = vpow.bf16 %v8961_v8  ;;  %v8962_v4 = vmul.bf16 3216621497, %v7480_v38  ;;  %v8994_v15 = vmul.bf16 3216621497, %v7930_v49 }
 0x472   :  { %10444 = vpow.bf16 %v8993_v24  ;;  %v8963_v9 = vmul.bf16 3216621497, %v7481_v0  ;;  %v8995_v13 = vmul.bf16 3216621497, %v7931_v20  ;;  %v15326_v19 = vadd.f32 %v16684_v39, %v16681_v17  ;;  %v16690_v48 = vld [vmem:[#allocation109_spill] sm:$0xff] }
 0x473   :  { %v10425_v55 = vpop.eup %10424  ;;  %v6718_v44 = vmul.bf16 %v10750_v60, %v6699_v57  ;;  %10446 = vpow.bf16 %v8962_v4  ;;  %v15333_v62 = vadd.f32 %v16685_v56, %v16682_v43  ;;  %v7424_v22 = vadd.f32 %v16687_v6, %v16686_v2  ;;  %v9486_v8 = vld [vmem:[#allocation2 + $0x1e4] ss:$8 sps:$4 sm:$0xff]   ;;  %v9490_v20 = vld [vmem:[#allocation2 + $0x3f0] ss:$8 sps:$4 sm:$0xff]  }
 0x474   :  { %v10427_v46 = vpop.eup %10426  ;;  %v7149_v5 = vmul.bf16 1065369472, %v10425_v55  ;;  %10448 = vpow.bf16 %v8994_v15  ;;  %v7874_v1 = vadd.f32 %v16689_v45, %v16688_v11  ;;  %v15341_v41 = vadd.f32 %v16690_v48, %v16686_v2  ;;  %v10752_v15 = vld [vmem:[%s15595_s0 + $0x1f0] ss:$8 sps:$4 sm:$0xff]  }
 0x475   :  { %v10429_v34 = vpop.eup %10428  ;;  %v6831_v58 = vsub.bf16 %v6718_v44, %v9482_v3  ;;  %v6701_v7 = vmul.bf16 1065369472, %v10427_v46  ;;  %10450 = vpow.bf16 %v8963_v9  ;;  %v7482_v24 = vpack.c.bf16 %v7424_v22, %v7420_v31 }
 0x476   :  { %v10431_v28 = vpop.eup %10430  ;;  %v7168_v29 = vmul.bf16 %v10750_v60, %v7149_v5  ;;  %v7151_v61 = vmul.bf16 1065369472, %v10429_v34  ;;  %10452 = vpow.bf16 %v8995_v13  ;;  %v7932_v54 = vpack.c.bf16 %v7874_v1, %v7870_v36 }
 0x477   :  { %v10433_v23 = vpop.eup %10432  ;;  %v6847_v21 = vand.u32 2147450879, %v6831_v58  ;;  %v6719_v17 = vmul.bf16 %v10751_v40, %v6701_v7  ;;  %v6703_v38 = vmul.bf16 1065369472, %v10431_v28  ;;  %v15346_v49 = vmul.bf16 3216621497, %v7482_v24 }
 0x478   :  { %v10435_v14 = vpop.eup %10434  ;;  %v7281_v3 = vsub.bf16 %v7168_v29, %v9484_v25  ;;  %v7169_v31 = vmul.bf16 %v10751_v40, %v7151_v61  ;;  %v7153_v0 = vmul.bf16 1065369472, %v10433_v23  ;;  %v15348_v43 = vmul.bf16 3216621497, %v7932_v54  ;;  %v9492_v28 = vld [vmem:[#allocation2 + $0x1f4] ss:$8 sps:$4 sm:$0xff]  }
 0x479   :  { %v10437_v18 = vpop.eup %10436  ;;  %v6875_v57 = vunpack.c.l.bf16 %v6847_v21  ;;  %v6877_v36 = vunpack.c.h.bf16 %v6847_v21  ;;  %v6832_v4 = vsub.bf16 %v6719_v17, %v9486_v8  ;;  %v6720_v9 = vmul.bf16 %v10752_v15, %v6703_v38  ;;  %v15359_v17 = vld [vmem:[%s15595_s0 + $0x1f4] ss:$8 sps:$4 sm:$0xff]  }
 0x47a   :  { %v10439_v13 = vpop.eup %10438  ;;  %v7297_v39 = vand.u32 2147450879, %v7281_v3  ;;  %v7282_v55 = vsub.bf16 %v7169_v31, %v9487_v26  ;;  %v7170_v60 = vmul.bf16 %v10752_v15, %v7153_v0  ;;  %v6705_v44 = vmul.bf16 1065369472, %v10435_v14  ;;  %v9493_v14 = vld [vmem:[#allocation2 + $0x3f4] ss:$8 sps:$4 sm:$0xff]  }
 0x47b   :  { %v10441_v56 = vpop.eup %10440  ;;  %v6894_v2 = vadd.f32 %v15290_v35, %v6875_v57  ;;  %v6848_v6 = vand.u32 2147450879, %v6832_v4  ;;  %v6833_v22 = vsub.bf16 %v6720_v9, %v9488_v50  ;;  %v7155_v46 = vmul.bf16 1065369472, %v10437_v18 }
 0x47c   :  { %v10443_v5 = vpop.eup %10442  ;;  %v7325_v25 = vunpack.c.l.bf16 %v7297_v39  ;;  %v7327_v45 = vunpack.c.h.bf16 %v7297_v39  ;;  %v7298_v1 = vand.u32 2147450879, %v7282_v55  ;;  %v7283_v48 = vsub.bf16 %v7170_v60, %v9490_v20 }
 0x47d   :  { %v10445_v34 = vpop.eup %10444  ;;  %v6895_v58 = vadd.f32 %v6894_v2, %v6877_v36  ;;  %v6876_v7 = vunpack.c.l.bf16 %v6848_v6  ;;  %v6878_v8 = vunpack.c.h.bf16 %v6848_v6  ;;  %v6849_v24 = vand.u32 2147450879, %v6833_v22 }
 0x47e   :  { %v10447_v29 = vpop.eup %10446  ;;  %v7344_v61 = vadd.f32 %v15292_v51, %v7325_v25  ;;  %v7326_v26 = vunpack.c.l.bf16 %v7298_v1  ;;  %v7328_v54 = vunpack.c.h.bf16 %v7298_v1  ;;  %v7299_v35 = vand.u32 2147450879, %v7283_v48 }
 0x47f   :  { %v10449_v23 = vpop.eup %10448  ;;  %v6909_v50 = vadd.f32 %v15294_v16, %v6876_v7  ;;  %v6879_v21 = vunpack.c.l.bf16 %v6849_v24  ;;  %v6881_v40 = vunpack.c.h.bf16 %v6849_v24  ;;  %v6721_v38 = vmul.bf16 %v15359_v17, %v6705_v44 }
 0x480   :  { %v10451_v3 = vpop.eup %10450  ;;  %v7345_v31 = vadd.f32 %v7344_v61, %v7327_v45  ;;  %v7359_v51 = vadd.f32 %v15318_v12, %v7326_v26  ;;  %v7329_v0 = vunpack.c.l.bf16 %v7299_v35  ;;  %v7331_v20 = vunpack.c.h.bf16 %v7299_v35  ;;  %v16691_v45 = vld [vmem:[#allocation6_spill] sm:$0xff]  ;;  %v16693_v26 = vld [vmem:[#allocation41_spill] sm:$0xff] }
 0x481   :  { %v10453_v18 = vpop.eup %10452  ;;  %v6910_v57 = vadd.f32 %v6909_v50, %v6878_v8  ;;  %v6896_v36 = vadd.f32 %v6895_v58, %v6879_v21  ;;  %v6834_v16 = vsub.bf16 %v6721_v38, %v9492_v28  ;;  %v7171_v4 = vmul.bf16 %v15359_v17, %v7155_v46 }
 0x482   :  { %v7360_v15 = vadd.f32 %v7359_v51, %v7328_v54  ;;  %v7346_v9 = vadd.f32 %v7345_v31, %v7329_v0  ;;  %v7558_v39 = vadd.bf16 1065369472, %v10439_v13  ;;  %v8008_v55 = vadd.bf16 1065369472, %v10441_v56  ;;  %v16694_v54 = vld [vmem:[#allocation22_spill] sm:$0xff]  ;;  %v16697_v31 = vld [vmem:[#allocation5_spill] sm:$0xff] }
 0x483   :  { %v6897_v60 = vadd.f32 %v6896_v36, %v6881_v40  ;;  %v6850_v2 = vand.u32 2147450879, %v6834_v16  ;;  %v7284_v44 = vsub.bf16 %v7171_v4, %v9493_v14  ;;  %v7559_v6 = vadd.bf16 1065369472, %v10443_v5  ;;  %v16696_v40 = vld [vmem:[#allocation8_spill] sm:$0xff]  ;;  %v16701_v36 = vld [vmem:[#allocation7_spill] sm:$0xff] }
 0x484   :  { %v7347_v22 = vadd.f32 %v7346_v9, %v7331_v20  ;;  %10454 = vrcp.bf16 %v7558_v39  ;;  %v8009_v25 = vadd.bf16 1065369472, %v10445_v34  ;;  %v7560_v12 = vadd.bf16 1065369472, %v10447_v29  ;;  %v16692_v34 = vld [vmem:[#allocation110_spill] sm:$0xff]  ;;  %v16702_v4 = vld [vmem:[#allocation49_spill] sm:$0xff] }
 0x485   :  { %v6913_v1 = vadd.f32 %v6897_v60, %v16691_v45  ;;  %v6880_v48 = vunpack.c.l.bf16 %v6850_v2  ;;  %v6882_v7 = vunpack.c.h.bf16 %v6850_v2  ;;  %v7300_v58 = vand.u32 2147450879, %v7284_v44  ;;  %v16705_v60 = vld [vmem:[#allocation56_spill] sm:$0xff] }
 0x486   :  { %10456 = vrcp.bf16 %v8008_v55  ;;  %v8010_v8 = vadd.bf16 1065369472, %v10449_v23  ;;  %v7561_v46 = vadd.bf16 1065369472, %v10451_v3  ;;  %v8011_v24 = vadd.bf16 1065369472, %v10453_v18 }
 0x487   :  { %v15365_v28 = vadd.f32 %v7347_v22, %v6913_v1  ;;  %v6911_v13 = vadd.f32 %v6910_v57, %v6880_v48  ;;  %v7330_v56 = vunpack.c.l.bf16 %v7300_v58  ;;  %v7332_v61 = vunpack.c.h.bf16 %v7300_v58  ;;  %v16695_v23 = vld [vmem:[#allocation48_spill] sm:$0xff]  ;;  %v16706_v1 = vld [vmem:[#allocation50_spill] sm:$0xff] }
 0x488   :  { %10458 = vrcp.bf16 %v7559_v6  ;;  %v7483_v5 = vpack.c.bf16 %v15341_v41, %v15326_v19  ;;  %v7876_v29 = vadd.f32 %v16692_v34, %v16688_v11  ;;  %v7430_v35 = vadd.f32 %v16694_v54, %v16693_v26  ;;  %v16698_v19 = vld [vmem:[#allocation21_spill] sm:$0xff]  ;;  %v16699_v11 = vld [vmem:[#allocation24_spill] sm:$0xff]  ;;  %v16707_v48 = vld [vmem:[#allocation10_spill] sm:$0xff] }
 0x489   :  { %v6912_v50 = vadd.f32 %v6911_v13, %v6882_v7  ;;  %v7361_v21 = vadd.f32 %v7360_v15, %v7330_v56  ;;  %10460 = vrcp.bf16 %v8009_v25  ;;  %v7880_v38 = vadd.f32 %v16696_v40, %v16695_v23  ;;  %v16700_v57 = vld [vmem:[#allocation44_spill] sm:$0xff]  ;;  %v16703_v15 = vld [vmem:[#allocation23_spill] sm:$0xff]  ;;  %v9494_v25 = vld [vmem:[#allocation2 + $0x580] ss:$8 sps:$4 sm:$0xff]  }
 0x48a   :  { %10462 = vrcp.bf16 %v7560_v12  ;;  %v8965_v14 = vmul.bf16 3216621497, %v7483_v5  ;;  %v7933_v3 = vpack.c.bf16 %v7876_v29, %v15333_v62  ;;  %v7432_v51 = vadd.f32 %v16697_v31, %v16693_v26  ;;  %v16704_v62 = vld [vmem:[#allocation111_spill] sm:$0xff]  ;;  %v9496_v26 = vld [vmem:[#allocation2 + $0x780] ss:$8 sps:$4 sm:$0xff]   ;;  %v16715_v31 = vld [vmem:[#allocation112_spill] sm:$0xff] }
 0x48b   :  { %v6914_v41 = vadd.f32 %v6912_v50, %v16698_v19  ;;  %v7362_v0 = vadd.f32 %v7361_v21, %v7332_v61  ;;  %10464 = vrcp.bf16 %v8010_v8  ;;  %v7882_v20 = vadd.f32 %v16699_v11, %v16695_v23  ;;  %v16709_v61 = vld [vmem:[#allocation66_spill] sm:$0xff]  ;;  %v16710_v54 = vld [vmem:[#allocation67_spill] sm:$0xff] }
 0x48c   :  { %10466 = vrcp.bf16 %v7561_v46  ;;  %v8997_v18 = vmul.bf16 3216621497, %v7933_v3  ;;  %v7434_v16 = vadd.f32 %v16701_v36, %v16700_v57  ;;  %v7884_v9 = vadd.f32 %v16703_v15, %v16702_v4  ;;  %v16711_v21 = vld [vmem:[#allocation26_spill] sm:$0xff]  ;;  %v16712_v40 = vld [vmem:[#allocation51_spill] sm:$0xff]  ;;  %v16714_v3 = vld [vmem:[#allocation57_spill] sm:$0xff] }
 0x48d   :  { %v15385_v39 = vadd.f32 %v7362_v0, %v6914_v41  ;;  %10468 = vrcp.bf16 %v8011_v24  ;;  %v7436_v55 = vadd.f32 %v16704_v62, %v16700_v57  ;;  %v7886_v2 = vadd.f32 %v16705_v60, %v16702_v4  ;;  %v9499_v4 = vld [vmem:[#allocation2 + $0x784] ss:$8 sps:$4 sm:$0xff]  }
 0x48e   :  { %10470 = vpow.bf16 %v15346_v49  ;;  %v7484_v44 = vpack.c.bf16 %v7434_v16, %v7430_v35  ;;  %v7934_v6 = vpack.c.bf16 %v7884_v9, %v7880_v38  ;;  %v7440_v7 = vadd.f32 %v16707_v48, %v16706_v1  ;;  %v16708_v49 = vld [vmem:[#allocation54_spill] sm:$0xff]  ;;  %v16713_v38 = vld [vmem:[#allocation68_spill] sm:$0xff] }
 0x48f   :  { %v10455_v22 = vpop.eup %10454  ;;  %10472 = vpow.bf16 %v15348_v43  ;;  %v7485_v12 = vpack.c.bf16 %v7436_v55, %v7432_v51  ;;  %v7935_v45 = vpack.c.bf16 %v7886_v2, %v7882_v20  ;;  %v15397_v5 = vadd.f32 %v16709_v61, %v16708_v49  ;;  %v10754_v43 = vld [vmem:[%s15595_s0 + $0x180] ss:$8 sps:$4 sm:$0xff]   ;;  %v9498_v20 = vld [vmem:[#allocation2 + $0x584] ss:$8 sps:$4 sm:$0xff]   ;;  %v10756_v61 = vld [vmem:[%s15595_s0 + $0x190] ss:$8 sps:$4 sm:$0xff]  }
 0x490   :  { %v7575_v58 = vmul.bf16 1065369472, %v10455_v22  ;;  %10474 = vpow.bf16 %v8965_v14  ;;  %v8966_v8 = vmul.bf16 3216621497, %v7484_v44  ;;  %v8998_v46 = vmul.bf16 3216621497, %v7934_v6 }
 0x491   :  { %v10457_v24 = vpop.eup %10456  ;;  %10476 = vpow.bf16 %v8997_v18  ;;  %v8967_v13 = vmul.bf16 3216621497, %v7485_v12  ;;  %v8999_v56 = vmul.bf16 3216621497, %v7935_v45  ;;  %v15404_v35 = vadd.f32 %v16710_v54, %v16708_v49  ;;  %v16716_v18 = vld [vmem:[#allocation9_spill] sm:$0xff] }
 0x492   :  { %v7606_v34 = vmul.bf16 %v10754_v43, %v7575_v58  ;;  %v8025_v29 = vmul.bf16 1065369472, %v10457_v24  ;;  %10478 = vpow.bf16 %v8966_v8  ;;  %v15408_v23 = vadd.f32 %v16711_v21, %v16706_v1  ;;  %v10755_v2 = vld [vmem:[%s15595_s0 + $0x184] ss:$8 sps:$4 sm:$0xff]   ;;  %v9500_v22 = vld [vmem:[#allocation2 + $0x590] ss:$8 sps:$4 sm:$0xff]  }
 0x493   :  { %v10459_v50 = vpop.eup %10458  ;;  %10480 = vpow.bf16 %v8998_v46  ;;  %v7444_v14 = vadd.f32 %v16713_v38, %v16712_v40  ;;  %v15414_v51 = vadd.f32 %v16715_v31, %v16714_v3  ;;  %v15418_v57 = vadd.f32 %v16716_v18, %v16712_v40  ;;  %v9502_v1 = vld [vmem:[#allocation2 + $0x790] ss:$8 sps:$4 sm:$0xff]   ;;  %v9504_v40 = vld [vmem:[#allocation2 + $0x594] ss:$8 sps:$4 sm:$0xff]  }
 0x494   :  { %v10461_v19 = vpop.eup %10460  ;;  %v7719_v41 = vsub.bf16 %v7606_v34, %v9494_v25  ;;  %v8056_v0 = vmul.bf16 %v10754_v43, %v8025_v29  ;;  %v7577_v11 = vmul.bf16 1065369472, %v10459_v50  ;;  %10482 = vpow.bf16 %v8967_v13 }
 0x495   :  { %v10463_v36 = vpop.eup %10462  ;;  %v8027_v16 = vmul.bf16 1065369472, %v10461_v19  ;;  %v7486_v15 = vpack.c.bf16 %v7444_v14, %v7440_v7  ;;  %v7936_v9 = vpack.c.bf16 %v15414_v51, %v15397_v5  ;;  %10484 = vpow.bf16 %v8999_v56  ;;  %v16722_v51 = vld [vmem:[#allocation59_spill] sm:$0xff] }
 0x496   :  { %v10465_v62 = vpop.eup %10464  ;;  %v7735_v55 = vand.u32 2147450879, %v7719_v41  ;;  %v8169_v60 = vsub.bf16 %v8056_v0, %v9496_v26  ;;  %v7607_v44 = vmul.bf16 %v10755_v2, %v7577_v11  ;;  %v7579_v6 = vmul.bf16 1065369472, %v10463_v36  ;;  %v10757_v41 = vld [vmem:[%s15595_s0 + $0x194] ss:$8 sps:$4 sm:$0xff]  }
 0x497   :  { %v10467_v25 = vpop.eup %10466  ;;  %v8057_v12 = vmul.bf16 %v10755_v2, %v8027_v16  ;;  %v8029_v45 = vmul.bf16 1065369472, %v10465_v62  ;;  %v15425_v48 = vmul.bf16 3216621497, %v7486_v15 }
 0x498   :  { %v10469_v7 = vpop.eup %10468  ;;  %v7751_v58 = vunpack.c.l.bf16 %v7735_v55  ;;  %v7753_v8 = vunpack.c.h.bf16 %v7735_v55  ;;  %v8185_v46 = vand.u32 2147450879, %v8169_v60  ;;  %v7720_v24 = vsub.bf16 %v7607_v44, %v9498_v20 }
 0x499   :  { %v10471_v13 = vpop.eup %10470  ;;  %v8170_v49 = vsub.bf16 %v8057_v12, %v9499_v4  ;;  %v7608_v43 = vmul.bf16 %v10756_v61, %v7579_v6  ;;  %v8058_v34 = vmul.bf16 %v10756_v61, %v8029_v45  ;;  %v7581_v29 = vmul.bf16 1065369472, %v10467_v25  ;;  %v9505_v4 = vld [vmem:[#allocation2 + $0x794] ss:$8 sps:$4 sm:$0xff]  }
 0x49a   :  { %v10473_v26 = vpop.eup %10472  ;;  %v7783_v54 = vadd.f32 %v7753_v8, %v7751_v58  ;;  %v8201_v50 = vunpack.c.l.bf16 %v8185_v46  ;;  %v8203_v56 = vunpack.c.h.bf16 %v8185_v46  ;;  %v7736_v21 = vand.u32 2147450879, %v7720_v24 }
 0x49b   :  { %v10475_v38 = vpop.eup %10474  ;;  %v8186_v14 = vand.u32 2147450879, %v8170_v49  ;;  %v7721_v31 = vsub.bf16 %v7608_v43, %v9500_v22  ;;  %v8171_v19 = vsub.bf16 %v8058_v34, %v9502_v1  ;;  %v7609_v0 = vmul.bf16 %v10757_v41, %v7581_v29 }
 0x49c   :  { %v10477_v11 = vpop.eup %10476  ;;  %v8233_v20 = vadd.f32 %v8203_v56, %v8201_v50  ;;  %v7752_v18 = vunpack.c.l.bf16 %v7736_v21  ;;  %v7754_v36 = vunpack.c.h.bf16 %v7736_v21  ;;  %v8031_v16 = vmul.bf16 1065369472, %v10469_v7 }
 0x49d   :  { %v10479_v15 = vpop.eup %10478  ;;  %v8202_v62 = vunpack.c.l.bf16 %v8186_v14  ;;  %v8204_v55 = vunpack.c.h.bf16 %v8186_v14  ;;  %v7737_v60 = vand.u32 2147450879, %v7721_v31  ;;  %v8187_v2 = vand.u32 2147450879, %v8171_v19 }
 0x49e   :  { %v10481_v44 = vpop.eup %10480  ;;  %v7798_v6 = vadd.f32 %v7754_v36, %v7752_v18  ;;  %v7722_v22 = vsub.bf16 %v7609_v0, %v9504_v40  ;;  %v8059_v25 = vmul.bf16 %v10757_v41, %v8031_v16  ;;  %v7562_v12 = vadd.bf16 1065369472, %v10471_v13 }
 0x49f   :  { %v8248_v45 = vadd.f32 %v8204_v55, %v8202_v62  ;;  %v7755_v1 = vunpack.c.l.bf16 %v7737_v60  ;;  %v7757_v58 = vunpack.c.h.bf16 %v7737_v60  ;;  %v8205_v8 = vunpack.c.l.bf16 %v8187_v2  ;;  %v10483_v46 = vpop.eup %10482  ;;  %v16718_v62 = vld [vmem:[#allocation58_spill] sm:$0xff] }
 0x4a0   :  { %v8207_v24 = vunpack.c.h.bf16 %v8187_v2  ;;  %v7738_v49 = vand.u32 2147450879, %v7722_v22  ;;  %v8172_v61 = vsub.bf16 %v8059_v25, %v9505_v4  ;;  %10486 = vrcp.bf16 %v7562_v12  ;;  %v10485_v50 = vpop.eup %10484  ;;  %v16717_v4 = vld [vmem:[#allocation113_spill] sm:$0xff] }
 0x4a1   :  { %v7784_v7 = vadd.f32 %v7783_v54, %v7755_v1  ;;  %v8234_v43 = vadd.f32 %v8233_v20, %v8205_v8  ;;  %v8012_v34 = vadd.bf16 1065369472, %v10473_v26  ;;  %v7563_v29 = vadd.bf16 1065369472, %v10475_v38 }
 0x4a2   :  { %v7756_v56 = vunpack.c.l.bf16 %v7738_v49  ;;  %v7758_v21 = vunpack.c.h.bf16 %v7738_v49  ;;  %v8188_v14 = vand.u32 2147450879, %v8172_v61  ;;  %v8013_v40 = vadd.bf16 1065369472, %v10477_v11 }
 0x4a3   :  { %v15433_v31 = vadd.f32 %v7784_v7, %v7757_v58  ;;  %v15435_v13 = vadd.f32 %v8234_v43, %v8207_v24  ;;  %10488 = vrcp.bf16 %v8012_v34  ;;  %v7564_v19 = vadd.bf16 1065369472, %v10479_v15  ;;  %v16727_v58 = vld [vmem:[#allocation63_spill] sm:$0xff]  ;;  %v16728_v24 = vld [vmem:[#allocation70_spill] sm:$0xff] }
 0x4a4   :  { %v7799_v41 = vadd.f32 %v7798_v6, %v7756_v56  ;;  %v8206_v0 = vunpack.c.l.bf16 %v8188_v14  ;;  %v8208_v18 = vunpack.c.h.bf16 %v8188_v14  ;;  %10490 = vrcp.bf16 %v7563_v29  ;;  %v16720_v6 = vld [vmem:[#allocation25_spill] sm:$0xff] }
 0x4a5   :  { %10492 = vrcp.bf16 %v8013_v40  ;;  %v8014_v54 = vadd.bf16 1065369472, %v10481_v44  ;;  %v7565_v20 = vadd.bf16 1065369472, %v10483_v46  ;;  %v8015_v26 = vadd.bf16 1065369472, %v10485_v50 }
 0x4a6   :  { %v15437_v38 = vadd.f32 %v7799_v41, %v7758_v21  ;;  %v8249_v36 = vadd.f32 %v8248_v45, %v8206_v0  ;;  %10494 = vrcp.bf16 %v7564_v19  ;;  %v7487_v11 = vpack.c.bf16 %v15418_v57, %v15408_v23  ;;  %v16719_v44 = vld [vmem:[#allocation62_spill] sm:$0xff]  ;;  %v16721_v57 = vld [vmem:[#allocation69_spill] sm:$0xff]  ;;  %v16726_v45 = vld [vmem:[#allocation27_spill] sm:$0xff] }
 0x4a7   :  { %10496 = vrcp.bf16 %v8014_v54  ;;  %v9000_v16 = vmul.bf16 3216621497, %v7936_v9  ;;  %v7896_v15 = vadd.f32 %v16717_v4, %v16714_v3  ;;  %v7450_v55 = vadd.f32 %v15089_v52, %v16718_v62  ;;  %v16723_v9 = vld [vmem:[#allocation71_spill] sm:$0xff]  ;;  %v16724_v3 = vld [vmem:[#allocation64_spill] sm:$0xff]  ;;  %v9506_v43 = vld [vmem:[#allocation2 + $0x5a0] ss:$8 sps:$4 sm:$0xff]  }
 0x4a8   :  { %v15448_v60 = vadd.f32 %v8249_v36, %v8208_v18  ;;  %10498 = vrcp.bf16 %v7565_v20  ;;  %v8969_v2 = vmul.bf16 3216621497, %v7487_v11  ;;  %v7900_v22 = vadd.f32 %v16720_v6, %v16719_v44  ;;  %v16725_v52 = vld [vmem:[#allocation12_spill] sm:$0xff]  ;;  %v16729_v56 = vld [vmem:[#allocation65_spill] sm:$0xff]  ;;  %v16730_v21 = vld [vmem:[#allocation114_spill] sm:$0xff] }
 0x4a9   :  { %10500 = vrcp.bf16 %v8015_v26  ;;  %v7937_v23 = vpack.c.bf16 %v7896_v15, %v15404_v35  ;;  %v7452_v5 = vadd.f32 %v16721_v57, %v16718_v62  ;;  %v7454_v25 = vadd.f32 %v16723_v9, %v16722_v51  ;;  %v10758_v19 = vld [vmem:[%s15595_s0 + $0x1a0] ss:$8 sps:$4 sm:$0xff]   ;;  %v16732_v20 = vld [vmem:[#allocation11_spill] sm:$0xff]  ;;  %v9510_v6 = vld [vmem:[#allocation2 + $0x5a4] ss:$8 sps:$4 sm:$0xff]  }
 0x4aa   :  { %10502 = vpow.bf16 %v15425_v48  ;;  %v7904_v12 = vadd.f32 %v16725_v52, %v16724_v3  ;;  %v7456_v1 = vadd.f32 %v16726_v45, %v16722_v51  ;;  %v7906_v8 = vadd.f32 %v16727_v58, %v16724_v3  ;;  %v16731_v54 = vld [vmem:[#allocation73_spill] sm:$0xff]  ;;  %v16733_v15 = vld [vmem:[#allocation115_spill] sm:$0xff]  ;;  %v16736_v3 = vld [vmem:[#allocation74_spill] sm:$0xff] }
 0x4ab   :  { %v10487_v46 = vpop.eup %10486  ;;  %10504 = vpow.bf16 %v9000_v16  ;;  %v9001_v35 = vmul.bf16 3216621497, %v7937_v23  ;;  %v7902_v49 = vadd.f32 %v16728_v24, %v16719_v44  ;;  %v7488_v61 = vpack.c.bf16 %v7454_v25, %v7450_v55  ;;  %v9508_v16 = vld [vmem:[#allocation2 + $0x7a0] ss:$8 sps:$4 sm:$0xff]   ;;  %v16735_v23 = vld [vmem:[#allocation72_spill] sm:$0xff] }
 0x4ac   :  { %v7583_v7 = vmul.bf16 1065369472, %v10487_v46  ;;  %10506 = vpow.bf16 %v8969_v2  ;;  %v7938_v48 = vpack.c.bf16 %v7904_v12, %v7900_v22  ;;  %v7489_v34 = vpack.c.bf16 %v7456_v1, %v7452_v5  ;;  %v16734_v22 = vld [vmem:[#allocation43_spill] sm:$0xff]  ;;  %v9511_v25 = vld [vmem:[#allocation2 + $0x7a4] ss:$8 sps:$4 sm:$0xff]  }
 0x4ad   :  { %10508 = vpow.bf16 %v9001_v35  ;;  %v8970_v29 = vmul.bf16 3216621497, %v7488_v61  ;;  %v7939_v50 = vpack.c.bf16 %v7906_v8, %v7902_v49  ;;  %v15468_v14 = vadd.f32 %v16730_v21, %v16729_v56  ;;  %v10759_v1 = vld [vmem:[%s15595_s0 + $0x1a4] ss:$8 sps:$4 sm:$0xff]   ;;  %v9512_v46 = vld [vmem:[#allocation2 + $0x5b0] ss:$8 sps:$4 sm:$0xff]  }
 0x4ae   :  { %v10489_v40 = vpop.eup %10488  ;;  %v7610_v41 = vmul.bf16 %v10758_v19, %v7583_v7  ;;  %v9002_v0 = vmul.bf16 3216621497, %v7938_v48  ;;  %v8971_v18 = vmul.bf16 3216621497, %v7489_v34  ;;  %v15475_v26 = vadd.f32 %v16732_v20, %v16731_v54  ;;  %v9514_v7 = vld [vmem:[#allocation2 + $0x7b0] ss:$8 sps:$4 sm:$0xff]  }
 0x4af   :  { %v10491_v36 = vpop.eup %10490  ;;  %v8033_v11 = vmul.bf16 1065369472, %v10489_v40  ;;  %10510 = vpow.bf16 %v8970_v29  ;;  %v9003_v4 = vmul.bf16 3216621497, %v7939_v50  ;;  %v15479_v62 = vadd.f32 %v16733_v15, %v16729_v56  ;;  %v10760_v50 = vld [vmem:[%s15595_s0 + $0x1b0] ss:$8 sps:$4 sm:$0xff]  }
 0x4b0   :  { %v10493_v55 = vpop.eup %10492  ;;  %v7723_v2 = vsub.bf16 %v7610_v41, %v9506_v43  ;;  %v7585_v44 = vmul.bf16 1065369472, %v10491_v36  ;;  %10512 = vpow.bf16 %v9002_v0  ;;  %v15483_v57 = vadd.f32 %v16735_v23, %v16734_v22 }
 0x4b1   :  { %v10495_v5 = vpop.eup %10494  ;;  %v8060_v51 = vmul.bf16 %v10758_v19, %v8033_v11  ;;  %v8035_v9 = vmul.bf16 1065369472, %v10493_v55  ;;  %10514 = vpow.bf16 %v8971_v18  ;;  %v15487_v52 = vadd.f32 %v15190_v47, %v16736_v3 }
 0x4b2   :  { %v10497_v12 = vpop.eup %10496  ;;  %v7739_v45 = vand.u32 2147450879, %v7723_v2  ;;  %v7611_v58 = vmul.bf16 %v10759_v1, %v7585_v44  ;;  %v7587_v8 = vmul.bf16 1065369472, %v10495_v5  ;;  %10516 = vpow.bf16 %v9003_v4 }
 0x4b3   :  { %v10499_v35 = vpop.eup %10498  ;;  %v8173_v24 = vsub.bf16 %v8060_v51, %v9508_v16  ;;  %v8061_v49 = vmul.bf16 %v10759_v1, %v8035_v9  ;;  %v8037_v61 = vmul.bf16 1065369472, %v10497_v12  ;;  %v7490_v43 = vpack.c.bf16 %v15483_v57, %v15468_v14  ;;  %v9516_v12 = vld [vmem:[#allocation2 + $0x5b4] ss:$8 sps:$4 sm:$0xff]  }
 0x4b4   :  { %v10501_v47 = vpop.eup %10500  ;;  %v7759_v48 = vunpack.c.l.bf16 %v7739_v45  ;;  %v7761_v34 = vunpack.c.h.bf16 %v7739_v45  ;;  %v7724_v29 = vsub.bf16 %v7611_v58, %v9510_v6  ;;  %v7612_v56 = vmul.bf16 %v10760_v50, %v7587_v8 }
 0x4b5   :  { %v10503_v21 = vpop.eup %10502  ;;  %v8189_v40 = vand.u32 2147450879, %v8173_v24  ;;  %v8174_v19 = vsub.bf16 %v8061_v49, %v9511_v25  ;;  %v8062_v41 = vmul.bf16 %v10760_v50, %v8037_v61  ;;  %v7589_v0 = vmul.bf16 1065369472, %v10499_v35  ;;  %v10761_v24 = vld [vmem:[%s15595_s0 + $0x1b4] ss:$8 sps:$4 sm:$0xff]  }
 0x4b6   :  { %v10505_v18 = vpop.eup %10504  ;;  %v7786_v20 = vadd.f32 %v15433_v31, %v7759_v48  ;;  %v7740_v36 = vand.u32 2147450879, %v7724_v29  ;;  %v7725_v11 = vsub.bf16 %v7612_v56, %v9512_v46  ;;  %v8039_v16 = vmul.bf16 1065369472, %v10501_v47  ;;  %v9517_v61 = vld [vmem:[#allocation2 + $0x7b4] ss:$8 sps:$4 sm:$0xff]  }
 0x4b7   :  { %v10507_v4 = vpop.eup %10506  ;;  %v8209_v15 = vunpack.c.l.bf16 %v8189_v40  ;;  %v8211_v55 = vunpack.c.h.bf16 %v8189_v40  ;;  %v8190_v2 = vand.u32 2147450879, %v8174_v19  ;;  %v8175_v44 = vsub.bf16 %v8062_v41, %v9514_v7 }
 0x4b8   :  { %v10509_v6 = vpop.eup %10508  ;;  %v7787_v23 = vadd.f32 %v7786_v20, %v7761_v34  ;;  %v7760_v5 = vunpack.c.l.bf16 %v7740_v36  ;;  %v7762_v51 = vunpack.c.h.bf16 %v7740_v36  ;;  %v7741_v9 = vand.u32 2147450879, %v7725_v11 }
 0x4b9   :  { %v8236_v25 = vadd.f32 %v15435_v13, %v8209_v15  ;;  %v8210_v45 = vunpack.c.l.bf16 %v8190_v2  ;;  %v8212_v1 = vunpack.c.h.bf16 %v8190_v2  ;;  %v8191_v58 = vand.u32 2147450879, %v8175_v44 }
 0x4ba   :  { %v10511_v31 = vpop.eup %10510  ;;  %v7801_v8 = vadd.f32 %v15437_v38, %v7760_v5  ;;  %v7763_v46 = vunpack.c.l.bf16 %v7741_v9  ;;  %v7765_v35 = vunpack.c.h.bf16 %v7741_v9  ;;  %v7613_v49 = vmul.bf16 %v10761_v24, %v7589_v0 }
 0x4bb   :  { %v10513_v7 = vpop.eup %10512  ;;  %v8237_v47 = vadd.f32 %v8236_v25, %v8211_v55  ;;  %v8251_v48 = vadd.f32 %v15448_v60, %v8210_v45  ;;  %v8213_v34 = vunpack.c.l.bf16 %v8191_v58  ;;  %v8215_v13 = vunpack.c.h.bf16 %v8191_v58 }
 0x4bc   :  { %v10515_v29 = vpop.eup %10514  ;;  %v7802_v50 = vadd.f32 %v7801_v8, %v7762_v51  ;;  %v7788_v56 = vadd.f32 %v7787_v23, %v7763_v46  ;;  %v7726_v40 = vsub.bf16 %v7613_v49, %v9516_v12  ;;  %v8063_v19 = vmul.bf16 %v10761_v24, %v8039_v16  ;;  %v16737_v16 = vld [vmem:[#allocation38_spill] sm:$0xff]  ;;  %v16739_v49 = vld [vmem:[#allocation77_spill] sm:$0xff] }
 0x4bd   :  { %v10517_v38 = vpop.eup %10516  ;;  %v8252_v41 = vadd.f32 %v8251_v48, %v8212_v1  ;;  %v8238_v20 = vadd.f32 %v8237_v47, %v8213_v34  ;;  %v7566_v36 = vadd.bf16 1065369472, %v10503_v21  ;;  %v8016_v11 = vadd.bf16 1065369472, %v10505_v18  ;;  %v16741_v47 = vld [vmem:[#allocation118_spill] sm:$0xff] }
 0x4be   :  { %v15504_v15 = vadd.f32 %v7788_v56, %v7765_v35  ;;  %v7742_v0 = vand.u32 2147450879, %v7726_v40  ;;  %v8176_v2 = vsub.bf16 %v8063_v19, %v9517_v61  ;;  %v7567_v44 = vadd.bf16 1065369472, %v10507_v4 }
 0x4bf   :  { %v15506_v55 = vadd.f32 %v8238_v20, %v8215_v13  ;;  %10518 = vrcp.bf16 %v7566_v36  ;;  %v8017_v60 = vadd.bf16 1065369472, %v10509_v6  ;;  %v7568_v5 = vadd.bf16 1065369472, %v10511_v31  ;;  %v9522_v36 = vld [vmem:[#allocation2 + $0x5c4] ss:$8 sps:$4 sm:$0xff]  }
 0x4c0   :  { %v7764_v9 = vunpack.c.l.bf16 %v7742_v0  ;;  %v8192_v51 = vand.u32 2147450879, %v8176_v2  ;;  %10520 = vrcp.bf16 %v8016_v11  ;;  %v7912_v23 = vadd.f32 %v16737_v16, %v16731_v54 }
 0x4c1   :  { %v7766_v12 = vunpack.c.h.bf16 %v7742_v0  ;;  %10522 = vrcp.bf16 %v7567_v44  ;;  %v8018_v21 = vadd.bf16 1065369472, %v10513_v7  ;;  %v7569_v18 = vadd.bf16 1065369472, %v10515_v29  ;;  %v9518_v29 = vld [vmem:[#allocation2 + $0x5c0] ss:$8 sps:$4 sm:$0xff]  }
 0x4c2   :  { %v7803_v25 = vadd.f32 %v7802_v50, %v7764_v9  ;;  %v8214_v45 = vunpack.c.l.bf16 %v8192_v51  ;;  %10524 = vrcp.bf16 %v8017_v60  ;;  %v8019_v1 = vadd.bf16 1065369472, %v10517_v38  ;;  %v10762_v38 = vld [vmem:[%s15595_s0 + $0x1c0] ss:$8 sps:$4 sm:$0xff]   ;;  %v9523_v60 = vld [vmem:[#allocation2 + $0x7c4] ss:$8 sps:$4 sm:$0xff]  }
 0x4c3   :  { %v8216_v4 = vunpack.c.h.bf16 %v8192_v51  ;;  %10526 = vrcp.bf16 %v7568_v5  ;;  %v7940_v6 = vpack.c.bf16 %v15487_v52, %v15475_v26  ;;  %v7466_v58 = vadd.f32 %v15194_v53, %v16734_v22  ;;  %v16738_v53 = vld [vmem:[#allocation83_spill] sm:$0xff]  ;;  %v10763_v51 = vld [vmem:[%s15595_s0 + $0x1c4] ss:$8 sps:$4 sm:$0xff]  }
 0x4c4   :  { %v15514_v31 = vadd.f32 %v7803_v25, %v7766_v12  ;;  %v8253_v8 = vadd.f32 %v8252_v41, %v8214_v45  ;;  %10528 = vrcp.bf16 %v8018_v21  ;;  %v7916_v54 = vadd.f32 %v15196_v30, %v16736_v3  ;;  %v9524_v12 = vld [vmem:[#allocation2 + $0x5d0] ss:$8 sps:$4 sm:$0xff]  }
 0x4c5   :  { %10530 = vrcp.bf16 %v7569_v18  ;;  %v7491_v46 = vpack.c.bf16 %v7466_v58, %v15479_v62  ;;  %v8972_v26 = vmul.bf16 3216621497, %v7490_v43  ;;  %v9004_v24 = vmul.bf16 3216621497, %v7940_v6  ;;  %v16740_v62 = vld [vmem:[#allocation80_spill] sm:$0xff] }
 0x4c6   :  { %v15519_v35 = vadd.f32 %v8253_v8, %v8216_v4  ;;  %10532 = vrcp.bf16 %v8019_v1  ;;  %v7941_v52 = vpack.c.bf16 %v7916_v54, %v7912_v23  ;;  %v7470_v22 = vadd.f32 %v15222_v10, %v16738_v53  ;;  %v9526_v1 = vld [vmem:[#allocation2 + $0x7d0] ss:$8 sps:$4 sm:$0xff]  }
 0x4c7   :  { %v7920_v61 = vadd.f32 %v15224_v63, %v16739_v49  ;;  %v8973_v7 = vmul.bf16 3216621497, %v7491_v46  ;;  %v7472_v30 = vadd.f32 %v15229_v32, %v16738_v53  ;;  %v7474_v3 = vadd.f32 %v15240_v33, %v16740_v62  ;;  %v10764_v8 = vld [vmem:[%s15595_s0 + $0x1d0] ss:$8 sps:$4 sm:$0xff]  }
 0x4c8   :  { %v7924_v48 = vadd.f32 %v15242_v37, %v16741_v47  ;;  %v9005_v14 = vmul.bf16 3216621497, %v7941_v52  ;;  %v15536_v57 = vadd.f32 %v15231_v42, %v16739_v49  ;;  %v7476_v10 = vadd.f32 %v15246_v27, %v16740_v62  ;;  %v9520_v37 = vld [vmem:[#allocation2 + $0x7c0] ss:$8 sps:$4 sm:$0xff]  }
 0x4c9   :  { %v15542_v63 = vadd.f32 %v15248_v59, %v16741_v47  ;;  %10534 = vpow.bf16 %v8972_v26  ;;  %v7492_v32 = vpack.c.bf16 %v7474_v3, %v7470_v22 }
 0x4ca   :  { %v10519_v43 = vpop.eup %10518  ;;  %v7942_v34 = vpack.c.bf16 %v7924_v48, %v7920_v61  ;;  %10536 = vpow.bf16 %v9004_v24  ;;  %v7493_v50 = vpack.c.bf16 %v7476_v10, %v7472_v30 }
 0x4cb   :  { %v10521_v33 = vpop.eup %10520  ;;  %v7591_v13 = vmul.bf16 1065369472, %v10519_v43  ;;  %v7943_v42 = vpack.c.bf16 %v15542_v63, %v15536_v57  ;;  %10538 = vpow.bf16 %v8973_v7  ;;  %v8974_v27 = vmul.bf16 3216621497, %v7492_v32  ;;  %v10767_v63 = vld [vmem:[%s15595_s0 + $0x1e4] ss:$8 sps:$4 sm:$0xff]  }
 0x4cc   :  { %v10523_v56 = vpop.eup %10522  ;;  %v8041_v40 = vmul.bf16 1065369472, %v10521_v33  ;;  %v9006_v19 = vmul.bf16 3216621497, %v7942_v34  ;;  %10540 = vpow.bf16 %v9005_v14  ;;  %v8975_v11 = vmul.bf16 3216621497, %v7493_v50 }
 0x4cd   :  { %v10525_v59 = vpop.eup %10524  ;;  %v7614_v41 = vmul.bf16 %v10762_v38, %v7591_v13  ;;  %v7593_v20 = vmul.bf16 1065369472, %v10523_v56  ;;  %10542 = vpow.bf16 %v8974_v27 }
 0x4ce   :  { %v10527_v0 = vpop.eup %10526  ;;  %v8064_v2 = vmul.bf16 %v10762_v38, %v8041_v40  ;;  %v8043_v44 = vmul.bf16 1065369472, %v10525_v59  ;;  %10544 = vpow.bf16 %v9006_v19  ;;  %v9528_v59 = vld [vmem:[#allocation2 + $0x5d4] ss:$8 sps:$4 sm:$0xff]  }
 0x4cf   :  { %v10529_v5 = vpop.eup %10528  ;;  %v7727_v9 = vsub.bf16 %v7614_v41, %v9518_v29  ;;  %v7615_v16 = vmul.bf16 %v10763_v51, %v7593_v20  ;;  %v7595_v23 = vmul.bf16 1065369472, %v10527_v0  ;;  %10546 = vpow.bf16 %v8975_v11  ;;  %v9529_v38 = vld [vmem:[#allocation2 + $0x7d4] ss:$8 sps:$4 sm:$0xff]  }
 0x4d0   :  { %v10531_v21 = vpop.eup %10530  ;;  %v8177_v18 = vsub.bf16 %v8064_v2, %v9520_v37  ;;  %v8065_v25 = vmul.bf16 %v10763_v51, %v8043_v44  ;;  %v8045_v45 = vmul.bf16 1065369472, %v10529_v5  ;;  %v10765_v44 = vld [vmem:[%s15595_s0 + $0x1d4] ss:$8 sps:$4 sm:$0xff]  }
 0x4d1   :  { %v10533_v4 = vpop.eup %10532  ;;  %v7743_v6 = vand.u32 2147450879, %v7727_v9  ;;  %v7728_v58 = vsub.bf16 %v7615_v16, %v9522_v36  ;;  %v7616_v54 = vmul.bf16 %v10764_v8, %v7595_v23  ;;  %v7597_v46 = vmul.bf16 1065369472, %v10531_v21 }
 0x4d2   :  { %v8193_v26 = vand.u32 2147450879, %v8177_v18  ;;  %v8178_v52 = vsub.bf16 %v8065_v25, %v9523_v60  ;;  %v8066_v24 = vmul.bf16 %v10764_v8, %v8045_v45  ;;  %v8047_v53 = vmul.bf16 1065369472, %v10533_v4 }
 0x4d3   :  { %v7767_v22 = vunpack.c.l.bf16 %v7743_v6  ;;  %v7769_v49 = vunpack.c.h.bf16 %v7743_v6  ;;  %v7744_v61 = vand.u32 2147450879, %v7728_v58  ;;  %v7729_v7 = vsub.bf16 %v7616_v54, %v9524_v12 }
 0x4d4   :  { %v8217_v30 = vunpack.c.l.bf16 %v8193_v26  ;;  %v8219_v62 = vunpack.c.h.bf16 %v8193_v26  ;;  %v8194_v3 = vand.u32 2147450879, %v8178_v52  ;;  %v8179_v47 = vsub.bf16 %v8066_v24, %v9526_v1  ;;  %v10535_v48 = vpop.eup %10534 }
 0x4d5   :  { %v7790_v14 = vadd.f32 %v15504_v15, %v7767_v22  ;;  %v7768_v10 = vunpack.c.l.bf16 %v7744_v61  ;;  %v7770_v43 = vunpack.c.h.bf16 %v7744_v61  ;;  %v7745_v32 = vand.u32 2147450879, %v7729_v7  ;;  %v10537_v34 = vpop.eup %10536 }
 0x4d6   :  { %v8240_v33 = vadd.f32 %v15506_v55, %v8217_v30  ;;  %v8218_v13 = vunpack.c.l.bf16 %v8194_v3  ;;  %v8220_v29 = vunpack.c.h.bf16 %v8194_v3  ;;  %v8195_v37 = vand.u32 2147450879, %v8179_v47  ;;  %v10539_v50 = vpop.eup %10538  ;;  %v9530_v47 = vld [vmem:[#allocation2 + $0x5e0] ss:$8 sps:$4 sm:$0xff]  }
 0x4d7   :  { %v7791_v56 = vadd.f32 %v7790_v14, %v7769_v49  ;;  %v7805_v40 = vadd.f32 %v15514_v31, %v7768_v10  ;;  %v7771_v27 = vunpack.c.l.bf16 %v7745_v32  ;;  %v7773_v19 = vunpack.c.h.bf16 %v7745_v32  ;;  %v10541_v41 = vpop.eup %10540  ;;  %v9532_v10 = vld [vmem:[#allocation2 + $0x7e0] ss:$8 sps:$4 sm:$0xff]  }
 0x4d8   :  { %v8241_v20 = vadd.f32 %v8240_v33, %v8219_v62  ;;  %v8255_v15 = vadd.f32 %v15519_v35, %v8218_v13  ;;  %v8221_v36 = vunpack.c.l.bf16 %v8195_v37  ;;  %v8223_v11 = vunpack.c.h.bf16 %v8195_v37  ;;  %v10543_v0 = vpop.eup %10542  ;;  %v9534_v33 = vld [vmem:[#allocation2 + $0x5e4] ss:$8 sps:$4 sm:$0xff]  }
 0x4d9   :  { %v7806_v2 = vadd.f32 %v7805_v40, %v7770_v43  ;;  %v7792_v55 = vadd.f32 %v7791_v56, %v7771_v27  ;;  %v7617_v60 = vmul.bf16 %v10765_v44, %v7597_v46  ;;  %v8067_v5 = vmul.bf16 %v10765_v44, %v8047_v53  ;;  %v10545_v31 = vpop.eup %10544  ;;  %v10766_v43 = vld [vmem:[%s15595_s0 + $0x1e0] ss:$8 sps:$4 sm:$0xff]   ;;  %v9535_v56 = vld [vmem:[#allocation2 + $0x7e4] ss:$8 sps:$4 sm:$0xff]  }
 0x4da   :  { %v8256_v9 = vadd.f32 %v8255_v15, %v8220_v29  ;;  %v8242_v51 = vadd.f32 %v8241_v20, %v8221_v36  ;;  %v7570_v16 = vadd.bf16 1065369472, %v10535_v48  ;;  %v8020_v23 = vadd.bf16 1065369472, %v10537_v34  ;;  %v10547_v12 = vpop.eup %10546 }
 0x4db   :  { %v15562_v21 = vadd.f32 %v7792_v55, %v7773_v19  ;;  %v7730_v35 = vsub.bf16 %v7617_v60, %v9528_v59  ;;  %v8180_v18 = vsub.bf16 %v8067_v5, %v9529_v38  ;;  %v7571_v25 = vadd.bf16 1065369472, %v10539_v50  ;;  %v9536_v59 = vld [vmem:[#allocation2 + $0x5f0] ss:$8 sps:$4 sm:$0xff]  }
 0x4dc   :  { %v15564_v45 = vadd.f32 %v8242_v51, %v8223_v11  ;;  %10548 = vrcp.bf16 %v7570_v16  ;;  %v8021_v1 = vadd.bf16 1065369472, %v10541_v41  ;;  %v7572_v58 = vadd.bf16 1065369472, %v10543_v0  ;;  %v10768_v0 = vld [vmem:[%s15595_s0 + $0x1f0] ss:$8 sps:$4 sm:$0xff]  }
 0x4dd   :  { %v7746_v4 = vand.u32 2147450879, %v7730_v35  ;;  %v8196_v6 = vand.u32 2147450879, %v8180_v18  ;;  %10550 = vrcp.bf16 %v8020_v23  ;;  %v8022_v8 = vadd.bf16 1065369472, %v10545_v31 }
 0x4de   :  { %10552 = vrcp.bf16 %v7571_v25  ;;  %v7573_v26 = vadd.bf16 1065369472, %v10547_v12  ;;  %v9007_v7 = vmul.bf16 3216621497, %v7943_v42  ;;  %v9538_v55 = vld [vmem:[#allocation2 + $0x7f0] ss:$8 sps:$4 sm:$0xff]  }
 0x4df   :  { %v7772_v54 = vunpack.c.l.bf16 %v7746_v4  ;;  %v8222_v46 = vunpack.c.l.bf16 %v8196_v6  ;;  %v7774_v52 = vunpack.c.h.bf16 %v7746_v4  ;;  %10554 = vrcp.bf16 %v8021_v1  ;;  %v9540_v1 = vld [vmem:[#allocation2 + $0x5f4] ss:$8 sps:$4 sm:$0xff]  }
 0x4e0   :  { %v8224_v53 = vunpack.c.h.bf16 %v8196_v6  ;;  %10556 = vrcp.bf16 %v7572_v58 }
 0x4e1   :  { %v7807_v24 = vadd.f32 %v7806_v2, %v7772_v54  ;;  %v8257_v22 = vadd.f32 %v8256_v9, %v8222_v46  ;;  %10558 = vrcp.bf16 %v8022_v8 }
 0x4e2   :  { %10560 = vrcp.bf16 %v7573_v26 }
 0x4e3   :  { %v7808_v49 = vadd.f32 %v7807_v24, %v7774_v52  ;;  %v15566_v61 = vadd.f32 %v8257_v22, %v8224_v53  ;;  %10562 = vpow.bf16 %v9007_v7 }
 0x4e7   :  { %v10549_v30 = vpop.eup %10548 }
 0x4e8   :  { %v10551_v62 = vpop.eup %10550  ;;  %v7599_v3 = vmul.bf16 1065369472, %v10549_v30 }
 0x4e9   :  { %v10553_v48 = vpop.eup %10552  ;;  %v8049_v14 = vmul.bf16 1065369472, %v10551_v62 }
 0x4ea   :  { %v7618_v32 = vmul.bf16 %v10766_v43, %v7599_v3  ;;  %v7601_v34 = vmul.bf16 1065369472, %v10553_v48  ;;  %v10555_v13 = vpop.eup %10554 }
 0x4eb   :  { %v8068_v29 = vmul.bf16 %v10766_v43, %v8049_v14  ;;  %v10557_v37 = vpop.eup %10556  ;;  %v8051_v50 = vmul.bf16 1065369472, %v10555_v13 }
 0x4ec   :  { %v7731_v57 = vsub.bf16 %v7618_v32, %v9530_v47  ;;  %v7619_v42 = vmul.bf16 %v10767_v63, %v7601_v34  ;;  %v10559_v40 = vpop.eup %10558  ;;  %v7603_v19 = vmul.bf16 1065369472, %v10557_v37 }
 0x4ed   :  { %v8181_v27 = vsub.bf16 %v8068_v29, %v9532_v10  ;;  %v10561_v38 = vpop.eup %10560  ;;  %v8069_v15 = vmul.bf16 %v10767_v63, %v8051_v50  ;;  %v8053_v36 = vmul.bf16 1065369472, %v10559_v40  ;;  %v10769_v40 = vld [vmem:[%s15595_s0 + $0x1f4] ss:$8 sps:$4 sm:$0xff]  }
 0x4ee   :  { %v7747_v41 = vand.u32 2147450879, %v7731_v57  ;;  %v7732_v20 = vsub.bf16 %v7619_v42, %v9534_v33  ;;  %v7620_v2 = vmul.bf16 %v10768_v0, %v7603_v19  ;;  %v7605_v44 = vmul.bf16 1065369472, %v10561_v38  ;;  %v10563_v4 = vpop.eup %10562 }
 0x4ef   :  { %v8197_v11 = vand.u32 2147450879, %v8181_v27  ;;  %v8182_v31 = vsub.bf16 %v8069_v15, %v9535_v56  ;;  %v8070_v23 = vmul.bf16 %v10768_v0, %v8053_v36  ;;  %v8023_v47 = vadd.bf16 1065369472, %v10563_v4  ;;  %v9541_v56 = vld [vmem:[#allocation2 + $0x7f4] ss:$8 sps:$4 sm:$0xff]  }
 0x4f0   :  { %v7775_v60 = vunpack.c.l.bf16 %v7747_v41  ;;  %v7748_v5 = vand.u32 2147450879, %v7732_v20  ;;  %v7777_v9 = vunpack.c.h.bf16 %v7747_v41  ;;  %v7733_v16 = vsub.bf16 %v7620_v2, %v9536_v59 }
 0x4f1   :  { %v8225_v51 = vunpack.c.l.bf16 %v8197_v11  ;;  %v8227_v35 = vunpack.c.h.bf16 %v8197_v11  ;;  %v8198_v25 = vand.u32 2147450879, %v8182_v31  ;;  %v8183_v8 = vsub.bf16 %v8070_v23, %v9538_v55 }
 0x4f2   :  { %v7794_v12 = vadd.f32 %v15562_v21, %v7775_v60  ;;  %v7776_v18 = vunpack.c.l.bf16 %v7748_v5  ;;  %v7749_v58 = vand.u32 2147450879, %v7733_v16  ;;  %v7621_v54 = vmul.bf16 %v15359_v17, %v7605_v44 }
 0x4f3   :  { %v8244_v6 = vadd.f32 %v15564_v45, %v8225_v51  ;;  %v7778_v26 = vunpack.c.h.bf16 %v7748_v5  ;;  %v8226_v24 = vunpack.c.l.bf16 %v8198_v25  ;;  %v8228_v22 = vunpack.c.h.bf16 %v8198_v25 }
 0x4f4   :  { %v7795_v46 = vadd.f32 %v7794_v12, %v7777_v9  ;;  %v7809_v52 = vadd.f32 %v7808_v49, %v7776_v18  ;;  %v7779_v7 = vunpack.c.l.bf16 %v7749_v58  ;;  %v8199_v30 = vand.u32 2147450879, %v8183_v8 }
 0x4f5   :  { %v8245_v53 = vadd.f32 %v8244_v6, %v8227_v35  ;;  %v8259_v62 = vadd.f32 %v15566_v61, %v8226_v24  ;;  %v7734_v3 = vsub.bf16 %v7621_v54, %v9540_v1  ;;  %v7781_v48 = vunpack.c.h.bf16 %v7749_v58 }
 0x4f6   :  { %v7810_v21 = vadd.f32 %v7809_v52, %v7778_v26  ;;  %v7796_v14 = vadd.f32 %v7795_v46, %v7779_v7  ;;  %v8229_v45 = vunpack.c.l.bf16 %v8199_v30  ;;  %10564 = vrcp.bf16 %v8023_v47 }
 0x4f7   :  { %v8260_v10 = vadd.f32 %v8259_v62, %v8228_v22  ;;  %v7750_v43 = vand.u32 2147450879, %v7734_v3  ;;  %v8231_v32 = vunpack.c.h.bf16 %v8199_v30 }
 0x4f8   :  { %v7797_v17 = vadd.f32 %v7796_v14, %v7781_v48  ;;  %v8246_v34 = vadd.f32 %v8245_v53, %v8229_v45 }
 0x4f9   :  { %v7780_v49 = vunpack.c.l.bf16 %v7750_v43  ;;  %v7782_v29 = vunpack.c.h.bf16 %v7750_v43 }
 0x4fa   :  { %v7813_v33 = vadd.f32 %v7797_v17, %v15365_v28  ;;  %v8247_v13 = vadd.f32 %v8246_v34, %v8231_v32 }
 0x4fb   :  { %v7811_v37 = vadd.f32 %v7810_v21, %v7780_v49 }
 0x4fc   :  { %v8263_v57 = vadd.f32 %v8247_v13, %v7813_v33 }
 0x4fd   :  { %v7812_v63 = vadd.f32 %v7811_v37, %v7782_v29 }
 0x4fe   :  { %8265 = vst [vmem:[%s15599_s4] sm:$0xff] %v8263_v57 }
 0x4ff   :  { %v7814_v61 = vadd.f32 %v7812_v63, %v15385_v39 }
 0x501   :  { %v10565_v42 = vpop.eup %10564 }
 0x502   :  { %v8055_v50 = vmul.bf16 1065369472, %v10565_v42 }
 0x504   :  { %v8071_v27 = vmul.bf16 %v10769_v40, %v8055_v50 }
 0x506   :  { %v8184_v28 = vsub.bf16 %v8071_v27, %v9541_v56 }
 0x508   :  { %v8200_v19 = vand.u32 2147450879, %v8184_v28 }
 0x50a   :  { %v8230_v59 = vunpack.c.l.bf16 %v8200_v19  ;;  %v8232_v38 = vunpack.c.h.bf16 %v8200_v19 }
 0x50c   :  { %v8261_v41 = vadd.f32 %v8260_v10, %v8230_v59 }
 0x50e   :  { %v8262_v20 = vadd.f32 %v8261_v41, %v8232_v38 }
 0x510   :  { %v8264_v15 = vadd.f32 %v8262_v20, %v7814_v61 }
 0x512   :  { %8266 = vst [vmem:[%s15599_s4 + $0x8] sm:$0xff] %v8264_v15 }
 0x513   :  { %8271 = vsyncpa [#allocation3], 1 }

</bundles_post_ra>
